<compile_context>
chip_gen: v7x
topology: tpu7x:2x2x1
jax: 0.10.0
libtpu: 0.0.40
codegen_flags: <defaults>
</compile_context>

<pallas_src>
import numpy as np
import jax
import jax.numpy as jnp
from jax.experimental import pallas as pl
from jax.experimental.pallas import tpu as pltpu


# ----------------------------- Pallas kernels -----------------------------

def conv_relu_pool_kernel(p_ref, w_ref, b_ref, o_ref):
    # p_ref: (8, bnp, K) bf16  -- 8 pool candidates x bnp pooled voxels x K taps
    # w_ref: (K, Cout) bf16, b_ref: (1, Cout) f32, o_ref: (bnp, Cout) bf16
    t, bnp, k = p_ref.shape
    cout = w_ref.shape[1]
    # Single large MXU matmul over all 8 pool candidates at once (f32 accumulate).
    y = jnp.dot(p_ref[...].reshape(t * bnp, k), w_ref[...],
                preferred_element_type=jnp.float32)          # (8*bnp, Cout)
    y = jnp.max(y.reshape(t, bnp, cout), axis=0)             # MaxPool3d(2): VPU max
    y = jnp.maximum(y + b_ref[...], 0.0)                     # bias + ReLU hoisted out of max
    o_ref[...] = y.astype(o_ref.dtype)


def mlp_kernel(x_ref, w1_ref, b1_ref, w2_ref, b2_ref, o_ref):
    # x: (bB, 2048) bf16; w1: (2048, 128) bf16; b1: (1, 128) f32
    # w2: (128, 128) bf16 (output cols zero-padded 3->128); b2: (1, 128) f32
    h = jnp.dot(x_ref[...], w1_ref[...], preferred_element_type=jnp.float32) + b1_ref[...]
    h = jnp.maximum(h, 0.0)
    o_ref[...] = jnp.dot(h, w2_ref[...], preferred_element_type=jnp.float32) + b2_ref[...]


# ------------------------------ pallas wrappers -----------------------------

_COMPILER_PARAMS = pltpu.CompilerParams(
    dimension_semantics=("parallel",),
    vmem_limit_bytes=32 * 1024 * 1024,
)


def conv_relu_pool(patches, w_mat, b_row, block_rows):
    # patches: (8, Np, K) bf16 -> (Np, Cout) bf16
    _, np_, k = patches.shape
    cout = w_mat.shape[1]
    bnp = min(block_rows, np_)
    assert np_ % bnp == 0
    return pl.pallas_call(
        conv_relu_pool_kernel,
        out_shape=jax.ShapeDtypeStruct((np_, cout), jnp.bfloat16),
        grid=(np_ // bnp,),
        in_specs=[
            pl.BlockSpec((8, bnp, k), lambda i: (0, i, 0)),
            pl.BlockSpec((k, cout), lambda i: (0, 0)),
            pl.BlockSpec((1, cout), lambda i: (0, 0)),
        ],
        out_specs=pl.BlockSpec((bnp, cout), lambda i: (i, 0)),
        compiler_params=_COMPILER_PARAMS,
    )(patches, w_mat, b_row)


def mlp(x, w1, b1, w2, b2):
    b, din = x.shape
    dhid, dout = w1.shape[1], w2.shape[1]
    bb = min(b, 256)
    return pl.pallas_call(
        mlp_kernel,
        out_shape=jax.ShapeDtypeStruct((b, dout), jnp.float32),
        grid=(pl.cdiv(b, bb),),
        in_specs=[
            pl.BlockSpec((bb, din), lambda i: (i, 0)),
            pl.BlockSpec((din, dhid), lambda i: (0, 0)),
            pl.BlockSpec((1, dhid), lambda i: (0, 0)),
            pl.BlockSpec((dhid, dout), lambda i: (0, 0)),
            pl.BlockSpec((1, dout), lambda i: (0, 0)),
        ],
        out_specs=pl.BlockSpec((bb, dout), lambda i: (i, 0)),
        compiler_params=_COMPILER_PARAMS,
    )(x, w1, b1, w2, b2)


# ------------------------------- glue (JAX) --------------------------------

def im2col_pool_patches(x):
    # x: (B, D, H, W, C) channels-last (bf16)
    #   -> (8, B*(D/2)*(H/2)*(W/2), 27*C) pool-candidate-major patches
    # TODO(synk): build these patches inside the conv kernel from a VMEM-resident
    # padded volume (shifted slices) to avoid the 27x HBM materialization; kept in
    # XLA glue here for lowering robustness (patches are bf16 to halve the traffic).
    B, D, H, W, C = x.shape
    xp = jnp.pad(x, ((0, 0), (1, 1), (1, 1), (1, 1), (0, 0)))
    cols = []
    for kd in range(3):
        for kh in range(3):
            for kw in range(3):
                cols.append(xp[:, kd:kd + D, kh:kh + H, kw:kw + W, :])
    patches = jnp.concatenate(cols, axis=-1)                  # (B, D, H, W, 27*C)
    k = 27 * C
    p = patches.reshape(B, D // 2, 2, H // 2, 2, W // 2, 2, k)
    p = p.transpose(2, 4, 6, 0, 1, 3, 5, 7)                   # (2,2,2, B, D/2, H/2, W/2, K)
    return p.reshape(8, B * (D // 2) * (H // 2) * (W // 2), k)


def prepare_params(params):
    """One-time weight prep (reshape / permute / pad / cast) outside forward()."""
    def conv_w(w):   # PyTorch Conv3d weight (Cout, Cin, 3,3,3) -> (27*Cin, Cout)
        cout, cin = w.shape[0], w.shape[1]
        return w.transpose(2, 3, 4, 1, 0).reshape(27 * cin, cout).astype(jnp.bfloat16)

    # fc1 consumes the channels-last flatten (d, h, w, c) directly: permute its rows
    # once so no activation transpose is needed on device.
    f1 = params["fc1_w"].reshape(128, 32, 4, 4, 4)            # (out, c, d, h, w)
    f1 = f1.transpose(2, 3, 4, 1, 0).reshape(4 * 4 * 4 * 32, 128)

    # fc2: transpose and zero-pad the 3 output columns to 128 (lane-dense store).
    f2 = jnp.zeros((128, 128), jnp.float32).at[:, :3].set(params["fc2_w"].T)
    b2 = jnp.zeros((1, 128), jnp.float32).at[:, :3].set(params["fc2_b"][None, :])

    return dict(
        conv1_w=conv_w(params["conv1_w"]),
        conv1_b=params["conv1_b"].reshape(1, -1).astype(jnp.float32),
        conv2_w=conv_w(params["conv2_w"]),
        conv2_b=params["conv2_b"].reshape(1, -1).astype(jnp.float32),
        fc1_w=f1.astype(jnp.bfloat16),
        fc1_b=params["fc1_b"].reshape(1, -1).astype(jnp.float32),
        fc2_w=f2.astype(jnp.bfloat16),
        fc2_b=b2,
    )


def forward(prep, x_ncdhw):
    B = x_ncdhw.shape[0]
    # NCDHW -> NDHWC (C=1, so this is layout-trivial), bf16 matmul operands.
    x = jnp.transpose(x_ncdhw, (0, 2, 3, 4, 1)).astype(jnp.bfloat16)   # (B,16,16,16,1)

    # Conv3d(1,16,k3,p1) + ReLU + MaxPool3d(2), fused
    p1 = im2col_pool_patches(x)                                        # (8, B*512, 27)
    y1 = conv_relu_pool(p1, prep["conv1_w"], prep["conv1_b"], block_rows=512)
    y1 = y1.reshape(B, 8, 8, 8, 16)

    # Conv3d(16,32,k3,p1) + ReLU + MaxPool3d(2), fused
    p2 = im2col_pool_patches(y1)                                       # (8, B*64, 432)
    y2 = conv_relu_pool(p2, prep["conv2_w"], prep["conv2_b"], block_rows=64)

    # Channels-last flatten; PyTorch's NCDHW flatten order is folded into fc1_w rows.
    feat = y2.reshape(B, 4 * 4 * 4 * 32)

    out = mlp(feat, prep["fc1_w"], prep["fc1_b"], prep["fc2_w"], prep["fc2_b"])
    return out[:, :3]


def reference_forward(params, x_ncdhw):
    # Pure-JAX/XLA fp32 reference (NCDHW), mirrors the PyTorch module.
    def conv3d(x, w, b):
        dn = jax.lax.conv_dimension_numbers(x.shape, w.shape, ('NCDHW', 'OIDHW', 'NCDHW'))
        y = jax.lax.conv_general_dilated(x, w, (1, 1, 1), 'SAME', dimension_numbers=dn)
        return y + b[None, :, None, None, None]

    def maxpool2(x):
        return jax.lax.reduce_window(x, -jnp.inf, jax.lax.max,
                                     (1, 1, 2, 2, 2), (1, 1, 2, 2, 2), 'VALID')

    y = maxpool2(jnp.maximum(conv3d(x_ncdhw, params["conv1_w"], params["conv1_b"]), 0.0))
    y = maxpool2(jnp.maximum(conv3d(y, params["conv2_w"], params["conv2_b"]), 0.0))
    f = y.reshape(y.shape[0], -1)
    h = jnp.maximum(f @ params["fc1_w"].T + params["fc1_b"], 0.0)
    return h @ params["fc2_w"].T + params["fc2_b"]


# ------------------------------ parameters ---------------------------------

def init_params(key):
    ks = jax.random.split(key, 8)

    def conv_init(kw, kb, cout, cin):
        bound = 1.0 / np.sqrt(cin * 27)
        w = jax.random.uniform(kw, (cout, cin, 3, 3, 3), jnp.float32, -bound, bound)
        b = jax.random.uniform(kb, (cout,), jnp.float32, -bound, bound)
        return w, b

    def lin_init(kw, kb, dout, din):
        bound = 1.0 / np.sqrt(din)
        w = jax.random.uniform(kw, (dout, din), jnp.float32, -bound, bound)
        b = jax.random.uniform(kb, (dout,), jnp.float32, -bound, bound)
        return w, b

    c1w, c1b = conv_init(ks[0], ks[1], 16, 1)
    c2w, c2b = conv_init(ks[2], ks[3], 32, 16)
    f1w, f1b = lin_init(ks[4], ks[5], 128, 4 * 4 * 4 * 32)
    f2w, f2b = lin_init(ks[6], ks[7], 3, 128)
    return dict(conv1_w=c1w, conv1_b=c1b, conv2_w=c2w, conv2_b=c2b,
                fc1_w=f1w, fc1_b=f1b, fc2_w=f2w, fc2_b=f2b)


# --------------------------------- main -------------------------------------

if __name__ == "__main__":
    key = jax.random.PRNGKey(0)
    k_param, k_theta, k_noise = jax.random.split(key, 3)

    params = init_params(k_param)
    prep = prepare_params(params)        # weight reshapes/casts done once, not per call

    # Simulator (JAX version of the torch simulator), small batch
    B, G = 2, 16
    theta = jax.random.uniform(k_theta, (B, 3), jnp.float32, -1.0, 1.0)
    lin = jnp.linspace(-1.0, 1.0, G)
    gx, gy, gz = jnp.meshgrid(lin, lin, lin, indexing='ij')
    mx = theta[:, 0, None, None, None]
    my = theta[:, 1, None, None, None]
    mz = theta[:, 2, None, None, None]
    gauss = jnp.exp(-((gx[None] - mx) ** 2 + (gy[None] - my) ** 2 + (gz[None] - mz) ** 2))
    noise = 0.05 * jax.random.normal(k_noise, gauss.shape, jnp.float32)
    x = (gauss + noise)[:, None]                              # (B, 1, 16, 16, 16) NCDHW

    fwd = jax.jit(forward)
    out = jax.block_until_ready(fwd(prep, x))
    assert out.shape == (B, 3)

    ref = jax.block_until_ready(reference_forward(params, x))
    np.testing.assert_allclose(np.asarray(out), np.asarray(ref), rtol=2e-2, atol=2e-2)

    print("KERNEL_OK")
</pallas_src>

<mosaic_0001>
module attributes {stable_mosaic.version = 11 : i64} {
  func.func @conv_relu_pool_kernel(%arg0: i32, %arg1: memref<8x512x27xbf16, #tpu.memory_space<vmem>>, %arg2: memref<27x16xbf16, #tpu.memory_space<vmem>>, %arg3: memref<1x16xf32, #tpu.memory_space<vmem>>, %arg4: memref<512x16xbf16, #tpu.memory_space<vmem>>) attributes {dimension_semantics = [#tpu.dimension_semantics<parallel>], iteration_bounds = array<i64: 2>, scalar_prefetch = 0 : i64, scratch_operands = 0 : i64, tpu.core_type = #tpu.core_type<tc>, window_params = [{transform_indices = @transform_0, window_bounds = array<i64: 8, 512, 27>}, {pipeline_mode = #tpu.pipeline_mode<synchronous>, transform_indices = @transform_1, window_bounds = array<i64: 27, 16>}, {pipeline_mode = #tpu.pipeline_mode<synchronous>, transform_indices = @transform_2, window_bounds = array<i64: 1, 16>}, {transform_indices = @transform_3, window_bounds = array<i64: 512, 16>}]} {
    %c0 = arith.constant 0 : index
    %c0_0 = arith.constant 0 : index
    %c0_1 = arith.constant 0 : index
    %0 = vector.load %arg1[%c0, %c0_0, %c0_1] : memref<8x512x27xbf16, #tpu.memory_space<vmem>>, vector<8x512x27xbf16>
    %1 = vector.shape_cast %0 : vector<8x512x27xbf16> to vector<4096x27xbf16>
    %c0_2 = arith.constant 0 : index
    %c0_3 = arith.constant 0 : index
    %2 = vector.load %arg2[%c0_2, %c0_3] : memref<27x16xbf16, #tpu.memory_space<vmem>>, vector<27x16xbf16>
    %cst = arith.constant dense<0.000000e+00> : vector<4096x16xf32>
    %3 = tpu.matmul %1, %2, %cst {dimension_numbers = #tpu.dot_dimension_numbers<[1], [0], [0], [1], [0, 0, 1, 1], [], []>} : vector<4096x27xbf16>, vector<27x16xbf16>, vector<4096x16xf32> -> vector<4096x16xf32>
    %4 = vector.shape_cast %3 : vector<4096x16xf32> to vector<8x512x16xf32>
    %cst_4 = arith.constant dense<0xFF800000> : vector<512x16xf32>
    %5 = vector.multi_reduction <maximumf>, %4, %cst_4 [0] : vector<8x512x16xf32> to vector<512x16xf32>
    %c0_5 = arith.constant 0 : index
    %c0_6 = arith.constant 0 : index
    %6 = vector.load %arg3[%c0_5, %c0_6] : memref<1x16xf32, #tpu.memory_space<vmem>>, vector<1x16xf32>
    %7 = vector.broadcast %6 : vector<1x16xf32> to vector<512x16xf32>
    %8 = arith.addf %5, %7 : vector<512x16xf32>
    %cst_7 = arith.constant 0.000000e+00 : f32
    %9 = vector.broadcast %cst_7 : f32 to vector<512x16xf32>
    %10 = arith.maximumf %8, %9 : vector<512x16xf32>
    %11 = arith.truncf %10 : vector<512x16xf32> to vector<512x16xbf16>
    %c0_8 = arith.constant 0 : index
    %c0_9 = arith.constant 0 : index
    %12 = vector.load %arg4[%c0_8, %c0_9] : memref<512x16xbf16, #tpu.memory_space<vmem>>, vector<512x16xbf16>
    tpu.vector_store %arg4[%c0_8, %c0_9], %11 {strides = array<i32>} : memref<512x16xbf16, #tpu.memory_space<vmem>>, vector<512x16xbf16>,
    return
  }
  func.func @transform_0(%arg0: i32) -> (i32, i32, i32) {
    %c0_i32 = arith.constant 0 : i32
    %c0_i32_0 = arith.constant 0 : i32
    %c0_i32_1 = arith.constant 0 : i32
    return %c0_i32, %arg0, %c0_i32_0 : i32, i32, i32
  }
  func.func @transform_1(%arg0: i32) -> (i32, i32) {
    %c0_i32 = arith.constant 0 : i32
    %c0_i32_0 = arith.constant 0 : i32
    %c0_i32_1 = arith.constant 0 : i32
    return %c0_i32, %c0_i32_0 : i32, i32
  }
  func.func @transform_2(%arg0: i32) -> (i32, i32) {
    %c0_i32 = arith.constant 0 : i32
    %c0_i32_0 = arith.constant 0 : i32
    %c0_i32_1 = arith.constant 0 : i32
    return %c0_i32, %c0_i32_0 : i32, i32
  }
  func.func @transform_3(%arg0: i32) -> (i32, i32) {
    %c0_i32 = arith.constant 0 : i32
    %c0_i32_0 = arith.constant 0 : i32
    return %arg0, %c0_i32 : i32, i32
  }
}

module attributes {stable_mosaic.version = 11 : i64} {
  func.func @conv_relu_pool_kernel(%arg0: i32, %arg1: memref<8x64x432xbf16, #tpu.memory_space<vmem>>, %arg2: memref<432x32xbf16, #tpu.memory_space<vmem>>, %arg3: memref<1x32xf32, #tpu.memory_space<vmem>>, %arg4: memref<64x32xbf16, #tpu.memory_space<vmem>>) attributes {dimension_semantics = [#tpu.dimension_semantics<parallel>], iteration_bounds = array<i64: 2>, scalar_prefetch = 0 : i64, scratch_operands = 0 : i64, tpu.core_type = #tpu.core_type<tc>, window_params = [{transform_indices = @transform_0, window_bounds = array<i64: 8, 64, 432>}, {pipeline_mode = #tpu.pipeline_mode<synchronous>, transform_indices = @transform_1, window_bounds = array<i64: 432, 32>}, {pipeline_mode = #tpu.pipeline_mode<synchronous>, transform_indices = @transform_2, window_bounds = array<i64: 1, 32>}, {transform_indices = @transform_3, window_bounds = array<i64: 64, 32>}]} {
    %c0 = arith.constant 0 : index
    %c0_0 = arith.constant 0 : index
    %c0_1 = arith.constant 0 : index
    %0 = vector.load %arg1[%c0, %c0_0, %c0_1] : memref<8x64x432xbf16, #tpu.memory_space<vmem>>, vector<8x64x432xbf16>
    %1 = vector.shape_cast %0 : vector<8x64x432xbf16> to vector<512x432xbf16>
    %c0_2 = arith.constant 0 : index
    %c0_3 = arith.constant 0 : index
    %2 = vector.load %arg2[%c0_2, %c0_3] : memref<432x32xbf16, #tpu.memory_space<vmem>>, vector<432x32xbf16>
    %cst = arith.constant dense<0.000000e+00> : vector<512x32xf32>
    %3 = tpu.matmul %1, %2, %cst {dimension_numbers = #tpu.dot_dimension_numbers<[1], [0], [0], [1], [0, 0, 1, 1], [], []>} : vector<512x432xbf16>, vector<432x32xbf16>, vector<512x32xf32> -> vector<512x32xf32>
    %4 = vector.shape_cast %3 : vector<512x32xf32> to vector<8x64x32xf32>
    %cst_4 = arith.constant dense<0xFF800000> : vector<64x32xf32>
    %5 = vector.multi_reduction <maximumf>, %4, %cst_4 [0] : vector<8x64x32xf32> to vector<64x32xf32>
    %c0_5 = arith.constant 0 : index
    %c0_6 = arith.constant 0 : index
    %6 = vector.load %arg3[%c0_5, %c0_6] : memref<1x32xf32, #tpu.memory_space<vmem>>, vector<1x32xf32>
    %7 = vector.broadcast %6 : vector<1x32xf32> to vector<64x32xf32>
    %8 = arith.addf %5, %7 : vector<64x32xf32>
    %cst_7 = arith.constant 0.000000e+00 : f32
    %9 = vector.broadcast %cst_7 : f32 to vector<64x32xf32>
    %10 = arith.maximumf %8, %9 : vector<64x32xf32>
    %11 = arith.truncf %10 : vector<64x32xf32> to vector<64x32xbf16>
    %c0_8 = arith.constant 0 : index
    %c0_9 = arith.constant 0 : index
    %12 = vector.load %arg4[%c0_8, %c0_9] : memref<64x32xbf16, #tpu.memory_space<vmem>>, vector<64x32xbf16>
    tpu.vector_store %arg4[%c0_8, %c0_9], %11 {strides = array<i32>} : memref<64x32xbf16, #tpu.memory_space<vmem>>, vector<64x32xbf16>,
    return
  }
  func.func @transform_0(%arg0: i32) -> (i32, i32, i32) {
    %c0_i32 = arith.constant 0 : i32
    %c0_i32_0 = arith.constant 0 : i32
    %c0_i32_1 = arith.constant 0 : i32
    return %c0_i32, %arg0, %c0_i32_0 : i32, i32, i32
  }
  func.func @transform_1(%arg0: i32) -> (i32, i32) {
    %c0_i32 = arith.constant 0 : i32
    %c0_i32_0 = arith.constant 0 : i32
    %c0_i32_1 = arith.constant 0 : i32
    return %c0_i32, %c0_i32_0 : i32, i32
  }
  func.func @transform_2(%arg0: i32) -> (i32, i32) {
    %c0_i32 = arith.constant 0 : i32
    %c0_i32_0 = arith.constant 0 : i32
    %c0_i32_1 = arith.constant 0 : i32
    return %c0_i32, %c0_i32_0 : i32, i32
  }
  func.func @transform_3(%arg0: i32) -> (i32, i32) {
    %c0_i32 = arith.constant 0 : i32
    %c0_i32_0 = arith.constant 0 : i32
    return %arg0, %c0_i32 : i32, i32
  }
}

module attributes {stable_mosaic.version = 11 : i64} {
  func.func @mlp_kernel(%arg0: i32, %arg1: memref<2x2048xbf16, #tpu.memory_space<vmem>>, %arg2: memref<2048x128xbf16, #tpu.memory_space<vmem>>, %arg3: memref<1x128xf32, #tpu.memory_space<vmem>>, %arg4: memref<128x128xbf16, #tpu.memory_space<vmem>>, %arg5: memref<1x128xf32, #tpu.memory_space<vmem>>, %arg6: memref<2x128xf32, #tpu.memory_space<vmem>>) attributes {dimension_semantics = [#tpu.dimension_semantics<parallel>], iteration_bounds = array<i64: 1>, scalar_prefetch = 0 : i64, scratch_operands = 0 : i64, tpu.core_type = #tpu.core_type<tc>, window_params = [{transform_indices = @transform_0, window_bounds = array<i64: 2, 2048>}, {pipeline_mode = #tpu.pipeline_mode<synchronous>, transform_indices = @transform_1, window_bounds = array<i64: 2048, 128>}, {pipeline_mode = #tpu.pipeline_mode<synchronous>, transform_indices = @transform_2, window_bounds = array<i64: 1, 128>}, {pipeline_mode = #tpu.pipeline_mode<synchronous>, transform_indices = @transform_3, window_bounds = array<i64: 128, 128>}, {pipeline_mode = #tpu.pipeline_mode<synchronous>, transform_indices = @transform_4, window_bounds = array<i64: 1, 128>}, {transform_indices = @transform_5, window_bounds = array<i64: 2, 128>}]} {
    %c0 = arith.constant 0 : index
    %c0_0 = arith.constant 0 : index
    %0 = vector.load %arg1[%c0, %c0_0] : memref<2x2048xbf16, #tpu.memory_space<vmem>>, vector<2x2048xbf16>
    %c0_1 = arith.constant 0 : index
    %c0_2 = arith.constant 0 : index
    %1 = vector.load %arg2[%c0_1, %c0_2] : memref<2048x128xbf16, #tpu.memory_space<vmem>>, vector<2048x128xbf16>
    %cst = arith.constant dense<0.000000e+00> : vector<2x128xf32>
    %2 = tpu.matmul %0, %1, %cst {dimension_numbers = #tpu.dot_dimension_numbers<[1], [0], [0], [1], [0, 0, 1, 1], [], []>} : vector<2x2048xbf16>, vector<2048x128xbf16>, vector<2x128xf32> -> vector<2x128xf32>
    %c0_3 = arith.constant 0 : index
    %c0_4 = arith.constant 0 : index
    %3 = vector.load %arg3[%c0_3, %c0_4] : memref<1x128xf32, #tpu.memory_space<vmem>>, vector<1x128xf32>
    %4 = vector.broadcast %3 : vector<1x128xf32> to vector<2x128xf32>
    %5 = arith.addf %2, %4 : vector<2x128xf32>
    %cst_5 = arith.constant 0.000000e+00 : f32
    %6 = vector.broadcast %cst_5 : f32 to vector<2x128xf32>
    %7 = arith.maximumf %5, %6 : vector<2x128xf32>
    %c0_6 = arith.constant 0 : index
    %c0_7 = arith.constant 0 : index
    %8 = vector.load %arg4[%c0_6, %c0_7] : memref<128x128xbf16, #tpu.memory_space<vmem>>, vector<128x128xbf16>
    %cst_8 = arith.constant dense<0.000000e+00> : vector<2x128xf32>
    %9 = tpu.matmul %7, %8, %cst_8 {dimension_numbers = #tpu.dot_dimension_numbers<[1], [0], [0], [1], [0, 0, 1, 1], [], []>} : vector<2x128xf32>, vector<128x128xbf16>, vector<2x128xf32> -> vector<2x128xf32>
    %c0_9 = arith.constant 0 : index
    %c0_10 = arith.constant 0 : index
    %10 = vector.load %arg5[%c0_9, %c0_10] : memref<1x128xf32, #tpu.memory_space<vmem>>, vector<1x128xf32>
    %11 = vector.broadcast %10 : vector<1x128xf32> to vector<2x128xf32>
    %12 = arith.addf %9, %11 : vector<2x128xf32>
    %c0_11 = arith.constant 0 : index
    %c0_12 = arith.constant 0 : index
    %13 = vector.load %arg6[%c0_11, %c0_12] : memref<2x128xf32, #tpu.memory_space<vmem>>, vector<2x128xf32>
    tpu.vector_store %arg6[%c0_11, %c0_12], %12 {strides = array<i32>} : memref<2x128xf32, #tpu.memory_space<vmem>>, vector<2x128xf32>,
    return
  }
  func.func @transform_0(%arg0: i32) -> (i32, i32) {
    %c0_i32 = arith.constant 0 : i32
    %c0_i32_0 = arith.constant 0 : i32
    return %arg0, %c0_i32 : i32, i32
  }
  func.func @transform_1(%arg0: i32) -> (i32, i32) {
    %c0_i32 = arith.constant 0 : i32
    %c0_i32_0 = arith.constant 0 : i32
    %c0_i32_1 = arith.constant 0 : i32
    return %c0_i32, %c0_i32_0 : i32, i32
  }
  func.func @transform_2(%arg0: i32) -> (i32, i32) {
    %c0_i32 = arith.constant 0 : i32
    %c0_i32_0 = arith.constant 0 : i32
    %c0_i32_1 = arith.constant 0 : i32
    return %c0_i32, %c0_i32_0 : i32, i32
  }
  func.func @transform_3(%arg0: i32) -> (i32, i32) {
    %c0_i32 = arith.constant 0 : i32
    %c0_i32_0 = arith.constant 0 : i32
    %c0_i32_1 = arith.constant 0 : i32
    return %c0_i32, %c0_i32_0 : i32, i32
  }
  func.func @transform_4(%arg0: i32) -> (i32, i32) {
    %c0_i32 = arith.constant 0 : i32
    %c0_i32_0 = arith.constant 0 : i32
    %c0_i32_1 = arith.constant 0 : i32
    return %c0_i32, %c0_i32_0 : i32, i32
  }
  func.func @transform_5(%arg0: i32) -> (i32, i32) {
    %c0_i32 = arith.constant 0 : i32
    %c0_i32_0 = arith.constant 0 : i32
    return %arg0, %c0_i32 : i32, i32
  }
}

</mosaic_0001>

<bundles_post_ra>
// kernel: forward.3
= control target key start
LH: loop header
LB: loop body
LE: loop exit
PB: predicated region body
PF: predicated region fallthrough
CT: control target
= control target key end

     0   :  { %s12253_s12 = smov 0   ;;  %s12255_s13 = smov 0   ;;  %s16424_s0 = inlined_call_operand.vmem [shape: bf16[8,1024,27], index: 0, kind: input, shape index: {}]   ;;  %s16425_s1 = inlined_call_operand.vmem [shape: bf16[27,16], index: 1, kind: input, shape index: {}]   ;;  %s16426_s2 = inlined_call_operand.vmem [shape: f32[1,16], index: 2, kind: input, shape index: {}]   ;;  %s16427_s3 = inlined_call_operand.vmem [shape: bf16[1024,16], index: 3, kind: output, shape index: {}]  }
   0x1   :  { %s12257_s14 = smov 0  }
   0x2 LB: > { %s10489_s15 = sadd.s32 4294967295, %s12230_s14   ;;  %s12270_s16 = sadd.s32 1, %s12230_s14   ;;  %s12230_s14 = sphi %s12257_s14, %s17471_s14   ;;  %s12226_s13 = sphi %s12255_s13, %s17470_s13   ;;  %s12222_s12 = sphi %s12253_s12, %s17469_s12  }
   0x3   : > { %s17_s17 = ssub.s32 %s12230_s14, %s12270_s16  ;;  %s20_s18 = sadd.s32 1, %s12226_s13 }
   0x4   : > { %p18_p0 = scmp.eq.s32.totalorder %s17_s17, 0  ;;  %p27_p1 = scmp.ne.s32.totalorder %s12226_s13, %s12222_s12 }
   0x5   : > { %p28_p2 = scmp.eq.s32.totalorder %s12230_s14, 0  ;;  %p10492_p4 = scmp.ge.s32.totalorder %s12230_s14, 2 }
   0x6   : > { %s12279_s19 = scalar_select %p18_p0, %s12226_s13, %s20_s18  }
   0x7   : > { %p29_p3 = por %p28_p2, %p27_p1  ;;  %127 = sbr.rel (%p10492_p4) target bundleno = 146 (0x92), region = 24 }
   0xe   : > { %130 = sbr.rel (!%p29_p3) target bundleno = 146 (0x92), region = 28  ;;  %s132_s20 = sand.u32 (%p29_p3), 1, %s12226_s13  }
   0xf   : > { %s11081_s21 = sshll.u32 (%p29_p3), %s12230_s14, 8  ;;  %s10493_s22 = sshll.u32 (%p29_p3), %s132_s20, 11 }
  0x10   : > { %s12287_s25 = scalar_lea.vmem (%p29_p3), %s16424_s0, %s11081_s21  ;;  %s12292_s26 = scalar_lea.vmem (%p29_p3), [#allocation2], %s10493_s22 }
  0x11   : > { %v153_v0 = vld [vmem:[%s12287_s25] sm:$0xff] (%p29_p3)   ;;  %v157_v1 = vld [vmem:[%s12287_s25 + $0x8] sm:$0xff] (%p29_p3)   ;;  %v161_v2 = vld [vmem:[%s12287_s25 + $0x10] sm:$0xff] (%p29_p3)  }
  0x12   : > { %154 = vst [vmem:[%s12292_s26] sm:$0xff] (%p29_p3), %v153_v0   ;;  %158 = vst [vmem:[%s12292_s26 + $0x8] sm:$0xff] (%p29_p3), %v157_v1   ;;  %v165_v3 = vld [vmem:[%s12287_s25 + $0x18] sm:$0xff] (%p29_p3)   ;;  %v169_v4 = vld [vmem:[%s12287_s25 + $0x20] sm:$0xff] (%p29_p3)  }
  0x13   : > { %162 = vst [vmem:[%s12292_s26 + $0x10] sm:$0xff] (%p29_p3), %v161_v2   ;;  %v173_v5 = vld [vmem:[%s12287_s25 + $0x28] sm:$0xff] (%p29_p3)   ;;  %166 = vst [vmem:[%s12292_s26 + $0x18] sm:$0xff] (%p29_p3), %v165_v3   ;;  %v177_v6 = vld [vmem:[%s12287_s25 + $0x30] sm:$0xff] (%p29_p3)  }
  0x14   : > { %170 = vst [vmem:[%s12292_s26 + $0x20] sm:$0xff] (%p29_p3), %v169_v4   ;;  %174 = vst [vmem:[%s12292_s26 + $0x28] sm:$0xff] (%p29_p3), %v173_v5   ;;  %v181_v7 = vld [vmem:[%s12287_s25 + $0x38] sm:$0xff] (%p29_p3)   ;;  %v185_v8 = vld [vmem:[%s12287_s25 + $0x40] sm:$0xff] (%p29_p3)  }
  0x15   : > { %178 = vst [vmem:[%s12292_s26 + $0x30] sm:$0xff] %v177_v6   ;;  %182 = vst [vmem:[%s12292_s26 + $0x38] sm:$0xff] %v181_v7   ;;  %v189_v9 = vld [vmem:[%s12287_s25 + $0x48] sm:$0xff]   ;;  %v193_v10 = vld [vmem:[%s12287_s25 + $0x50] sm:$0xff]  }
  0x16   : > { %186 = vst [vmem:[%s12292_s26 + $0x40] sm:$0xff] %v185_v8   ;;  %v197_v11 = vld [vmem:[%s12287_s25 + $0x58] sm:$0xff]   ;;  %190 = vst [vmem:[%s12292_s26 + $0x48] sm:$0xff] %v189_v9   ;;  %v201_v12 = vld [vmem:[%s12287_s25 + $0x60] sm:$0xff]  }
  0x17   : > { %194 = vst [vmem:[%s12292_s26 + $0x50] sm:$0xff] %v193_v10   ;;  %198 = vst [vmem:[%s12292_s26 + $0x58] sm:$0xff] %v197_v11   ;;  %v205_v13 = vld [vmem:[%s12287_s25 + $0x68] sm:$0xff]   ;;  %v209_v14 = vld [vmem:[%s12287_s25 + $0x70] sm:$0xff]  }
  0x18   : > { %202 = vst [vmem:[%s12292_s26 + $0x60] sm:$0xff] %v201_v12   ;;  %206 = vst [vmem:[%s12292_s26 + $0x68] sm:$0xff] %v205_v13   ;;  %v213_v15 = vld [vmem:[%s12287_s25 + $0x78] sm:$0xff]   ;;  %v217_v16 = vld [vmem:[%s12287_s25 + $0x80] sm:$0xff]  }
  0x19   : > { %210 = vst [vmem:[%s12292_s26 + $0x70] sm:$0xff] %v209_v14   ;;  %v221_v17 = vld [vmem:[%s12287_s25 + $0x88] sm:$0xff]   ;;  %214 = vst [vmem:[%s12292_s26 + $0x78] sm:$0xff] %v213_v15   ;;  %v225_v18 = vld [vmem:[%s12287_s25 + $0x90] sm:$0xff]  }
  0x1a   : > { %218 = vst [vmem:[%s12292_s26 + $0x80] sm:$0xff] %v217_v16   ;;  %222 = vst [vmem:[%s12292_s26 + $0x88] sm:$0xff] %v221_v17   ;;  %v229_v19 = vld [vmem:[%s12287_s25 + $0x98] sm:$0xff]   ;;  %v233_v20 = vld [vmem:[%s12287_s25 + $0xa0] sm:$0xff]  }
  0x1b   : > { %226 = vst [vmem:[%s12292_s26 + $0x90] sm:$0xff] %v225_v18   ;;  %230 = vst [vmem:[%s12292_s26 + $0x98] sm:$0xff] %v229_v19   ;;  %v237_v21 = vld [vmem:[%s12287_s25 + $0xa8] sm:$0xff]   ;;  %v241_v22 = vld [vmem:[%s12287_s25 + $0xb0] sm:$0xff]  }
  0x1c   : > { %234 = vst [vmem:[%s12292_s26 + $0xa0] sm:$0xff] %v233_v20   ;;  %v245_v23 = vld [vmem:[%s12287_s25 + $0xb8] sm:$0xff]   ;;  %238 = vst [vmem:[%s12292_s26 + $0xa8] sm:$0xff] %v237_v21   ;;  %v249_v24 = vld [vmem:[%s12287_s25 + $0xc0] sm:$0xff]  }
  0x1d   : > { %242 = vst [vmem:[%s12292_s26 + $0xb0] sm:$0xff] %v241_v22   ;;  %246 = vst [vmem:[%s12292_s26 + $0xb8] sm:$0xff] %v245_v23   ;;  %v253_v25 = vld [vmem:[%s12287_s25 + $0xc8] sm:$0xff]   ;;  %v257_v26 = vld [vmem:[%s12287_s25 + $0xd0] sm:$0xff]  }
  0x1e   : > { %250 = vst [vmem:[%s12292_s26 + $0xc0] sm:$0xff] %v249_v24   ;;  %254 = vst [vmem:[%s12292_s26 + $0xc8] sm:$0xff] %v253_v25   ;;  %v261_v27 = vld [vmem:[%s12287_s25 + $0xd8] sm:$0xff]   ;;  %v265_v28 = vld [vmem:[%s12287_s25 + $0xe0] sm:$0xff]  }
  0x1f   : > { %258 = vst [vmem:[%s12292_s26 + $0xd0] sm:$0xff] %v257_v26   ;;  %v269_v29 = vld [vmem:[%s12287_s25 + $0xe8] sm:$0xff]   ;;  %262 = vst [vmem:[%s12292_s26 + $0xd8] sm:$0xff] %v261_v27   ;;  %v273_v30 = vld [vmem:[%s12287_s25 + $0xf0] sm:$0xff]  }
  0x20   : > { %266 = vst [vmem:[%s12292_s26 + $0xe0] sm:$0xff] %v265_v28   ;;  %270 = vst [vmem:[%s12292_s26 + $0xe8] sm:$0xff] %v269_v29   ;;  %v277_v31 = vld [vmem:[%s12287_s25 + $0xf8] sm:$0xff]   ;;  %v281_v32 = vld [vmem:[%s12287_s25 + $0x200] sm:$0xff]  }
  0x21   : > { %274 = vst [vmem:[%s12292_s26 + $0xf0] sm:$0xff] %v273_v30   ;;  %278 = vst [vmem:[%s12292_s26 + $0xf8] sm:$0xff] %v277_v31   ;;  %v285_v33 = vld [vmem:[%s12287_s25 + $0x208] sm:$0xff]   ;;  %v289_v34 = vld [vmem:[%s12287_s25 + $0x210] sm:$0xff]  }
  0x22   : > { %282 = vst [vmem:[%s12292_s26 + $0x100] sm:$0xff] %v281_v32   ;;  %v293_v35 = vld [vmem:[%s12287_s25 + $0x218] sm:$0xff]   ;;  %286 = vst [vmem:[%s12292_s26 + $0x108] sm:$0xff] %v285_v33   ;;  %v297_v36 = vld [vmem:[%s12287_s25 + $0x220] sm:$0xff]  }
  0x23   : > { %290 = vst [vmem:[%s12292_s26 + $0x110] sm:$0xff] %v289_v34   ;;  %294 = vst [vmem:[%s12292_s26 + $0x118] sm:$0xff] %v293_v35   ;;  %v301_v37 = vld [vmem:[%s12287_s25 + $0x228] sm:$0xff]   ;;  %v305_v38 = vld [vmem:[%s12287_s25 + $0x230] sm:$0xff]  }
  0x24   : > { %298 = vst [vmem:[%s12292_s26 + $0x120] sm:$0xff] %v297_v36   ;;  %302 = vst [vmem:[%s12292_s26 + $0x128] sm:$0xff] %v301_v37   ;;  %v309_v39 = vld [vmem:[%s12287_s25 + $0x238] sm:$0xff]   ;;  %v313_v40 = vld [vmem:[%s12287_s25 + $0x240] sm:$0xff]  }
  0x25   : > { %306 = vst [vmem:[%s12292_s26 + $0x130] sm:$0xff] %v305_v38   ;;  %v317_v41 = vld [vmem:[%s12287_s25 + $0x248] sm:$0xff]   ;;  %310 = vst [vmem:[%s12292_s26 + $0x138] sm:$0xff] %v309_v39   ;;  %v321_v42 = vld [vmem:[%s12287_s25 + $0x250] sm:$0xff]  }
  0x26   : > { %314 = vst [vmem:[%s12292_s26 + $0x140] sm:$0xff] %v313_v40   ;;  %318 = vst [vmem:[%s12292_s26 + $0x148] sm:$0xff] %v317_v41   ;;  %v325_v43 = vld [vmem:[%s12287_s25 + $0x258] sm:$0xff]   ;;  %v329_v44 = vld [vmem:[%s12287_s25 + $0x260] sm:$0xff]  }
  0x27   : > { %322 = vst [vmem:[%s12292_s26 + $0x150] sm:$0xff] %v321_v42   ;;  %326 = vst [vmem:[%s12292_s26 + $0x158] sm:$0xff] %v325_v43   ;;  %v333_v45 = vld [vmem:[%s12287_s25 + $0x268] sm:$0xff]   ;;  %v337_v46 = vld [vmem:[%s12287_s25 + $0x270] sm:$0xff]  }
  0x28   : > { %330 = vst [vmem:[%s12292_s26 + $0x160] sm:$0xff] %v329_v44   ;;  %v341_v47 = vld [vmem:[%s12287_s25 + $0x278] sm:$0xff]   ;;  %334 = vst [vmem:[%s12292_s26 + $0x168] sm:$0xff] %v333_v45   ;;  %v345_v48 = vld [vmem:[%s12287_s25 + $0x280] sm:$0xff]  }
  0x29   : > { %338 = vst [vmem:[%s12292_s26 + $0x170] sm:$0xff] %v337_v46   ;;  %342 = vst [vmem:[%s12292_s26 + $0x178] sm:$0xff] %v341_v47   ;;  %v349_v49 = vld [vmem:[%s12287_s25 + $0x288] sm:$0xff]   ;;  %v353_v50 = vld [vmem:[%s12287_s25 + $0x290] sm:$0xff]  }
  0x2a   : > { %346 = vst [vmem:[%s12292_s26 + $0x180] sm:$0xff] %v345_v48   ;;  %350 = vst [vmem:[%s12292_s26 + $0x188] sm:$0xff] %v349_v49   ;;  %v357_v51 = vld [vmem:[%s12287_s25 + $0x298] sm:$0xff]   ;;  %v361_v52 = vld [vmem:[%s12287_s25 + $0x2a0] sm:$0xff]  }
  0x2b   : > { %354 = vst [vmem:[%s12292_s26 + $0x190] sm:$0xff] %v353_v50   ;;  %v365_v53 = vld [vmem:[%s12287_s25 + $0x2a8] sm:$0xff]   ;;  %358 = vst [vmem:[%s12292_s26 + $0x198] sm:$0xff] %v357_v51   ;;  %v369_v54 = vld [vmem:[%s12287_s25 + $0x2b0] sm:$0xff]  }
  0x2c   : > { %362 = vst [vmem:[%s12292_s26 + $0x1a0] sm:$0xff] %v361_v52   ;;  %366 = vst [vmem:[%s12292_s26 + $0x1a8] sm:$0xff] %v365_v53   ;;  %v373_v55 = vld [vmem:[%s12287_s25 + $0x2b8] sm:$0xff]   ;;  %v377_v56 = vld [vmem:[%s12287_s25 + $0x2c0] sm:$0xff]  }
  0x2d   : > { %370 = vst [vmem:[%s12292_s26 + $0x1b0] sm:$0xff] %v369_v54   ;;  %374 = vst [vmem:[%s12292_s26 + $0x1b8] sm:$0xff] %v373_v55   ;;  %v381_v57 = vld [vmem:[%s12287_s25 + $0x2c8] sm:$0xff]   ;;  %v385_v58 = vld [vmem:[%s12287_s25 + $0x2d0] sm:$0xff]  }
  0x2e   : > { %378 = vst [vmem:[%s12292_s26 + $0x1c0] sm:$0xff] %v377_v56   ;;  %v389_v59 = vld [vmem:[%s12287_s25 + $0x2d8] sm:$0xff]   ;;  %382 = vst [vmem:[%s12292_s26 + $0x1c8] sm:$0xff] %v381_v57   ;;  %v393_v60 = vld [vmem:[%s12287_s25 + $0x2e0] sm:$0xff]  }
  0x2f   : > { %386 = vst [vmem:[%s12292_s26 + $0x1d0] sm:$0xff] %v385_v58   ;;  %390 = vst [vmem:[%s12292_s26 + $0x1d8] sm:$0xff] %v389_v59   ;;  %v397_v61 = vld [vmem:[%s12287_s25 + $0x2e8] sm:$0xff]   ;;  %v401_v62 = vld [vmem:[%s12287_s25 + $0x2f0] sm:$0xff]  }
  0x30   : > { %394 = vst [vmem:[%s12292_s26 + $0x1e0] sm:$0xff] %v393_v60   ;;  %398 = vst [vmem:[%s12292_s26 + $0x1e8] sm:$0xff] %v397_v61   ;;  %v405_v63 = vld [vmem:[%s12287_s25 + $0x2f8] sm:$0xff]   ;;  %v409_v0 = vld [vmem:[%s12287_s25 + $0x400] sm:$0xff]  }
  0x31   : > { %402 = vst [vmem:[%s12292_s26 + $0x1f0] sm:$0xff] %v401_v62   ;;  %v413_v1 = vld [vmem:[%s12287_s25 + $0x408] sm:$0xff]   ;;  %406 = vst [vmem:[%s12292_s26 + $0x1f8] sm:$0xff] %v405_v63   ;;  %v417_v2 = vld [vmem:[%s12287_s25 + $0x410] sm:$0xff]  }
  0x32   : > { %410 = vst [vmem:[%s12292_s26 + $0x200] sm:$0xff] %v409_v0   ;;  %414 = vst [vmem:[%s12292_s26 + $0x208] sm:$0xff] %v413_v1   ;;  %v421_v3 = vld [vmem:[%s12287_s25 + $0x418] sm:$0xff]   ;;  %v425_v4 = vld [vmem:[%s12287_s25 + $0x420] sm:$0xff]  }
  0x33   : > { %418 = vst [vmem:[%s12292_s26 + $0x210] sm:$0xff] %v417_v2   ;;  %422 = vst [vmem:[%s12292_s26 + $0x218] sm:$0xff] %v421_v3   ;;  %v429_v5 = vld [vmem:[%s12287_s25 + $0x428] sm:$0xff]   ;;  %v433_v6 = vld [vmem:[%s12287_s25 + $0x430] sm:$0xff]  }
  0x34   : > { %426 = vst [vmem:[%s12292_s26 + $0x220] sm:$0xff] %v425_v4   ;;  %v437_v7 = vld [vmem:[%s12287_s25 + $0x438] sm:$0xff]   ;;  %430 = vst [vmem:[%s12292_s26 + $0x228] sm:$0xff] %v429_v5   ;;  %v441_v8 = vld [vmem:[%s12287_s25 + $0x440] sm:$0xff]  }
  0x35   : > { %434 = vst [vmem:[%s12292_s26 + $0x230] sm:$0xff] %v433_v6   ;;  %438 = vst [vmem:[%s12292_s26 + $0x238] sm:$0xff] %v437_v7   ;;  %v445_v9 = vld [vmem:[%s12287_s25 + $0x448] sm:$0xff]   ;;  %v449_v10 = vld [vmem:[%s12287_s25 + $0x450] sm:$0xff]  }
  0x36   : > { %442 = vst [vmem:[%s12292_s26 + $0x240] sm:$0xff] %v441_v8   ;;  %446 = vst [vmem:[%s12292_s26 + $0x248] sm:$0xff] %v445_v9   ;;  %v453_v11 = vld [vmem:[%s12287_s25 + $0x458] sm:$0xff]   ;;  %v457_v12 = vld [vmem:[%s12287_s25 + $0x460] sm:$0xff]  }
  0x37   : > { %450 = vst [vmem:[%s12292_s26 + $0x250] sm:$0xff] %v449_v10   ;;  %v461_v13 = vld [vmem:[%s12287_s25 + $0x468] sm:$0xff]   ;;  %454 = vst [vmem:[%s12292_s26 + $0x258] sm:$0xff] %v453_v11   ;;  %v465_v14 = vld [vmem:[%s12287_s25 + $0x470] sm:$0xff]  }
  0x38   : > { %458 = vst [vmem:[%s12292_s26 + $0x260] sm:$0xff] %v457_v12   ;;  %462 = vst [vmem:[%s12292_s26 + $0x268] sm:$0xff] %v461_v13   ;;  %v469_v15 = vld [vmem:[%s12287_s25 + $0x478] sm:$0xff]   ;;  %v473_v16 = vld [vmem:[%s12287_s25 + $0x480] sm:$0xff]  }
  0x39   : > { %466 = vst [vmem:[%s12292_s26 + $0x270] sm:$0xff] %v465_v14   ;;  %470 = vst [vmem:[%s12292_s26 + $0x278] sm:$0xff] %v469_v15   ;;  %v477_v17 = vld [vmem:[%s12287_s25 + $0x488] sm:$0xff]   ;;  %v481_v18 = vld [vmem:[%s12287_s25 + $0x490] sm:$0xff]  }
  0x3a   : > { %474 = vst [vmem:[%s12292_s26 + $0x280] sm:$0xff] %v473_v16   ;;  %v485_v19 = vld [vmem:[%s12287_s25 + $0x498] sm:$0xff]   ;;  %478 = vst [vmem:[%s12292_s26 + $0x288] sm:$0xff] %v477_v17   ;;  %v489_v20 = vld [vmem:[%s12287_s25 + $0x4a0] sm:$0xff]  }
  0x3b   : > { %482 = vst [vmem:[%s12292_s26 + $0x290] sm:$0xff] %v481_v18   ;;  %486 = vst [vmem:[%s12292_s26 + $0x298] sm:$0xff] %v485_v19   ;;  %v493_v21 = vld [vmem:[%s12287_s25 + $0x4a8] sm:$0xff]   ;;  %v497_v22 = vld [vmem:[%s12287_s25 + $0x4b0] sm:$0xff]  }
  0x3c   : > { %490 = vst [vmem:[%s12292_s26 + $0x2a0] sm:$0xff] %v489_v20   ;;  %494 = vst [vmem:[%s12292_s26 + $0x2a8] sm:$0xff] %v493_v21   ;;  %v501_v23 = vld [vmem:[%s12287_s25 + $0x4b8] sm:$0xff]   ;;  %v505_v24 = vld [vmem:[%s12287_s25 + $0x4c0] sm:$0xff]  }
  0x3d   : > { %498 = vst [vmem:[%s12292_s26 + $0x2b0] sm:$0xff] %v497_v22   ;;  %v509_v25 = vld [vmem:[%s12287_s25 + $0x4c8] sm:$0xff]   ;;  %502 = vst [vmem:[%s12292_s26 + $0x2b8] sm:$0xff] %v501_v23   ;;  %v513_v26 = vld [vmem:[%s12287_s25 + $0x4d0] sm:$0xff]  }
  0x3e   : > { %506 = vst [vmem:[%s12292_s26 + $0x2c0] sm:$0xff] %v505_v24   ;;  %510 = vst [vmem:[%s12292_s26 + $0x2c8] sm:$0xff] %v509_v25   ;;  %v517_v27 = vld [vmem:[%s12287_s25 + $0x4d8] sm:$0xff]   ;;  %v521_v28 = vld [vmem:[%s12287_s25 + $0x4e0] sm:$0xff]  }
  0x3f   : > { %514 = vst [vmem:[%s12292_s26 + $0x2d0] sm:$0xff] %v513_v26   ;;  %518 = vst [vmem:[%s12292_s26 + $0x2d8] sm:$0xff] %v517_v27   ;;  %v525_v29 = vld [vmem:[%s12287_s25 + $0x4e8] sm:$0xff]   ;;  %v529_v30 = vld [vmem:[%s12287_s25 + $0x4f0] sm:$0xff]  }
  0x40   : > { %522 = vst [vmem:[%s12292_s26 + $0x2e0] sm:$0xff] %v521_v28   ;;  %v533_v31 = vld [vmem:[%s12287_s25 + $0x4f8] sm:$0xff]   ;;  %526 = vst [vmem:[%s12292_s26 + $0x2e8] sm:$0xff] %v525_v29   ;;  %v537_v32 = vld [vmem:[%s12287_s25 + $0x600] sm:$0xff]  }
  0x41   : > { %530 = vst [vmem:[%s12292_s26 + $0x2f0] sm:$0xff] %v529_v30   ;;  %534 = vst [vmem:[%s12292_s26 + $0x2f8] sm:$0xff] %v533_v31   ;;  %v541_v33 = vld [vmem:[%s12287_s25 + $0x608] sm:$0xff]   ;;  %v545_v34 = vld [vmem:[%s12287_s25 + $0x610] sm:$0xff]  }
  0x42   : > { %538 = vst [vmem:[%s12292_s26 + $0x300] sm:$0xff] %v537_v32   ;;  %542 = vst [vmem:[%s12292_s26 + $0x308] sm:$0xff] %v541_v33   ;;  %v549_v35 = vld [vmem:[%s12287_s25 + $0x618] sm:$0xff]   ;;  %v553_v36 = vld [vmem:[%s12287_s25 + $0x620] sm:$0xff]  }
  0x43   : > { %546 = vst [vmem:[%s12292_s26 + $0x310] sm:$0xff] %v545_v34   ;;  %v557_v37 = vld [vmem:[%s12287_s25 + $0x628] sm:$0xff]   ;;  %550 = vst [vmem:[%s12292_s26 + $0x318] sm:$0xff] %v549_v35   ;;  %v561_v38 = vld [vmem:[%s12287_s25 + $0x630] sm:$0xff]  }
  0x44   : > { %554 = vst [vmem:[%s12292_s26 + $0x320] sm:$0xff] %v553_v36   ;;  %558 = vst [vmem:[%s12292_s26 + $0x328] sm:$0xff] %v557_v37   ;;  %v565_v39 = vld [vmem:[%s12287_s25 + $0x638] sm:$0xff]   ;;  %v569_v40 = vld [vmem:[%s12287_s25 + $0x640] sm:$0xff]  }
  0x45   : > { %562 = vst [vmem:[%s12292_s26 + $0x330] sm:$0xff] %v561_v38   ;;  %566 = vst [vmem:[%s12292_s26 + $0x338] sm:$0xff] %v565_v39   ;;  %v573_v41 = vld [vmem:[%s12287_s25 + $0x648] sm:$0xff]   ;;  %v577_v42 = vld [vmem:[%s12287_s25 + $0x650] sm:$0xff]  }
  0x46   : > { %570 = vst [vmem:[%s12292_s26 + $0x340] sm:$0xff] %v569_v40   ;;  %v581_v43 = vld [vmem:[%s12287_s25 + $0x658] sm:$0xff]   ;;  %574 = vst [vmem:[%s12292_s26 + $0x348] sm:$0xff] %v573_v41   ;;  %v585_v44 = vld [vmem:[%s12287_s25 + $0x660] sm:$0xff]  }
  0x47   : > { %578 = vst [vmem:[%s12292_s26 + $0x350] sm:$0xff] %v577_v42   ;;  %582 = vst [vmem:[%s12292_s26 + $0x358] sm:$0xff] %v581_v43   ;;  %v589_v45 = vld [vmem:[%s12287_s25 + $0x668] sm:$0xff]   ;;  %v593_v46 = vld [vmem:[%s12287_s25 + $0x670] sm:$0xff]  }
  0x48   : > { %586 = vst [vmem:[%s12292_s26 + $0x360] sm:$0xff] %v585_v44   ;;  %590 = vst [vmem:[%s12292_s26 + $0x368] sm:$0xff] %v589_v45   ;;  %v597_v47 = vld [vmem:[%s12287_s25 + $0x678] sm:$0xff]   ;;  %v601_v48 = vld [vmem:[%s12287_s25 + $0x680] sm:$0xff]  }
  0x49   : > { %594 = vst [vmem:[%s12292_s26 + $0x370] sm:$0xff] %v593_v46   ;;  %v605_v49 = vld [vmem:[%s12287_s25 + $0x688] sm:$0xff]   ;;  %598 = vst [vmem:[%s12292_s26 + $0x378] sm:$0xff] %v597_v47   ;;  %v609_v50 = vld [vmem:[%s12287_s25 + $0x690] sm:$0xff]  }
  0x4a   : > { %602 = vst [vmem:[%s12292_s26 + $0x380] sm:$0xff] %v601_v48   ;;  %606 = vst [vmem:[%s12292_s26 + $0x388] sm:$0xff] %v605_v49   ;;  %v613_v51 = vld [vmem:[%s12287_s25 + $0x698] sm:$0xff]   ;;  %v617_v52 = vld [vmem:[%s12287_s25 + $0x6a0] sm:$0xff]  }
  0x4b   : > { %610 = vst [vmem:[%s12292_s26 + $0x390] sm:$0xff] %v609_v50   ;;  %614 = vst [vmem:[%s12292_s26 + $0x398] sm:$0xff] %v613_v51   ;;  %v621_v53 = vld [vmem:[%s12287_s25 + $0x6a8] sm:$0xff]   ;;  %v625_v54 = vld [vmem:[%s12287_s25 + $0x6b0] sm:$0xff]  }
  0x4c   : > { %618 = vst [vmem:[%s12292_s26 + $0x3a0] sm:$0xff] %v617_v52   ;;  %v629_v55 = vld [vmem:[%s12287_s25 + $0x6b8] sm:$0xff]   ;;  %622 = vst [vmem:[%s12292_s26 + $0x3a8] sm:$0xff] %v621_v53   ;;  %v633_v56 = vld [vmem:[%s12287_s25 + $0x6c0] sm:$0xff]  }
  0x4d   : > { %626 = vst [vmem:[%s12292_s26 + $0x3b0] sm:$0xff] %v625_v54   ;;  %630 = vst [vmem:[%s12292_s26 + $0x3b8] sm:$0xff] %v629_v55   ;;  %v637_v57 = vld [vmem:[%s12287_s25 + $0x6c8] sm:$0xff]   ;;  %v641_v58 = vld [vmem:[%s12287_s25 + $0x6d0] sm:$0xff]  }
  0x4e   : > { %634 = vst [vmem:[%s12292_s26 + $0x3c0] sm:$0xff] %v633_v56   ;;  %638 = vst [vmem:[%s12292_s26 + $0x3c8] sm:$0xff] %v637_v57   ;;  %v645_v59 = vld [vmem:[%s12287_s25 + $0x6d8] sm:$0xff]   ;;  %v649_v60 = vld [vmem:[%s12287_s25 + $0x6e0] sm:$0xff]  }
  0x4f   : > { %642 = vst [vmem:[%s12292_s26 + $0x3d0] sm:$0xff] %v641_v58   ;;  %v653_v61 = vld [vmem:[%s12287_s25 + $0x6e8] sm:$0xff]   ;;  %646 = vst [vmem:[%s12292_s26 + $0x3d8] sm:$0xff] %v645_v59   ;;  %v657_v62 = vld [vmem:[%s12287_s25 + $0x6f0] sm:$0xff]  }
  0x50   : > { %650 = vst [vmem:[%s12292_s26 + $0x3e0] sm:$0xff] %v649_v60   ;;  %654 = vst [vmem:[%s12292_s26 + $0x3e8] sm:$0xff] %v653_v61   ;;  %v661_v63 = vld [vmem:[%s12287_s25 + $0x6f8] sm:$0xff]   ;;  %v665_v0 = vld [vmem:[%s12287_s25 + $0x800] sm:$0xff]  }
  0x51   : > { %658 = vst [vmem:[%s12292_s26 + $0x3f0] sm:$0xff] %v657_v62   ;;  %662 = vst [vmem:[%s12292_s26 + $0x3f8] sm:$0xff] %v661_v63   ;;  %v669_v1 = vld [vmem:[%s12287_s25 + $0x808] sm:$0xff]   ;;  %v673_v2 = vld [vmem:[%s12287_s25 + $0x810] sm:$0xff]  }
  0x52   : > { %666 = vst [vmem:[%s12292_s26 + $0x400] sm:$0xff] %v665_v0   ;;  %v677_v3 = vld [vmem:[%s12287_s25 + $0x818] sm:$0xff]   ;;  %670 = vst [vmem:[%s12292_s26 + $0x408] sm:$0xff] %v669_v1   ;;  %v681_v4 = vld [vmem:[%s12287_s25 + $0x820] sm:$0xff]  }
  0x53   : > { %674 = vst [vmem:[%s12292_s26 + $0x410] sm:$0xff] %v673_v2   ;;  %678 = vst [vmem:[%s12292_s26 + $0x418] sm:$0xff] %v677_v3   ;;  %v685_v5 = vld [vmem:[%s12287_s25 + $0x828] sm:$0xff]   ;;  %v689_v6 = vld [vmem:[%s12287_s25 + $0x830] sm:$0xff]  }
  0x54   : > { %682 = vst [vmem:[%s12292_s26 + $0x420] sm:$0xff] %v681_v4   ;;  %686 = vst [vmem:[%s12292_s26 + $0x428] sm:$0xff] %v685_v5   ;;  %v693_v7 = vld [vmem:[%s12287_s25 + $0x838] sm:$0xff]   ;;  %v697_v8 = vld [vmem:[%s12287_s25 + $0x840] sm:$0xff]  }
  0x55   : > { %690 = vst [vmem:[%s12292_s26 + $0x430] sm:$0xff] %v689_v6   ;;  %v701_v9 = vld [vmem:[%s12287_s25 + $0x848] sm:$0xff]   ;;  %694 = vst [vmem:[%s12292_s26 + $0x438] sm:$0xff] %v693_v7   ;;  %v705_v10 = vld [vmem:[%s12287_s25 + $0x850] sm:$0xff]  }
  0x56   : > { %698 = vst [vmem:[%s12292_s26 + $0x440] sm:$0xff] %v697_v8   ;;  %702 = vst [vmem:[%s12292_s26 + $0x448] sm:$0xff] %v701_v9   ;;  %v709_v11 = vld [vmem:[%s12287_s25 + $0x858] sm:$0xff]   ;;  %v713_v12 = vld [vmem:[%s12287_s25 + $0x860] sm:$0xff]  }
  0x57   : > { %706 = vst [vmem:[%s12292_s26 + $0x450] sm:$0xff] %v705_v10   ;;  %710 = vst [vmem:[%s12292_s26 + $0x458] sm:$0xff] %v709_v11   ;;  %v717_v13 = vld [vmem:[%s12287_s25 + $0x868] sm:$0xff]   ;;  %v721_v14 = vld [vmem:[%s12287_s25 + $0x870] sm:$0xff]  }
  0x58   : > { %714 = vst [vmem:[%s12292_s26 + $0x460] sm:$0xff] %v713_v12   ;;  %v725_v15 = vld [vmem:[%s12287_s25 + $0x878] sm:$0xff]   ;;  %718 = vst [vmem:[%s12292_s26 + $0x468] sm:$0xff] %v717_v13   ;;  %v729_v16 = vld [vmem:[%s12287_s25 + $0x880] sm:$0xff]  }
  0x59   : > { %722 = vst [vmem:[%s12292_s26 + $0x470] sm:$0xff] %v721_v14   ;;  %726 = vst [vmem:[%s12292_s26 + $0x478] sm:$0xff] %v725_v15   ;;  %v733_v17 = vld [vmem:[%s12287_s25 + $0x888] sm:$0xff]   ;;  %v737_v18 = vld [vmem:[%s12287_s25 + $0x890] sm:$0xff]  }
  0x5a   : > { %730 = vst [vmem:[%s12292_s26 + $0x480] sm:$0xff] %v729_v16   ;;  %734 = vst [vmem:[%s12292_s26 + $0x488] sm:$0xff] %v733_v17   ;;  %v741_v19 = vld [vmem:[%s12287_s25 + $0x898] sm:$0xff]   ;;  %v745_v20 = vld [vmem:[%s12287_s25 + $0x8a0] sm:$0xff]  }
  0x5b   : > { %738 = vst [vmem:[%s12292_s26 + $0x490] sm:$0xff] %v737_v18   ;;  %v749_v21 = vld [vmem:[%s12287_s25 + $0x8a8] sm:$0xff]   ;;  %742 = vst [vmem:[%s12292_s26 + $0x498] sm:$0xff] %v741_v19   ;;  %v753_v22 = vld [vmem:[%s12287_s25 + $0x8b0] sm:$0xff]  }
  0x5c   : > { %746 = vst [vmem:[%s12292_s26 + $0x4a0] sm:$0xff] %v745_v20   ;;  %750 = vst [vmem:[%s12292_s26 + $0x4a8] sm:$0xff] %v749_v21   ;;  %v757_v23 = vld [vmem:[%s12287_s25 + $0x8b8] sm:$0xff]   ;;  %v761_v24 = vld [vmem:[%s12287_s25 + $0x8c0] sm:$0xff]  }
  0x5d   : > { %754 = vst [vmem:[%s12292_s26 + $0x4b0] sm:$0xff] %v753_v22   ;;  %758 = vst [vmem:[%s12292_s26 + $0x4b8] sm:$0xff] %v757_v23   ;;  %v765_v25 = vld [vmem:[%s12287_s25 + $0x8c8] sm:$0xff]   ;;  %v769_v26 = vld [vmem:[%s12287_s25 + $0x8d0] sm:$0xff]  }
  0x5e   : > { %762 = vst [vmem:[%s12292_s26 + $0x4c0] sm:$0xff] %v761_v24   ;;  %v773_v27 = vld [vmem:[%s12287_s25 + $0x8d8] sm:$0xff]   ;;  %766 = vst [vmem:[%s12292_s26 + $0x4c8] sm:$0xff] %v765_v25   ;;  %v777_v28 = vld [vmem:[%s12287_s25 + $0x8e0] sm:$0xff]  }
  0x5f   : > { %770 = vst [vmem:[%s12292_s26 + $0x4d0] sm:$0xff] %v769_v26   ;;  %774 = vst [vmem:[%s12292_s26 + $0x4d8] sm:$0xff] %v773_v27   ;;  %v781_v29 = vld [vmem:[%s12287_s25 + $0x8e8] sm:$0xff]   ;;  %v785_v30 = vld [vmem:[%s12287_s25 + $0x8f0] sm:$0xff]  }
  0x60   : > { %778 = vst [vmem:[%s12292_s26 + $0x4e0] sm:$0xff] %v777_v28   ;;  %782 = vst [vmem:[%s12292_s26 + $0x4e8] sm:$0xff] %v781_v29   ;;  %v789_v31 = vld [vmem:[%s12287_s25 + $0x8f8] sm:$0xff]   ;;  %v793_v32 = vld [vmem:[%s12287_s25 + $0xa00] sm:$0xff]  }
  0x61   : > { %786 = vst [vmem:[%s12292_s26 + $0x4f0] sm:$0xff] %v785_v30   ;;  %v797_v33 = vld [vmem:[%s12287_s25 + $0xa08] sm:$0xff]   ;;  %790 = vst [vmem:[%s12292_s26 + $0x4f8] sm:$0xff] %v789_v31   ;;  %v801_v34 = vld [vmem:[%s12287_s25 + $0xa10] sm:$0xff]  }
  0x62   : > { %794 = vst [vmem:[%s12292_s26 + $0x500] sm:$0xff] %v793_v32   ;;  %798 = vst [vmem:[%s12292_s26 + $0x508] sm:$0xff] %v797_v33   ;;  %v805_v35 = vld [vmem:[%s12287_s25 + $0xa18] sm:$0xff]   ;;  %v809_v36 = vld [vmem:[%s12287_s25 + $0xa20] sm:$0xff]  }
  0x63   : > { %802 = vst [vmem:[%s12292_s26 + $0x510] sm:$0xff] %v801_v34   ;;  %806 = vst [vmem:[%s12292_s26 + $0x518] sm:$0xff] %v805_v35   ;;  %v813_v37 = vld [vmem:[%s12287_s25 + $0xa28] sm:$0xff]   ;;  %v817_v38 = vld [vmem:[%s12287_s25 + $0xa30] sm:$0xff]  }
  0x64   : > { %810 = vst [vmem:[%s12292_s26 + $0x520] sm:$0xff] %v809_v36   ;;  %v821_v39 = vld [vmem:[%s12287_s25 + $0xa38] sm:$0xff]   ;;  %814 = vst [vmem:[%s12292_s26 + $0x528] sm:$0xff] %v813_v37   ;;  %v825_v40 = vld [vmem:[%s12287_s25 + $0xa40] sm:$0xff]  }
  0x65   : > { %818 = vst [vmem:[%s12292_s26 + $0x530] sm:$0xff] %v817_v38   ;;  %822 = vst [vmem:[%s12292_s26 + $0x538] sm:$0xff] %v821_v39   ;;  %v829_v41 = vld [vmem:[%s12287_s25 + $0xa48] sm:$0xff]   ;;  %v833_v42 = vld [vmem:[%s12287_s25 + $0xa50] sm:$0xff]  }
  0x66   : > { %826 = vst [vmem:[%s12292_s26 + $0x540] sm:$0xff] %v825_v40   ;;  %830 = vst [vmem:[%s12292_s26 + $0x548] sm:$0xff] %v829_v41   ;;  %v837_v43 = vld [vmem:[%s12287_s25 + $0xa58] sm:$0xff]   ;;  %v841_v44 = vld [vmem:[%s12287_s25 + $0xa60] sm:$0xff]  }
  0x67   : > { %834 = vst [vmem:[%s12292_s26 + $0x550] sm:$0xff] %v833_v42   ;;  %v845_v45 = vld [vmem:[%s12287_s25 + $0xa68] sm:$0xff]   ;;  %838 = vst [vmem:[%s12292_s26 + $0x558] sm:$0xff] %v837_v43   ;;  %v849_v46 = vld [vmem:[%s12287_s25 + $0xa70] sm:$0xff]  }
  0x68   : > { %842 = vst [vmem:[%s12292_s26 + $0x560] sm:$0xff] %v841_v44   ;;  %846 = vst [vmem:[%s12292_s26 + $0x568] sm:$0xff] %v845_v45   ;;  %v853_v47 = vld [vmem:[%s12287_s25 + $0xa78] sm:$0xff]   ;;  %v857_v48 = vld [vmem:[%s12287_s25 + $0xa80] sm:$0xff]  }
  0x69   : > { %850 = vst [vmem:[%s12292_s26 + $0x570] sm:$0xff] %v849_v46   ;;  %854 = vst [vmem:[%s12292_s26 + $0x578] sm:$0xff] %v853_v47   ;;  %v861_v49 = vld [vmem:[%s12287_s25 + $0xa88] sm:$0xff]   ;;  %v865_v50 = vld [vmem:[%s12287_s25 + $0xa90] sm:$0xff]  }
  0x6a   : > { %858 = vst [vmem:[%s12292_s26 + $0x580] sm:$0xff] %v857_v48   ;;  %v869_v51 = vld [vmem:[%s12287_s25 + $0xa98] sm:$0xff]   ;;  %862 = vst [vmem:[%s12292_s26 + $0x588] sm:$0xff] %v861_v49   ;;  %v873_v52 = vld [vmem:[%s12287_s25 + $0xaa0] sm:$0xff]  }
  0x6b   : > { %866 = vst [vmem:[%s12292_s26 + $0x590] sm:$0xff] %v865_v50   ;;  %870 = vst [vmem:[%s12292_s26 + $0x598] sm:$0xff] %v869_v51   ;;  %v877_v53 = vld [vmem:[%s12287_s25 + $0xaa8] sm:$0xff]   ;;  %v881_v54 = vld [vmem:[%s12287_s25 + $0xab0] sm:$0xff]  }
  0x6c   : > { %874 = vst [vmem:[%s12292_s26 + $0x5a0] sm:$0xff] %v873_v52   ;;  %878 = vst [vmem:[%s12292_s26 + $0x5a8] sm:$0xff] %v877_v53   ;;  %v885_v55 = vld [vmem:[%s12287_s25 + $0xab8] sm:$0xff]   ;;  %v889_v56 = vld [vmem:[%s12287_s25 + $0xac0] sm:$0xff]  }
  0x6d   : > { %882 = vst [vmem:[%s12292_s26 + $0x5b0] sm:$0xff] %v881_v54   ;;  %v893_v57 = vld [vmem:[%s12287_s25 + $0xac8] sm:$0xff]   ;;  %886 = vst [vmem:[%s12292_s26 + $0x5b8] sm:$0xff] %v885_v55   ;;  %v897_v58 = vld [vmem:[%s12287_s25 + $0xad0] sm:$0xff]  }
  0x6e   : > { %890 = vst [vmem:[%s12292_s26 + $0x5c0] sm:$0xff] %v889_v56   ;;  %894 = vst [vmem:[%s12292_s26 + $0x5c8] sm:$0xff] %v893_v57   ;;  %v901_v59 = vld [vmem:[%s12287_s25 + $0xad8] sm:$0xff]   ;;  %v905_v60 = vld [vmem:[%s12287_s25 + $0xae0] sm:$0xff]  }
  0x6f   : > { %898 = vst [vmem:[%s12292_s26 + $0x5d0] sm:$0xff] %v897_v58   ;;  %902 = vst [vmem:[%s12292_s26 + $0x5d8] sm:$0xff] %v901_v59   ;;  %v909_v61 = vld [vmem:[%s12287_s25 + $0xae8] sm:$0xff]   ;;  %v913_v62 = vld [vmem:[%s12287_s25 + $0xaf0] sm:$0xff]  }
  0x70   : > { %906 = vst [vmem:[%s12292_s26 + $0x5e0] sm:$0xff] %v905_v60   ;;  %v917_v63 = vld [vmem:[%s12287_s25 + $0xaf8] sm:$0xff]   ;;  %910 = vst [vmem:[%s12292_s26 + $0x5e8] sm:$0xff] %v909_v61   ;;  %v921_v0 = vld [vmem:[%s12287_s25 + $0xc00] sm:$0xff]  }
  0x71   : > { %914 = vst [vmem:[%s12292_s26 + $0x5f0] sm:$0xff] %v913_v62   ;;  %918 = vst [vmem:[%s12292_s26 + $0x5f8] sm:$0xff] %v917_v63   ;;  %v925_v1 = vld [vmem:[%s12287_s25 + $0xc08] sm:$0xff]   ;;  %v929_v2 = vld [vmem:[%s12287_s25 + $0xc10] sm:$0xff]  }
  0x72   : > { %922 = vst [vmem:[%s12292_s26 + $0x600] sm:$0xff] %v921_v0   ;;  %926 = vst [vmem:[%s12292_s26 + $0x608] sm:$0xff] %v925_v1   ;;  %v933_v3 = vld [vmem:[%s12287_s25 + $0xc18] sm:$0xff]   ;;  %v937_v4 = vld [vmem:[%s12287_s25 + $0xc20] sm:$0xff]  }
  0x73   : > { %930 = vst [vmem:[%s12292_s26 + $0x610] sm:$0xff] %v929_v2   ;;  %v941_v5 = vld [vmem:[%s12287_s25 + $0xc28] sm:$0xff]   ;;  %934 = vst [vmem:[%s12292_s26 + $0x618] sm:$0xff] %v933_v3   ;;  %v945_v6 = vld [vmem:[%s12287_s25 + $0xc30] sm:$0xff]  }
  0x74   : > { %938 = vst [vmem:[%s12292_s26 + $0x620] sm:$0xff] %v937_v4   ;;  %942 = vst [vmem:[%s12292_s26 + $0x628] sm:$0xff] %v941_v5   ;;  %v949_v7 = vld [vmem:[%s12287_s25 + $0xc38] sm:$0xff]   ;;  %v953_v8 = vld [vmem:[%s12287_s25 + $0xc40] sm:$0xff]  }
  0x75   : > { %946 = vst [vmem:[%s12292_s26 + $0x630] sm:$0xff] %v945_v6   ;;  %950 = vst [vmem:[%s12292_s26 + $0x638] sm:$0xff] %v949_v7   ;;  %v957_v9 = vld [vmem:[%s12287_s25 + $0xc48] sm:$0xff]   ;;  %v961_v10 = vld [vmem:[%s12287_s25 + $0xc50] sm:$0xff]  }
  0x76   : > { %954 = vst [vmem:[%s12292_s26 + $0x640] sm:$0xff] %v953_v8   ;;  %v965_v11 = vld [vmem:[%s12287_s25 + $0xc58] sm:$0xff]   ;;  %958 = vst [vmem:[%s12292_s26 + $0x648] sm:$0xff] %v957_v9   ;;  %v969_v12 = vld [vmem:[%s12287_s25 + $0xc60] sm:$0xff]  }
  0x77   : > { %962 = vst [vmem:[%s12292_s26 + $0x650] sm:$0xff] %v961_v10   ;;  %966 = vst [vmem:[%s12292_s26 + $0x658] sm:$0xff] %v965_v11   ;;  %v973_v13 = vld [vmem:[%s12287_s25 + $0xc68] sm:$0xff]   ;;  %v977_v14 = vld [vmem:[%s12287_s25 + $0xc70] sm:$0xff]  }
  0x78   : > { %970 = vst [vmem:[%s12292_s26 + $0x660] sm:$0xff] %v969_v12   ;;  %974 = vst [vmem:[%s12292_s26 + $0x668] sm:$0xff] %v973_v13   ;;  %v981_v15 = vld [vmem:[%s12287_s25 + $0xc78] sm:$0xff]   ;;  %v985_v16 = vld [vmem:[%s12287_s25 + $0xc80] sm:$0xff]  }
  0x79   : > { %978 = vst [vmem:[%s12292_s26 + $0x670] sm:$0xff] %v977_v14   ;;  %v989_v17 = vld [vmem:[%s12287_s25 + $0xc88] sm:$0xff]   ;;  %982 = vst [vmem:[%s12292_s26 + $0x678] sm:$0xff] %v981_v15   ;;  %v993_v18 = vld [vmem:[%s12287_s25 + $0xc90] sm:$0xff]  }
  0x7a   : > { %986 = vst [vmem:[%s12292_s26 + $0x680] sm:$0xff] %v985_v16   ;;  %990 = vst [vmem:[%s12292_s26 + $0x688] sm:$0xff] %v989_v17   ;;  %v997_v19 = vld [vmem:[%s12287_s25 + $0xc98] sm:$0xff]   ;;  %v1001_v20 = vld [vmem:[%s12287_s25 + $0xca0] sm:$0xff]  }
  0x7b   : > { %994 = vst [vmem:[%s12292_s26 + $0x690] sm:$0xff] %v993_v18   ;;  %998 = vst [vmem:[%s12292_s26 + $0x698] sm:$0xff] %v997_v19   ;;  %v1005_v21 = vld [vmem:[%s12287_s25 + $0xca8] sm:$0xff]   ;;  %v1009_v22 = vld [vmem:[%s12287_s25 + $0xcb0] sm:$0xff]  }
  0x7c   : > { %1002 = vst [vmem:[%s12292_s26 + $0x6a0] sm:$0xff] %v1001_v20   ;;  %v1013_v23 = vld [vmem:[%s12287_s25 + $0xcb8] sm:$0xff]   ;;  %1006 = vst [vmem:[%s12292_s26 + $0x6a8] sm:$0xff] %v1005_v21   ;;  %v1017_v24 = vld [vmem:[%s12287_s25 + $0xcc0] sm:$0xff]  }
  0x7d   : > { %1010 = vst [vmem:[%s12292_s26 + $0x6b0] sm:$0xff] %v1009_v22   ;;  %1014 = vst [vmem:[%s12292_s26 + $0x6b8] sm:$0xff] %v1013_v23   ;;  %v1021_v25 = vld [vmem:[%s12287_s25 + $0xcc8] sm:$0xff]   ;;  %v1025_v26 = vld [vmem:[%s12287_s25 + $0xcd0] sm:$0xff]  }
  0x7e   : > { %1018 = vst [vmem:[%s12292_s26 + $0x6c0] sm:$0xff] %v1017_v24   ;;  %1022 = vst [vmem:[%s12292_s26 + $0x6c8] sm:$0xff] %v1021_v25   ;;  %v1029_v27 = vld [vmem:[%s12287_s25 + $0xcd8] sm:$0xff]   ;;  %v1033_v28 = vld [vmem:[%s12287_s25 + $0xce0] sm:$0xff]  }
  0x7f   : > { %1026 = vst [vmem:[%s12292_s26 + $0x6d0] sm:$0xff] %v1025_v26   ;;  %v1037_v29 = vld [vmem:[%s12287_s25 + $0xce8] sm:$0xff]   ;;  %1030 = vst [vmem:[%s12292_s26 + $0x6d8] sm:$0xff] %v1029_v27   ;;  %v1041_v30 = vld [vmem:[%s12287_s25 + $0xcf0] sm:$0xff]  }
  0x80   : > { %1034 = vst [vmem:[%s12292_s26 + $0x6e0] sm:$0xff] %v1033_v28   ;;  %1038 = vst [vmem:[%s12292_s26 + $0x6e8] sm:$0xff] %v1037_v29   ;;  %v1045_v31 = vld [vmem:[%s12287_s25 + $0xcf8] sm:$0xff]   ;;  %v1049_v32 = vld [vmem:[%s12287_s25 + $0xe00] sm:$0xff]  }
  0x81   : > { %1042 = vst [vmem:[%s12292_s26 + $0x6f0] sm:$0xff] %v1041_v30   ;;  %1046 = vst [vmem:[%s12292_s26 + $0x6f8] sm:$0xff] %v1045_v31   ;;  %v1053_v33 = vld [vmem:[%s12287_s25 + $0xe08] sm:$0xff]   ;;  %v1057_v34 = vld [vmem:[%s12287_s25 + $0xe10] sm:$0xff]  }
  0x82   : > { %1050 = vst [vmem:[%s12292_s26 + $0x700] sm:$0xff] %v1049_v32   ;;  %v1061_v35 = vld [vmem:[%s12287_s25 + $0xe18] sm:$0xff]   ;;  %1054 = vst [vmem:[%s12292_s26 + $0x708] sm:$0xff] %v1053_v33   ;;  %v1065_v36 = vld [vmem:[%s12287_s25 + $0xe20] sm:$0xff]  }
  0x83   : > { %1058 = vst [vmem:[%s12292_s26 + $0x710] sm:$0xff] %v1057_v34   ;;  %1062 = vst [vmem:[%s12292_s26 + $0x718] sm:$0xff] %v1061_v35   ;;  %v1069_v37 = vld [vmem:[%s12287_s25 + $0xe28] sm:$0xff]   ;;  %v1073_v38 = vld [vmem:[%s12287_s25 + $0xe30] sm:$0xff]  }
  0x84   : > { %1066 = vst [vmem:[%s12292_s26 + $0x720] sm:$0xff] %v1065_v36   ;;  %1070 = vst [vmem:[%s12292_s26 + $0x728] sm:$0xff] %v1069_v37   ;;  %v1077_v39 = vld [vmem:[%s12287_s25 + $0xe38] sm:$0xff]   ;;  %v1081_v40 = vld [vmem:[%s12287_s25 + $0xe40] sm:$0xff]  }
  0x85   : > { %1074 = vst [vmem:[%s12292_s26 + $0x730] sm:$0xff] %v1073_v38   ;;  %v1085_v41 = vld [vmem:[%s12287_s25 + $0xe48] sm:$0xff]   ;;  %1078 = vst [vmem:[%s12292_s26 + $0x738] sm:$0xff] %v1077_v39   ;;  %v1089_v42 = vld [vmem:[%s12287_s25 + $0xe50] sm:$0xff]  }
  0x86   : > { %1082 = vst [vmem:[%s12292_s26 + $0x740] sm:$0xff] %v1081_v40   ;;  %1086 = vst [vmem:[%s12292_s26 + $0x748] sm:$0xff] %v1085_v41   ;;  %v1093_v43 = vld [vmem:[%s12287_s25 + $0xe58] sm:$0xff]   ;;  %v1097_v44 = vld [vmem:[%s12287_s25 + $0xe60] sm:$0xff]  }
  0x87   : > { %1090 = vst [vmem:[%s12292_s26 + $0x750] sm:$0xff] %v1089_v42   ;;  %1094 = vst [vmem:[%s12292_s26 + $0x758] sm:$0xff] %v1093_v43   ;;  %v1101_v45 = vld [vmem:[%s12287_s25 + $0xe68] sm:$0xff]   ;;  %v1105_v46 = vld [vmem:[%s12287_s25 + $0xe70] sm:$0xff]  }
  0x88   : > { %1098 = vst [vmem:[%s12292_s26 + $0x760] sm:$0xff] %v1097_v44   ;;  %v1109_v47 = vld [vmem:[%s12287_s25 + $0xe78] sm:$0xff]   ;;  %1102 = vst [vmem:[%s12292_s26 + $0x768] sm:$0xff] %v1101_v45   ;;  %v1113_v48 = vld [vmem:[%s12287_s25 + $0xe80] sm:$0xff]  }
  0x89   : > { %1106 = vst [vmem:[%s12292_s26 + $0x770] sm:$0xff] %v1105_v46   ;;  %1110 = vst [vmem:[%s12292_s26 + $0x778] sm:$0xff] %v1109_v47   ;;  %v1117_v49 = vld [vmem:[%s12287_s25 + $0xe88] sm:$0xff]   ;;  %v1121_v50 = vld [vmem:[%s12287_s25 + $0xe90] sm:$0xff]  }
  0x8a   : > { %1114 = vst [vmem:[%s12292_s26 + $0x780] sm:$0xff] %v1113_v48   ;;  %1118 = vst [vmem:[%s12292_s26 + $0x788] sm:$0xff] %v1117_v49   ;;  %v1125_v51 = vld [vmem:[%s12287_s25 + $0xe98] sm:$0xff]   ;;  %v1129_v52 = vld [vmem:[%s12287_s25 + $0xea0] sm:$0xff]  }
  0x8b   : > { %1122 = vst [vmem:[%s12292_s26 + $0x790] sm:$0xff] %v1121_v50   ;;  %v1133_v53 = vld [vmem:[%s12287_s25 + $0xea8] sm:$0xff]   ;;  %1126 = vst [vmem:[%s12292_s26 + $0x798] sm:$0xff] %v1125_v51   ;;  %v1137_v54 = vld [vmem:[%s12287_s25 + $0xeb0] sm:$0xff]  }
  0x8c   : > { %1130 = vst [vmem:[%s12292_s26 + $0x7a0] sm:$0xff] %v1129_v52   ;;  %1134 = vst [vmem:[%s12292_s26 + $0x7a8] sm:$0xff] %v1133_v53   ;;  %v1141_v55 = vld [vmem:[%s12287_s25 + $0xeb8] sm:$0xff]   ;;  %v1145_v56 = vld [vmem:[%s12287_s25 + $0xec0] sm:$0xff]  }
  0x8d   : > { %1138 = vst [vmem:[%s12292_s26 + $0x7b0] sm:$0xff] %v1137_v54   ;;  %1142 = vst [vmem:[%s12292_s26 + $0x7b8] sm:$0xff] %v1141_v55   ;;  %v1149_v57 = vld [vmem:[%s12287_s25 + $0xec8] sm:$0xff]   ;;  %v1153_v58 = vld [vmem:[%s12287_s25 + $0xed0] sm:$0xff]  }
  0x8e   : > { %1146 = vst [vmem:[%s12292_s26 + $0x7c0] sm:$0xff] %v1145_v56   ;;  %v1157_v59 = vld [vmem:[%s12287_s25 + $0xed8] sm:$0xff]   ;;  %1150 = vst [vmem:[%s12292_s26 + $0x7c8] sm:$0xff] %v1149_v57   ;;  %v1161_v60 = vld [vmem:[%s12287_s25 + $0xee0] sm:$0xff]  }
  0x8f   : > { %1154 = vst [vmem:[%s12292_s26 + $0x7d0] sm:$0xff] %v1153_v58   ;;  %1158 = vst [vmem:[%s12292_s26 + $0x7d8] sm:$0xff] %v1157_v59   ;;  %v1165_v61 = vld [vmem:[%s12287_s25 + $0xee8] sm:$0xff]   ;;  %v1169_v62 = vld [vmem:[%s12287_s25 + $0xef0] sm:$0xff]  }
  0x90   : > { %1162 = vst [vmem:[%s12292_s26 + $0x7e0] sm:$0xff] %v1161_v60   ;;  %1166 = vst [vmem:[%s12292_s26 + $0x7e8] sm:$0xff] %v1165_v61   ;;  %v1173_v63 = vld [vmem:[%s12287_s25 + $0xef8] sm:$0xff]  }
  0x91   : > { %1170 = vst [vmem:[%s12292_s26 + $0x7f0] sm:$0xff] %v1169_v62   ;;  %1174 = vst [vmem:[%s12292_s26 + $0x7f8] sm:$0xff] %v1173_v63  }
  0x92 PF: > { %p10496_p5 = scmp.ge.s32.totalorder %s12230_s14, 1  ;;  %p4300_p6 = scmp.lt.s32.totalorder %s12230_s14, 3 }
  0x94   : > { %p4301_p7 = pnand %p10496_p5, %p4300_p6 }
  0x96   : > { %4304 = sbr.rel (%p4301_p7) target bundleno = 983 (0x3d7), region = 80 }
  0x9d   : > { %v11949_v0 = vld [vmem:[%s16425_s1] sm:$0xff]   ;;  %vm6914_vm0 = vcmask 1044480   ;;  %v11950_v1 = vld [vmem:[%s16425_s1 + $0x8] sm:$0x3f]   ;;  %vm6915_vm1 = vcmask 1045504   ;;  %s4307_s4 = sand.u32 1, %s12222_s12  }
  0x9e   : > { %11404 = vmatprep.subr.bf16.mxu0 %v11949_v0  ;;  %11920 = vmatprep.subr.bf16.mxu1 %v11949_v0  ;;  %v12232_v2 = vmov 65535   ;;  %s10497_s5 = sshll.u32 %s4307_s4, 11  ;;  %vm6145_vm2 = vcmask 220160   ;;  %vm9002_vm3 = vcmask 130048   ;;  %s15506_s7 = sshll.u32 %s10489_s15, 6  ;;  %vm10354_vm4 = vcmask 125952  }
  0x9f   : > { %11405 = vmatpush3.bf16.msra.mxu0 %v11949_v0  ;;  %v6916_v3 = vsel %vm6914_vm0, 4294967295, %v12232_v2  ;;  %11922 = vmatpush3.bf16.msra.mxu1 %v11949_v0  ;;  %s12812_s6 = scalar_lea.vmem [#allocation2], %s10497_s5  ;;  %p4332_p8 = scmp.lt.s32.totalorder %s15506_s7, 127 }
  0xa0   : > { %v6917_v4 = vsel %vm6915_vm1, %v6916_v3, 0  ;;  %v11951_v6 = vld [vmem:[%s12812_s6] sm:$0xff]   ;;  %v11952_v7 = vld [vmem:[%s12812_s6 + $0x8] sm:$0xff]   ;;  %v11955_v10 = vld [vmem:[%s12812_s6 + $0x10] sm:$0xff]  }
  0xa1   : > { %v6919_v5 = vand.u32 %v11950_v1, %v6917_v4  ;;  %11408 = vmatprep.mubr.msk.bf16.mxu0 %vm6145_vm2, %v11951_v6  ;;  %v11953_v8 = vld [vmem:[%s12812_s6 + $0x400] sm:$0xff]   ;;  %v11954_v9 = vld [vmem:[%s12812_s6 + $0x408] sm:$0xff]   ;;  %v11957_v11 = vld [vmem:[%s12812_s6 + $0x410] sm:$0xff]   ;;  %s17473_s7 = smov (!%p4332_p8, %s15506_s7), 127 }
  0xa2   : > { %11664 = vmatprep.mubr.msk.bf16.mxu1 %vm6145_vm2, %v11953_v8  ;;  %v11956_v12 = vld [vmem:[%s12812_s6 + $0x18] sm:$0xff]   ;;  %v11959_v14 = vld [vmem:[%s12812_s6 + $0x20] sm:$0xff]   ;;  %v11960_v16 = vld [vmem:[%s12812_s6 + $0x28] sm:$0xff]   ;;  %s10499_s10 = sshll.u32 %s17473_s7, 2 }
  0xa3   : > { %11406 = vmatprep.subr.bf16.mxu0 %v6919_v5  ;;  %11921 = vmatprep.subr.bf16.mxu1 %v6919_v5  ;;  %v11958_v13 = vld [vmem:[%s12812_s6 + $0x418] sm:$0xff]   ;;  %v11961_v15 = vld [vmem:[%s12812_s6 + $0x420] sm:$0xff]   ;;  %v11962_v17 = vld [vmem:[%s12812_s6 + $0x428] sm:$0xff]   ;;  %s15612_s14 = scalar_lea.vmem %s16427_s3, %s10499_s10 }
  0xa4   : > { %11407 = vmatpush3.bf16.msra.mxu0 %v6919_v5  ;;  %11923 = vmatpush3.bf16.msra.mxu1 %v6919_v5  ;;  %v11963_v18 = vld [vmem:[%s12812_s6 + $0x30] sm:$0xff]   ;;  %v11964_v20 = vld [vmem:[%s12812_s6 + $0x38] sm:$0xff]   ;;  %v11967_v22 = vld [vmem:[%s12812_s6 + $0x40] sm:$0xff]  }
  0xa5   : > { %v11965_v19 = vld [vmem:[%s12812_s6 + $0x430] sm:$0xff]   ;;  %v11966_v21 = vld [vmem:[%s12812_s6 + $0x438] sm:$0xff]   ;;  %v11969_v23 = vld [vmem:[%s12812_s6 + $0x440] sm:$0xff]  }
  0xa6   : > { %v11968_v24 = vld [vmem:[%s12812_s6 + $0x48] sm:$0xff]   ;;  %v11971_v26 = vld [vmem:[%s12812_s6 + $0x50] sm:$0xff]   ;;  %v11972_v28 = vld [vmem:[%s12812_s6 + $0x58] sm:$0xff]  }
  0xa7   : > { %11409 = vmatmul.mubr.msk.bf16.vlgmr.msra.gmra.mrb[0].mxu0 %vm6145_vm2, %v11952_v7  ;;  %11665 = vmatmul.mubr.msk.bf16.vlgmr.msra.gmra.mrb[0].mxu1 %vm6145_vm2, %v11954_v9  ;;  %v11970_v25 = vld [vmem:[%s12812_s6 + $0x448] sm:$0xff]   ;;  %v11973_v27 = vld [vmem:[%s12812_s6 + $0x450] sm:$0xff]   ;;  %v11974_v29 = vld [vmem:[%s12812_s6 + $0x458] sm:$0xff]  }
  0xa8   : > { %11412 = vmatprep.mubr.msk.bf16.mxu0 %vm6145_vm2, %v11955_v10  ;;  %11668 = vmatprep.mubr.msk.bf16.mxu1 %vm6145_vm2, %v11957_v11  ;;  %v11975_v30 = vld [vmem:[%s12812_s6 + $0x60] sm:$0xff]   ;;  %v11976_v32 = vld [vmem:[%s12812_s6 + $0x68] sm:$0xff]   ;;  %v11979_v34 = vld [vmem:[%s12812_s6 + $0x70] sm:$0xff]  }
  0xa9   : > { %v11977_v31 = vld [vmem:[%s12812_s6 + $0x460] sm:$0xff]   ;;  %v11978_v33 = vld [vmem:[%s12812_s6 + $0x468] sm:$0xff]   ;;  %v11981_v35 = vld [vmem:[%s12812_s6 + $0x470] sm:$0xff]  }
  0xaa   : > { %v11980_v36 = vld [vmem:[%s12812_s6 + $0x78] sm:$0xff]   ;;  %v11983_v38 = vld [vmem:[%s12812_s6 + $0x80] sm:$0xff]   ;;  %v11984_v40 = vld [vmem:[%s12812_s6 + $0x88] sm:$0xff]  }
  0xab   : > { %v11982_v37 = vld [vmem:[%s12812_s6 + $0x478] sm:$0xff]   ;;  %v11985_v39 = vld [vmem:[%s12812_s6 + $0x480] sm:$0xff]   ;;  %v11986_v41 = vld [vmem:[%s12812_s6 + $0x488] sm:$0xff]  }
  0xac   : > { %v11987_v42 = vld [vmem:[%s12812_s6 + $0x90] sm:$0xff]   ;;  %v11988_v44 = vld [vmem:[%s12812_s6 + $0x98] sm:$0xff]   ;;  %v11991_v46 = vld [vmem:[%s12812_s6 + $0xa0] sm:$0xff]  }
  0xad   : > { %v11989_v43 = vld [vmem:[%s12812_s6 + $0x490] sm:$0xff]   ;;  %v11990_v45 = vld [vmem:[%s12812_s6 + $0x498] sm:$0xff]   ;;  %v11993_v47 = vld [vmem:[%s12812_s6 + $0x4a0] sm:$0xff]  }
  0xae   : > { %v11992_v48 = vld [vmem:[%s12812_s6 + $0xa8] sm:$0xff]   ;;  %v11995_v50 = vld [vmem:[%s12812_s6 + $0xb0] sm:$0xff]   ;;  %v11996_v52 = vld [vmem:[%s12812_s6 + $0xb8] sm:$0xff]  }
  0xaf   : > { %11413 = vmatmul.mubr.msk.bf16.gmra.mrb[4].mxu0 %vm6145_vm2, %v11956_v12  ;;  %11669 = vmatmul.mubr.msk.bf16.gmra.mrb[4].mxu1 %vm6145_vm2, %v11958_v13  ;;  %v11994_v49 = vld [vmem:[%s12812_s6 + $0x4a8] sm:$0xff]   ;;  %v11997_v51 = vld [vmem:[%s12812_s6 + $0x4b0] sm:$0xff]   ;;  %v11998_v53 = vld [vmem:[%s12812_s6 + $0x4b8] sm:$0xff]  }
  0xb0   : > { %11416 = vmatprep.mubr.msk.bf16.mxu0 %vm6145_vm2, %v11959_v14  ;;  %11672 = vmatprep.mubr.msk.bf16.mxu1 %vm6145_vm2, %v11961_v15  ;;  %v11999_v54 = vld [vmem:[%s12812_s6 + $0xc0] sm:$0xff]   ;;  %v12000_v56 = vld [vmem:[%s12812_s6 + $0xc8] sm:$0xff]   ;;  %v12003_v58 = vld [vmem:[%s12812_s6 + $0xd0] sm:$0xff]  }
  0xb1   : > { %v12001_v55 = vld [vmem:[%s12812_s6 + $0x4c0] sm:$0xff]   ;;  %v12002_v57 = vld [vmem:[%s12812_s6 + $0x4c8] sm:$0xff]   ;;  %v12005_v59 = vld [vmem:[%s12812_s6 + $0x4d0] sm:$0xff]  }
  0xb2   : > { %v12004_v60 = vld [vmem:[%s12812_s6 + $0xd8] sm:$0xff]   ;;  %v12007_v62 = vld [vmem:[%s12812_s6 + $0xe0] sm:$0xff]   ;;  %v12008_v0 = vld [vmem:[%s12812_s6 + $0xe8] sm:$0xff]  }
  0xb3   : > { %v12006_v61 = vld [vmem:[%s12812_s6 + $0x4d8] sm:$0xff]   ;;  %v12009_v63 = vld [vmem:[%s12812_s6 + $0x4e0] sm:$0xff]   ;;  %v12010_v1 = vld [vmem:[%s12812_s6 + $0x4e8] sm:$0xff]  }
  0xb4   : > { %v12011_v2 = vld [vmem:[%s12812_s6 + $0xf0] sm:$0xff]   ;;  %v12012_v4 = vld [vmem:[%s12812_s6 + $0xf8] sm:$0xff]   ;;  %v12015_v6 = vld [vmem:[%s12812_s6 + $0x100] sm:$0xff]  }
  0xb5   : > { %v12013_v3 = vld [vmem:[%s12812_s6 + $0x4f0] sm:$0xff]   ;;  %v12014_v5 = vld [vmem:[%s12812_s6 + $0x4f8] sm:$0xff]   ;;  %v12017_v7 = vld [vmem:[%s12812_s6 + $0x500] sm:$0xff]  }
  0xb6   : > { %v12016_v8 = vld [vmem:[%s12812_s6 + $0x108] sm:$0xff]   ;;  %v12019_v10 = vld [vmem:[%s12812_s6 + $0x110] sm:$0xff]   ;;  %v12020_v12 = vld [vmem:[%s12812_s6 + $0x118] sm:$0xff]  }
  0xb7   : > { %11417 = vmatmul.mubr.msk.bf16.gmra.mrb[8].mxu0 %vm6145_vm2, %v11960_v16  ;;  %11673 = vmatmul.mubr.msk.bf16.gmra.mrb[8].mxu1 %vm6145_vm2, %v11962_v17  ;;  %v12018_v9 = vld [vmem:[%s12812_s6 + $0x508] sm:$0xff]   ;;  %v12021_v11 = vld [vmem:[%s12812_s6 + $0x510] sm:$0xff]   ;;  %v12022_v13 = vld [vmem:[%s12812_s6 + $0x518] sm:$0xff]  }
  0xb8   : > { %11420 = vmatprep.mubr.msk.bf16.mxu0 %vm6145_vm2, %v11963_v18  ;;  %11676 = vmatprep.mubr.msk.bf16.mxu1 %vm6145_vm2, %v11965_v19  ;;  %v12023_v14 = vld [vmem:[%s12812_s6 + $0x120] sm:$0xff]   ;;  %v12024_v16 = vld [vmem:[%s12812_s6 + $0x128] sm:$0xff]   ;;  %v12027_v18 = vld [vmem:[%s12812_s6 + $0x130] sm:$0xff]  }
  0xb9   : > { %v12025_v15 = vld [vmem:[%s12812_s6 + $0x520] sm:$0xff]   ;;  %v12026_v17 = vld [vmem:[%s12812_s6 + $0x528] sm:$0xff]   ;;  %v12029_v19 = vld [vmem:[%s12812_s6 + $0x530] sm:$0xff]  }
  0xbf   : > { %11421 = vmatmul.mubr.msk.bf16.gmra.mrb[12].mxu0 %vm6145_vm2, %v11964_v20  ;;  %11677 = vmatmul.mubr.msk.bf16.gmra.mrb[12].mxu1 %vm6145_vm2, %v11966_v21  ;;  %v12028_v20 = vld [vmem:[%s12812_s6 + $0x138] sm:$0xff]  }
  0xc0   : > { %11424 = vmatprep.mubr.msk.bf16.mxu0 %vm6145_vm2, %v11967_v22  ;;  %11680 = vmatprep.mubr.msk.bf16.mxu1 %vm6145_vm2, %v11969_v23  ;;  %v12030_v21 = vld [vmem:[%s12812_s6 + $0x538] sm:$0xff]   ;;  %v12031_v22 = vld [vmem:[%s12812_s6 + $0x140] sm:$0xff]  }
  0xc1   : > { %v12033_v23 = vld [vmem:[%s12812_s6 + $0x540] sm:$0xff]  }
  0xc7   : > { %11425 = vmatmul.mubr.msk.bf16.gmra.mrb[16].mxu0 %vm6145_vm2, %v11968_v24  ;;  %11681 = vmatmul.mubr.msk.bf16.gmra.mrb[16].mxu1 %vm6145_vm2, %v11970_v25  ;;  %v12032_v24 = vld [vmem:[%s12812_s6 + $0x148] sm:$0xff]  }
  0xc8   : > { %11428 = vmatprep.mubr.msk.bf16.mxu0 %vm6145_vm2, %v11971_v26  ;;  %11684 = vmatprep.mubr.msk.bf16.mxu1 %vm6145_vm2, %v11973_v27  ;;  %v12034_v25 = vld [vmem:[%s12812_s6 + $0x548] sm:$0xff]   ;;  %v12035_v26 = vld [vmem:[%s12812_s6 + $0x150] sm:$0xff]  }
  0xc9   : > { %v12037_v27 = vld [vmem:[%s12812_s6 + $0x550] sm:$0xff]  }
  0xcf   : > { %11429 = vmatmul.mubr.msk.bf16.gmra.mrb[20].mxu0 %vm6145_vm2, %v11972_v28  ;;  %11685 = vmatmul.mubr.msk.bf16.gmra.mrb[20].mxu1 %vm6145_vm2, %v11974_v29  ;;  %v12036_v28 = vld [vmem:[%s12812_s6 + $0x158] sm:$0xff]  }
  0xd0   : > { %11432 = vmatprep.mubr.msk.bf16.mxu0 %vm6145_vm2, %v11975_v30  ;;  %11688 = vmatprep.mubr.msk.bf16.mxu1 %vm6145_vm2, %v11977_v31  ;;  %v12038_v29 = vld [vmem:[%s12812_s6 + $0x558] sm:$0xff]   ;;  %v12039_v30 = vld [vmem:[%s12812_s6 + $0x160] sm:$0xff]  }
  0xd1   : > { %v12041_v31 = vld [vmem:[%s12812_s6 + $0x560] sm:$0xff]  }
  0xd7   : > { %11433 = vmatmul.mubr.msk.bf16.gmra.mrb[24].mxu0 %vm6145_vm2, %v11976_v32  ;;  %11689 = vmatmul.mubr.msk.bf16.gmra.mrb[24].mxu1 %vm6145_vm2, %v11978_v33  ;;  %v12040_v32 = vld [vmem:[%s12812_s6 + $0x168] sm:$0xff]  }
  0xd8   : > { %11436 = vmatprep.mubr.msk.bf16.mxu0 %vm6145_vm2, %v11979_v34  ;;  %11692 = vmatprep.mubr.msk.bf16.mxu1 %vm6145_vm2, %v11981_v35  ;;  %v12042_v33 = vld [vmem:[%s12812_s6 + $0x568] sm:$0xff]   ;;  %v12043_v34 = vld [vmem:[%s12812_s6 + $0x170] sm:$0xff]  }
  0xd9   : > { %v12045_v35 = vld [vmem:[%s12812_s6 + $0x570] sm:$0xff]  }
  0xdf   : > { %11437 = vmatmul.mubr.msk.bf16.gmra.mrb[28].mxu0 %vm6145_vm2, %v11980_v36  ;;  %11693 = vmatmul.mubr.msk.bf16.gmra.mrb[28].mxu1 %vm6145_vm2, %v11982_v37  ;;  %v12044_v36 = vld [vmem:[%s12812_s6 + $0x178] sm:$0xff]  }
  0xe0   : > { %11440 = vmatprep.mubr.msk.bf16.mxu0 %vm6145_vm2, %v11983_v38  ;;  %11696 = vmatprep.mubr.msk.bf16.mxu1 %vm6145_vm2, %v11985_v39  ;;  %v12046_v37 = vld [vmem:[%s12812_s6 + $0x578] sm:$0xff]   ;;  %v12047_v38 = vld [vmem:[%s12812_s6 + $0x180] sm:$0xff]  }
  0xe1   : > { %v12049_v39 = vld [vmem:[%s12812_s6 + $0x580] sm:$0xff]  }
  0xe7   : > { %11441 = vmatmul.mubr.msk.bf16.gmra.mrb[32].mxu0 %vm6145_vm2, %v11984_v40  ;;  %11697 = vmatmul.mubr.msk.bf16.gmra.mrb[32].mxu1 %vm6145_vm2, %v11986_v41  ;;  %v12048_v40 = vld [vmem:[%s12812_s6 + $0x188] sm:$0xff]  }
  0xe8   : > { %11444 = vmatprep.mubr.msk.bf16.mxu0 %vm6145_vm2, %v11987_v42  ;;  %11700 = vmatprep.mubr.msk.bf16.mxu1 %vm6145_vm2, %v11989_v43  ;;  %v12050_v41 = vld [vmem:[%s12812_s6 + $0x588] sm:$0xff]   ;;  %v12051_v42 = vld [vmem:[%s12812_s6 + $0x190] sm:$0xff]  }
  0xe9   : > { %v12053_v43 = vld [vmem:[%s12812_s6 + $0x590] sm:$0xff]  }
  0xef   : > { %11445 = vmatmul.mubr.msk.bf16.gmra.mrb[36].mxu0 %vm6145_vm2, %v11988_v44  ;;  %11701 = vmatmul.mubr.msk.bf16.gmra.mrb[36].mxu1 %vm6145_vm2, %v11990_v45  ;;  %v12052_v44 = vld [vmem:[%s12812_s6 + $0x198] sm:$0xff]  }
  0xf0   : > { %11448 = vmatprep.mubr.msk.bf16.mxu0 %vm6145_vm2, %v11991_v46  ;;  %11704 = vmatprep.mubr.msk.bf16.mxu1 %vm6145_vm2, %v11993_v47  ;;  %v12054_v45 = vld [vmem:[%s12812_s6 + $0x598] sm:$0xff]   ;;  %v12055_v46 = vld [vmem:[%s12812_s6 + $0x1a0] sm:$0xff]  }
  0xf1   : > { %v12057_v47 = vld [vmem:[%s12812_s6 + $0x5a0] sm:$0xff]  }
  0xf7   : > { %11449 = vmatmul.mubr.msk.bf16.gmra.mrb[40].mxu0 %vm6145_vm2, %v11992_v48  ;;  %11705 = vmatmul.mubr.msk.bf16.gmra.mrb[40].mxu1 %vm6145_vm2, %v11994_v49  ;;  %v12056_v48 = vld [vmem:[%s12812_s6 + $0x1a8] sm:$0xff]  }
  0xf8   : > { %11452 = vmatprep.mubr.msk.bf16.mxu0 %vm6145_vm2, %v11995_v50  ;;  %11708 = vmatprep.mubr.msk.bf16.mxu1 %vm6145_vm2, %v11997_v51  ;;  %v12058_v49 = vld [vmem:[%s12812_s6 + $0x5a8] sm:$0xff]   ;;  %v12059_v50 = vld [vmem:[%s12812_s6 + $0x1b0] sm:$0xff]  }
  0xf9   : > { %v12061_v51 = vld [vmem:[%s12812_s6 + $0x5b0] sm:$0xff]  }
  0xff   : > { %11453 = vmatmul.mubr.msk.bf16.gmra.mrb[44].mxu0 %vm6145_vm2, %v11996_v52  ;;  %11709 = vmatmul.mubr.msk.bf16.gmra.mrb[44].mxu1 %vm6145_vm2, %v11998_v53 }
 0x100   : > { %11456 = vmatprep.mubr.msk.bf16.mxu0 %vm6145_vm2, %v11999_v54  ;;  %11712 = vmatprep.mubr.msk.bf16.mxu1 %vm6145_vm2, %v12001_v55  ;;  %v12060_v54 = vld [vmem:[%s12812_s6 + $0x1b8] sm:$0xff]  }
 0x107   : > { %11457 = vmatmul.mubr.msk.bf16.gmra.mrb[48].mxu0 %vm6145_vm2, %v12000_v56  ;;  %11713 = vmatmul.mubr.msk.bf16.gmra.mrb[48].mxu1 %vm6145_vm2, %v12002_v57 }
 0x108   : > { %11460 = vmatprep.mubr.msk.bf16.mxu0 %vm6145_vm2, %v12003_v58  ;;  %11716 = vmatprep.mubr.msk.bf16.mxu1 %vm6145_vm2, %v12005_v59  ;;  %v12062_v58 = vld [vmem:[%s12812_s6 + $0x5b8] sm:$0xff]   ;;  %v12063_v59 = vld [vmem:[%s12812_s6 + $0x1c0] sm:$0xff]  }
 0x10f   : > { %11461 = vmatmul.mubr.msk.bf16.gmra.mrb[52].mxu0 %vm6145_vm2, %v12004_v60  ;;  %11717 = vmatmul.mubr.msk.bf16.gmra.mrb[52].mxu1 %vm6145_vm2, %v12006_v61 }
 0x110   : > { %11464 = vmatprep.mubr.msk.bf16.mxu0 %vm6145_vm2, %v12007_v62  ;;  %11720 = vmatprep.mubr.msk.bf16.mxu1 %vm6145_vm2, %v12009_v63  ;;  %v12065_v62 = vld [vmem:[%s12812_s6 + $0x5c0] sm:$0xff]  }
 0x117   : > { %11465 = vmatmul.mubr.msk.bf16.gmra.mrb[56].mxu0 %vm6145_vm2, %v12008_v0  ;;  %11721 = vmatmul.mubr.msk.bf16.gmra.mrb[56].mxu1 %vm6145_vm2, %v12010_v1 }
 0x118   : > { %11468 = vmatprep.mubr.msk.bf16.mxu0 %vm6145_vm2, %v12011_v2  ;;  %11724 = vmatprep.mubr.msk.bf16.mxu1 %vm6145_vm2, %v12013_v3  ;;  %v12064_v2 = vld [vmem:[%s12812_s6 + $0x1c8] sm:$0xff]  }
 0x11f   : > { %11469 = vmatmul.mubr.msk.bf16.gmra.mrb[60].mxu0 %vm6145_vm2, %v12012_v4  ;;  %11725 = vmatmul.mubr.msk.bf16.gmra.mrb[60].mxu1 %vm6145_vm2, %v12014_v5 }
 0x120   : > { %11472 = vmatprep.mubr.msk.bf16.mxu0 %vm6145_vm2, %v12015_v6  ;;  %11728 = vmatprep.mubr.msk.bf16.mxu1 %vm6145_vm2, %v12017_v7  ;;  %v12066_v6 = vld [vmem:[%s12812_s6 + $0x5c8] sm:$0xff]   ;;  %v12067_v7 = vld [vmem:[%s12812_s6 + $0x1d0] sm:$0xff]  }
 0x127   : > { %11473 = vmatmul.mubr.msk.bf16.gmra.mrb[64].mxu0 %vm6145_vm2, %v12016_v8  ;;  %11729 = vmatmul.mubr.msk.bf16.gmra.mrb[64].mxu1 %vm6145_vm2, %v12018_v9 }
 0x128   : > { %11476 = vmatprep.mubr.msk.bf16.mxu0 %vm6145_vm2, %v12019_v10  ;;  %11732 = vmatprep.mubr.msk.bf16.mxu1 %vm6145_vm2, %v12021_v11  ;;  %v12069_v10 = vld [vmem:[%s12812_s6 + $0x5d0] sm:$0xff]  }
 0x12f   : > { %11477 = vmatmul.mubr.msk.bf16.gmra.mrb[68].mxu0 %vm6145_vm2, %v12020_v12  ;;  %11733 = vmatmul.mubr.msk.bf16.gmra.mrb[68].mxu1 %vm6145_vm2, %v12022_v13 }
 0x130   : > { %11480 = vmatprep.mubr.msk.bf16.mxu0 %vm6145_vm2, %v12023_v14  ;;  %11736 = vmatprep.mubr.msk.bf16.mxu1 %vm6145_vm2, %v12025_v15  ;;  %v12068_v14 = vld [vmem:[%s12812_s6 + $0x1d8] sm:$0xff]  }
 0x137   : > { %11481 = vmatmul.mubr.msk.bf16.gmra.mrb[72].mxu0 %vm6145_vm2, %v12024_v16  ;;  %11737 = vmatmul.mubr.msk.bf16.gmra.mrb[72].mxu1 %vm6145_vm2, %v12026_v17 }
 0x138   : > { %11484 = vmatprep.mubr.msk.bf16.mxu0 %vm6145_vm2, %v12027_v18  ;;  %11740 = vmatprep.mubr.msk.bf16.mxu1 %vm6145_vm2, %v12029_v19  ;;  %v12070_v18 = vld [vmem:[%s12812_s6 + $0x5d8] sm:$0xff]   ;;  %v12071_v19 = vld [vmem:[%s12812_s6 + $0x1e0] sm:$0xff]  }
 0x13f   : > { %11485 = vmatmul.mubr.msk.bf16.gmra.mrb[76].mxu0 %vm6145_vm2, %v12028_v20  ;;  %11741 = vmatmul.mubr.msk.bf16.gmra.mrb[76].mxu1 %vm6145_vm2, %v12030_v21 }
 0x140   : > { %11488 = vmatprep.mubr.msk.bf16.mxu0 %vm6145_vm2, %v12031_v22  ;;  %11744 = vmatprep.mubr.msk.bf16.mxu1 %vm6145_vm2, %v12033_v23  ;;  %v12073_v22 = vld [vmem:[%s12812_s6 + $0x5e0] sm:$0xff]  }
 0x147   : > { %11489 = vmatmul.mubr.msk.bf16.gmra.mrb[80].mxu0 %vm6145_vm2, %v12032_v24  ;;  %11745 = vmatmul.mubr.msk.bf16.gmra.mrb[80].mxu1 %vm6145_vm2, %v12034_v25 }
 0x148   : > { %11492 = vmatprep.mubr.msk.bf16.mxu0 %vm6145_vm2, %v12035_v26  ;;  %11748 = vmatprep.mubr.msk.bf16.mxu1 %vm6145_vm2, %v12037_v27  ;;  %v12072_v26 = vld [vmem:[%s12812_s6 + $0x1e8] sm:$0xff]  }
 0x14f   : > { %11493 = vmatmul.mubr.msk.bf16.gmra.mrb[84].mxu0 %vm6145_vm2, %v12036_v28  ;;  %11749 = vmatmul.mubr.msk.bf16.gmra.mrb[84].mxu1 %vm6145_vm2, %v12038_v29 }
 0x150   : > { %11496 = vmatprep.mubr.msk.bf16.mxu0 %vm6145_vm2, %v12039_v30  ;;  %11752 = vmatprep.mubr.msk.bf16.mxu1 %vm6145_vm2, %v12041_v31  ;;  %v12074_v30 = vld [vmem:[%s12812_s6 + $0x5e8] sm:$0xff]   ;;  %v12075_v31 = vld [vmem:[%s12812_s6 + $0x1f0] sm:$0xff]  }
 0x157   : > { %11497 = vmatmul.mubr.msk.bf16.gmra.mrb[88].mxu0 %vm6145_vm2, %v12040_v32  ;;  %11753 = vmatmul.mubr.msk.bf16.gmra.mrb[88].mxu1 %vm6145_vm2, %v12042_v33 }
 0x158   : > { %11500 = vmatprep.mubr.msk.bf16.mxu0 %vm6145_vm2, %v12043_v34  ;;  %11756 = vmatprep.mubr.msk.bf16.mxu1 %vm6145_vm2, %v12045_v35  ;;  %v12077_v34 = vld [vmem:[%s12812_s6 + $0x5f0] sm:$0xff]  }
 0x15f   : > { %11501 = vmatmul.mubr.msk.bf16.gmra.mrb[92].mxu0 %vm6145_vm2, %v12044_v36  ;;  %11757 = vmatmul.mubr.msk.bf16.gmra.mrb[92].mxu1 %vm6145_vm2, %v12046_v37 }
 0x160   : > { %11504 = vmatprep.mubr.msk.bf16.mxu0 %vm6145_vm2, %v12047_v38  ;;  %11760 = vmatprep.mubr.msk.bf16.mxu1 %vm6145_vm2, %v12049_v39  ;;  %v12076_v38 = vld [vmem:[%s12812_s6 + $0x1f8] sm:$0xff]  }
 0x167   : > { %11505 = vmatmul.mubr.msk.bf16.gmra.mrb[96].mxu0 %vm6145_vm2, %v12048_v40  ;;  %11761 = vmatmul.mubr.msk.bf16.gmra.mrb[96].mxu1 %vm6145_vm2, %v12050_v41 }
 0x168   : > { %11508 = vmatprep.mubr.msk.bf16.mxu0 %vm6145_vm2, %v12051_v42  ;;  %11764 = vmatprep.mubr.msk.bf16.mxu1 %vm6145_vm2, %v12053_v43  ;;  %v12078_v42 = vld [vmem:[%s12812_s6 + $0x5f8] sm:$0xff]   ;;  %v12079_v43 = vld [vmem:[%s12812_s6 + $0x200] sm:$0xff]  }
 0x16f   : > { %11509 = vmatmul.mubr.msk.bf16.gmra.mrb[100].mxu0 %vm6145_vm2, %v12052_v44  ;;  %11765 = vmatmul.mubr.msk.bf16.gmra.mrb[100].mxu1 %vm6145_vm2, %v12054_v45 }
 0x170   : > { %11512 = vmatprep.mubr.msk.bf16.mxu0 %vm6145_vm2, %v12055_v46  ;;  %11768 = vmatprep.mubr.msk.bf16.mxu1 %vm6145_vm2, %v12057_v47  ;;  %v12081_v46 = vld [vmem:[%s12812_s6 + $0x600] sm:$0xff]  }
 0x177   : > { %11513 = vmatmul.mubr.msk.bf16.gmra.mrb[104].mxu0 %vm6145_vm2, %v12056_v48  ;;  %11769 = vmatmul.mubr.msk.bf16.gmra.mrb[104].mxu1 %vm6145_vm2, %v12058_v49 }
 0x178   : > { %11516 = vmatprep.mubr.msk.bf16.mxu0 %vm6145_vm2, %v12059_v50  ;;  %11772 = vmatprep.mubr.msk.bf16.mxu1 %vm6145_vm2, %v12061_v51  ;;  %v12080_v50 = vld [vmem:[%s12812_s6 + $0x208] sm:$0xff]  }
 0x17a   : > { %v13034_v52 = vpop.f32.mrb[0].mxu0  ;;  %v13039_v55 = vpop.f32.mrb[0].mxu1 }
 0x17b   : > { %v13036_v53 = vpop.f32.mrb[1].mxu0  ;;  %16509 = vst [vmem:[#allocation3_spill] sm:$0xff] %v13039_v55  ;;  %v13043_v57 = vpop.f32.mrb[1].mxu1 }
 0x17c   : > { %v13041_v56 = vpop.f32.mrb[2].mxu0  ;;  %16510 = vst [vmem:[#allocation4_spill] sm:$0xff] %v13043_v57  ;;  %v13049_v61 = vpop.f32.mrb[2].mxu1 }
 0x17d   : > { %v13047_v60 = vpop.f32.mrb[3].mxu0  ;;  %16511 = vst [vmem:[#allocation5_spill] sm:$0xff] %v13049_v61  ;;  %v13052_v63 = vpop.f32.mrb[3].mxu1 }
 0x17e   : > { %16512 = vst [vmem:[#allocation6_spill] sm:$0xff] %v13052_v63  ;;  %v12112_v63 = vld [vmem:[%s12812_s6 + $0x288] sm:$0xff]  }
 0x17f   : > { %11517 = vmatmul.mubr.msk.bf16.gmra.mrb[108].mxu0 %vm6145_vm2, %v12060_v54  ;;  %11773 = vmatmul.mubr.msk.bf16.gmra.mrb[108].mxu1 %vm6145_vm2, %v12062_v58 }
 0x180   : > { %11520 = vmatprep.mubr.msk.bf16.mxu0 %vm6145_vm2, %v12063_v59  ;;  %11776 = vmatprep.mubr.msk.bf16.mxu1 %vm6145_vm2, %v12065_v62  ;;  %v12082_v59 = vld [vmem:[%s12812_s6 + $0x608] sm:$0xff]   ;;  %v12083_v62 = vld [vmem:[%s12812_s6 + $0x210] sm:$0xff]  }
 0x182   : > { %v13058_v0 = vpop.f32.mrb[4].mxu0  ;;  %v13063_v3 = vpop.f32.mrb[4].mxu1 }
 0x183   : > { %v13060_v1 = vpop.f32.mrb[5].mxu0  ;;  %16513 = vst [vmem:[#allocation7_spill] sm:$0xff] %v13063_v3  ;;  %v13067_v5 = vpop.f32.mrb[5].mxu1 }
 0x184   : > { %v13065_v4 = vpop.f32.mrb[6].mxu0  ;;  %16514 = vst [vmem:[#allocation8_spill] sm:$0xff] %v13067_v5  ;;  %v13073_v9 = vpop.f32.mrb[6].mxu1 }
 0x185   : > { %v13071_v8 = vpop.f32.mrb[7].mxu0  ;;  %16515 = vst [vmem:[#allocation9_spill] sm:$0xff] %v13073_v9  ;;  %v13076_v11 = vpop.f32.mrb[7].mxu1 }
 0x186   : > { %16516 = vst [vmem:[#allocation10_spill] sm:$0xff] %v13076_v11  ;;  %v12108_v11 = vld [vmem:[%s12812_s6 + $0x278] sm:$0xff]  }
 0x187   : > { %11521 = vmatmul.mubr.msk.bf16.gmra.mrb[112].mxu0 %vm6145_vm2, %v12064_v2  ;;  %11777 = vmatmul.mubr.msk.bf16.gmra.mrb[112].mxu1 %vm6145_vm2, %v12066_v6 }
 0x188   : > { %11524 = vmatprep.mubr.msk.bf16.mxu0 %vm6145_vm2, %v12067_v7  ;;  %11780 = vmatprep.mubr.msk.bf16.mxu1 %vm6145_vm2, %v12069_v10  ;;  %v12085_v7 = vld [vmem:[%s12812_s6 + $0x610] sm:$0xff]  }
 0x18a   : > { %v13082_v12 = vpop.f32.mrb[8].mxu0  ;;  %v13087_v15 = vpop.f32.mrb[8].mxu1 }
 0x18b   : > { %v13084_v13 = vpop.f32.mrb[9].mxu0  ;;  %16517 = vst [vmem:[#allocation11_spill] sm:$0xff] %v13087_v15  ;;  %v13091_v17 = vpop.f32.mrb[9].mxu1 }
 0x18c   : > { %v13089_v16 = vpop.f32.mrb[10].mxu0  ;;  %16518 = vst [vmem:[#allocation12_spill] sm:$0xff] %v13091_v17  ;;  %v13097_v21 = vpop.f32.mrb[10].mxu1 }
 0x18d   : > { %v13095_v20 = vpop.f32.mrb[11].mxu0  ;;  %16519 = vst [vmem:[#allocation13_spill] sm:$0xff] %v13097_v21  ;;  %v13100_v23 = vpop.f32.mrb[11].mxu1 }
 0x18e   : > { %16520 = vst [vmem:[#allocation14_spill] sm:$0xff] %v13100_v23  ;;  %v12104_v23 = vld [vmem:[%s12812_s6 + $0x268] sm:$0xff]  }
 0x18f   : > { %11525 = vmatmul.mubr.msk.bf16.gmra.mrb[116].mxu0 %vm6145_vm2, %v12068_v14  ;;  %11781 = vmatmul.mubr.msk.bf16.gmra.mrb[116].mxu1 %vm6145_vm2, %v12070_v18 }
 0x190   : > { %11528 = vmatprep.mubr.msk.bf16.mxu0 %vm6145_vm2, %v12071_v19  ;;  %11784 = vmatprep.mubr.msk.bf16.mxu1 %vm6145_vm2, %v12073_v22  ;;  %v12084_v19 = vld [vmem:[%s12812_s6 + $0x218] sm:$0xff]  }
 0x192   : > { %v13106_v24 = vpop.f32.mrb[12].mxu0  ;;  %v13111_v27 = vpop.f32.mrb[12].mxu1 }
 0x193   : > { %v13108_v25 = vpop.f32.mrb[13].mxu0  ;;  %16521 = vst [vmem:[#allocation15_spill] sm:$0xff] %v13111_v27  ;;  %v13115_v29 = vpop.f32.mrb[13].mxu1 }
 0x194   : > { %v13113_v28 = vpop.f32.mrb[14].mxu0  ;;  %16522 = vst [vmem:[#allocation16_spill] sm:$0xff] %v13115_v29  ;;  %v13121_v33 = vpop.f32.mrb[14].mxu1 }
 0x195   : > { %v13119_v32 = vpop.f32.mrb[15].mxu0  ;;  %16523 = vst [vmem:[#allocation17_spill] sm:$0xff] %v13121_v33  ;;  %v13124_v35 = vpop.f32.mrb[15].mxu1 }
 0x196   : > { %16524 = vst [vmem:[#allocation18_spill] sm:$0xff] %v13124_v35  ;;  %v12100_v35 = vld [vmem:[%s12812_s6 + $0x258] sm:$0xff]  }
 0x197   : > { %11529 = vmatmul.mubr.msk.bf16.gmra.mrb[120].mxu0 %vm6145_vm2, %v12072_v26  ;;  %11785 = vmatmul.mubr.msk.bf16.gmra.mrb[120].mxu1 %vm6145_vm2, %v12074_v30 }
 0x198   : > { %11532 = vmatprep.mubr.msk.bf16.mxu0 %vm6145_vm2, %v12075_v31  ;;  %11788 = vmatprep.mubr.msk.bf16.mxu1 %vm6145_vm2, %v12077_v34  ;;  %v12086_v31 = vld [vmem:[%s12812_s6 + $0x618] sm:$0xff]   ;;  %v12087_v34 = vld [vmem:[%s12812_s6 + $0x220] sm:$0xff]  }
 0x19a   : > { %v13130_v36 = vpop.f32.mrb[16].mxu0  ;;  %v13135_v39 = vpop.f32.mrb[16].mxu1 }
 0x19b   : > { %v13132_v37 = vpop.f32.mrb[17].mxu0  ;;  %16525 = vst [vmem:[#allocation19_spill] sm:$0xff] %v13135_v39  ;;  %v13139_v41 = vpop.f32.mrb[17].mxu1 }
 0x19c   : > { %v13137_v40 = vpop.f32.mrb[18].mxu0  ;;  %16526 = vst [vmem:[#allocation20_spill] sm:$0xff] %v13139_v41  ;;  %v13145_v45 = vpop.f32.mrb[18].mxu1 }
 0x19d   : > { %v13143_v44 = vpop.f32.mrb[19].mxu0  ;;  %16527 = vst [vmem:[#allocation21_spill] sm:$0xff] %v13145_v45  ;;  %v13148_v47 = vpop.f32.mrb[19].mxu1 }
 0x19e   : > { %16528 = vst [vmem:[#allocation22_spill] sm:$0xff] %v13148_v47  ;;  %v12096_v47 = vld [vmem:[%s12812_s6 + $0x248] sm:$0xff]  }
 0x19f   : > { %11533 = vmatmul.mubr.msk.bf16.gmra.mrb[124].mxu0 %vm6145_vm2, %v12076_v38  ;;  %11789 = vmatmul.mubr.msk.bf16.gmra.mrb[124].mxu1 %vm6145_vm2, %v12078_v42 }
 0x1a0   : > { %11536 = vmatprep.mubr.msk.bf16.mxu0 %vm6145_vm2, %v12079_v43  ;;  %11792 = vmatprep.mubr.msk.bf16.mxu1 %vm6145_vm2, %v12081_v46  ;;  %v12089_v43 = vld [vmem:[%s12812_s6 + $0x620] sm:$0xff]  }
 0x1a2   : > { %v13154_v48 = vpop.f32.mrb[20].mxu0  ;;  %v13159_v51 = vpop.f32.mrb[20].mxu1 }
 0x1a3   : > { %v13156_v49 = vpop.f32.mrb[21].mxu0  ;;  %16529 = vst [vmem:[#allocation23_spill] sm:$0xff] %v13159_v51  ;;  %v13163_v58 = vpop.f32.mrb[21].mxu1 }
 0x1a4   : > { %v13161_v54 = vpop.f32.mrb[22].mxu0  ;;  %16530 = vst [vmem:[#allocation24_spill] sm:$0xff] %v13163_v58  ;;  %v13169_v6 = vpop.f32.mrb[22].mxu1 }
 0x1a5   : > { %v13167_v2 = vpop.f32.mrb[23].mxu0  ;;  %16531 = vst [vmem:[#allocation25_spill] sm:$0xff] %v13169_v6  ;;  %v13172_v10 = vpop.f32.mrb[23].mxu1 }
 0x1a6   : > { %16532 = vst [vmem:[#allocation26_spill] sm:$0xff] %v13172_v10  ;;  %v12092_v10 = vld [vmem:[%s12812_s6 + $0x238] sm:$0xff]  }
 0x1a7   : > { %11537 = vmatmul.mubr.msk.bf16.gmra.mrb[128].mxu0 %vm6145_vm2, %v12080_v50  ;;  %11793 = vmatmul.mubr.msk.bf16.gmra.mrb[128].mxu1 %vm6145_vm2, %v12082_v59 }
 0x1a8   : > { %11540 = vmatprep.mubr.msk.bf16.mxu0 %vm6145_vm2, %v12083_v62  ;;  %11796 = vmatprep.mubr.msk.bf16.mxu1 %vm6145_vm2, %v12085_v7  ;;  %v12088_v62 = vld [vmem:[%s12812_s6 + $0x228] sm:$0xff]  }
 0x1aa   : > { %v13178_v14 = vpop.f32.mrb[24].mxu0  ;;  %v13183_v22 = vpop.f32.mrb[24].mxu1 }
 0x1ab   : > { %v13180_v18 = vpop.f32.mrb[25].mxu0  ;;  %16533 = vst [vmem:[#allocation27_spill] sm:$0xff] %v13183_v22  ;;  %v13187_v30 = vpop.f32.mrb[25].mxu1 }
 0x1ac   : > { %v13185_v26 = vpop.f32.mrb[26].mxu0  ;;  %16534 = vst [vmem:[#allocation28_spill] sm:$0xff] %v13187_v30  ;;  %v13193_v42 = vpop.f32.mrb[26].mxu1 }
 0x1ad   : > { %v13191_v38 = vpop.f32.mrb[27].mxu0  ;;  %16535 = vst [vmem:[#allocation29_spill] sm:$0xff] %v13193_v42  ;;  %v13196_v46 = vpop.f32.mrb[27].mxu1 }
 0x1ae   : > { %16536 = vst [vmem:[#allocation30_spill] sm:$0xff] %v13196_v46  ;;  %v12090_v46 = vld [vmem:[%s12812_s6 + $0x628] sm:$0xff]  }
 0x1af   : > { %11541 = vmatmul.mubr.msk.bf16.gmra.mrb[132].mxu0 %vm6145_vm2, %v12084_v19  ;;  %11797 = vmatmul.mubr.msk.bf16.gmra.mrb[132].mxu1 %vm6145_vm2, %v12086_v31  ;;  %v12091_v19 = vld [vmem:[%s12812_s6 + $0x230] sm:$0xff]  }
 0x1b0   : > { %11544 = vmatprep.mubr.msk.bf16.mxu0 %vm6145_vm2, %v12087_v34  ;;  %11800 = vmatprep.mubr.msk.bf16.mxu1 %vm6145_vm2, %v12089_v43  ;;  %v12093_v43 = vld [vmem:[%s12812_s6 + $0x630] sm:$0xff]  }
 0x1b2   : > { %v13202_v50 = vpop.f32.mrb[28].mxu0  ;;  %v13207_v7 = vpop.f32.mrb[28].mxu1 }
 0x1b3   : > { %v13204_v59 = vpop.f32.mrb[29].mxu0  ;;  %16537 = vst [vmem:[#allocation31_spill] sm:$0xff] %v13207_v7  ;;  %v13211_v30 = vpop.f32.mrb[29].mxu1 }
 0x1b4   : > { %v13209_v42 = vpop.f32.mrb[30].mxu0  ;;  %16538 = vst [vmem:[#allocation32_spill] sm:$0xff] %v13211_v30  ;;  %v13217_v34 = vpop.f32.mrb[30].mxu1 }
 0x1b5   : > { %v13215_v31 = vpop.f32.mrb[31].mxu0  ;;  %16539 = vst [vmem:[#allocation33_spill] sm:$0xff] %v13217_v34  ;;  %v13220_v22 = vpop.f32.mrb[31].mxu1 }
 0x1b6   : > { %16540 = vst [vmem:[#allocation34_spill] sm:$0xff] %v13220_v22  ;;  %v12094_v22 = vld [vmem:[%s12812_s6 + $0x638] sm:$0xff]  }
 0x1b7   : > { %11545 = vmatmul.mubr.msk.bf16.gmra.mrb[136].mxu0 %vm6145_vm2, %v12088_v62  ;;  %11801 = vmatmul.mubr.msk.bf16.gmra.mrb[136].mxu1 %vm6145_vm2, %v12090_v46  ;;  %v12095_v62 = vld [vmem:[%s12812_s6 + $0x240] sm:$0xff]  }
 0x1b8   : > { %11548 = vmatprep.mubr.msk.bf16.mxu0 %vm6145_vm2, %v12091_v19  ;;  %11804 = vmatprep.mubr.msk.bf16.mxu1 %vm6145_vm2, %v12093_v43  ;;  %v12097_v43 = vld [vmem:[%s12812_s6 + $0x640] sm:$0xff]  }
 0x1ba   : > { %v13226_v30 = vpop.f32.mrb[32].mxu0  ;;  %v13231_v6 = vpop.f32.mrb[32].mxu1 }
 0x1bb   : > { %v13228_v7 = vpop.f32.mrb[33].mxu0  ;;  %16541 = vst [vmem:[#allocation35_spill] sm:$0xff] %v13231_v6  ;;  %v13235_v58 = vpop.f32.mrb[33].mxu1 }
 0x1bc   : > { %v13233_v34 = vpop.f32.mrb[34].mxu0  ;;  %16542 = vst [vmem:[#allocation36_spill] sm:$0xff] %v13235_v58  ;;  %v13241_v19 = vpop.f32.mrb[34].mxu1 }
 0x1bd   : > { %v13239_v46 = vpop.f32.mrb[35].mxu0  ;;  %16543 = vst [vmem:[#allocation37_spill] sm:$0xff] %v13241_v19  ;;  %v13244_v51 = vpop.f32.mrb[35].mxu1 }
 0x1be   : > { %16544 = vst [vmem:[#allocation38_spill] sm:$0xff] %v13244_v51  ;;  %v12098_v51 = vld [vmem:[%s12812_s6 + $0x648] sm:$0xff]  }
 0x1bf   : > { %11549 = vmatmul.mubr.msk.bf16.gmra.mrb[140].mxu0 %vm6145_vm2, %v12092_v10  ;;  %11805 = vmatmul.mubr.msk.bf16.gmra.mrb[140].mxu1 %vm6145_vm2, %v12094_v22  ;;  %v12099_v10 = vld [vmem:[%s12812_s6 + $0x250] sm:$0xff]  }
 0x1c0   : > { %11552 = vmatprep.mubr.msk.bf16.mxu0 %vm6145_vm2, %v12095_v62  ;;  %11808 = vmatprep.mubr.msk.bf16.mxu1 %vm6145_vm2, %v12097_v43  ;;  %v12101_v43 = vld [vmem:[%s12812_s6 + $0x650] sm:$0xff]  }
 0x1c2   : > { %v13250_v58 = vpop.f32.mrb[36].mxu0  ;;  %v13255_v45 = vpop.f32.mrb[36].mxu1 }
 0x1c3   : > { %v13252_v6 = vpop.f32.mrb[37].mxu0  ;;  %16545 = vst [vmem:[#allocation39_spill] sm:$0xff] %v13255_v45  ;;  %v13259_v41 = vpop.f32.mrb[37].mxu1 }
 0x1c4   : > { %v13257_v19 = vpop.f32.mrb[38].mxu0  ;;  %16546 = vst [vmem:[#allocation40_spill] sm:$0xff] %v13259_v41  ;;  %v13265_v62 = vpop.f32.mrb[38].mxu1 }
 0x1c5   : > { %v13263_v22 = vpop.f32.mrb[39].mxu0  ;;  %16547 = vst [vmem:[#allocation41_spill] sm:$0xff] %v13265_v62  ;;  %v13268_v39 = vpop.f32.mrb[39].mxu1 }
 0x1c6   : > { %16548 = vst [vmem:[#allocation42_spill] sm:$0xff] %v13268_v39  ;;  %v12102_v39 = vld [vmem:[%s12812_s6 + $0x658] sm:$0xff]  }
 0x1c7   : > { %11553 = vmatmul.mubr.msk.bf16.gmra.mrb[144].mxu0 %vm6145_vm2, %v12096_v47  ;;  %11809 = vmatmul.mubr.msk.bf16.gmra.mrb[144].mxu1 %vm6145_vm2, %v12098_v51  ;;  %v12103_v47 = vld [vmem:[%s12812_s6 + $0x260] sm:$0xff]  }
 0x1c8   : > { %11556 = vmatprep.mubr.msk.bf16.mxu0 %vm6145_vm2, %v12099_v10  ;;  %11812 = vmatprep.mubr.msk.bf16.mxu1 %vm6145_vm2, %v12101_v43  ;;  %v12105_v43 = vld [vmem:[%s12812_s6 + $0x660] sm:$0xff]  }
 0x1ca   : > { %v13274_v41 = vpop.f32.mrb[40].mxu0  ;;  %v13279_v33 = vpop.f32.mrb[40].mxu1 }
 0x1cb   : > { %v13276_v45 = vpop.f32.mrb[41].mxu0  ;;  %16549 = vst [vmem:[#allocation43_spill] sm:$0xff] %v13279_v33  ;;  %v13283_v29 = vpop.f32.mrb[41].mxu1 }
 0x1cc   : > { %v13281_v62 = vpop.f32.mrb[42].mxu0  ;;  %16550 = vst [vmem:[#allocation44_spill] sm:$0xff] %v13283_v29  ;;  %v13289_v10 = vpop.f32.mrb[42].mxu1 }
 0x1cd   : > { %v13287_v51 = vpop.f32.mrb[43].mxu0  ;;  %16551 = vst [vmem:[#allocation45_spill] sm:$0xff] %v13289_v10  ;;  %v13292_v27 = vpop.f32.mrb[43].mxu1 }
 0x1ce   : > { %16552 = vst [vmem:[#allocation46_spill] sm:$0xff] %v13292_v27  ;;  %v12106_v27 = vld [vmem:[%s12812_s6 + $0x668] sm:$0xff]  }
 0x1cf   : > { %11557 = vmatmul.mubr.msk.bf16.gmra.mrb[148].mxu0 %vm6145_vm2, %v12100_v35  ;;  %11813 = vmatmul.mubr.msk.bf16.gmra.mrb[148].mxu1 %vm6145_vm2, %v12102_v39  ;;  %v12107_v35 = vld [vmem:[%s12812_s6 + $0x270] sm:$0xff]  }
 0x1d0   : > { %11560 = vmatprep.mubr.msk.bf16.mxu0 %vm6145_vm2, %v12103_v47  ;;  %11816 = vmatprep.mubr.msk.bf16.mxu1 %vm6145_vm2, %v12105_v43  ;;  %v12109_v43 = vld [vmem:[%s12812_s6 + $0x670] sm:$0xff]  }
 0x1d2   : > { %v13298_v29 = vpop.f32.mrb[44].mxu0  ;;  %v13303_v21 = vpop.f32.mrb[44].mxu1 }
 0x1d3   : > { %v13300_v33 = vpop.f32.mrb[45].mxu0  ;;  %16553 = vst [vmem:[#allocation47_spill] sm:$0xff] %v13303_v21  ;;  %v13307_v17 = vpop.f32.mrb[45].mxu1 }
 0x1d4   : > { %v13305_v10 = vpop.f32.mrb[46].mxu0  ;;  %16554 = vst [vmem:[#allocation48_spill] sm:$0xff] %v13307_v17  ;;  %v13313_v47 = vpop.f32.mrb[46].mxu1 }
 0x1d5   : > { %v13311_v39 = vpop.f32.mrb[47].mxu0  ;;  %16555 = vst [vmem:[#allocation49_spill] sm:$0xff] %v13313_v47  ;;  %v13316_v15 = vpop.f32.mrb[47].mxu1 }
 0x1d6   : > { %16556 = vst [vmem:[#allocation50_spill] sm:$0xff] %v13316_v15  ;;  %v12110_v15 = vld [vmem:[%s12812_s6 + $0x678] sm:$0xff]  }
 0x1d7   : > { %11561 = vmatmul.mubr.msk.bf16.gmra.mrb[152].mxu0 %vm6145_vm2, %v12104_v23  ;;  %11817 = vmatmul.mubr.msk.bf16.gmra.mrb[152].mxu1 %vm6145_vm2, %v12106_v27  ;;  %v12111_v23 = vld [vmem:[%s12812_s6 + $0x280] sm:$0xff]  }
 0x1d8   : > { %11564 = vmatprep.mubr.msk.bf16.mxu0 %vm6145_vm2, %v12107_v35  ;;  %11820 = vmatprep.mubr.msk.bf16.mxu1 %vm6145_vm2, %v12109_v43  ;;  %v12113_v43 = vld [vmem:[%s12812_s6 + $0x680] sm:$0xff]  }
 0x1da   : > { %v13322_v17 = vpop.f32.mrb[48].mxu0  ;;  %v13327_v9 = vpop.f32.mrb[48].mxu1 }
 0x1db   : > { %v13324_v21 = vpop.f32.mrb[49].mxu0  ;;  %16557 = vst [vmem:[#allocation51_spill] sm:$0xff] %v13327_v9  ;;  %v13331_v5 = vpop.f32.mrb[49].mxu1 }
 0x1dc   : > { %v13329_v47 = vpop.f32.mrb[50].mxu0  ;;  %16558 = vst [vmem:[#allocation52_spill] sm:$0xff] %v13331_v5  ;;  %v13337_v35 = vpop.f32.mrb[50].mxu1 }
 0x1dd   : > { %v13335_v27 = vpop.f32.mrb[51].mxu0  ;;  %16560 = vst [vmem:[#allocation54_spill] sm:$0xff] %v13337_v35  ;;  %v13340_v3 = vpop.f32.mrb[51].mxu1 }
 0x1de   : > { %16559 = vst [vmem:[#allocation53_spill] sm:$0xff] %v13335_v27  ;;  %16561 = vst [vmem:[#allocation55_spill] sm:$0xff] %v13340_v3  ;;  %v12114_v3 = vld [vmem:[%s12812_s6 + $0x688] sm:$0xff]  }
 0x1df   : > { %11565 = vmatmul.mubr.msk.bf16.gmra.mrb[156].mxu0 %vm6145_vm2, %v12108_v11  ;;  %11821 = vmatmul.mubr.msk.bf16.gmra.mrb[156].mxu1 %vm6145_vm2, %v12110_v15  ;;  %v12115_v11 = vld [vmem:[%s12812_s6 + $0x290] sm:$0xff]  }
 0x1e0   : > { %11568 = vmatprep.mubr.msk.bf16.mxu0 %vm6145_vm2, %v12111_v23  ;;  %11824 = vmatprep.mubr.msk.bf16.mxu1 %vm6145_vm2, %v12113_v43  ;;  %v12117_v43 = vld [vmem:[%s12812_s6 + $0x690] sm:$0xff]  }
 0x1e2   : > { %v13346_v5 = vpop.f32.mrb[52].mxu0  ;;  %v13351_v61 = vpop.f32.mrb[52].mxu1 }
 0x1e3   : > { %16562 = vst [vmem:[#allocation56_spill] sm:$0xff] %v13346_v5  ;;  %v13348_v9 = vpop.f32.mrb[53].mxu0  ;;  %16564 = vst [vmem:[#allocation58_spill] sm:$0xff] %v13351_v61  ;;  %v13355_v57 = vpop.f32.mrb[53].mxu1 }
 0x1e4   : > { %16563 = vst [vmem:[#allocation57_spill] sm:$0xff] %v13348_v9  ;;  %v13353_v35 = vpop.f32.mrb[54].mxu0  ;;  %16566 = vst [vmem:[#allocation60_spill] sm:$0xff] %v13355_v57  ;;  %v13361_v23 = vpop.f32.mrb[54].mxu1 }
 0x1e5   : > { %16565 = vst [vmem:[#allocation59_spill] sm:$0xff] %v13353_v35  ;;  %v13359_v15 = vpop.f32.mrb[55].mxu0  ;;  %16568 = vst [vmem:[#allocation62_spill] sm:$0xff] %v13361_v23  ;;  %v13364_v55 = vpop.f32.mrb[55].mxu1  ;;  %v12116_v35 = vld [vmem:[%s12812_s6 + $0x298] sm:$0xff]  }
 0x1e6   : > { %16567 = vst [vmem:[#allocation61_spill] sm:$0xff] %v13359_v15  ;;  %16569 = vst [vmem:[#allocation63_spill] sm:$0xff] %v13364_v55  ;;  %v12118_v55 = vld [vmem:[%s12812_s6 + $0x698] sm:$0xff]  }
 0x1e7   : > { %11569 = vmatmul.mubr.msk.bf16.gmra.mrb[160].mxu0 %vm6145_vm2, %v12112_v63  ;;  %11825 = vmatmul.mubr.msk.bf16.gmra.mrb[160].mxu1 %vm6145_vm2, %v12114_v3  ;;  %v12119_v63 = vld [vmem:[%s12812_s6 + $0x2a0] sm:$0xff]  }
 0x1e8   : > { %11572 = vmatprep.mubr.msk.bf16.mxu0 %vm6145_vm2, %v12115_v11  ;;  %11828 = vmatprep.mubr.msk.bf16.mxu1 %vm6145_vm2, %v12117_v43  ;;  %v12121_v43 = vld [vmem:[%s12812_s6 + $0x6a0] sm:$0xff]  }
 0x1ea   : > { %v13370_v57 = vpop.f32.mrb[56].mxu0  ;;  %v13375_v15 = vpop.f32.mrb[56].mxu1 }
 0x1eb   : > { %16570 = vst [vmem:[#allocation64_spill] sm:$0xff] %v13370_v57  ;;  %v13372_v61 = vpop.f32.mrb[57].mxu0  ;;  %16572 = vst [vmem:[#allocation66_spill] sm:$0xff] %v13375_v15  ;;  %v13379_v9 = vpop.f32.mrb[57].mxu1 }
 0x1ec   : > { %16571 = vst [vmem:[#allocation65_spill] sm:$0xff] %v13372_v61  ;;  %v13377_v23 = vpop.f32.mrb[58].mxu0  ;;  %16574 = vst [vmem:[#allocation68_spill] sm:$0xff] %v13379_v9  ;;  %v13385_v11 = vpop.f32.mrb[58].mxu1 }
 0x1ed   : > { %16573 = vst [vmem:[#allocation67_spill] sm:$0xff] %v13377_v23  ;;  %v13383_v3 = vpop.f32.mrb[59].mxu0  ;;  %16576 = vst [vmem:[#allocation70_spill] sm:$0xff] %v13385_v11  ;;  %v13388_v57 = vpop.f32.mrb[59].mxu1  ;;  %v12120_v23 = vld [vmem:[%s12812_s6 + $0x2a8] sm:$0xff]  }
 0x1ee   : > { %16575 = vst [vmem:[#allocation69_spill] sm:$0xff] %v13383_v3  ;;  %16577 = vst [vmem:[#allocation71_spill] sm:$0xff] %v13388_v57  ;;  %v12122_v57 = vld [vmem:[%s12812_s6 + $0x6a8] sm:$0xff]  }
 0x1ef   : > { %11573 = vmatmul.mubr.msk.bf16.gmra.mrb[164].mxu0 %vm6145_vm2, %v12116_v35  ;;  %11829 = vmatmul.mubr.msk.bf16.gmra.mrb[164].mxu1 %vm6145_vm2, %v12118_v55  ;;  %v12123_v35 = vld [vmem:[%s12812_s6 + $0x2b0] sm:$0xff]  }
 0x1f0   : > { %11576 = vmatprep.mubr.msk.bf16.mxu0 %vm6145_vm2, %v12119_v63  ;;  %11832 = vmatprep.mubr.msk.bf16.mxu1 %vm6145_vm2, %v12121_v43  ;;  %v12125_v63 = vld [vmem:[%s12812_s6 + $0x6b0] sm:$0xff]  }
 0x1f2   : > { %v13394_v9 = vpop.f32.mrb[60].mxu0  ;;  %v13399_v3 = vpop.f32.mrb[60].mxu1 }
 0x1f3   : > { %16578 = vst [vmem:[#allocation72_spill] sm:$0xff] %v13394_v9  ;;  %v13396_v15 = vpop.f32.mrb[61].mxu0  ;;  %16580 = vst [vmem:[#allocation74_spill] sm:$0xff] %v13399_v3  ;;  %v13403_v61 = vpop.f32.mrb[61].mxu1  ;;  %v13420_v3 = vsel %vm9002_vm3, %v13034_v52, -inf  ;;  %v13443_v9 = vsel %vm9002_vm3, %v13041_v56, -inf }
 0x1f4   : > { %16579 = vst [vmem:[#allocation73_spill] sm:$0xff] %v13396_v15  ;;  %v13401_v11 = vpop.f32.mrb[62].mxu0  ;;  %16582 = vst [vmem:[#allocation76_spill] sm:$0xff] %v13403_v61  ;;  %v13409_v55 = vpop.f32.mrb[62].mxu1  ;;  %v12127_v15 = vld [vmem:[%s12812_s6 + $0x2c0] sm:$0xff]  }
 0x1f5   : > { %16581 = vst [vmem:[#allocation75_spill] sm:$0xff] %v13401_v11  ;;  %v13407_v5 = vpop.f32.mrb[63].mxu0  ;;  %16584 = vst [vmem:[#allocation78_spill] sm:$0xff] %v13409_v55  ;;  %v13412_v43 = vpop.f32.mrb[63].mxu1 }
 0x1f6   : > { %16583 = vst [vmem:[#allocation77_spill] sm:$0xff] %v13407_v5  ;;  %16585 = vst [vmem:[#allocation79_spill] sm:$0xff] %v13412_v43 }
 0x1f7   : > { %11577 = vmatmul.mubr.msk.bf16.gmra.mrb[168].mxu0 %vm6145_vm2, %v12120_v23  ;;  %11833 = vmatmul.mubr.msk.bf16.gmra.mrb[168].mxu1 %vm6145_vm2, %v12122_v57  ;;  %16586 = vst [vmem:[#allocation80_spill] sm:$0xff] %v13420_v3  ;;  %v12124_v23 = vld [vmem:[%s12812_s6 + $0x2b8] sm:$0xff]   ;;  %v13430_v57 = vsel %vm9002_vm3, %v13036_v53, -inf }
 0x1f8   : > { %11580 = vmatprep.mubr.msk.bf16.mxu0 %vm6145_vm2, %v12123_v35  ;;  %11836 = vmatprep.mubr.msk.bf16.mxu1 %vm6145_vm2, %v12125_v63 }
 0x1fa   : > { %v11474_v61 = vpop.f32.mrb[64].mxu0  ;;  %v13426_v5 = vpop.f32.mrb[64].mxu1 }
 0x1fb   : > { %v13423_v55 = vsel %vm9002_vm3, %v11474_v61, -inf  ;;  %v7211_v43 = vpop.f32.mrb[65].mxu0  ;;  %16588 = vst [vmem:[#allocation82_spill] sm:$0xff] %v13426_v5  ;;  %v13437_v11 = vpop.f32.mrb[65].mxu1  ;;  %v12126_v61 = vld [vmem:[%s12812_s6 + $0x6b8] sm:$0xff]   ;;  %v12128_v5 = vld [vmem:[%s12812_s6 + $0x2c8] sm:$0xff]  }
 0x1fc   : > { %16587 = vst [vmem:[#allocation81_spill] sm:$0xff] %v13423_v55  ;;  %v13435_v63 = vsel %vm9002_vm3, %v7211_v43, -inf  ;;  %v11475_v52 = vpop.f32.mrb[66].mxu0  ;;  %16589 = vst [vmem:[#allocation83_spill] sm:$0xff] %v13437_v11  ;;  %v13450_v35 = vpop.f32.mrb[66].mxu1  ;;  %v12129_v43 = vld [vmem:[%s12812_s6 + $0x6c0] sm:$0xff]  }
 0x1fd   : > { %v13448_v53 = vsel %vm9002_vm3, %v11475_v52, -inf  ;;  %v7214_v27 = vpop.f32.mrb[67].mxu0  ;;  %16590 = vst [vmem:[#allocation84_spill] sm:$0xff] %v13450_v35  ;;  %v13455_v11 = vsel %vm9002_vm3, %v13047_v60, -inf  ;;  %v13462_v3 = vpop.f32.mrb[67].mxu1  ;;  %v12131_v35 = vld [vmem:[%s12812_s6 + $0x2d0] sm:$0xff]  }
 0x1fe   : > { %16591 = vst [vmem:[#allocation85_spill] sm:$0xff] %v13455_v11  ;;  %v13460_v56 = vsel %vm9002_vm3, %v7214_v27, -inf  ;;  %16593 = vst [vmem:[#allocation87_spill] sm:$0xff] %v13462_v3  ;;  %v13472_v27 = vsel %vm9002_vm3, %v13058_v0, -inf }
 0x1ff   : > { %16592 = vst [vmem:[#allocation86_spill] sm:$0xff] %v13460_v56  ;;  %11581 = vmatmul.mubr.msk.bf16.gmra.mrb[172].mxu0 %vm6145_vm2, %v12124_v23  ;;  %11837 = vmatmul.mubr.msk.bf16.gmra.mrb[172].mxu1 %vm6145_vm2, %v12126_v61  ;;  %16594 = vst [vmem:[#allocation88_spill] sm:$0xff] %v13472_v27  ;;  %v13482_v23 = vsel %vm9002_vm3, %v13060_v1, -inf  ;;  %v13495_v56 = vsel %vm9002_vm3, %v13065_v4, -inf }
 0x200   : > { %11584 = vmatprep.mubr.msk.bf16.mxu0 %vm6145_vm2, %v12127_v15  ;;  %11840 = vmatprep.mubr.msk.bf16.mxu1 %vm6145_vm2, %v12129_v43 }
 0x202   : > { %v11478_v60 = vpop.f32.mrb[68].mxu0  ;;  %v13478_v3 = vpop.f32.mrb[68].mxu1 }
 0x203   : > { %v13475_v55 = vsel %vm9002_vm3, %v11478_v60, -inf  ;;  %v7227_v52 = vpop.f32.mrb[69].mxu0  ;;  %16596 = vst [vmem:[#allocation90_spill] sm:$0xff] %v13478_v3  ;;  %v13489_v43 = vpop.f32.mrb[69].mxu1  ;;  %v12130_v60 = vld [vmem:[%s12812_s6 + $0x6c8] sm:$0xff]   ;;  %v12132_v3 = vld [vmem:[%s12812_s6 + $0x2d8] sm:$0xff]  }
 0x204   : > { %16595 = vst [vmem:[#allocation89_spill] sm:$0xff] %v13475_v55  ;;  %v13487_v61 = vsel %vm9002_vm3, %v7227_v52, -inf  ;;  %v11479_v0 = vpop.f32.mrb[70].mxu0  ;;  %16597 = vst [vmem:[#allocation91_spill] sm:$0xff] %v13489_v43  ;;  %v13502_v15 = vpop.f32.mrb[70].mxu1  ;;  %v12133_v52 = vld [vmem:[%s12812_s6 + $0x6d0] sm:$0xff]  }
 0x205   : > { %v13500_v1 = vsel %vm9002_vm3, %v11479_v0, -inf  ;;  %v7230_v11 = vpop.f32.mrb[71].mxu0  ;;  %16598 = vst [vmem:[#allocation92_spill] sm:$0xff] %v13502_v15  ;;  %v13507_v43 = vsel %vm9002_vm3, %v13071_v8, -inf  ;;  %v13514_v27 = vpop.f32.mrb[71].mxu1  ;;  %v12135_v15 = vld [vmem:[%s12812_s6 + $0x2e0] sm:$0xff]  }
 0x206   : > { %16599 = vst [vmem:[#allocation93_spill] sm:$0xff] %v13507_v43  ;;  %v13512_v4 = vsel %vm9002_vm3, %v7230_v11, -inf  ;;  %16601 = vst [vmem:[#allocation95_spill] sm:$0xff] %v13514_v27  ;;  %v13524_v11 = vsel %vm9002_vm3, %v13082_v12, -inf }
 0x207   : > { %16600 = vst [vmem:[#allocation94_spill] sm:$0xff] %v13512_v4  ;;  %11585 = vmatmul.mubr.msk.bf16.gmra.mrb[176].mxu0 %vm6145_vm2, %v12128_v5  ;;  %11841 = vmatmul.mubr.msk.bf16.gmra.mrb[176].mxu1 %vm6145_vm2, %v12130_v60  ;;  %16602 = vst [vmem:[#allocation96_spill] sm:$0xff] %v13524_v11  ;;  %v13534_v5 = vsel %vm9002_vm3, %v13084_v13, -inf  ;;  %v13547_v4 = vsel %vm9002_vm3, %v13089_v16, -inf }
 0x208   : > { %11588 = vmatprep.mubr.msk.bf16.mxu0 %vm6145_vm2, %v12131_v35  ;;  %11844 = vmatprep.mubr.msk.bf16.mxu1 %vm6145_vm2, %v12133_v52 }
 0x20a   : > { %v11482_v8 = vpop.f32.mrb[72].mxu0  ;;  %v13530_v27 = vpop.f32.mrb[72].mxu1 }
 0x20b   : > { %v13527_v55 = vsel %vm9002_vm3, %v11482_v8, -inf  ;;  %v7243_v0 = vpop.f32.mrb[73].mxu0  ;;  %16604 = vst [vmem:[#allocation98_spill] sm:$0xff] %v13530_v27  ;;  %v13541_v52 = vpop.f32.mrb[73].mxu1  ;;  %v12134_v8 = vld [vmem:[%s12812_s6 + $0x6d8] sm:$0xff]   ;;  %v12136_v27 = vld [vmem:[%s12812_s6 + $0x2e8] sm:$0xff]  }
 0x20c   : > { %16603 = vst [vmem:[#allocation97_spill] sm:$0xff] %v13527_v55  ;;  %v13539_v60 = vsel %vm9002_vm3, %v7243_v0, -inf  ;;  %v11483_v12 = vpop.f32.mrb[74].mxu0  ;;  %16605 = vst [vmem:[#allocation99_spill] sm:$0xff] %v13541_v52  ;;  %v13554_v35 = vpop.f32.mrb[74].mxu1  ;;  %v12137_v0 = vld [vmem:[%s12812_s6 + $0x6e0] sm:$0xff]  }
 0x20d   : > { %v13552_v13 = vsel %vm9002_vm3, %v11483_v12, -inf  ;;  %v7246_v43 = vpop.f32.mrb[75].mxu0  ;;  %16606 = vst [vmem:[#allocation100_spill] sm:$0xff] %v13554_v35  ;;  %v13559_v52 = vsel %vm9002_vm3, %v13095_v20, -inf  ;;  %v13566_v11 = vpop.f32.mrb[75].mxu1  ;;  %v12139_v35 = vld [vmem:[%s12812_s6 + $0x2f0] sm:$0xff]  }
 0x20e   : > { %16607 = vst [vmem:[#allocation101_spill] sm:$0xff] %v13559_v52  ;;  %v13564_v16 = vsel %vm9002_vm3, %v7246_v43, -inf  ;;  %16609 = vst [vmem:[#allocation103_spill] sm:$0xff] %v13566_v11  ;;  %v13576_v43 = vsel %vm9002_vm3, %v13106_v24, -inf }
 0x20f   : > { %16608 = vst [vmem:[#allocation102_spill] sm:$0xff] %v13564_v16  ;;  %11589 = vmatmul.mubr.msk.bf16.gmra.mrb[180].mxu0 %vm6145_vm2, %v12132_v3  ;;  %11845 = vmatmul.mubr.msk.bf16.gmra.mrb[180].mxu1 %vm6145_vm2, %v12134_v8  ;;  %16610 = vst [vmem:[#allocation104_spill] sm:$0xff] %v13576_v43  ;;  %v13586_v3 = vsel %vm9002_vm3, %v13108_v25, -inf  ;;  %v13599_v16 = vsel %vm9002_vm3, %v13113_v28, -inf }
 0x210   : > { %11592 = vmatprep.mubr.msk.bf16.mxu0 %vm6145_vm2, %v12135_v15  ;;  %11848 = vmatprep.mubr.msk.bf16.mxu1 %vm6145_vm2, %v12137_v0 }
 0x212   : > { %v11486_v20 = vpop.f32.mrb[76].mxu0  ;;  %v13582_v11 = vpop.f32.mrb[76].mxu1 }
 0x213   : > { %v13579_v55 = vsel %vm9002_vm3, %v11486_v20, -inf  ;;  %v7259_v12 = vpop.f32.mrb[77].mxu0  ;;  %16612 = vst [vmem:[#allocation106_spill] sm:$0xff] %v13582_v11  ;;  %v13593_v0 = vpop.f32.mrb[77].mxu1  ;;  %v12138_v20 = vld [vmem:[%s12812_s6 + $0x6e8] sm:$0xff]   ;;  %v12140_v11 = vld [vmem:[%s12812_s6 + $0x2f8] sm:$0xff]  }
 0x214   : > { %16611 = vst [vmem:[#allocation105_spill] sm:$0xff] %v13579_v55  ;;  %v13591_v8 = vsel %vm9002_vm3, %v7259_v12, -inf  ;;  %v11487_v24 = vpop.f32.mrb[78].mxu0  ;;  %16613 = vst [vmem:[#allocation107_spill] sm:$0xff] %v13593_v0  ;;  %v13606_v15 = vpop.f32.mrb[78].mxu1  ;;  %v12141_v12 = vld [vmem:[%s12812_s6 + $0x6f0] sm:$0xff]  }
 0x215   : > { %v13604_v25 = vsel %vm9002_vm3, %v11487_v24, -inf  ;;  %v7262_v52 = vpop.f32.mrb[79].mxu0  ;;  %16614 = vst [vmem:[#allocation108_spill] sm:$0xff] %v13606_v15  ;;  %v13611_v0 = vsel %vm9002_vm3, %v13119_v32, -inf  ;;  %v13618_v43 = vpop.f32.mrb[79].mxu1  ;;  %v12143_v15 = vld [vmem:[%s12812_s6 + $0x300] sm:$0xff]  }
 0x216   : > { %16615 = vst [vmem:[#allocation109_spill] sm:$0xff] %v13611_v0  ;;  %v13616_v28 = vsel %vm9002_vm3, %v7262_v52, -inf  ;;  %16617 = vst [vmem:[#allocation111_spill] sm:$0xff] %v13618_v43  ;;  %v13628_v52 = vsel %vm9002_vm3, %v13130_v36, -inf }
 0x217   : > { %16616 = vst [vmem:[#allocation110_spill] sm:$0xff] %v13616_v28  ;;  %11593 = vmatmul.mubr.msk.bf16.gmra.mrb[184].mxu0 %vm6145_vm2, %v12136_v27  ;;  %11849 = vmatmul.mubr.msk.bf16.gmra.mrb[184].mxu1 %vm6145_vm2, %v12138_v20  ;;  %16618 = vst [vmem:[#allocation112_spill] sm:$0xff] %v13628_v52  ;;  %v13638_v27 = vsel %vm9002_vm3, %v13132_v37, -inf  ;;  %v13651_v28 = vsel %vm9002_vm3, %v13137_v40, -inf }
 0x218   : > { %11596 = vmatprep.mubr.msk.bf16.mxu0 %vm6145_vm2, %v12139_v35  ;;  %11852 = vmatprep.mubr.msk.bf16.mxu1 %vm6145_vm2, %v12141_v12 }
 0x21a   : > { %v11490_v32 = vpop.f32.mrb[80].mxu0  ;;  %v13634_v43 = vpop.f32.mrb[80].mxu1 }
 0x21b   : > { %v13631_v55 = vsel %vm9002_vm3, %v11490_v32, -inf  ;;  %v7275_v24 = vpop.f32.mrb[81].mxu0  ;;  %16620 = vst [vmem:[#allocation114_spill] sm:$0xff] %v13634_v43  ;;  %v13645_v12 = vpop.f32.mrb[81].mxu1  ;;  %v12142_v32 = vld [vmem:[%s12812_s6 + $0x6f8] sm:$0xff]   ;;  %v12144_v43 = vld [vmem:[%s12812_s6 + $0x308] sm:$0xff]  }
 0x21c   : > { %16619 = vst [vmem:[#allocation113_spill] sm:$0xff] %v13631_v55  ;;  %v13643_v20 = vsel %vm9002_vm3, %v7275_v24, -inf  ;;  %v11491_v36 = vpop.f32.mrb[82].mxu0  ;;  %16621 = vst [vmem:[#allocation115_spill] sm:$0xff] %v13645_v12  ;;  %v13658_v35 = vpop.f32.mrb[82].mxu1  ;;  %v12145_v24 = vld [vmem:[%s12812_s6 + $0x700] sm:$0xff]  }
 0x21d   : > { %v13656_v37 = vsel %vm9002_vm3, %v11491_v36, -inf  ;;  %v7278_v0 = vpop.f32.mrb[83].mxu0  ;;  %16622 = vst [vmem:[#allocation116_spill] sm:$0xff] %v13658_v35  ;;  %v13663_v12 = vsel %vm9002_vm3, %v13143_v44, -inf  ;;  %v13670_v52 = vpop.f32.mrb[83].mxu1  ;;  %v12147_v35 = vld [vmem:[%s12812_s6 + $0x310] sm:$0xff]  }
 0x21e   : > { %16623 = vst [vmem:[#allocation117_spill] sm:$0xff] %v13663_v12  ;;  %v13668_v40 = vsel %vm9002_vm3, %v7278_v0, -inf  ;;  %16625 = vst [vmem:[#allocation119_spill] sm:$0xff] %v13670_v52  ;;  %v13680_v0 = vsel %vm9002_vm3, %v13154_v48, -inf }
 0x21f   : > { %16624 = vst [vmem:[#allocation118_spill] sm:$0xff] %v13668_v40  ;;  %11597 = vmatmul.mubr.msk.bf16.gmra.mrb[188].mxu0 %vm6145_vm2, %v12140_v11  ;;  %11853 = vmatmul.mubr.msk.bf16.gmra.mrb[188].mxu1 %vm6145_vm2, %v12142_v32  ;;  %16626 = vst [vmem:[#allocation120_spill] sm:$0xff] %v13680_v0  ;;  %v13690_v11 = vsel %vm9002_vm3, %v13156_v49, -inf  ;;  %v13703_v40 = vsel %vm9002_vm3, %v13161_v54, -inf }
 0x220   : > { %11600 = vmatprep.mubr.msk.bf16.mxu0 %vm6145_vm2, %v12143_v15  ;;  %11856 = vmatprep.mubr.msk.bf16.mxu1 %vm6145_vm2, %v12145_v24 }
 0x222   : > { %v11494_v44 = vpop.f32.mrb[84].mxu0  ;;  %v13686_v52 = vpop.f32.mrb[84].mxu1 }
 0x223   : > { %v13683_v55 = vsel %vm9002_vm3, %v11494_v44, -inf  ;;  %v7291_v36 = vpop.f32.mrb[85].mxu0  ;;  %16628 = vst [vmem:[#allocation122_spill] sm:$0xff] %v13686_v52  ;;  %v13697_v24 = vpop.f32.mrb[85].mxu1  ;;  %v12146_v44 = vld [vmem:[%s12812_s6 + $0x708] sm:$0xff]   ;;  %v12148_v52 = vld [vmem:[%s12812_s6 + $0x318] sm:$0xff]  }
 0x224   : > { %16627 = vst [vmem:[#allocation121_spill] sm:$0xff] %v13683_v55  ;;  %v13695_v32 = vsel %vm9002_vm3, %v7291_v36, -inf  ;;  %v11495_v48 = vpop.f32.mrb[86].mxu0  ;;  %16629 = vst [vmem:[#allocation123_spill] sm:$0xff] %v13697_v24  ;;  %v13710_v15 = vpop.f32.mrb[86].mxu1  ;;  %v12149_v36 = vld [vmem:[%s12812_s6 + $0x710] sm:$0xff]  }
 0x225   : > { %v13708_v49 = vsel %vm9002_vm3, %v11495_v48, -inf  ;;  %v7294_v12 = vpop.f32.mrb[87].mxu0  ;;  %16630 = vst [vmem:[#allocation124_spill] sm:$0xff] %v13710_v15  ;;  %v13715_v24 = vsel %vm9002_vm3, %v13167_v2, -inf  ;;  %v13722_v0 = vpop.f32.mrb[87].mxu1  ;;  %v12151_v15 = vld [vmem:[%s12812_s6 + $0x320] sm:$0xff]  }
 0x226   : > { %16631 = vst [vmem:[#allocation125_spill] sm:$0xff] %v13715_v24  ;;  %v13720_v54 = vsel %vm9002_vm3, %v7294_v12, -inf  ;;  %16633 = vst [vmem:[#allocation127_spill] sm:$0xff] %v13722_v0  ;;  %v13732_v12 = vsel %vm9002_vm3, %v13178_v14, -inf }
 0x227   : > { %16632 = vst [vmem:[#allocation126_spill] sm:$0xff] %v13720_v54  ;;  %11601 = vmatmul.mubr.msk.bf16.gmra.mrb[192].mxu0 %vm6145_vm2, %v12144_v43  ;;  %11857 = vmatmul.mubr.msk.bf16.gmra.mrb[192].mxu1 %vm6145_vm2, %v12146_v44  ;;  %16634 = vst [vmem:[#allocation128_spill] sm:$0xff] %v13732_v12  ;;  %v13742_v43 = vsel %vm9002_vm3, %v13180_v18, -inf  ;;  %v13755_v54 = vsel %vm9002_vm3, %v13185_v26, -inf }
 0x228   : > { %11604 = vmatprep.mubr.msk.bf16.mxu0 %vm6145_vm2, %v12147_v35  ;;  %11860 = vmatprep.mubr.msk.bf16.mxu1 %vm6145_vm2, %v12149_v36 }
 0x22a   : > { %v11498_v2 = vpop.f32.mrb[88].mxu0  ;;  %v13738_v0 = vpop.f32.mrb[88].mxu1 }
 0x22b   : > { %v13735_v55 = vsel %vm9002_vm3, %v11498_v2, -inf  ;;  %v7307_v48 = vpop.f32.mrb[89].mxu0  ;;  %16636 = vst [vmem:[#allocation130_spill] sm:$0xff] %v13738_v0  ;;  %v13749_v36 = vpop.f32.mrb[89].mxu1  ;;  %v12150_v2 = vld [vmem:[%s12812_s6 + $0x718] sm:$0xff]   ;;  %v12152_v0 = vld [vmem:[%s12812_s6 + $0x328] sm:$0xff]  }
 0x22c   : > { %16635 = vst [vmem:[#allocation129_spill] sm:$0xff] %v13735_v55  ;;  %v13747_v44 = vsel %vm9002_vm3, %v7307_v48, -inf  ;;  %v11499_v14 = vpop.f32.mrb[90].mxu0  ;;  %16637 = vst [vmem:[#allocation131_spill] sm:$0xff] %v13749_v36  ;;  %v13762_v35 = vpop.f32.mrb[90].mxu1  ;;  %v12153_v48 = vld [vmem:[%s12812_s6 + $0x720] sm:$0xff]  }
 0x22d   : > { %v13760_v18 = vsel %vm9002_vm3, %v11499_v14, -inf  ;;  %v7310_v24 = vpop.f32.mrb[91].mxu0  ;;  %16638 = vst [vmem:[#allocation132_spill] sm:$0xff] %v13762_v35  ;;  %v13767_v36 = vsel %vm9002_vm3, %v13191_v38, -inf  ;;  %v13774_v12 = vpop.f32.mrb[91].mxu1  ;;  %v12155_v35 = vld [vmem:[%s12812_s6 + $0x330] sm:$0xff]  }
 0x22e   : > { %16639 = vst [vmem:[#allocation133_spill] sm:$0xff] %v13767_v36  ;;  %v13772_v26 = vsel %vm9002_vm3, %v7310_v24, -inf  ;;  %16641 = vst [vmem:[#allocation135_spill] sm:$0xff] %v13774_v12  ;;  %v13784_v24 = vsel %vm9002_vm3, %v13202_v50, -inf }
 0x22f   : > { %16640 = vst [vmem:[#allocation134_spill] sm:$0xff] %v13772_v26  ;;  %11605 = vmatmul.mubr.msk.bf16.gmra.mrb[196].mxu0 %vm6145_vm2, %v12148_v52  ;;  %11861 = vmatmul.mubr.msk.bf16.gmra.mrb[196].mxu1 %vm6145_vm2, %v12150_v2  ;;  %16642 = vst [vmem:[#allocation136_spill] sm:$0xff] %v13784_v24  ;;  %v13794_v52 = vsel %vm9002_vm3, %v13204_v59, -inf  ;;  %v13807_v26 = vsel %vm9002_vm3, %v13209_v42, -inf }
 0x230   : > { %11608 = vmatprep.mubr.msk.bf16.mxu0 %vm6145_vm2, %v12151_v15  ;;  %11864 = vmatprep.mubr.msk.bf16.mxu1 %vm6145_vm2, %v12153_v48 }
 0x232   : > { %v11502_v38 = vpop.f32.mrb[92].mxu0  ;;  %v13790_v12 = vpop.f32.mrb[92].mxu1 }
 0x233   : > { %v13787_v55 = vsel %vm9002_vm3, %v11502_v38, -inf  ;;  %v7323_v14 = vpop.f32.mrb[93].mxu0  ;;  %16644 = vst [vmem:[#allocation138_spill] sm:$0xff] %v13790_v12  ;;  %v13801_v48 = vpop.f32.mrb[93].mxu1  ;;  %v12154_v38 = vld [vmem:[%s12812_s6 + $0x728] sm:$0xff]   ;;  %v12156_v12 = vld [vmem:[%s12812_s6 + $0x338] sm:$0xff]  }
 0x234   : > { %16643 = vst [vmem:[#allocation137_spill] sm:$0xff] %v13787_v55  ;;  %v13799_v2 = vsel %vm9002_vm3, %v7323_v14, -inf  ;;  %v11503_v50 = vpop.f32.mrb[94].mxu0  ;;  %16645 = vst [vmem:[#allocation139_spill] sm:$0xff] %v13801_v48  ;;  %v13814_v15 = vpop.f32.mrb[94].mxu1  ;;  %v12157_v14 = vld [vmem:[%s12812_s6 + $0x730] sm:$0xff]  }
 0x235   : > { %v13812_v59 = vsel %vm9002_vm3, %v11503_v50, -inf  ;;  %v7326_v36 = vpop.f32.mrb[95].mxu0  ;;  %16646 = vst [vmem:[#allocation140_spill] sm:$0xff] %v13814_v15  ;;  %v13819_v48 = vsel %vm9002_vm3, %v13215_v31, -inf  ;;  %v13826_v24 = vpop.f32.mrb[95].mxu1  ;;  %v12159_v15 = vld [vmem:[%s12812_s6 + $0x340] sm:$0xff]  }
 0x236   : > { %16647 = vst [vmem:[#allocation141_spill] sm:$0xff] %v13819_v48  ;;  %v13824_v42 = vsel %vm9002_vm3, %v7326_v36, -inf  ;;  %16649 = vst [vmem:[#allocation143_spill] sm:$0xff] %v13826_v24  ;;  %v13836_v36 = vsel %vm9002_vm3, %v13226_v30, -inf }
 0x237   : > { %16648 = vst [vmem:[#allocation142_spill] sm:$0xff] %v13824_v42  ;;  %11609 = vmatmul.mubr.msk.bf16.gmra.mrb[200].mxu0 %vm6145_vm2, %v12152_v0  ;;  %11865 = vmatmul.mubr.msk.bf16.gmra.mrb[200].mxu1 %vm6145_vm2, %v12154_v38  ;;  %16650 = vst [vmem:[#allocation144_spill] sm:$0xff] %v13836_v36  ;;  %v13846_v0 = vsel %vm9002_vm3, %v13228_v7, -inf  ;;  %v13859_v42 = vsel %vm9002_vm3, %v13233_v34, -inf }
 0x238   : > { %11612 = vmatprep.mubr.msk.bf16.mxu0 %vm6145_vm2, %v12155_v35  ;;  %11868 = vmatprep.mubr.msk.bf16.mxu1 %vm6145_vm2, %v12157_v14 }
 0x23a   : > { %v11506_v31 = vpop.f32.mrb[96].mxu0  ;;  %v13842_v24 = vpop.f32.mrb[96].mxu1 }
 0x23b   : > { %v13839_v55 = vsel %vm9002_vm3, %v11506_v31, -inf  ;;  %v7339_v50 = vpop.f32.mrb[97].mxu0  ;;  %16652 = vst [vmem:[#allocation146_spill] sm:$0xff] %v13842_v24  ;;  %v13853_v14 = vpop.f32.mrb[97].mxu1  ;;  %v12158_v31 = vld [vmem:[%s12812_s6 + $0x738] sm:$0xff]   ;;  %v12160_v24 = vld [vmem:[%s12812_s6 + $0x348] sm:$0xff]  }
 0x23c   : > { %16651 = vst [vmem:[#allocation145_spill] sm:$0xff] %v13839_v55  ;;  %v13851_v38 = vsel %vm9002_vm3, %v7339_v50, -inf  ;;  %v11507_v30 = vpop.f32.mrb[98].mxu0  ;;  %16653 = vst [vmem:[#allocation147_spill] sm:$0xff] %v13853_v14  ;;  %v13866_v35 = vpop.f32.mrb[98].mxu1  ;;  %v12161_v50 = vld [vmem:[%s12812_s6 + $0x740] sm:$0xff]  }
 0x23d   : > { %v13864_v7 = vsel %vm9002_vm3, %v11507_v30, -inf  ;;  %v7342_v48 = vpop.f32.mrb[99].mxu0  ;;  %16654 = vst [vmem:[#allocation148_spill] sm:$0xff] %v13866_v35  ;;  %v13871_v14 = vsel %vm9002_vm3, %v13239_v46, -inf  ;;  %v13878_v36 = vpop.f32.mrb[99].mxu1  ;;  %v12163_v35 = vld [vmem:[%s12812_s6 + $0x350] sm:$0xff]  }
 0x23e   : > { %16655 = vst [vmem:[#allocation149_spill] sm:$0xff] %v13871_v14  ;;  %v13876_v34 = vsel %vm9002_vm3, %v7342_v48, -inf  ;;  %16657 = vst [vmem:[#allocation151_spill] sm:$0xff] %v13878_v36  ;;  %v13888_v48 = vsel %vm9002_vm3, %v13250_v58, -inf }
 0x23f   : > { %16656 = vst [vmem:[#allocation150_spill] sm:$0xff] %v13876_v34  ;;  %11613 = vmatmul.mubr.msk.bf16.gmra.mrb[204].mxu0 %vm6145_vm2, %v12156_v12  ;;  %11869 = vmatmul.mubr.msk.bf16.gmra.mrb[204].mxu1 %vm6145_vm2, %v12158_v31  ;;  %16658 = vst [vmem:[#allocation152_spill] sm:$0xff] %v13888_v48  ;;  %v13898_v12 = vsel %vm9002_vm3, %v13252_v6, -inf  ;;  %v13911_v34 = vsel %vm9002_vm3, %v13257_v19, -inf }
 0x240   : > { %11616 = vmatprep.mubr.msk.bf16.mxu0 %vm6145_vm2, %v12159_v15  ;;  %11872 = vmatprep.mubr.msk.bf16.mxu1 %vm6145_vm2, %v12161_v50 }
 0x242   : > { %v11510_v46 = vpop.f32.mrb[100].mxu0  ;;  %v13894_v36 = vpop.f32.mrb[100].mxu1 }
 0x243   : > { %v13891_v55 = vsel %vm9002_vm3, %v11510_v46, -inf  ;;  %v7355_v30 = vpop.f32.mrb[101].mxu0  ;;  %16660 = vst [vmem:[#allocation154_spill] sm:$0xff] %v13894_v36  ;;  %v13905_v50 = vpop.f32.mrb[101].mxu1  ;;  %v12162_v46 = vld [vmem:[%s12812_s6 + $0x748] sm:$0xff]   ;;  %v12164_v36 = vld [vmem:[%s12812_s6 + $0x358] sm:$0xff]  }
 0x244   : > { %16659 = vst [vmem:[#allocation153_spill] sm:$0xff] %v13891_v55  ;;  %v13903_v31 = vsel %vm9002_vm3, %v7355_v30, -inf  ;;  %v11511_v58 = vpop.f32.mrb[102].mxu0  ;;  %16661 = vst [vmem:[#allocation155_spill] sm:$0xff] %v13905_v50  ;;  %v13918_v15 = vpop.f32.mrb[102].mxu1  ;;  %v12165_v30 = vld [vmem:[%s12812_s6 + $0x750] sm:$0xff]  }
 0x245   : > { %v13916_v6 = vsel %vm9002_vm3, %v11511_v58, -inf  ;;  %v7358_v14 = vpop.f32.mrb[103].mxu0  ;;  %16662 = vst [vmem:[#allocation156_spill] sm:$0xff] %v13918_v15  ;;  %v13923_v50 = vsel %vm9002_vm3, %v13263_v22, -inf  ;;  %v13930_v48 = vpop.f32.mrb[103].mxu1  ;;  %v12167_v15 = vld [vmem:[%s12812_s6 + $0x360] sm:$0xff]  }
 0x246   : > { %16663 = vst [vmem:[#allocation157_spill] sm:$0xff] %v13923_v50  ;;  %v13928_v19 = vsel %vm9002_vm3, %v7358_v14, -inf  ;;  %16665 = vst [vmem:[#allocation159_spill] sm:$0xff] %v13930_v48  ;;  %v13940_v14 = vsel %vm9002_vm3, %v13274_v41, -inf }
 0x247   : > { %16664 = vst [vmem:[#allocation158_spill] sm:$0xff] %v13928_v19  ;;  %11617 = vmatmul.mubr.msk.bf16.gmra.mrb[208].mxu0 %vm6145_vm2, %v12160_v24  ;;  %11873 = vmatmul.mubr.msk.bf16.gmra.mrb[208].mxu1 %vm6145_vm2, %v12162_v46  ;;  %16666 = vst [vmem:[#allocation160_spill] sm:$0xff] %v13940_v14  ;;  %v13950_v24 = vsel %vm9002_vm3, %v13276_v45, -inf  ;;  %v13963_v19 = vsel %vm9002_vm3, %v13281_v62, -inf }
 0x248   : > { %11620 = vmatprep.mubr.msk.bf16.mxu0 %vm6145_vm2, %v12163_v35  ;;  %11876 = vmatprep.mubr.msk.bf16.mxu1 %vm6145_vm2, %v12165_v30 }
 0x24a   : > { %v11514_v22 = vpop.f32.mrb[104].mxu0  ;;  %v13946_v48 = vpop.f32.mrb[104].mxu1 }
 0x24b   : > { %v13943_v55 = vsel %vm9002_vm3, %v11514_v22, -inf  ;;  %v7371_v58 = vpop.f32.mrb[105].mxu0  ;;  %16668 = vst [vmem:[#allocation162_spill] sm:$0xff] %v13946_v48  ;;  %v13957_v30 = vpop.f32.mrb[105].mxu1  ;;  %v12166_v22 = vld [vmem:[%s12812_s6 + $0x758] sm:$0xff]   ;;  %v12168_v48 = vld [vmem:[%s12812_s6 + $0x368] sm:$0xff]  }
 0x24c   : > { %16667 = vst [vmem:[#allocation161_spill] sm:$0xff] %v13943_v55  ;;  %v13955_v46 = vsel %vm9002_vm3, %v7371_v58, -inf  ;;  %v11515_v41 = vpop.f32.mrb[106].mxu0  ;;  %16669 = vst [vmem:[#allocation163_spill] sm:$0xff] %v13957_v30  ;;  %v13970_v35 = vpop.f32.mrb[106].mxu1  ;;  %v12169_v58 = vld [vmem:[%s12812_s6 + $0x760] sm:$0xff]  }
 0x24d   : > { %v13968_v45 = vsel %vm9002_vm3, %v11515_v41, -inf  ;;  %v7374_v50 = vpop.f32.mrb[107].mxu0  ;;  %16670 = vst [vmem:[#allocation164_spill] sm:$0xff] %v13970_v35  ;;  %v13975_v30 = vsel %vm9002_vm3, %v13287_v51, -inf  ;;  %v13982_v14 = vpop.f32.mrb[107].mxu1  ;;  %v12171_v35 = vld [vmem:[%s12812_s6 + $0x370] sm:$0xff]  }
 0x24e   : > { %16671 = vst [vmem:[#allocation165_spill] sm:$0xff] %v13975_v30  ;;  %v13980_v62 = vsel %vm9002_vm3, %v7374_v50, -inf  ;;  %16673 = vst [vmem:[#allocation167_spill] sm:$0xff] %v13982_v14  ;;  %v13992_v50 = vsel %vm9002_vm3, %v13298_v29, -inf }
 0x24f   : > { %16672 = vst [vmem:[#allocation166_spill] sm:$0xff] %v13980_v62  ;;  %11621 = vmatmul.mubr.msk.bf16.gmra.mrb[212].mxu0 %vm6145_vm2, %v12164_v36  ;;  %11877 = vmatmul.mubr.msk.bf16.gmra.mrb[212].mxu1 %vm6145_vm2, %v12166_v22  ;;  %16674 = vst [vmem:[#allocation168_spill] sm:$0xff] %v13992_v50  ;;  %v14002_v36 = vsel %vm9002_vm3, %v13300_v33, -inf  ;;  %v14015_v62 = vsel %vm9002_vm3, %v13305_v10, -inf }
 0x250   : > { %11624 = vmatprep.mubr.msk.bf16.mxu0 %vm6145_vm2, %v12167_v15  ;;  %11880 = vmatprep.mubr.msk.bf16.mxu1 %vm6145_vm2, %v12169_v58 }
 0x252   : > { %v11518_v51 = vpop.f32.mrb[108].mxu0  ;;  %v13998_v14 = vpop.f32.mrb[108].mxu1 }
 0x253   : > { %v13995_v55 = vsel %vm9002_vm3, %v11518_v51, -inf  ;;  %v7387_v41 = vpop.f32.mrb[109].mxu0  ;;  %16676 = vst [vmem:[#allocation170_spill] sm:$0xff] %v13998_v14  ;;  %v14009_v58 = vpop.f32.mrb[109].mxu1  ;;  %v12170_v51 = vld [vmem:[%s12812_s6 + $0x768] sm:$0xff]   ;;  %v12172_v14 = vld [vmem:[%s12812_s6 + $0x378] sm:$0xff]  }
 0x254   : > { %16675 = vst [vmem:[#allocation169_spill] sm:$0xff] %v13995_v55  ;;  %v14007_v22 = vsel %vm9002_vm3, %v7387_v41, -inf  ;;  %v11519_v29 = vpop.f32.mrb[110].mxu0  ;;  %16677 = vst [vmem:[#allocation171_spill] sm:$0xff] %v14009_v58  ;;  %v14022_v15 = vpop.f32.mrb[110].mxu1  ;;  %v12173_v41 = vld [vmem:[%s12812_s6 + $0x770] sm:$0xff]  }
 0x255   : > { %v14020_v33 = vsel %vm9002_vm3, %v11519_v29, -inf  ;;  %v7390_v30 = vpop.f32.mrb[111].mxu0  ;;  %16679 = vst [vmem:[#allocation173_spill] sm:$0xff] %v14022_v15  ;;  %v14027_v58 = vsel %vm9002_vm3, %v13311_v39, -inf  ;;  %v14034_v50 = vpop.f32.mrb[111].mxu1  ;;  %v12175_v15 = vld [vmem:[%s12812_s6 + $0x380] sm:$0xff]  }
 0x256   : > { %16678 = vst [vmem:[#allocation172_spill] sm:$0xff] %v14020_v33  ;;  %16680 = vst [vmem:[#allocation174_spill] sm:$0xff] %v14027_v58  ;;  %v14032_v10 = vsel %vm9002_vm3, %v7390_v30, -inf  ;;  %v14044_v30 = vsel %vm9002_vm3, %v13322_v17, -inf }
 0x257   : > { %16681 = vst [vmem:[#allocation175_spill] sm:$0xff] %v14032_v10  ;;  %16682 = vst [vmem:[#allocation176_spill] sm:$0xff] %v14034_v50  ;;  %11625 = vmatmul.mubr.msk.bf16.gmra.mrb[216].mxu0 %vm6145_vm2, %v12168_v48  ;;  %11881 = vmatmul.mubr.msk.bf16.gmra.mrb[216].mxu1 %vm6145_vm2, %v12170_v51  ;;  %v14054_v48 = vsel %vm9002_vm3, %v13324_v21, -inf  ;;  %v14067_v10 = vsel %vm9002_vm3, %v13329_v47, -inf }
 0x258   : > { %11628 = vmatprep.mubr.msk.bf16.mxu0 %vm6145_vm2, %v12171_v35  ;;  %11884 = vmatprep.mubr.msk.bf16.mxu1 %vm6145_vm2, %v12173_v41  ;;  %16683 = vst [vmem:[#allocation177_spill] sm:$0xff] %v14044_v30  ;;  %16686 = vst [vmem:[#allocation180_spill] sm:$0xff] %v14054_v48  ;;  %v16696_v30 = vld [vmem:[#allocation56_spill] sm:$0xff] }
 0x259   : > { %16689 = vst [vmem:[#allocation183_spill] sm:$0xff] %v14067_v10 }
 0x25a   : > { %v11522_v39 = vpop.f32.mrb[112].mxu0  ;;  %v14050_v50 = vpop.f32.mrb[112].mxu1 }
 0x25b   : > { %v14047_v55 = vsel %vm9002_vm3, %v11522_v39, -inf  ;;  %v7403_v29 = vpop.f32.mrb[113].mxu0  ;;  %16685 = vst [vmem:[#allocation179_spill] sm:$0xff] %v14050_v50  ;;  %v14061_v41 = vpop.f32.mrb[113].mxu1  ;;  %v12174_v39 = vld [vmem:[%s12812_s6 + $0x778] sm:$0xff]  }
 0x25c   : > { %16684 = vst [vmem:[#allocation178_spill] sm:$0xff] %v14047_v55  ;;  %v14059_v51 = vsel %vm9002_vm3, %v7403_v29, -inf  ;;  %v11523_v17 = vpop.f32.mrb[114].mxu0  ;;  %16688 = vst [vmem:[#allocation182_spill] sm:$0xff] %v14061_v41  ;;  %v14074_v35 = vpop.f32.mrb[114].mxu1  ;;  %v12177_v29 = vld [vmem:[%s12812_s6 + $0x780] sm:$0xff]  }
 0x25d   : > { %16687 = vst [vmem:[#allocation181_spill] sm:$0xff] %v14059_v51  ;;  %v14072_v21 = vsel %vm9002_vm3, %v11523_v17, -inf  ;;  %v7406_v58 = vpop.f32.mrb[115].mxu0  ;;  %16691 = vst [vmem:[#allocation185_spill] sm:$0xff] %v14074_v35  ;;  %v16692_v55 = vld [vmem:[#allocation53_spill] sm:$0xff]  ;;  %v14086_v33 = vpop.f32.mrb[115].mxu1 }
 0x25e   : > { %16690 = vst [vmem:[#allocation184_spill] sm:$0xff] %v14072_v21  ;;  %v14079_v41 = vsel %vm9002_vm3, %v16692_v55, -inf  ;;  %v14084_v47 = vsel %vm9002_vm3, %v7406_v58, -inf  ;;  %16695 = vst [vmem:[#allocation187_spill] sm:$0xff] %v14086_v33  ;;  %v14096_v58 = vsel %vm9002_vm3, %v16696_v30, -inf  ;;  %v12176_v33 = vld [vmem:[%s12812_s6 + $0x388] sm:$0xff]  }
 0x25f   : > { %16693 = vst [vmem:[#allocation53_spill] sm:$0xff] %v14079_v41  ;;  %16694 = vst [vmem:[#allocation186_spill] sm:$0xff] %v14084_v47  ;;  %11629 = vmatmul.mubr.msk.bf16.gmra.mrb[220].mxu0 %vm6145_vm2, %v12172_v14  ;;  %11885 = vmatmul.mubr.msk.bf16.gmra.mrb[220].mxu1 %vm6145_vm2, %v12174_v39  ;;  %v16700_v14 = vld [vmem:[#allocation57_spill] sm:$0xff]  ;;  %v16704_v21 = vld [vmem:[#allocation59_spill] sm:$0xff] }
 0x260   : > { %11632 = vmatprep.mubr.msk.bf16.mxu0 %vm6145_vm2, %v12175_v15  ;;  %11888 = vmatprep.mubr.msk.bf16.mxu1 %vm6145_vm2, %v12177_v29  ;;  %16697 = vst [vmem:[#allocation56_spill] sm:$0xff] %v14096_v58  ;;  %v14106_v39 = vsel %vm9002_vm3, %v16700_v14, -inf  ;;  %v12179_v41 = vld [vmem:[%s12812_s6 + $0x390] sm:$0xff]   ;;  %v14119_v10 = vsel %vm9002_vm3, %v16704_v21, -inf  ;;  %v16712_v58 = vld [vmem:[#allocation64_spill] sm:$0xff] }
 0x261   : > { %16701 = vst [vmem:[#allocation57_spill] sm:$0xff] %v14106_v39  ;;  %16705 = vst [vmem:[#allocation59_spill] sm:$0xff] %v14119_v10 }
 0x262   : > { %v11526_v55 = vpop.f32.mrb[116].mxu0  ;;  %v14102_v35 = vpop.f32.mrb[116].mxu1 }
 0x263   : > { %v14099_v50 = vsel %vm9002_vm3, %v11526_v55, -inf  ;;  %v7419_v17 = vpop.f32.mrb[117].mxu0  ;;  %16699 = vst [vmem:[#allocation189_spill] sm:$0xff] %v14102_v35  ;;  %v14113_v47 = vpop.f32.mrb[117].mxu1  ;;  %v12178_v55 = vld [vmem:[%s12812_s6 + $0x788] sm:$0xff]  }
 0x264   : > { %16698 = vst [vmem:[#allocation188_spill] sm:$0xff] %v14099_v50  ;;  %v14111_v29 = vsel %vm9002_vm3, %v7419_v17, -inf  ;;  %v11527_v30 = vpop.f32.mrb[118].mxu0  ;;  %16703 = vst [vmem:[#allocation191_spill] sm:$0xff] %v14113_v47  ;;  %v14126_v15 = vpop.f32.mrb[118].mxu1  ;;  %v12181_v17 = vld [vmem:[%s12812_s6 + $0x790] sm:$0xff]  }
 0x265   : > { %16702 = vst [vmem:[#allocation190_spill] sm:$0xff] %v14111_v29  ;;  %v14124_v14 = vsel %vm9002_vm3, %v11527_v30, -inf  ;;  %v7422_v51 = vpop.f32.mrb[119].mxu0  ;;  %16707 = vst [vmem:[#allocation193_spill] sm:$0xff] %v14126_v15  ;;  %v16708_v50 = vld [vmem:[#allocation61_spill] sm:$0xff]  ;;  %v14138_v48 = vpop.f32.mrb[119].mxu1 }
 0x266   : > { %16706 = vst [vmem:[#allocation192_spill] sm:$0xff] %v14124_v14  ;;  %v14131_v47 = vsel %vm9002_vm3, %v16708_v50, -inf  ;;  %v14136_v21 = vsel %vm9002_vm3, %v7422_v51, -inf  ;;  %16711 = vst [vmem:[#allocation195_spill] sm:$0xff] %v14138_v48  ;;  %v14148_v51 = vsel %vm9002_vm3, %v16712_v58, -inf  ;;  %v12180_v48 = vld [vmem:[%s12812_s6 + $0x398] sm:$0xff]  }
 0x267   : > { %16709 = vst [vmem:[#allocation61_spill] sm:$0xff] %v14131_v47  ;;  %16710 = vst [vmem:[#allocation194_spill] sm:$0xff] %v14136_v21  ;;  %11633 = vmatmul.mubr.msk.bf16.gmra.mrb[224].mxu0 %vm6145_vm2, %v12176_v33  ;;  %11889 = vmatmul.mubr.msk.bf16.gmra.mrb[224].mxu1 %vm6145_vm2, %v12178_v55  ;;  %v16716_v33 = vld [vmem:[#allocation65_spill] sm:$0xff]  ;;  %v12183_v47 = vld [vmem:[%s12812_s6 + $0x3a0] sm:$0xff]  }
 0x268   : > { %11636 = vmatprep.mubr.msk.bf16.mxu0 %vm6145_vm2, %v12179_v41  ;;  %11892 = vmatprep.mubr.msk.bf16.mxu1 %vm6145_vm2, %v12181_v17  ;;  %16713 = vst [vmem:[#allocation64_spill] sm:$0xff] %v14148_v51  ;;  %v14158_v55 = vsel %vm9002_vm3, %v16716_v33, -inf  ;;  %v16720_v14 = vld [vmem:[#allocation67_spill] sm:$0xff] }
 0x269   : > { %16717 = vst [vmem:[#allocation65_spill] sm:$0xff] %v14158_v55  ;;  %v14171_v10 = vsel %vm9002_vm3, %v16720_v14, -inf }
 0x26a   : > { %v11530_v50 = vpop.f32.mrb[120].mxu0  ;;  %v14154_v15 = vpop.f32.mrb[120].mxu1  ;;  %16721 = vst [vmem:[#allocation67_spill] sm:$0xff] %v14171_v10  ;;  %v12187_v10 = vld [vmem:[%s12812_s6 + $0x3b0] sm:$0xff]  }
 0x26b   : > { %v14151_v35 = vsel %vm9002_vm3, %v11530_v50, -inf  ;;  %v7435_v30 = vpop.f32.mrb[121].mxu0  ;;  %16715 = vst [vmem:[#allocation197_spill] sm:$0xff] %v14154_v15  ;;  %v14165_v21 = vpop.f32.mrb[121].mxu1  ;;  %v12182_v50 = vld [vmem:[%s12812_s6 + $0x798] sm:$0xff]  }
 0x26c   : > { %16714 = vst [vmem:[#allocation196_spill] sm:$0xff] %v14151_v35  ;;  %v14163_v17 = vsel %vm9002_vm3, %v7435_v30, -inf  ;;  %v11531_v58 = vpop.f32.mrb[122].mxu0  ;;  %16719 = vst [vmem:[#allocation199_spill] sm:$0xff] %v14165_v21  ;;  %v14178_v41 = vpop.f32.mrb[122].mxu1  ;;  %v12185_v30 = vld [vmem:[%s12812_s6 + $0x7a0] sm:$0xff]  }
 0x26d   : > { %16718 = vst [vmem:[#allocation198_spill] sm:$0xff] %v14163_v17  ;;  %v14176_v33 = vsel %vm9002_vm3, %v11531_v58, -inf  ;;  %v7438_v29 = vpop.f32.mrb[123].mxu0  ;;  %16723 = vst [vmem:[#allocation201_spill] sm:$0xff] %v14178_v41  ;;  %v16724_v35 = vld [vmem:[#allocation69_spill] sm:$0xff]  ;;  %v14190_v39 = vpop.f32.mrb[123].mxu1 }
 0x26e   : > { %16722 = vst [vmem:[#allocation200_spill] sm:$0xff] %v14176_v33  ;;  %v14183_v51 = vsel %vm9002_vm3, %v16724_v35, -inf  ;;  %v14188_v14 = vsel %vm9002_vm3, %v7438_v29, -inf  ;;  %16727 = vst [vmem:[#allocation203_spill] sm:$0xff] %v14190_v39  ;;  %v16728_v21 = vld [vmem:[#allocation72_spill] sm:$0xff]  ;;  %v16736_v17 = vld [vmem:[#allocation75_spill] sm:$0xff] }
 0x26f   : > { %16725 = vst [vmem:[#allocation69_spill] sm:$0xff] %v14183_v51  ;;  %16726 = vst [vmem:[#allocation202_spill] sm:$0xff] %v14188_v14  ;;  %11637 = vmatmul.mubr.msk.bf16.gmra.mrb[228].mxu0 %vm6145_vm2, %v12180_v48  ;;  %11893 = vmatmul.mubr.msk.bf16.gmra.mrb[228].mxu1 %vm6145_vm2, %v12182_v50  ;;  %v14200_v29 = vsel %vm9002_vm3, %v16728_v21, -inf  ;;  %v12184_v14 = vld [vmem:[%s12812_s6 + $0x3a8] sm:$0xff]   ;;  %v16732_v48 = vld [vmem:[#allocation73_spill] sm:$0xff]  ;;  %v14223_v55 = vsel %vm9002_vm3, %v16736_v17, -inf }
 0x270   : > { %11640 = vmatprep.mubr.msk.bf16.mxu0 %vm6145_vm2, %v12183_v47  ;;  %11896 = vmatprep.mubr.msk.bf16.mxu1 %vm6145_vm2, %v12185_v30  ;;  %16729 = vst [vmem:[#allocation72_spill] sm:$0xff] %v14200_v29  ;;  %v14210_v50 = vsel %vm9002_vm3, %v16732_v48, -inf  ;;  %16737 = vst [vmem:[#allocation75_spill] sm:$0xff] %v14223_v55  ;;  %v16740_v29 = vld [vmem:[#allocation77_spill] sm:$0xff] }
 0x271   : > { %16733 = vst [vmem:[#allocation73_spill] sm:$0xff] %v14210_v50  ;;  %v16746_v50 = vld [vmem:[#allocation81_spill] sm:$0xff] }
 0x272   : > { %v11534_v35 = vpop.f32.mrb[124].mxu0  ;;  %v14206_v51 = vpop.f32.mrb[124].mxu1 }
 0x273   : > { %v14203_v15 = vsel %vm9002_vm3, %v11534_v35, -inf  ;;  %v7451_v58 = vpop.f32.mrb[125].mxu0  ;;  %16731 = vst [vmem:[#allocation205_spill] sm:$0xff] %v14206_v51  ;;  %v14217_v33 = vpop.f32.mrb[125].mxu1  ;;  %v12186_v35 = vld [vmem:[%s12812_s6 + $0x7a8] sm:$0xff]  }
 0x274   : > { %16730 = vst [vmem:[#allocation204_spill] sm:$0xff] %v14203_v15  ;;  %v14215_v30 = vsel %vm9002_vm3, %v7451_v58, -inf  ;;  %v11535_v21 = vpop.f32.mrb[126].mxu0  ;;  %16735 = vst [vmem:[#allocation207_spill] sm:$0xff] %v14217_v33  ;;  %v14230_v15 = vpop.f32.mrb[126].mxu1  ;;  %v12189_v58 = vld [vmem:[%s12812_s6 + $0x7b0] sm:$0xff]  }
 0x275   : > { %16734 = vst [vmem:[#allocation206_spill] sm:$0xff] %v14215_v30  ;;  %v14228_v48 = vsel %vm9002_vm3, %v11535_v21, -inf  ;;  %v7454_v47 = vpop.f32.mrb[127].mxu0  ;;  %16739 = vst [vmem:[#allocation209_spill] sm:$0xff] %v14230_v15  ;;  %v14235_v33 = vsel %vm9002_vm3, %v16740_v29, -inf  ;;  %v14242_v51 = vpop.f32.mrb[127].mxu1 }
 0x276   : > { %16738 = vst [vmem:[#allocation208_spill] sm:$0xff] %v14228_v48  ;;  %16741 = vst [vmem:[#allocation77_spill] sm:$0xff] %v14235_v33  ;;  %v14240_v17 = vsel %vm9002_vm3, %v7454_v47, -inf  ;;  %v12188_v48 = vld [vmem:[%s12812_s6 + $0x3b8] sm:$0xff]   ;;  %v16745_v30 = vld [vmem:[#allocation80_spill] sm:$0xff]  ;;  %v16749_v33 = vmax.f32 %v13430_v57, %v13435_v63 }
 0x277   : > { %16742 = vst [vmem:[#allocation210_spill] sm:$0xff] %v14240_v17  ;;  %16743 = vst [vmem:[#allocation211_spill] sm:$0xff] %v14242_v51  ;;  %11641 = vmatmul.mubr.msk.bf16.gmra.mrb[232].mxu0 %vm6145_vm2, %v12184_v14  ;;  %11897 = vmatmul.mubr.msk.bf16.gmra.mrb[232].mxu1 %vm6145_vm2, %v12186_v35  ;;  %v16747_v51 = vmax.f32 %v16745_v30, %v16746_v50  ;;  %v16753_v57 = vld [vmem:[#allocation85_spill] sm:$0xff]  ;;  %v16754_v63 = vld [vmem:[#allocation86_spill] sm:$0xff] }
 0x278   : > { %11644 = vmatprep.mubr.msk.bf16.mxu0 %vm6145_vm2, %v12187_v10  ;;  %11900 = vmatprep.mubr.msk.bf16.mxu1 %vm6145_vm2, %v12189_v58  ;;  %v12190_v10 = vld [vmem:[%s12812_s6 + $0x7b8] sm:$0xff]   ;;  %v12191_v58 = vld [vmem:[%s12812_s6 + $0x3c0] sm:$0xff]  }
 0x27a   : > { %v11538_v29 = vpop.f32.mrb[128].mxu0  ;;  %v14252_v55 = vpop.f32.mrb[128].mxu1 }
 0x27b   : > { %v9036_v47 = vsel %vm9002_vm3, %v11538_v29, -inf  ;;  %v7467_v39 = vpop.f32.mrb[129].mxu0  ;;  %16744 = vst [vmem:[#allocation212_spill] sm:$0xff] %v14252_v55  ;;  %v14260_v17 = vpop.f32.mrb[129].mxu1 }
 0x27c   : > { %v14257_v21 = vmax.f32 %v16747_v51, %v9036_v47  ;;  %v9006_v14 = vsel %vm9002_vm3, %v7467_v39, -inf  ;;  %v11539_v35 = vpop.f32.mrb[130].mxu0  ;;  %v14270_v41 = vpop.f32.mrb[130].mxu1  ;;  %v12193_v51 = vld [vmem:[%s12812_s6 + $0x7c0] sm:$0xff]   ;;  %v16751_v39 = vmax.f32 %v13443_v9, %v13448_v53 }
 0x27d   : > { %v14267_v29 = vmax.f32 %v16749_v33, %v9006_v14  ;;  %v9051_v55 = vsel %vm9002_vm3, %v11539_v35, -inf  ;;  %v7470_v15 = vpop.f32.mrb[131].mxu0  ;;  %v14279_v47 = vpop.f32.mrb[131].mxu1  ;;  %v16755_v33 = vmax.f32 %v16753_v57, %v16754_v63  ;;  %v16758_v57 = vld [vmem:[#allocation89_spill] sm:$0xff] }
 0x27e   : > { %16748 = vst [vmem:[#allocation80_spill] sm:$0xff] %v14257_v21  ;;  %v14276_v50 = vmax.f32 %v16751_v39, %v9051_v55  ;;  %v9021_v30 = vsel %vm9002_vm3, %v7470_v15, -inf  ;;  %v12192_v55 = vld [vmem:[%s12812_s6 + $0x3c8] sm:$0xff]  }
 0x27f   : > { %16750 = vst [vmem:[#allocation81_spill] sm:$0xff] %v14267_v29  ;;  %v14284_v14 = vmax.f32 %v16755_v33, %v9021_v30  ;;  %11645 = vmatmul.mubr.msk.bf16.gmra.mrb[236].mxu0 %vm6145_vm2, %v12188_v48  ;;  %11901 = vmatmul.mubr.msk.bf16.gmra.mrb[236].mxu1 %vm6145_vm2, %v12190_v10  ;;  %v16757_v39 = vld [vmem:[#allocation88_spill] sm:$0xff] }
 0x280   : > { %16752 = vst [vmem:[#allocation213_spill] sm:$0xff] %v14276_v50  ;;  %11648 = vmatprep.mubr.msk.bf16.mxu0 %vm6145_vm2, %v12191_v58  ;;  %11904 = vmatprep.mubr.msk.bf16.mxu1 %vm6145_vm2, %v12193_v51  ;;  %v16759_v30 = vmax.f32 %v16757_v39, %v16758_v57  ;;  %v12194_v58 = vld [vmem:[%s12812_s6 + $0x7c8] sm:$0xff]   ;;  %v12195_v51 = vld [vmem:[%s12812_s6 + $0x3d0] sm:$0xff]  }
 0x281   : > { %16756 = vst [vmem:[#allocation85_spill] sm:$0xff] %v14284_v14  ;;  %v16761_v14 = vmax.f32 %v13482_v23, %v13487_v61  ;;  %v16765_v23 = vld [vmem:[#allocation93_spill] sm:$0xff]  ;;  %v16766_v61 = vld [vmem:[#allocation94_spill] sm:$0xff] }
 0x282   : > { %v11542_v9 = vpop.f32.mrb[132].mxu0  ;;  %v14292_v35 = vpop.f32.mrb[132].mxu1 }
 0x283   : > { %v9096_v53 = vsel %vm9002_vm3, %v11542_v9, -inf  ;;  %v7483_v15 = vpop.f32.mrb[133].mxu0  ;;  %v14300_v33 = vpop.f32.mrb[133].mxu1 }
 0x284   : > { %v14297_v63 = vmax.f32 %v16759_v30, %v9096_v53  ;;  %v9066_v48 = vsel %vm9002_vm3, %v7483_v15, -inf  ;;  %v11543_v10 = vpop.f32.mrb[134].mxu0  ;;  %v14310_v21 = vpop.f32.mrb[134].mxu1  ;;  %v12197_v53 = vld [vmem:[%s12812_s6 + $0x7d0] sm:$0xff]   ;;  %v16763_v15 = vmax.f32 %v13495_v56, %v13500_v1 }
 0x285   : > { %v14307_v9 = vmax.f32 %v16761_v14, %v9066_v48  ;;  %v9111_v50 = vsel %vm9002_vm3, %v11543_v10, -inf  ;;  %v7486_v29 = vpop.f32.mrb[135].mxu0  ;;  %v14319_v30 = vpop.f32.mrb[135].mxu1  ;;  %v16767_v14 = vmax.f32 %v16765_v23, %v16766_v61  ;;  %v16770_v23 = vld [vmem:[#allocation97_spill] sm:$0xff] }
 0x286   : > { %16760 = vst [vmem:[#allocation86_spill] sm:$0xff] %v14297_v63  ;;  %v14316_v39 = vmax.f32 %v16763_v15, %v9111_v50  ;;  %v9081_v57 = vsel %vm9002_vm3, %v7486_v29, -inf  ;;  %v12196_v50 = vld [vmem:[%s12812_s6 + $0x3d8] sm:$0xff]   ;;  %v16769_v15 = vld [vmem:[#allocation96_spill] sm:$0xff] }
 0x287   : > { %16762 = vst [vmem:[#allocation88_spill] sm:$0xff] %v14307_v9  ;;  %v14324_v48 = vmax.f32 %v16767_v14, %v9081_v57  ;;  %11649 = vmatmul.mubr.msk.bf16.gmra.mrb[240].mxu0 %vm6145_vm2, %v12192_v55  ;;  %11905 = vmatmul.mubr.msk.bf16.gmra.mrb[240].mxu1 %vm6145_vm2, %v12194_v58  ;;  %v16771_v57 = vmax.f32 %v16769_v15, %v16770_v23 }
 0x288   : > { %16764 = vst [vmem:[#allocation89_spill] sm:$0xff] %v14316_v39  ;;  %11652 = vmatprep.mubr.msk.bf16.mxu0 %vm6145_vm2, %v12195_v51  ;;  %11908 = vmatprep.mubr.msk.bf16.mxu1 %vm6145_vm2, %v12197_v53  ;;  %v12198_v51 = vld [vmem:[%s12812_s6 + $0x7d8] sm:$0xff]   ;;  %v12199_v53 = vld [vmem:[%s12812_s6 + $0x3e0] sm:$0xff]  }
 0x289   : > { %16768 = vst [vmem:[#allocation93_spill] sm:$0xff] %v14324_v48  ;;  %v16773_v48 = vmax.f32 %v13534_v5, %v13539_v60  ;;  %v16777_v5 = vld [vmem:[#allocation101_spill] sm:$0xff]  ;;  %v16778_v60 = vld [vmem:[#allocation102_spill] sm:$0xff] }
 0x28a   : > { %v11546_v56 = vpop.f32.mrb[136].mxu0  ;;  %v14332_v10 = vpop.f32.mrb[136].mxu1 }
 0x28b   : > { %v9156_v1 = vsel %vm9002_vm3, %v11546_v56, -inf  ;;  %v7499_v29 = vpop.f32.mrb[137].mxu0  ;;  %v14340_v14 = vpop.f32.mrb[137].mxu1 }
 0x28c   : > { %v14337_v61 = vmax.f32 %v16771_v57, %v9156_v1  ;;  %v9126_v55 = vsel %vm9002_vm3, %v7499_v29, -inf  ;;  %v11547_v58 = vpop.f32.mrb[138].mxu0  ;;  %v14350_v63 = vpop.f32.mrb[138].mxu1  ;;  %v12201_v1 = vld [vmem:[%s12812_s6 + $0x7e0] sm:$0xff]   ;;  %v16775_v29 = vmax.f32 %v13547_v4, %v13552_v13 }
 0x28d   : > { %v14347_v56 = vmax.f32 %v16773_v48, %v9126_v55  ;;  %v9171_v39 = vsel %vm9002_vm3, %v11547_v58, -inf  ;;  %v7502_v9 = vpop.f32.mrb[139].mxu0  ;;  %v14359_v57 = vpop.f32.mrb[139].mxu1  ;;  %v16779_v48 = vmax.f32 %v16777_v5, %v16778_v60  ;;  %v16782_v5 = vld [vmem:[#allocation105_spill] sm:$0xff] }
 0x28e   : > { %16772 = vst [vmem:[#allocation94_spill] sm:$0xff] %v14337_v61  ;;  %v14356_v15 = vmax.f32 %v16775_v29, %v9171_v39  ;;  %v9141_v23 = vsel %vm9002_vm3, %v7502_v9, -inf  ;;  %v12200_v39 = vld [vmem:[%s12812_s6 + $0x3e8] sm:$0xff]  }
 0x28f   : > { %16774 = vst [vmem:[#allocation96_spill] sm:$0xff] %v14347_v56  ;;  %v14364_v55 = vmax.f32 %v16779_v48, %v9141_v23  ;;  %11653 = vmatmul.mubr.msk.bf16.gmra.mrb[244].mxu0 %vm6145_vm2, %v12196_v50  ;;  %11909 = vmatmul.mubr.msk.bf16.gmra.mrb[244].mxu1 %vm6145_vm2, %v12198_v51  ;;  %v16781_v29 = vld [vmem:[#allocation104_spill] sm:$0xff] }
 0x290   : > { %16776 = vst [vmem:[#allocation97_spill] sm:$0xff] %v14356_v15  ;;  %11656 = vmatprep.mubr.msk.bf16.mxu0 %vm6145_vm2, %v12199_v53  ;;  %11912 = vmatprep.mubr.msk.bf16.mxu1 %vm6145_vm2, %v12201_v1  ;;  %v16783_v23 = vmax.f32 %v16781_v29, %v16782_v5  ;;  %v12202_v53 = vld [vmem:[%s12812_s6 + $0x7e8] sm:$0xff]   ;;  %v12203_v1 = vld [vmem:[%s12812_s6 + $0x3f0] sm:$0xff]  }
 0x291   : > { %16780 = vst [vmem:[#allocation101_spill] sm:$0xff] %v14364_v55  ;;  %v16785_v55 = vmax.f32 %v13586_v3, %v13591_v8  ;;  %v16789_v3 = vld [vmem:[#allocation109_spill] sm:$0xff]  ;;  %v16790_v8 = vld [vmem:[#allocation110_spill] sm:$0xff] }
 0x292   : > { %v11550_v4 = vpop.f32.mrb[140].mxu0  ;;  %v14372_v58 = vpop.f32.mrb[140].mxu1 }
 0x293   : > { %v9216_v13 = vsel %vm9002_vm3, %v11550_v4, -inf  ;;  %v7515_v9 = vpop.f32.mrb[141].mxu0  ;;  %v14380_v48 = vpop.f32.mrb[141].mxu1 }
 0x294   : > { %v14377_v60 = vmax.f32 %v16783_v23, %v9216_v13  ;;  %v9186_v50 = vsel %vm9002_vm3, %v7515_v9, -inf  ;;  %v11551_v51 = vpop.f32.mrb[142].mxu0  ;;  %v14390_v61 = vpop.f32.mrb[142].mxu1  ;;  %v12205_v13 = vld [vmem:[%s12812_s6 + $0x7f0] sm:$0xff]   ;;  %v16787_v9 = vmax.f32 %v13599_v16, %v13604_v25 }
 0x295   : > { %v14387_v4 = vmax.f32 %v16785_v55, %v9186_v50  ;;  %v9231_v15 = vsel %vm9002_vm3, %v11551_v51, -inf  ;;  %v7518_v56 = vpop.f32.mrb[143].mxu0  ;;  %v14399_v23 = vpop.f32.mrb[143].mxu1  ;;  %v16791_v55 = vmax.f32 %v16789_v3, %v16790_v8 }
 0x296   : > { %16784 = vst [vmem:[#allocation102_spill] sm:$0xff] %v14377_v60  ;;  %v14396_v29 = vmax.f32 %v16787_v9, %v9231_v15  ;;  %v9201_v5 = vsel %vm9002_vm3, %v7518_v56, -inf  ;;  %v12204_v15 = vld [vmem:[%s12812_s6 + $0x3f8] sm:$0xff]   ;;  %v16793_v9 = vld [vmem:[#allocation112_spill] sm:$0xff] }
 0x297   : > { %16786 = vst [vmem:[#allocation104_spill] sm:$0xff] %v14387_v4  ;;  %v14404_v50 = vmax.f32 %v16791_v55, %v9201_v5  ;;  %11657 = vmatmul.mubr.msk.bf16.gmra.mrb[248].mxu0 %vm6145_vm2, %v12200_v39  ;;  %11913 = vmatmul.mubr.msk.bf16.gmra.mrb[248].mxu1 %vm6145_vm2, %v12202_v53 }
 0x298   : > { %16788 = vst [vmem:[#allocation105_spill] sm:$0xff] %v14396_v29  ;;  %11660 = vmatprep.mubr.msk.bf16.mxu0 %vm6145_vm2, %v12203_v1  ;;  %11916 = vmatprep.mubr.msk.bf16.mxu1 %vm6145_vm2, %v12205_v13  ;;  %v16794_v29 = vld [vmem:[#allocation113_spill] sm:$0xff]  ;;  %v12206_v1 = vld [vmem:[%s12812_s6 + $0x7f8] sm:$0xff]   ;;  %v16797_v13 = vmax.f32 %v13638_v27, %v13643_v20 }
 0x299   : > { %16792 = vst [vmem:[#allocation109_spill] sm:$0xff] %v14404_v50  ;;  %v16795_v3 = vmax.f32 %v16793_v9, %v16794_v29  ;;  %v16799_v29 = vmax.f32 %v13651_v28, %v13656_v37  ;;  %v16805_v37 = vld [vmem:[#allocation120_spill] sm:$0xff] }
 0x29a   : > { %v11554_v16 = vpop.f32.mrb[144].mxu0  ;;  %v14412_v51 = vpop.f32.mrb[144].mxu1 }
 0x29b   : > { %v9276_v25 = vsel %vm9002_vm3, %v11554_v16, -inf  ;;  %v7531_v56 = vpop.f32.mrb[145].mxu0  ;;  %v14420_v53 = vpop.f32.mrb[145].mxu1 }
 0x29c   : > { %v14417_v5 = vmax.f32 %v16795_v3, %v9276_v25  ;;  %v9246_v39 = vsel %vm9002_vm3, %v7531_v56, -inf  ;;  %v11555_v8 = vpop.f32.mrb[146].mxu0  ;;  %v14429_v4 = vpop.f32.mrb[146].mxu1  ;;  %v16801_v3 = vld [vmem:[#allocation117_spill] sm:$0xff] }
 0x29d   : > { %v14426_v55 = vmax.f32 %v16797_v13, %v9246_v39  ;;  %v9291_v16 = vsel %vm9002_vm3, %v11555_v8, -inf  ;;  %v7534_v50 = vpop.f32.mrb[147].mxu0  ;;  %v14437_v9 = vpop.f32.mrb[147].mxu1  ;;  %v16806_v13 = vld [vmem:[#allocation121_spill] sm:$0xff] }
 0x29e   : > { %16796 = vst [vmem:[#allocation110_spill] sm:$0xff] %v14417_v5  ;;  %v14434_v25 = vmax.f32 %v16799_v29, %v9291_v16  ;;  %v9261_v56 = vsel %vm9002_vm3, %v7534_v50, -inf  ;;  %v16802_v5 = vld [vmem:[#allocation118_spill] sm:$0xff]  ;;  %v16807_v50 = vmax.f32 %v16805_v37, %v16806_v13  ;;  %v16811_v37 = vmax.f32 %v13703_v40, %v13708_v49 }
 0x29f   : > { %16798 = vst [vmem:[#allocation112_spill] sm:$0xff] %v14426_v55  ;;  %v16803_v60 = vmax.f32 %v16801_v3, %v16802_v5  ;;  %11661 = vmatmul.mubr.msk.bf16.gmra.mrb[252].mxu0 %vm6145_vm2, %v12204_v15  ;;  %11917 = vmatmul.mubr.msk.bf16.gmra.mrb[252].mxu1 %vm6145_vm2, %v12206_v1  ;;  %v16809_v15 = vmax.f32 %v13690_v11, %v13695_v32  ;;  %v16875_v55 = vld [vmem:[#allocation14_spill] sm:$0xff] }
 0x2a0   : > { %16800 = vst [vmem:[#allocation113_spill] sm:$0xff] %v14434_v25  ;;  %v16818_v25 = vld [vmem:[#allocation129_spill] sm:$0xff] }
 0x2a1   : > { %v14442_v27 = vmax.f32 %v16803_v60, %v9261_v56 }
 0x2a2   : > { %v11558_v20 = vpop.f32.mrb[148].mxu0  ;;  %v14447_v28 = vpop.f32.mrb[148].mxu1 }
 0x2a3   : > { %16804 = vst [vmem:[#allocation117_spill] sm:$0xff] %v14442_v27  ;;  %v9336_v39 = vsel %vm9002_vm3, %v11558_v20, -inf  ;;  %v7547_v8 = vpop.f32.mrb[149].mxu0  ;;  %v14455_v60 = vpop.f32.mrb[149].mxu1 }
 0x2a4   : > { %v14452_v16 = vmax.f32 %v16807_v50, %v9336_v39  ;;  %v9306_v29 = vsel %vm9002_vm3, %v7547_v8, -inf  ;;  %v11559_v5 = vpop.f32.mrb[150].mxu0  ;;  %v14463_v20 = vpop.f32.mrb[150].mxu1  ;;  %v16813_v50 = vld [vmem:[#allocation125_spill] sm:$0xff] }
 0x2a5   : > { %v14460_v1 = vmax.f32 %v16809_v15, %v9306_v29  ;;  %v9351_v56 = vsel %vm9002_vm3, %v11559_v5, -inf  ;;  %v7550_v3 = vpop.f32.mrb[151].mxu0  ;;  %v14471_v13 = vpop.f32.mrb[151].mxu1 }
 0x2a6   : > { %16808 = vst [vmem:[#allocation118_spill] sm:$0xff] %v14452_v16  ;;  %v14468_v39 = vmax.f32 %v16811_v37, %v9351_v56  ;;  %v9321_v8 = vsel %vm9002_vm3, %v7550_v3, -inf  ;;  %v16814_v16 = vld [vmem:[#allocation126_spill] sm:$0xff] }
 0x2a7   : > { %16810 = vst [vmem:[#allocation120_spill] sm:$0xff] %v14460_v1  ;;  %v16815_v27 = vmax.f32 %v16813_v50, %v16814_v16  ;;  %v16817_v1 = vld [vmem:[#allocation128_spill] sm:$0xff] }
 0x2a8   : > { %16812 = vst [vmem:[#allocation121_spill] sm:$0xff] %v14468_v39  ;;  %v16819_v40 = vmax.f32 %v16817_v1, %v16818_v25  ;;  %v16823_v25 = vmax.f32 %v13755_v54, %v13760_v18  ;;  %v16830_v39 = vld [vmem:[#allocation137_spill] sm:$0xff] }
 0x2a9   : > { %v14476_v11 = vmax.f32 %v16815_v27, %v9321_v8  ;;  %v16821_v27 = vmax.f32 %v13742_v43, %v13747_v44 }
 0x2aa   : > { %v11562_v32 = vpop.f32.mrb[152].mxu0  ;;  %v14479_v15 = vpop.f32.mrb[152].mxu1 }
 0x2ab   : > { %16816 = vst [vmem:[#allocation125_spill] sm:$0xff] %v14476_v11  ;;  %v9396_v29 = vsel %vm9002_vm3, %v11562_v32, -inf  ;;  %v7563_v5 = vpop.f32.mrb[153].mxu0  ;;  %v14487_v37 = vpop.f32.mrb[153].mxu1 }
 0x2ac   : > { %v14484_v49 = vmax.f32 %v16819_v40, %v9396_v29  ;;  %v9366_v56 = vsel %vm9002_vm3, %v7563_v5, -inf  ;;  %v11563_v3 = vpop.f32.mrb[154].mxu0  ;;  %v14495_v32 = vpop.f32.mrb[154].mxu1  ;;  %v16825_v40 = vld [vmem:[#allocation133_spill] sm:$0xff] }
 0x2ad   : > { %v14492_v16 = vmax.f32 %v16821_v27, %v9366_v56  ;;  %v9411_v8 = vsel %vm9002_vm3, %v11563_v3, -inf  ;;  %v7566_v50 = vpop.f32.mrb[155].mxu0  ;;  %v14503_v5 = vpop.f32.mrb[155].mxu1 }
 0x2ae   : > { %16820 = vst [vmem:[#allocation126_spill] sm:$0xff] %v14484_v49  ;;  %v14500_v1 = vmax.f32 %v16823_v25, %v9411_v8  ;;  %v9381_v29 = vsel %vm9002_vm3, %v7566_v50, -inf  ;;  %v16826_v49 = vld [vmem:[#allocation134_spill] sm:$0xff] }
 0x2af   : > { %16822 = vst [vmem:[#allocation128_spill] sm:$0xff] %v14492_v16  ;;  %v16827_v11 = vmax.f32 %v16825_v40, %v16826_v49  ;;  %v16829_v16 = vld [vmem:[#allocation136_spill] sm:$0xff] }
 0x2b0   : > { %16824 = vst [vmem:[#allocation129_spill] sm:$0xff] %v14500_v1  ;;  %v16831_v54 = vmax.f32 %v16829_v16, %v16830_v39  ;;  %v16835_v39 = vmax.f32 %v13807_v26, %v13812_v59  ;;  %v16842_v1 = vld [vmem:[#allocation145_spill] sm:$0xff] }
 0x2b1   : > { %v14508_v43 = vmax.f32 %v16827_v11, %v9381_v29  ;;  %v16833_v11 = vmax.f32 %v13794_v52, %v13799_v2 }
 0x2b2   : > { %v11566_v44 = vpop.f32.mrb[156].mxu0  ;;  %v14511_v27 = vpop.f32.mrb[156].mxu1 }
 0x2b3   : > { %16828 = vst [vmem:[#allocation133_spill] sm:$0xff] %v14508_v43  ;;  %v9456_v56 = vsel %vm9002_vm3, %v11566_v44, -inf  ;;  %v7579_v3 = vpop.f32.mrb[157].mxu0  ;;  %v14519_v25 = vpop.f32.mrb[157].mxu1 }
 0x2b4   : > { %v14516_v18 = vmax.f32 %v16831_v54, %v9456_v56  ;;  %v9426_v8 = vsel %vm9002_vm3, %v7579_v3, -inf  ;;  %v11567_v50 = vpop.f32.mrb[158].mxu0  ;;  %v14527_v44 = vpop.f32.mrb[158].mxu1  ;;  %v16837_v54 = vld [vmem:[#allocation141_spill] sm:$0xff] }
 0x2b5   : > { %v14524_v49 = vmax.f32 %v16833_v11, %v9426_v8  ;;  %v9471_v29 = vsel %vm9002_vm3, %v11567_v50, -inf  ;;  %v7582_v40 = vpop.f32.mrb[159].mxu0  ;;  %v14535_v3 = vpop.f32.mrb[159].mxu1 }
 0x2b6   : > { %16832 = vst [vmem:[#allocation134_spill] sm:$0xff] %v14516_v18  ;;  %v14532_v16 = vmax.f32 %v16835_v39, %v9471_v29  ;;  %v9441_v56 = vsel %vm9002_vm3, %v7582_v40, -inf  ;;  %v16838_v18 = vld [vmem:[#allocation142_spill] sm:$0xff] }
 0x2b7   : > { %16834 = vst [vmem:[#allocation136_spill] sm:$0xff] %v14524_v49  ;;  %v16839_v43 = vmax.f32 %v16837_v54, %v16838_v18  ;;  %v16841_v49 = vld [vmem:[#allocation144_spill] sm:$0xff] }
 0x2b8   : > { %16836 = vst [vmem:[#allocation137_spill] sm:$0xff] %v14532_v16  ;;  %v16843_v26 = vmax.f32 %v16841_v49, %v16842_v1  ;;  %v16847_v1 = vmax.f32 %v13859_v42, %v13864_v7  ;;  %v16857_v42 = vld [vmem:[#allocation5_spill] sm:$0xff] }
 0x2b9   : > { %v14540_v52 = vmax.f32 %v16839_v43, %v9441_v56  ;;  %v16845_v43 = vmax.f32 %v13846_v0, %v13851_v38  ;;  %v16853_v38 = vld [vmem:[#allocation3_spill] sm:$0xff]  ;;  %v14584_v7 = vsel %vm9002_vm3, %v16857_v42, -inf  ;;  %v16873_v16 = vld [vmem:[#allocation13_spill] sm:$0xff] }
 0x2ba   : > { %v11570_v2 = vpop.f32.mrb[160].mxu0  ;;  %v14543_v11 = vpop.f32.mrb[160].mxu1 }
 0x2bb   : > { %16840 = vst [vmem:[#allocation141_spill] sm:$0xff] %v14540_v52  ;;  %v9516_v8 = vsel %vm9002_vm3, %v11570_v2, -inf  ;;  %v7595_v50 = vpop.f32.mrb[161].mxu0  ;;  %v14551_v39 = vpop.f32.mrb[161].mxu1 }
 0x2bc   : > { %v14548_v59 = vmax.f32 %v16843_v26, %v9516_v8  ;;  %v9486_v29 = vsel %vm9002_vm3, %v7595_v50, -inf  ;;  %v11571_v40 = vpop.f32.mrb[162].mxu0  ;;  %v14559_v2 = vpop.f32.mrb[162].mxu1  ;;  %v16849_v26 = vld [vmem:[#allocation149_spill] sm:$0xff] }
 0x2bd   : > { %v14556_v18 = vmax.f32 %v16845_v43, %v9486_v29  ;;  %v9531_v56 = vsel %vm9002_vm3, %v11571_v40, -inf  ;;  %v7598_v54 = vpop.f32.mrb[163].mxu0  ;;  %v14567_v50 = vpop.f32.mrb[163].mxu1  ;;  %v14576_v29 = vsel %vm9002_vm3, %v16853_v38, -inf  ;;  %v16855_v40 = vld [vmem:[#allocation4_spill] sm:$0xff] }
 0x2be   : > { %16844 = vst [vmem:[#allocation142_spill] sm:$0xff] %v14548_v59  ;;  %v14564_v49 = vmax.f32 %v16847_v1, %v9531_v56  ;;  %v9501_v8 = vsel %vm9002_vm3, %v7598_v54, -inf  ;;  %v16850_v59 = vld [vmem:[#allocation150_spill] sm:$0xff]  ;;  %v14580_v43 = vsel %vm9002_vm3, %v16855_v40, -inf  ;;  %16858 = vst [vmem:[#allocation4_spill] sm:$0xff] %v14584_v7  ;;  %v16861_v1 = vld [vmem:[#allocation7_spill] sm:$0xff] }
 0x2bf   : > { %16846 = vst [vmem:[#allocation144_spill] sm:$0xff] %v14556_v18  ;;  %v16851_v52 = vmax.f32 %v16849_v26, %v16850_v59  ;;  %16854 = vst [vmem:[#allocation150_spill] sm:$0xff] %v14576_v29  ;;  %v16859_v56 = vld [vmem:[#allocation6_spill] sm:$0xff]  ;;  %v16863_v59 = vld [vmem:[#allocation8_spill] sm:$0xff] }
 0x2c0   : > { %16848 = vst [vmem:[#allocation145_spill] sm:$0xff] %v14564_v49  ;;  %16856 = vst [vmem:[#allocation3_spill] sm:$0xff] %v14580_v43  ;;  %v14588_v54 = vsel %vm9002_vm3, %v16859_v56, -inf  ;;  %v16865_v26 = vld [vmem:[#allocation9_spill] sm:$0xff]  ;;  %v16867_v40 = vld [vmem:[#allocation10_spill] sm:$0xff] }
 0x2c1   : > { %v14572_v0 = vmax.f32 %v16851_v52, %v9501_v8  ;;  %16860 = vst [vmem:[#allocation5_spill] sm:$0xff] %v14588_v54  ;;  %v14592_v52 = vsel %vm9002_vm3, %v16861_v1, -inf  ;;  %v14596_v8 = vsel %vm9002_vm3, %v16863_v59, -inf  ;;  %v14600_v38 = vsel %vm9002_vm3, %v16865_v26, -inf  ;;  %v16871_v18 = vld [vmem:[#allocation12_spill] sm:$0xff]  ;;  %v16885_v54 = vld [vmem:[#allocation17_spill] sm:$0xff] }
 0x2c2   : > { %16862 = vst [vmem:[#allocation6_spill] sm:$0xff] %v14592_v52  ;;  %16864 = vst [vmem:[#allocation7_spill] sm:$0xff] %v14596_v8  ;;  %v14604_v42 = vsel %vm9002_vm3, %v16867_v40, -inf  ;;  %v11574_v49 = vpop.f32.mrb[164].mxu0  ;;  %v14612_v1 = vsel %vm9002_vm3, %v16871_v18, -inf  ;;  %v14616_v59 = vsel %vm9002_vm3, %v16873_v16, -inf }
 0x2c3   : > { %16852 = vst [vmem:[#allocation149_spill] sm:$0xff] %v14572_v0  ;;  %16866 = vst [vmem:[#allocation8_spill] sm:$0xff] %v14600_v38  ;;  %v16869_v0 = vld [vmem:[#allocation11_spill] sm:$0xff]  ;;  %v14620_v26 = vsel %vm9002_vm3, %v16875_v55, -inf  ;;  %v9576_v40 = vsel %vm9002_vm3, %v11574_v49, -inf  ;;  %v14623_v38 = vpop.f32.mrb[164].mxu1 }
 0x2c4   : > { %16868 = vst [vmem:[#allocation9_spill] sm:$0xff] %v14604_v42  ;;  %v14608_v56 = vsel %vm9002_vm3, %v16869_v0, -inf  ;;  %16872 = vst [vmem:[#allocation11_spill] sm:$0xff] %v14612_v1  ;;  %v7611_v42 = vpop.f32.mrb[165].mxu0  ;;  %v16877_v0 = vld [vmem:[#allocation15_spill] sm:$0xff]  ;;  %v16879_v8 = vld [vmem:[#allocation16_spill] sm:$0xff] }
 0x2c5   : > { %16870 = vst [vmem:[#allocation10_spill] sm:$0xff] %v14608_v56  ;;  %16874 = vst [vmem:[#allocation12_spill] sm:$0xff] %v14616_v59  ;;  %v14627_v56 = vsel %vm9002_vm3, %v16877_v0, -inf  ;;  %v14631_v18 = vsel %vm9002_vm3, %v16879_v8, -inf  ;;  %v16881_v1 = vld [vmem:[#allocation152_spill] sm:$0xff]  ;;  %v16882_v16 = vld [vmem:[#allocation153_spill] sm:$0xff]  ;;  %v16889_v8 = vmax.f32 %v13898_v12, %v13903_v31 }
 0x2c6   : > { %16876 = vst [vmem:[#allocation13_spill] sm:$0xff] %v14620_v26  ;;  %16878 = vst [vmem:[#allocation14_spill] sm:$0xff] %v14627_v56  ;;  %v16883_v59 = vmax.f32 %v16881_v1, %v16882_v16  ;;  %v9546_v55 = vsel %vm9002_vm3, %v7611_v42, -inf  ;;  %v11575_v26 = vpop.f32.mrb[166].mxu0  ;;  %v14639_v49 = vpop.f32.mrb[165].mxu1  ;;  %v14643_v7 = vsel %vm9002_vm3, %v16885_v54, -inf }
 0x2c7   : > { %16880 = vst [vmem:[#allocation15_spill] sm:$0xff] %v14631_v18  ;;  %16886 = vst [vmem:[#allocation152_spill] sm:$0xff] %v14643_v7  ;;  %v16887_v0 = vld [vmem:[#allocation18_spill] sm:$0xff]  ;;  %v14652_v18 = vmax.f32 %v16889_v8, %v9546_v55  ;;  %v9591_v1 = vsel %vm9002_vm3, %v11575_v26, -inf  ;;  %v14655_v42 = vpop.f32.mrb[166].mxu1  ;;  %v16893_v54 = vld [vmem:[#allocation20_spill] sm:$0xff] }
 0x2c8   : > { %v14636_v52 = vmax.f32 %v16883_v59, %v9576_v40  ;;  %v14647_v56 = vsel %vm9002_vm3, %v16887_v0, -inf  ;;  %v7614_v59 = vpop.f32.mrb[167].mxu0  ;;  %v16891_v40 = vld [vmem:[#allocation19_spill] sm:$0xff]  ;;  %v16895_v0 = vmax.f32 %v13911_v34, %v13916_v6  ;;  %v14671_v31 = vpop.f32.mrb[167].mxu1  ;;  %v16897_v26 = vld [vmem:[#allocation21_spill] sm:$0xff]  ;;  %v16899_v8 = vld [vmem:[#allocation22_spill] sm:$0xff] }
 0x2c9   : > { %16888 = vst [vmem:[#allocation153_spill] sm:$0xff] %v14647_v56  ;;  %16890 = vst [vmem:[#allocation17_spill] sm:$0xff] %v14652_v18  ;;  %v14659_v16 = vsel %vm9002_vm3, %v16891_v40, -inf  ;;  %v9561_v12 = vsel %vm9002_vm3, %v7614_v59, -inf  ;;  %v14675_v55 = vsel %vm9002_vm3, %v16897_v26, -inf  ;;  %v14679_v40 = vsel %vm9002_vm3, %v16899_v8, -inf }
 0x2ca   : > { %16884 = vst [vmem:[#allocation16_spill] sm:$0xff] %v14636_v52  ;;  %16892 = vst [vmem:[#allocation18_spill] sm:$0xff] %v14659_v16  ;;  %v14663_v52 = vsel %vm9002_vm3, %v16893_v54, -inf  ;;  %v14668_v56 = vmax.f32 %v16895_v0, %v9591_v1  ;;  %v16901_v18 = vld [vmem:[#allocation23_spill] sm:$0xff]  ;;  %v16904_v34 = vld [vmem:[#allocation158_spill] sm:$0xff] }
 0x2cb   : > { %16894 = vst [vmem:[#allocation19_spill] sm:$0xff] %v14663_v52  ;;  %16898 = vst [vmem:[#allocation21_spill] sm:$0xff] %v14675_v55  ;;  %v14683_v54 = vsel %vm9002_vm3, %v16901_v18, -inf  ;;  %v16903_v52 = vld [vmem:[#allocation157_spill] sm:$0xff]  ;;  %v16907_v59 = vld [vmem:[#allocation24_spill] sm:$0xff] }
 0x2cc   : > { %16896 = vst [vmem:[#allocation20_spill] sm:$0xff] %v14668_v56  ;;  %16900 = vst [vmem:[#allocation22_spill] sm:$0xff] %v14679_v40  ;;  %v16905_v6 = vmax.f32 %v16903_v52, %v16904_v34  ;;  %v14692_v0 = vsel %vm9002_vm3, %v16907_v59, -inf  ;;  %v16909_v56 = vld [vmem:[#allocation25_spill] sm:$0xff]  ;;  %v16911_v55 = vld [vmem:[#allocation26_spill] sm:$0xff] }
 0x2cd   : > { %16902 = vst [vmem:[#allocation23_spill] sm:$0xff] %v14683_v54  ;;  %16908 = vst [vmem:[#allocation158_spill] sm:$0xff] %v14692_v0  ;;  %v14696_v26 = vsel %vm9002_vm3, %v16909_v56, -inf  ;;  %v14700_v8 = vsel %vm9002_vm3, %v16911_v55, -inf  ;;  %v16913_v40 = vld [vmem:[#allocation27_spill] sm:$0xff]  ;;  %v16915_v54 = vld [vmem:[#allocation28_spill] sm:$0xff] }
 0x2ce   : > { %v14688_v1 = vmax.f32 %v16905_v6, %v9561_v12  ;;  %16910 = vst [vmem:[#allocation24_spill] sm:$0xff] %v14696_v26  ;;  %16912 = vst [vmem:[#allocation25_spill] sm:$0xff] %v14700_v8  ;;  %v14704_v18 = vsel %vm9002_vm3, %v16913_v40, -inf  ;;  %v14708_v52 = vsel %vm9002_vm3, %v16915_v54, -inf  ;;  %v16917_v12 = vld [vmem:[#allocation29_spill] sm:$0xff]  ;;  %v16919_v6 = vld [vmem:[#allocation30_spill] sm:$0xff] }
 0x2cf   : > { %16914 = vst [vmem:[#allocation26_spill] sm:$0xff] %v14704_v18  ;;  %16916 = vst [vmem:[#allocation27_spill] sm:$0xff] %v14708_v52  ;;  %v14712_v34 = vsel %vm9002_vm3, %v16917_v12, -inf  ;;  %v14716_v56 = vsel %vm9002_vm3, %v16919_v6, -inf  ;;  %v16921_v59 = vld [vmem:[#allocation31_spill] sm:$0xff]  ;;  %v16925_v18 = vld [vmem:[#allocation33_spill] sm:$0xff] }
 0x2d0   : > { %16906 = vst [vmem:[#allocation157_spill] sm:$0xff] %v14688_v1  ;;  %16918 = vst [vmem:[#allocation28_spill] sm:$0xff] %v14712_v34  ;;  %v14720_v55 = vsel %vm9002_vm3, %v16921_v59, -inf  ;;  %v16923_v1 = vld [vmem:[#allocation32_spill] sm:$0xff]  ;;  %v14728_v54 = vsel %vm9002_vm3, %v16925_v18, -inf  ;;  %v16927_v52 = vld [vmem:[#allocation34_spill] sm:$0xff] }
 0x2d1   : > { %16920 = vst [vmem:[#allocation29_spill] sm:$0xff] %v14716_v56  ;;  %16922 = vst [vmem:[#allocation30_spill] sm:$0xff] %v14720_v55  ;;  %v14724_v40 = vsel %vm9002_vm3, %v16923_v1, -inf  ;;  %v14732_v12 = vsel %vm9002_vm3, %v16927_v52, -inf  ;;  %v16929_v34 = vld [vmem:[#allocation35_spill] sm:$0xff]  ;;  %v11578_v56 = vpop.f32.mrb[168].mxu0 }
 0x2d2   : > { %16924 = vst [vmem:[#allocation31_spill] sm:$0xff] %v14724_v40  ;;  %16926 = vst [vmem:[#allocation32_spill] sm:$0xff] %v14728_v54  ;;  %v14736_v6 = vsel %vm9002_vm3, %v16929_v34, -inf  ;;  %v16931_v8 = vld [vmem:[#allocation36_spill] sm:$0xff]  ;;  %v16933_v55 = vld [vmem:[#allocation37_spill] sm:$0xff]  ;;  %v9636_v52 = vsel %vm9002_vm3, %v11578_v56, -inf }
 0x2d3   : > { %16928 = vst [vmem:[#allocation33_spill] sm:$0xff] %v14732_v12  ;;  %16930 = vst [vmem:[#allocation34_spill] sm:$0xff] %v14736_v6  ;;  %v14740_v59 = vsel %vm9002_vm3, %v16931_v8, -inf  ;;  %v14744_v1 = vsel %vm9002_vm3, %v16933_v55, -inf  ;;  %v16935_v40 = vld [vmem:[#allocation38_spill] sm:$0xff]  ;;  %v7627_v12 = vpop.f32.mrb[169].mxu0 }
 0x2d4   : > { %16932 = vst [vmem:[#allocation35_spill] sm:$0xff] %v14740_v59  ;;  %16934 = vst [vmem:[#allocation36_spill] sm:$0xff] %v14744_v1  ;;  %v14748_v18 = vsel %vm9002_vm3, %v16935_v40, -inf  ;;  %v14751_v54 = vpop.f32.mrb[168].mxu1  ;;  %v16937_v34 = vld [vmem:[#allocation39_spill] sm:$0xff]  ;;  %v16939_v26 = vld [vmem:[#allocation40_spill] sm:$0xff] }
 0x2d5   : > { %16936 = vst [vmem:[#allocation37_spill] sm:$0xff] %v14748_v18  ;;  %v14755_v6 = vsel %vm9002_vm3, %v16937_v34, -inf  ;;  %v14759_v8 = vsel %vm9002_vm3, %v16939_v26, -inf  ;;  %v16941_v59 = vld [vmem:[#allocation160_spill] sm:$0xff]  ;;  %v16942_v55 = vld [vmem:[#allocation161_spill] sm:$0xff]  ;;  %v9606_v40 = vsel %vm9002_vm3, %v7627_v12, -inf  ;;  %v16949_v26 = vmax.f32 %v13950_v24, %v13955_v46 }
 0x2d6   : > { %16938 = vst [vmem:[#allocation38_spill] sm:$0xff] %v14755_v6  ;;  %16940 = vst [vmem:[#allocation39_spill] sm:$0xff] %v14759_v8  ;;  %v16943_v1 = vmax.f32 %v16941_v59, %v16942_v55  ;;  %v11579_v18 = vpop.f32.mrb[170].mxu0  ;;  %v14767_v56 = vpop.f32.mrb[169].mxu1  ;;  %v16945_v16 = vld [vmem:[#allocation41_spill] sm:$0xff]  ;;  %v16947_v34 = vld [vmem:[#allocation42_spill] sm:$0xff] }
 0x2d7   : > { %v14771_v7 = vsel %vm9002_vm3, %v16945_v16, -inf  ;;  %v14775_v6 = vsel %vm9002_vm3, %v16947_v34, -inf  ;;  %v14780_v8 = vmax.f32 %v16949_v26, %v9606_v40  ;;  %v9651_v59 = vsel %vm9002_vm3, %v11579_v18, -inf  ;;  %v14783_v12 = vpop.f32.mrb[170].mxu1  ;;  %v16953_v16 = vld [vmem:[#allocation44_spill] sm:$0xff]  ;;  %v16957_v18 = vld [vmem:[#allocation45_spill] sm:$0xff] }
 0x2d8   : > { %v14764_v0 = vmax.f32 %v16943_v1, %v9636_v52  ;;  %16946 = vst [vmem:[#allocation160_spill] sm:$0xff] %v14771_v7  ;;  %16948 = vst [vmem:[#allocation161_spill] sm:$0xff] %v14775_v6  ;;  %v7630_v1 = vpop.f32.mrb[171].mxu0  ;;  %v16951_v52 = vld [vmem:[#allocation43_spill] sm:$0xff]  ;;  %v16955_v34 = vmax.f32 %v13963_v19, %v13968_v45  ;;  %v14799_v46 = vpop.f32.mrb[171].mxu1  ;;  %v14803_v40 = vsel %vm9002_vm3, %v16957_v18, -inf }
 0x2d9   : > { %16950 = vst [vmem:[#allocation41_spill] sm:$0xff] %v14780_v8  ;;  %v14787_v55 = vsel %vm9002_vm3, %v16951_v52, -inf  ;;  %v9621_v24 = vsel %vm9002_vm3, %v7630_v1, -inf  ;;  %16958 = vst [vmem:[#allocation45_spill] sm:$0xff] %v14803_v40  ;;  %v16959_v26 = vld [vmem:[#allocation46_spill] sm:$0xff]  ;;  %v16961_v8 = vld [vmem:[#allocation47_spill] sm:$0xff] }
 0x2da   : > { %16944 = vst [vmem:[#allocation40_spill] sm:$0xff] %v14764_v0  ;;  %16952 = vst [vmem:[#allocation42_spill] sm:$0xff] %v14787_v55  ;;  %v14791_v0 = vsel %vm9002_vm3, %v16953_v16, -inf  ;;  %v14796_v6 = vmax.f32 %v16955_v34, %v9651_v59  ;;  %v14807_v52 = vsel %vm9002_vm3, %v16959_v26, -inf  ;;  %v14811_v16 = vsel %vm9002_vm3, %v16961_v8, -inf  ;;  %v16964_v19 = vld [vmem:[#allocation166_spill] sm:$0xff] }
 0x2db   : > { %16954 = vst [vmem:[#allocation43_spill] sm:$0xff] %v14791_v0  ;;  %16960 = vst [vmem:[#allocation46_spill] sm:$0xff] %v14807_v52  ;;  %v16963_v0 = vld [vmem:[#allocation165_spill] sm:$0xff]  ;;  %v16967_v1 = vld [vmem:[#allocation48_spill] sm:$0xff] }
 0x2dc   : > { %16956 = vst [vmem:[#allocation44_spill] sm:$0xff] %v14796_v6  ;;  %16962 = vst [vmem:[#allocation47_spill] sm:$0xff] %v14811_v16  ;;  %v16965_v45 = vmax.f32 %v16963_v0, %v16964_v19  ;;  %v14820_v34 = vsel %vm9002_vm3, %v16967_v1, -inf  ;;  %v16969_v6 = vld [vmem:[#allocation49_spill] sm:$0xff]  ;;  %v16971_v40 = vld [vmem:[#allocation50_spill] sm:$0xff] }
 0x2dd   : > { %16968 = vst [vmem:[#allocation166_spill] sm:$0xff] %v14820_v34  ;;  %v14824_v18 = vsel %vm9002_vm3, %v16969_v6, -inf  ;;  %v14828_v26 = vsel %vm9002_vm3, %v16971_v40, -inf  ;;  %v16973_v52 = vld [vmem:[#allocation51_spill] sm:$0xff]  ;;  %v16975_v16 = vld [vmem:[#allocation52_spill] sm:$0xff]  ;;  %v16981_v1 = vld [vmem:[#allocation58_spill] sm:$0xff] }
 0x2de   : > { %v14816_v59 = vmax.f32 %v16965_v45, %v9621_v24  ;;  %16970 = vst [vmem:[#allocation48_spill] sm:$0xff] %v14824_v18  ;;  %16972 = vst [vmem:[#allocation49_spill] sm:$0xff] %v14828_v26  ;;  %v14832_v8 = vsel %vm9002_vm3, %v16973_v52, -inf  ;;  %v14836_v0 = vsel %vm9002_vm3, %v16975_v16, -inf  ;;  %v16977_v24 = vld [vmem:[#allocation54_spill] sm:$0xff]  ;;  %v16979_v45 = vld [vmem:[#allocation55_spill] sm:$0xff] }
 0x2df   : > { %16974 = vst [vmem:[#allocation50_spill] sm:$0xff] %v14832_v8  ;;  %16976 = vst [vmem:[#allocation51_spill] sm:$0xff] %v14836_v0  ;;  %v14840_v19 = vsel %vm9002_vm3, %v16977_v24, -inf  ;;  %v14844_v6 = vsel %vm9002_vm3, %v16979_v45, -inf  ;;  %v14848_v40 = vsel %vm9002_vm3, %v16981_v1, -inf  ;;  %v16983_v26 = vld [vmem:[#allocation60_spill] sm:$0xff] }
 0x2e0   : > { %16966 = vst [vmem:[#allocation165_spill] sm:$0xff] %v14816_v59  ;;  %16978 = vst [vmem:[#allocation52_spill] sm:$0xff] %v14840_v19  ;;  %v14852_v52 = vsel %vm9002_vm3, %v16983_v26, -inf  ;;  %v16985_v8 = vld [vmem:[#allocation62_spill] sm:$0xff]  ;;  %v16987_v0 = vld [vmem:[#allocation63_spill] sm:$0xff] }
 0x2e1   : > { %16980 = vst [vmem:[#allocation54_spill] sm:$0xff] %v14844_v6  ;;  %16982 = vst [vmem:[#allocation55_spill] sm:$0xff] %v14848_v40  ;;  %v14856_v16 = vsel %vm9002_vm3, %v16985_v8, -inf  ;;  %v14860_v24 = vsel %vm9002_vm3, %v16987_v0, -inf  ;;  %v16989_v19 = vld [vmem:[#allocation66_spill] sm:$0xff]  ;;  %v11582_v6 = vpop.f32.mrb[172].mxu0 }
 0x2e2   : > { %16984 = vst [vmem:[#allocation58_spill] sm:$0xff] %v14852_v52  ;;  %16986 = vst [vmem:[#allocation60_spill] sm:$0xff] %v14856_v16  ;;  %v14864_v45 = vsel %vm9002_vm3, %v16989_v19, -inf  ;;  %v16991_v18 = vld [vmem:[#allocation68_spill] sm:$0xff]  ;;  %v16993_v40 = vld [vmem:[#allocation70_spill] sm:$0xff]  ;;  %v9696_v0 = vsel %vm9002_vm3, %v11582_v6, -inf }
 0x2e3   : > { %16988 = vst [vmem:[#allocation62_spill] sm:$0xff] %v14860_v24  ;;  %16990 = vst [vmem:[#allocation63_spill] sm:$0xff] %v14864_v45  ;;  %v14868_v1 = vsel %vm9002_vm3, %v16991_v18, -inf  ;;  %v14872_v26 = vsel %vm9002_vm3, %v16993_v40, -inf  ;;  %v16995_v52 = vld [vmem:[#allocation71_spill] sm:$0xff]  ;;  %v7643_v24 = vpop.f32.mrb[173].mxu0 }
 0x2e4   : > { %16992 = vst [vmem:[#allocation66_spill] sm:$0xff] %v14868_v1  ;;  %16994 = vst [vmem:[#allocation68_spill] sm:$0xff] %v14872_v26  ;;  %v14876_v8 = vsel %vm9002_vm3, %v16995_v52, -inf  ;;  %v14879_v16 = vpop.f32.mrb[172].mxu1  ;;  %v16997_v19 = vld [vmem:[#allocation74_spill] sm:$0xff]  ;;  %v16999_v34 = vld [vmem:[#allocation76_spill] sm:$0xff] }
 0x2e5   : > { %16996 = vst [vmem:[#allocation70_spill] sm:$0xff] %v14876_v8  ;;  %v14883_v45 = vsel %vm9002_vm3, %v16997_v19, -inf  ;;  %v14887_v18 = vsel %vm9002_vm3, %v16999_v34, -inf  ;;  %v17001_v1 = vld [vmem:[#allocation168_spill] sm:$0xff]  ;;  %v17002_v40 = vld [vmem:[#allocation169_spill] sm:$0xff]  ;;  %v9666_v52 = vsel %vm9002_vm3, %v7643_v24, -inf  ;;  %v17009_v34 = vmax.f32 %v14002_v36, %v14007_v22 }
 0x2e6   : > { %16998 = vst [vmem:[#allocation71_spill] sm:$0xff] %v14883_v45  ;;  %17000 = vst [vmem:[#allocation74_spill] sm:$0xff] %v14887_v18  ;;  %v17003_v26 = vmax.f32 %v17001_v1, %v17002_v40  ;;  %v11583_v8 = vpop.f32.mrb[174].mxu0  ;;  %v14895_v6 = vpop.f32.mrb[173].mxu1  ;;  %v17005_v55 = vld [vmem:[#allocation78_spill] sm:$0xff]  ;;  %v17007_v19 = vld [vmem:[#allocation79_spill] sm:$0xff] }
 0x2e7   : > { %v14899_v7 = vsel %vm9002_vm3, %v17005_v55, -inf  ;;  %v14903_v45 = vsel %vm9002_vm3, %v17007_v19, -inf  ;;  %v14908_v18 = vmax.f32 %v17009_v34, %v9666_v52  ;;  %v9711_v1 = vsel %vm9002_vm3, %v11583_v8, -inf  ;;  %v14911_v24 = vpop.f32.mrb[174].mxu1  ;;  %v17013_v55 = vld [vmem:[#allocation83_spill] sm:$0xff]  ;;  %v17015_v19 = vld [vmem:[#allocation172_spill] sm:$0xff] }
 0x2e8   : > { %v14892_v59 = vmax.f32 %v17003_v26, %v9696_v0  ;;  %17006 = vst [vmem:[#allocation168_spill] sm:$0xff] %v14899_v7  ;;  %17008 = vst [vmem:[#allocation169_spill] sm:$0xff] %v14903_v45  ;;  %v7646_v26 = vpop.f32.mrb[175].mxu0  ;;  %v17011_v0 = vld [vmem:[#allocation82_spill] sm:$0xff]  ;;  %v14919_v7 = vsel %vm9002_vm3, %v17013_v55, -inf  ;;  %v17016_v45 = vmax.f32 %v14015_v62, %v17015_v19  ;;  %v14927_v22 = vpop.f32.mrb[175].mxu1 }
 0x2e9   : > { %17010 = vst [vmem:[#allocation78_spill] sm:$0xff] %v14908_v18  ;;  %v14915_v40 = vsel %vm9002_vm3, %v17011_v0, -inf  ;;  %17014 = vst [vmem:[#allocation82_spill] sm:$0xff] %v14919_v7  ;;  %v9681_v36 = vsel %vm9002_vm3, %v7646_v26, -inf  ;;  %v17018_v8 = vld [vmem:[#allocation84_spill] sm:$0xff]  ;;  %v17020_v34 = vld [vmem:[#allocation87_spill] sm:$0xff] }
 0x2ea   : > { %17004 = vst [vmem:[#allocation76_spill] sm:$0xff] %v14892_v59  ;;  %17012 = vst [vmem:[#allocation79_spill] sm:$0xff] %v14915_v40  ;;  %v14924_v59 = vmax.f32 %v17016_v45, %v9711_v1  ;;  %v14931_v52 = vsel %vm9002_vm3, %v17018_v8, -inf  ;;  %v14935_v0 = vsel %vm9002_vm3, %v17020_v34, -inf  ;;  %v17022_v18 = vld [vmem:[#allocation90_spill] sm:$0xff]  ;;  %v17025_v62 = vld [vmem:[#allocation175_spill] sm:$0xff] }
 0x2eb   : > { %17019 = vst [vmem:[#allocation172_spill] sm:$0xff] %v14931_v52  ;;  %17021 = vst [vmem:[#allocation84_spill] sm:$0xff] %v14935_v0  ;;  %v14939_v55 = vsel %vm9002_vm3, %v17022_v18, -inf  ;;  %v17024_v7 = vld [vmem:[#allocation174_spill] sm:$0xff]  ;;  %v17028_v26 = vld [vmem:[#allocation91_spill] sm:$0xff] }
 0x2ec   : > { %17017 = vst [vmem:[#allocation83_spill] sm:$0xff] %v14924_v59  ;;  %17023 = vst [vmem:[#allocation87_spill] sm:$0xff] %v14939_v55  ;;  %v17026_v45 = vmax.f32 %v17024_v7, %v17025_v62  ;;  %v14948_v19 = vsel %vm9002_vm3, %v17028_v26, -inf  ;;  %v17030_v59 = vld [vmem:[#allocation92_spill] sm:$0xff]  ;;  %v17032_v52 = vld [vmem:[#allocation95_spill] sm:$0xff] }
 0x2ed   : > { %17029 = vst [vmem:[#allocation174_spill] sm:$0xff] %v14948_v19  ;;  %v14952_v8 = vsel %vm9002_vm3, %v17030_v59, -inf  ;;  %v14956_v34 = vsel %vm9002_vm3, %v17032_v52, -inf  ;;  %v17034_v0 = vld [vmem:[#allocation98_spill] sm:$0xff]  ;;  %v17036_v55 = vld [vmem:[#allocation99_spill] sm:$0xff]  ;;  %v17068_v40 = vld [vmem:[#allocation124_spill] sm:$0xff] }
 0x2ee   : > { %v14944_v1 = vmax.f32 %v17026_v45, %v9681_v36  ;;  %17031 = vst [vmem:[#allocation175_spill] sm:$0xff] %v14952_v8  ;;  %17033 = vst [vmem:[#allocation91_spill] sm:$0xff] %v14956_v34  ;;  %v14960_v18 = vsel %vm9002_vm3, %v17034_v0, -inf  ;;  %v14964_v7 = vsel %vm9002_vm3, %v17036_v55, -inf  ;;  %v17038_v36 = vld [vmem:[#allocation100_spill] sm:$0xff]  ;;  %v17040_v45 = vld [vmem:[#allocation103_spill] sm:$0xff] }
 0x2ef   : > { %17035 = vst [vmem:[#allocation92_spill] sm:$0xff] %v14960_v18  ;;  %17037 = vst [vmem:[#allocation95_spill] sm:$0xff] %v14964_v7  ;;  %v14968_v62 = vsel %vm9002_vm3, %v17038_v36, -inf  ;;  %v14972_v59 = vsel %vm9002_vm3, %v17040_v45, -inf  ;;  %v17042_v26 = vld [vmem:[#allocation106_spill] sm:$0xff]  ;;  %v17046_v18 = vld [vmem:[#allocation108_spill] sm:$0xff] }
 0x2f0   : > { %17027 = vst [vmem:[#allocation90_spill] sm:$0xff] %v14944_v1  ;;  %17039 = vst [vmem:[#allocation98_spill] sm:$0xff] %v14968_v62  ;;  %v14976_v52 = vsel %vm9002_vm3, %v17042_v26, -inf  ;;  %v17044_v1 = vld [vmem:[#allocation107_spill] sm:$0xff]  ;;  %v14984_v55 = vsel %vm9002_vm3, %v17046_v18, -inf  ;;  %v17050_v62 = vld [vmem:[#allocation114_spill] sm:$0xff] }
 0x2f1   : > { %17041 = vst [vmem:[#allocation99_spill] sm:$0xff] %v14972_v59  ;;  %17043 = vst [vmem:[#allocation100_spill] sm:$0xff] %v14976_v52  ;;  %v14980_v0 = vsel %vm9002_vm3, %v17044_v1, -inf  ;;  %v17048_v7 = vld [vmem:[#allocation111_spill] sm:$0xff]  ;;  %v14992_v45 = vsel %vm9002_vm3, %v17050_v62, -inf  ;;  %v11586_v59 = vpop.f32.mrb[176].mxu0 }
 0x2f2   : > { %17045 = vst [vmem:[#allocation103_spill] sm:$0xff] %v14980_v0  ;;  %17047 = vst [vmem:[#allocation106_spill] sm:$0xff] %v14984_v55  ;;  %v14988_v36 = vsel %vm9002_vm3, %v17048_v7, -inf  ;;  %v17052_v34 = vld [vmem:[#allocation115_spill] sm:$0xff]  ;;  %v17054_v52 = vld [vmem:[#allocation116_spill] sm:$0xff]  ;;  %v9756_v7 = vsel %vm9002_vm3, %v11586_v59, -inf }
 0x2f3   : > { %17049 = vst [vmem:[#allocation107_spill] sm:$0xff] %v14988_v36  ;;  %17051 = vst [vmem:[#allocation108_spill] sm:$0xff] %v14992_v45  ;;  %v14996_v26 = vsel %vm9002_vm3, %v17052_v34, -inf  ;;  %v15000_v1 = vsel %vm9002_vm3, %v17054_v52, -inf  ;;  %v17056_v0 = vld [vmem:[#allocation119_spill] sm:$0xff]  ;;  %v7659_v36 = vpop.f32.mrb[177].mxu0 }
 0x2f4   : > { %17053 = vst [vmem:[#allocation111_spill] sm:$0xff] %v14996_v26  ;;  %17055 = vst [vmem:[#allocation114_spill] sm:$0xff] %v15000_v1  ;;  %v15004_v18 = vsel %vm9002_vm3, %v17056_v0, -inf  ;;  %v15007_v55 = vpop.f32.mrb[176].mxu1  ;;  %v17059_v62 = vld [vmem:[#allocation122_spill] sm:$0xff]  ;;  %v17061_v8 = vld [vmem:[#allocation123_spill] sm:$0xff] }
 0x2f5   : > { %17057 = vst [vmem:[#allocation115_spill] sm:$0xff] %v15004_v18  ;;  %17058 = vst [vmem:[#allocation116_spill] sm:$0xff] %v15007_v55  ;;  %v15011_v45 = vsel %vm9002_vm3, %v17059_v62, -inf  ;;  %v15015_v34 = vsel %vm9002_vm3, %v17061_v8, -inf  ;;  %v17063_v26 = vld [vmem:[#allocation177_spill] sm:$0xff]  ;;  %v17064_v52 = vld [vmem:[#allocation178_spill] sm:$0xff] }
 0x2f6   : > { %17060 = vst [vmem:[#allocation119_spill] sm:$0xff] %v15011_v45  ;;  %17062 = vst [vmem:[#allocation122_spill] sm:$0xff] %v15015_v34  ;;  %v17065_v1 = vmax.f32 %v17063_v26, %v17064_v52  ;;  %v9726_v0 = vsel %vm9002_vm3, %v7659_v36, -inf  ;;  %v11587_v18 = vpop.f32.mrb[178].mxu0  ;;  %v15023_v59 = vpop.f32.mrb[177].mxu1  ;;  %v15027_v43 = vsel %vm9002_vm3, %v17068_v40, -inf }
 0x2f7   : > { %17067 = vst [vmem:[#allocation177_spill] sm:$0xff] %v15023_v59  ;;  %17069 = vst [vmem:[#allocation178_spill] sm:$0xff] %v15027_v43  ;;  %v17070_v62 = vld [vmem:[#allocation127_spill] sm:$0xff]  ;;  %v17072_v8 = vld [vmem:[#allocation180_spill] sm:$0xff]  ;;  %v9771_v26 = vsel %vm9002_vm3, %v11587_v18, -inf  ;;  %v15039_v36 = vpop.f32.mrb[178].mxu1 }
 0x2f8   : > { %v15020_v19 = vmax.f32 %v17065_v1, %v9756_v7  ;;  %v15031_v45 = vsel %vm9002_vm3, %v17070_v62, -inf  ;;  %v17073_v34 = vld [vmem:[#allocation181_spill] sm:$0xff]  ;;  %v7662_v1 = vpop.f32.mrb[179].mxu0  ;;  %17076 = vst [vmem:[#allocation180_spill] sm:$0xff] %v15039_v36  ;;  %v17077_v7 = vld [vmem:[#allocation130_spill] sm:$0xff]  ;;  %v17079_v40 = vld [vmem:[#allocation131_spill] sm:$0xff] }
 0x2f9   : > { %17071 = vst [vmem:[#allocation124_spill] sm:$0xff] %v15031_v45  ;;  %v17074_v29 = vmax.f32 %v17072_v8, %v17073_v34  ;;  %v15043_v52 = vsel %vm9002_vm3, %v17077_v7, -inf  ;;  %v17081_v62 = vld [vmem:[#allocation183_spill] sm:$0xff]  ;;  %v17082_v45 = vld [vmem:[#allocation184_spill] sm:$0xff]  ;;  %v15055_v34 = vpop.f32.mrb[179].mxu1 }
 0x2fa   : > { %17066 = vst [vmem:[#allocation123_spill] sm:$0xff] %v15020_v19  ;;  %17078 = vst [vmem:[#allocation181_spill] sm:$0xff] %v15043_v52  ;;  %v15047_v19 = vsel %vm9002_vm3, %v17079_v40, -inf  ;;  %v17083_v43 = vmax.f32 %v17081_v62, %v17082_v45  ;;  %v17086_v18 = vld [vmem:[#allocation132_spill] sm:$0xff]  ;;  %v17088_v8 = vld [vmem:[#allocation135_spill] sm:$0xff] }
 0x2fb   : > { %v15036_v55 = vmax.f32 %v17074_v29, %v9726_v0  ;;  %17080 = vst [vmem:[#allocation130_spill] sm:$0xff] %v15047_v19  ;;  %v9741_v29 = vsel %vm9002_vm3, %v7662_v1, -inf  ;;  %17085 = vst [vmem:[#allocation183_spill] sm:$0xff] %v15055_v34  ;;  %v15059_v0 = vsel %vm9002_vm3, %v17086_v18, -inf  ;;  %v15063_v7 = vsel %vm9002_vm3, %v17088_v8, -inf  ;;  %v17092_v19 = vld [vmem:[#allocation53_spill] sm:$0xff] }
 0x2fc   : > { %v15052_v59 = vmax.f32 %v17083_v43, %v9771_v26  ;;  %17087 = vst [vmem:[#allocation184_spill] sm:$0xff] %v15059_v0  ;;  %17089 = vst [vmem:[#allocation132_spill] sm:$0xff] %v15063_v7  ;;  %v17093_v45 = vld [vmem:[#allocation186_spill] sm:$0xff]  ;;  %v17096_v1 = vld [vmem:[#allocation139_spill] sm:$0xff] }
 0x2fd   : > { %17075 = vst [vmem:[#allocation127_spill] sm:$0xff] %v15036_v55  ;;  %v17090_v55 = vld [vmem:[#allocation138_spill] sm:$0xff]  ;;  %v17094_v43 = vmax.f32 %v17092_v19, %v17093_v45  ;;  %v15076_v62 = vsel %vm9002_vm3, %v17096_v1, -inf  ;;  %v17100_v0 = vld [vmem:[#allocation143_spill] sm:$0xff]  ;;  %v17136_v52 = vld [vmem:[#allocation173_spill] sm:$0xff] }
 0x2fe   : > { %17084 = vst [vmem:[#allocation131_spill] sm:$0xff] %v15052_v59  ;;  %v15067_v40 = vsel %vm9002_vm3, %v17090_v55, -inf  ;;  %17097 = vst [vmem:[#allocation53_spill] sm:$0xff] %v15076_v62  ;;  %v17098_v59 = vld [vmem:[#allocation140_spill] sm:$0xff]  ;;  %v15084_v8 = vsel %vm9002_vm3, %v17100_v0, -inf  ;;  %v17102_v7 = vld [vmem:[#allocation146_spill] sm:$0xff] }
 0x2ff   : > { %17091 = vst [vmem:[#allocation135_spill] sm:$0xff] %v15067_v40  ;;  %v15072_v26 = vmax.f32 %v17094_v43, %v9741_v29  ;;  %v15080_v18 = vsel %vm9002_vm3, %v17098_v59, -inf  ;;  %17101 = vst [vmem:[#allocation139_spill] sm:$0xff] %v15084_v8  ;;  %v15088_v55 = vsel %vm9002_vm3, %v17102_v7, -inf  ;;  %v17104_v40 = vld [vmem:[#allocation147_spill] sm:$0xff]  ;;  %v17106_v29 = vld [vmem:[#allocation148_spill] sm:$0xff] }
 0x300   : > { %17099 = vst [vmem:[#allocation186_spill] sm:$0xff] %v15080_v18  ;;  %17103 = vst [vmem:[#allocation140_spill] sm:$0xff] %v15088_v55  ;;  %v15092_v19 = vsel %vm9002_vm3, %v17104_v40, -inf  ;;  %v15096_v45 = vsel %vm9002_vm3, %v17106_v29, -inf  ;;  %v17108_v43 = vld [vmem:[#allocation151_spill] sm:$0xff]  ;;  %v17110_v1 = vld [vmem:[#allocation154_spill] sm:$0xff] }
 0x301   : > { %17095 = vst [vmem:[#allocation138_spill] sm:$0xff] %v15072_v26  ;;  %17105 = vst [vmem:[#allocation143_spill] sm:$0xff] %v15092_v19  ;;  %v15100_v59 = vsel %vm9002_vm3, %v17108_v43, -inf  ;;  %v15104_v0 = vsel %vm9002_vm3, %v17110_v1, -inf  ;;  %v17112_v26 = vld [vmem:[#allocation155_spill] sm:$0xff]  ;;  %v17114_v55 = vld [vmem:[#allocation156_spill] sm:$0xff] }
 0x302   : > { %17107 = vst [vmem:[#allocation146_spill] sm:$0xff] %v15096_v45  ;;  %17109 = vst [vmem:[#allocation147_spill] sm:$0xff] %v15100_v59  ;;  %v15108_v7 = vsel %vm9002_vm3, %v17112_v26, -inf  ;;  %v15112_v40 = vsel %vm9002_vm3, %v17114_v55, -inf  ;;  %v17116_v19 = vld [vmem:[#allocation159_spill] sm:$0xff]  ;;  %v17118_v45 = vld [vmem:[#allocation162_spill] sm:$0xff] }
 0x303   : > { %17111 = vst [vmem:[#allocation148_spill] sm:$0xff] %v15104_v0  ;;  %17113 = vst [vmem:[#allocation151_spill] sm:$0xff] %v15108_v7  ;;  %v15116_v29 = vsel %vm9002_vm3, %v17116_v19, -inf  ;;  %v15120_v43 = vsel %vm9002_vm3, %v17118_v45, -inf  ;;  %v11590_v59 = vpop.f32.mrb[180].mxu0  ;;  %v17120_v8 = vld [vmem:[#allocation163_spill] sm:$0xff] }
 0x304   : > { %17115 = vst [vmem:[#allocation154_spill] sm:$0xff] %v15112_v40  ;;  %17117 = vst [vmem:[#allocation155_spill] sm:$0xff] %v15116_v29  ;;  %v15124_v1 = vsel %vm9002_vm3, %v17120_v8, -inf  ;;  %v17122_v0 = vld [vmem:[#allocation164_spill] sm:$0xff]  ;;  %v17124_v7 = vld [vmem:[#allocation167_spill] sm:$0xff]  ;;  %v9816_v19 = vsel %vm9002_vm3, %v11590_v59, -inf }
 0x305   : > { %17119 = vst [vmem:[#allocation156_spill] sm:$0xff] %v15120_v43  ;;  %17121 = vst [vmem:[#allocation159_spill] sm:$0xff] %v15124_v1  ;;  %v15128_v26 = vsel %vm9002_vm3, %v17122_v0, -inf  ;;  %v15132_v55 = vsel %vm9002_vm3, %v17124_v7, -inf  ;;  %v7675_v29 = vpop.f32.mrb[181].mxu0  ;;  %v15135_v40 = vpop.f32.mrb[180].mxu1 }
 0x306   : > { %17123 = vst [vmem:[#allocation162_spill] sm:$0xff] %v15128_v26  ;;  %17125 = vst [vmem:[#allocation163_spill] sm:$0xff] %v15132_v55  ;;  %v17127_v45 = vld [vmem:[#allocation170_spill] sm:$0xff]  ;;  %v17129_v18 = vld [vmem:[#allocation171_spill] sm:$0xff]  ;;  %v9786_v7 = vsel %vm9002_vm3, %v7675_v29, -inf  ;;  %v11591_v55 = vpop.f32.mrb[182].mxu0 }
 0x307   : > { %17126 = vst [vmem:[#allocation164_spill] sm:$0xff] %v15135_v40  ;;  %v15139_v43 = vsel %vm9002_vm3, %v17127_v45, -inf  ;;  %v15143_v8 = vsel %vm9002_vm3, %v17129_v18, -inf  ;;  %v17131_v1 = vld [vmem:[#allocation56_spill] sm:$0xff]  ;;  %v15151_v59 = vpop.f32.mrb[181].mxu1  ;;  %v15155_v40 = vsel %vm9002_vm3, %v17136_v52, -inf }
 0x308   : > { %17128 = vst [vmem:[#allocation167_spill] sm:$0xff] %v15139_v43  ;;  %17130 = vst [vmem:[#allocation170_spill] sm:$0xff] %v15143_v8  ;;  %v17132_v0 = vld [vmem:[#allocation188_spill] sm:$0xff]  ;;  %v17140_v18 = vld [vmem:[#allocation57_spill] sm:$0xff]  ;;  %v15167_v29 = vpop.f32.mrb[182].mxu1 }
 0x309   : > { %v17133_v26 = vmax.f32 %v17131_v1, %v17132_v0  ;;  %17135 = vst [vmem:[#allocation56_spill] sm:$0xff] %v15151_v59  ;;  %17137 = vst [vmem:[#allocation188_spill] sm:$0xff] %v15155_v40  ;;  %v17138_v45 = vld [vmem:[#allocation176_spill] sm:$0xff]  ;;  %v17141_v8 = vld [vmem:[#allocation190_spill] sm:$0xff]  ;;  %v9831_v1 = vsel %vm9002_vm3, %v11591_v55, -inf }
 0x30a   : > { %v15159_v43 = vsel %vm9002_vm3, %v17138_v45, -inf  ;;  %v17142_v34 = vmax.f32 %v17140_v18, %v17141_v8  ;;  %v17146_v52 = vld [vmem:[#allocation182_spill] sm:$0xff]  ;;  %v17148_v45 = vld [vmem:[#allocation59_spill] sm:$0xff]  ;;  %v15183_v8 = vpop.f32.mrb[183].mxu1  ;;  %v17152_v55 = vld [vmem:[#allocation185_spill] sm:$0xff] }
 0x30b   : > { %v15148_v62 = vmax.f32 %v17133_v26, %v9816_v19  ;;  %17139 = vst [vmem:[#allocation173_spill] sm:$0xff] %v15159_v43  ;;  %v7678_v26 = vpop.f32.mrb[183].mxu0  ;;  %v17144_v19 = vld [vmem:[#allocation179_spill] sm:$0xff]  ;;  %v17149_v43 = vld [vmem:[#allocation192_spill] sm:$0xff] }
 0x30c   : > { %v15164_v36 = vmax.f32 %v17142_v34, %v9786_v7  ;;  %v15171_v0 = vsel %vm9002_vm3, %v17144_v19, -inf  ;;  %v17150_v40 = vmax.f32 %v17148_v45, %v17149_v43  ;;  %v9801_v34 = vsel %vm9002_vm3, %v7678_v26, -inf  ;;  %v17154_v18 = vld [vmem:[#allocation187_spill] sm:$0xff]  ;;  %v17159_v43 = vld [vmem:[#allocation194_spill] sm:$0xff] }
 0x30d   : > { %17134 = vst [vmem:[#allocation171_spill] sm:$0xff] %v15148_v62  ;;  %17145 = vst [vmem:[#allocation57_spill] sm:$0xff] %v15171_v0  ;;  %v15175_v62 = vsel %vm9002_vm3, %v17146_v52, -inf  ;;  %v15187_v7 = vsel %vm9002_vm3, %v17152_v55, -inf  ;;  %v15191_v19 = vsel %vm9002_vm3, %v17154_v18, -inf  ;;  %v17162_v26 = vld [vmem:[#allocation191_spill] sm:$0xff] }
 0x30e   : > { %17143 = vst [vmem:[#allocation176_spill] sm:$0xff] %v15164_v36  ;;  %17147 = vst [vmem:[#allocation190_spill] sm:$0xff] %v15175_v62  ;;  %v15180_v59 = vmax.f32 %v17150_v40, %v9831_v1  ;;  %v17156_v36 = vld [vmem:[#allocation189_spill] sm:$0xff]  ;;  %v15204_v45 = vsel %vm9002_vm3, %v17162_v26, -inf  ;;  %v17193_v0 = vld [vmem:[#allocation198_spill] sm:$0xff] }
 0x30f   : > { %17153 = vst [vmem:[#allocation182_spill] sm:$0xff] %v15187_v7  ;;  %17155 = vst [vmem:[#allocation59_spill] sm:$0xff] %v15191_v19  ;;  %v15195_v52 = vsel %vm9002_vm3, %v17156_v36, -inf  ;;  %v17158_v62 = vld [vmem:[#allocation61_spill] sm:$0xff]  ;;  %v17166_v7 = vld [vmem:[#allocation195_spill] sm:$0xff] }
 0x310   : > { %17151 = vst [vmem:[#allocation179_spill] sm:$0xff] %v15180_v59  ;;  %17157 = vst [vmem:[#allocation192_spill] sm:$0xff] %v15195_v52  ;;  %v17160_v40 = vmax.f32 %v17158_v62, %v17159_v43  ;;  %v17164_v59 = vld [vmem:[#allocation193_spill] sm:$0xff]  ;;  %v15212_v18 = vsel %vm9002_vm3, %v17166_v7, -inf  ;;  %v17170_v52 = vld [vmem:[#allocation199_spill] sm:$0xff] }
 0x311   : > { %17163 = vst [vmem:[#allocation187_spill] sm:$0xff] %v15204_v45  ;;  %v15208_v55 = vsel %vm9002_vm3, %v17164_v59, -inf  ;;  %17167 = vst [vmem:[#allocation61_spill] sm:$0xff] %v15212_v18  ;;  %v17168_v19 = vld [vmem:[#allocation197_spill] sm:$0xff]  ;;  %v15220_v62 = vsel %vm9002_vm3, %v17170_v52, -inf  ;;  %v17178_v18 = vld [vmem:[#allocation207_spill] sm:$0xff] }
 0x312   : > { %v15200_v1 = vmax.f32 %v17160_v40, %v9801_v34  ;;  %17165 = vst [vmem:[#allocation189_spill] sm:$0xff] %v15208_v55  ;;  %v15216_v36 = vsel %vm9002_vm3, %v17168_v19, -inf  ;;  %17171 = vst [vmem:[#allocation191_spill] sm:$0xff] %v15220_v62  ;;  %v17172_v34 = vld [vmem:[#allocation201_spill] sm:$0xff]  ;;  %v17174_v40 = vld [vmem:[#allocation203_spill] sm:$0xff]  ;;  %v15236_v19 = vsel %vm9002_vm3, %v17178_v18, -inf }
 0x313   : > { %17169 = vst [vmem:[#allocation194_spill] sm:$0xff] %v15216_v36  ;;  %v15224_v43 = vsel %vm9002_vm3, %v17172_v34, -inf  ;;  %v15228_v59 = vsel %vm9002_vm3, %v17174_v40, -inf  ;;  %v17176_v26 = vld [vmem:[#allocation205_spill] sm:$0xff]  ;;  %17179 = vst [vmem:[#allocation199_spill] sm:$0xff] %v15236_v19  ;;  %v17182_v62 = vld [vmem:[#allocation211_spill] sm:$0xff] }
 0x314   : > { %17161 = vst [vmem:[#allocation185_spill] sm:$0xff] %v15200_v1  ;;  %17173 = vst [vmem:[#allocation193_spill] sm:$0xff] %v15224_v43  ;;  %v15232_v7 = vsel %vm9002_vm3, %v17176_v26, -inf  ;;  %v17180_v36 = vld [vmem:[#allocation209_spill] sm:$0xff]  ;;  %v15244_v34 = vsel %vm9002_vm3, %v17182_v62, -inf  ;;  %v17184_v43 = vld [vmem:[#allocation212_spill] sm:$0xff] }
 0x315   : > { %17175 = vst [vmem:[#allocation195_spill] sm:$0xff] %v15228_v59  ;;  %17177 = vst [vmem:[#allocation197_spill] sm:$0xff] %v15232_v7  ;;  %v15240_v52 = vsel %vm9002_vm3, %v17180_v36, -inf  ;;  %v15248_v40 = vsel %vm9002_vm3, %v17184_v43, -inf  ;;  %v11594_v59 = vpop.f32.mrb[184].mxu0  ;;  %v15252_v26 = vsel %vm9002_vm3, %v14260_v17, -inf }
 0x316   : > { %17181 = vst [vmem:[#allocation201_spill] sm:$0xff] %v15240_v52  ;;  %17183 = vst [vmem:[#allocation203_spill] sm:$0xff] %v15244_v34  ;;  %v15256_v18 = vsel %vm9002_vm3, %v14270_v41, -inf  ;;  %v15260_v36 = vsel %vm9002_vm3, %v14279_v47, -inf  ;;  %v9876_v62 = vsel %vm9002_vm3, %v11594_v59, -inf  ;;  %v7691_v34 = vpop.f32.mrb[185].mxu0 }
 0x317   : > { %v15263_v52 = vpop.f32.mrb[184].mxu1  ;;  %v15267_v43 = vsel %vm9002_vm3, %v14292_v35, -inf  ;;  %v15271_v17 = vsel %vm9002_vm3, %v14300_v33, -inf  ;;  %v17187_v19 = vld [vmem:[#allocation64_spill] sm:$0xff]  ;;  %v9846_v47 = vsel %vm9002_vm3, %v7691_v34, -inf  ;;  %v11595_v45 = vpop.f32.mrb[186].mxu0 }
 0x318   : > { %17185 = vst [vmem:[#allocation205_spill] sm:$0xff] %v15267_v43  ;;  %17186 = vst [vmem:[#allocation207_spill] sm:$0xff] %v15271_v17  ;;  %v17188_v41 = vld [vmem:[#allocation196_spill] sm:$0xff]  ;;  %v15279_v59 = vpop.f32.mrb[185].mxu1  ;;  %v15283_v1 = vsel %vm9002_vm3, %v14310_v21, -inf  ;;  %v15287_v35 = vsel %vm9002_vm3, %v14319_v30, -inf }
 0x319   : > { %v17189_v7 = vmax.f32 %v17187_v19, %v17188_v41  ;;  %17191 = vst [vmem:[#allocation211_spill] sm:$0xff] %v15287_v35  ;;  %v17192_v33 = vld [vmem:[#allocation65_spill] sm:$0xff]  ;;  %v7694_v19 = vpop.f32.mrb[187].mxu0  ;;  %v15295_v34 = vpop.f32.mrb[186].mxu1  ;;  %v15303_v21 = vsel %vm9002_vm3, %v14340_v14, -inf  ;;  %v17196_v30 = vld [vmem:[#allocation67_spill] sm:$0xff] }
 0x31a   : > { %v17194_v17 = vmax.f32 %v17192_v33, %v17193_v0  ;;  %v17197_v41 = vld [vmem:[#allocation200_spill] sm:$0xff]  ;;  %v9861_v0 = vsel %vm9002_vm3, %v7694_v19, -inf  ;;  %v15323_v14 = vsel %vm9002_vm3, %v14372_v58, -inf  ;;  %v17201_v33 = vld [vmem:[#allocation202_spill] sm:$0xff]  ;;  %v15332_v19 = vsel %vm9002_vm3, %v14380_v48, -inf }
 0x31b   : > { %v15276_v55 = vmax.f32 %v17189_v7, %v9876_v62  ;;  %v9891_v7 = vsel %vm9002_vm3, %v11595_v45, -inf  ;;  %v15299_v62 = vsel %vm9002_vm3, %v14332_v10, -inf  ;;  %v15315_v45 = vsel %vm9002_vm3, %v14350_v63, -inf }
 0x31c   : > { %v15292_v43 = vmax.f32 %v17194_v17, %v9846_v47  ;;  %v15311_v17 = vpop.f32.mrb[187].mxu1  ;;  %v15319_v10 = vsel %vm9002_vm3, %v14359_v57, -inf  ;;  %v17200_v47 = vld [vmem:[#allocation69_spill] sm:$0xff]  ;;  %v15336_v63 = vsel %vm9002_vm3, %v14390_v61, -inf  ;;  %v15340_v57 = vsel %vm9002_vm3, %v14399_v23, -inf }
 0x31d   : > { %17190 = vst [vmem:[#allocation209_spill] sm:$0xff] %v15276_v55  ;;  %v17198_v55 = vmax.f32 %v17196_v30, %v17197_v41  ;;  %v15344_v58 = vsel %vm9002_vm3, %v14412_v51, -inf  ;;  %v15348_v30 = vsel %vm9002_vm3, %v14420_v53, -inf  ;;  %v15352_v48 = vsel %vm9002_vm3, %v14429_v4, -inf  ;;  %v11598_v41 = vpop.f32.mrb[188].mxu0 }
 0x31e   : > { %17195 = vst [vmem:[#allocation212_spill] sm:$0xff] %v15292_v43  ;;  %v15356_v61 = vsel %vm9002_vm3, %v14437_v9, -inf  ;;  %v15360_v23 = vsel %vm9002_vm3, %v14447_v28, -inf  ;;  %v15364_v51 = vsel %vm9002_vm3, %v14455_v60, -inf  ;;  %v15368_v53 = vsel %vm9002_vm3, %v14463_v20, -inf }
 0x31f   : > { %v15308_v35 = vmax.f32 %v17198_v55, %v9891_v7  ;;  %v17202_v55 = vmax.f32 %v17200_v47, %v17201_v33  ;;  %v15372_v4 = vsel %vm9002_vm3, %v14471_v13, -inf  ;;  %v15376_v9 = vsel %vm9002_vm3, %v14479_v15, -inf  ;;  %v15391_v47 = vpop.f32.mrb[188].mxu1  ;;  %v17207_v33 = vld [vmem:[#allocation72_spill] sm:$0xff] }
 0x320   : > { %v15380_v28 = vsel %vm9002_vm3, %v14487_v37, -inf  ;;  %v15384_v60 = vsel %vm9002_vm3, %v14495_v32, -inf  ;;  %v15388_v20 = vsel %vm9002_vm3, %v14503_v5, -inf  ;;  %v9936_v13 = vsel %vm9002_vm3, %v11598_v41, -inf  ;;  %v17208_v32 = vld [vmem:[#allocation204_spill] sm:$0xff]  ;;  %v8731_v41 = vpop.f32.mrb[189].mxu1 }
 0x321   : > { %17199 = vst [vmem:[#allocation64_spill] sm:$0xff] %v15308_v35  ;;  %v15328_v7 = vmax.f32 %v17202_v55, %v9861_v0  ;;  %17204 = vst [vmem:[#allocation65_spill] sm:$0xff] %v15388_v20  ;;  %v7707_v0 = vpop.f32.mrb[189].mxu0  ;;  %v15395_v15 = vsel %vm9002_vm3, %v14511_v27, -inf  ;;  %v15399_v37 = vsel %vm9002_vm3, %v14519_v25, -inf  ;;  %v17209_v55 = vmax.f32 %v17207_v33, %v17208_v32  ;;  %v17213_v25 = vld [vmem:[#allocation206_spill] sm:$0xff] }
 0x322   : > { %17205 = vst [vmem:[#allocation198_spill] sm:$0xff] %v15395_v15  ;;  %17206 = vst [vmem:[#allocation67_spill] sm:$0xff] %v15399_v37  ;;  %v9906_v5 = vsel %vm9002_vm3, %v7707_v0, -inf  ;;  %v11599_v35 = vpop.f32.mrb[190].mxu0  ;;  %v15409_v43 = vsel %vm9002_vm3, %v14527_v44, -inf  ;;  %v15413_v27 = vsel %vm9002_vm3, %v14535_v3, -inf }
 0x323   : > { %17203 = vst [vmem:[#allocation196_spill] sm:$0xff] %v15328_v7  ;;  %v15404_v7 = vmax.f32 %v17209_v55, %v9936_v13  ;;  %17211 = vst [vmem:[#allocation69_spill] sm:$0xff] %v15413_v27  ;;  %v17212_v15 = vld [vmem:[#allocation73_spill] sm:$0xff]  ;;  %v9951_v13 = vsel %vm9002_vm3, %v11599_v35, -inf  ;;  %v7710_v33 = vpop.f32.mrb[191].mxu0  ;;  %v15421_v32 = vpop.f32.mrb[190].mxu1 }
 0x324   : > { %v17214_v37 = vmax.f32 %v17212_v15, %v17213_v25  ;;  %17216 = vst [vmem:[#allocation72_spill] sm:$0xff] %v15421_v32  ;;  %v15425_v0 = vsel %vm9002_vm3, %v14543_v11, -inf  ;;  %v15429_v44 = vsel %vm9002_vm3, %v14551_v39, -inf  ;;  %v17217_v3 = vld [vmem:[#allocation75_spill] sm:$0xff]  ;;  %v17218_v55 = vld [vmem:[#allocation208_spill] sm:$0xff]  ;;  %v9921_v15 = vsel %vm9002_vm3, %v7710_v33, -inf }
 0x325   : > { %17210 = vst [vmem:[#allocation200_spill] sm:$0xff] %v15404_v7  ;;  %v17219_v7 = vmax.f32 %v17217_v3, %v17218_v55  ;;  %v15441_v35 = vsel %vm9002_vm3, %v14559_v2, -inf  ;;  %v15445_v11 = vsel %vm9002_vm3, %v14567_v50, -inf  ;;  %v15449_v39 = vsel %vm9002_vm3, %v14623_v38, -inf  ;;  %v17230_v55 = vld [vmem:[#allocation116_spill] sm:$0xff] }
 0x326   : > { %v15418_v20 = vmax.f32 %v17214_v37, %v9906_v5  ;;  %v15437_v37 = vpop.f32.mrb[191].mxu1  ;;  %v17222_v5 = vld [vmem:[#allocation77_spill] sm:$0xff]  ;;  %v15458_v33 = vsel %vm9002_vm3, %v14639_v49, -inf  ;;  %v15462_v2 = vsel %vm9002_vm3, %v14655_v42, -inf  ;;  %v15466_v50 = vsel %vm9002_vm3, %v14671_v31, -inf  ;;  %v17238_v32 = vld [vmem:[#allocation164_spill] sm:$0xff] }
 0x327   : > { %v15434_v27 = vmax.f32 %v17219_v7, %v9951_v13  ;;  %17221 = vst [vmem:[#allocation73_spill] sm:$0xff] %v15437_v37  ;;  %v17223_v7 = vld [vmem:[#allocation210_spill] sm:$0xff]  ;;  %v15470_v38 = vsel %vm9002_vm3, %v14751_v54, -inf  ;;  %v15474_v3 = vsel %vm9002_vm3, %v14767_v56, -inf  ;;  %v15478_v49 = vsel %vm9002_vm3, %v14783_v12, -inf  ;;  %v11858_v37 = vpop.f32.mrb[192].mxu1 }
 0x328   : > { %17215 = vst [vmem:[#allocation202_spill] sm:$0xff] %v15418_v20  ;;  %v17224_v25 = vmax.f32 %v17222_v5, %v17223_v7  ;;  %v15482_v42 = vsel %vm9002_vm3, %v14799_v46, -inf  ;;  %v15486_v31 = vsel %vm9002_vm3, %v14879_v16, -inf  ;;  %v15490_v54 = vsel %vm9002_vm3, %v14895_v6, -inf  ;;  %v17232_v16 = vld [vmem:[#allocation177_spill] sm:$0xff]  ;;  %v17234_v5 = vld [vmem:[#allocation180_spill] sm:$0xff] }
 0x329   : > { %17220 = vst [vmem:[#allocation204_spill] sm:$0xff] %v15434_v27  ;;  %17226 = vst [vmem:[#allocation75_spill] sm:$0xff] %v15486_v31  ;;  %v15494_v56 = vsel %vm9002_vm3, %v14911_v24, -inf  ;;  %v15498_v12 = vsel %vm9002_vm3, %v14927_v22, -inf  ;;  %v15502_v46 = vsel %vm9002_vm3, %v17230_v55, -inf  ;;  %v15510_v6 = vsel %vm9002_vm3, %v17232_v16, -inf }
 0x32a   : > { %v15454_v13 = vmax.f32 %v17224_v25, %v9921_v15  ;;  %17227 = vst [vmem:[#allocation208_spill] sm:$0xff] %v15490_v54  ;;  %17228 = vst [vmem:[#allocation77_spill] sm:$0xff] %v15494_v56  ;;  %v11602_v15 = vpop.f32.mrb[192].mxu0  ;;  %v15514_v24 = vsel %vm9002_vm3, %v17234_v5, -inf  ;;  %v17236_v7 = vld [vmem:[#allocation183_spill] sm:$0xff]  ;;  %v17240_v27 = vld [vmem:[#allocation56_spill] sm:$0xff] }
 0x32b   : > { %17229 = vst [vmem:[#allocation210_spill] sm:$0xff] %v15498_v12  ;;  %17231 = vst [vmem:[#allocation116_spill] sm:$0xff] %v15502_v46  ;;  %v15518_v22 = vsel %vm9002_vm3, %v17236_v7, -inf  ;;  %v9038_v25 = vsel %vm9002_vm3, %v11602_v15, -inf  ;;  %v7723_v55 = vpop.f32.mrb[193].mxu0  ;;  %v15527_v16 = vsel %vm9002_vm3, %v17240_v27, -inf }
 0x32c   : > { %17225 = vst [vmem:[#allocation206_spill] sm:$0xff] %v15454_v13  ;;  %17233 = vst [vmem:[#allocation177_spill] sm:$0xff] %v15510_v6  ;;  %v15523_v13 = vsel %vm9002_vm3, %v17238_v32, -inf  ;;  %v17242_v20 = vld [vmem:[#allocation80_spill] sm:$0xff]  ;;  %v11603_v6 = vpop.f32.mrb[194].mxu0  ;;  %v8747_v7 = vpop.f32.mrb[193].mxu1 }
 0x32d   : > { %17235 = vst [vmem:[#allocation180_spill] sm:$0xff] %v15514_v24  ;;  %17237 = vst [vmem:[#allocation183_spill] sm:$0xff] %v15518_v22  ;;  %v9039_v5 = vmax.f32 %v17242_v20, %v9038_v25  ;;  %v9008_v24 = vsel %vm9002_vm3, %v7723_v55, -inf  ;;  %v15533_v15 = vsel %vm9002_vm3, %v15167_v29, -inf  ;;  %v15537_v22 = vsel %vm9002_vm3, %v15183_v8, -inf  ;;  %v17245_v32 = vld [vmem:[#allocation81_spill] sm:$0xff] }
 0x32e   : > { %17239 = vst [vmem:[#allocation164_spill] sm:$0xff] %v15523_v13  ;;  %17241 = vst [vmem:[#allocation56_spill] sm:$0xff] %v15527_v16  ;;  %v9009_v13 = vmax.f32 %v17245_v32, %v9008_v24  ;;  %v9053_v46 = vsel %vm9002_vm3, %v11603_v6, -inf  ;;  %v7726_v27 = vpop.f32.mrb[195].mxu0  ;;  %v11859_v16 = vpop.f32.mrb[194].mxu1  ;;  %v15543_v20 = vsel %vm9002_vm3, %v15263_v52, -inf }
 0x32f   : > { %17243 = vst [vmem:[#allocation80_spill] sm:$0xff] %v15533_v15  ;;  %17244 = vst [vmem:[#allocation214_spill] sm:$0xff] %v15537_v22  ;;  %v17247_v25 = vld [vmem:[#allocation150_spill] sm:$0xff]  ;;  %v17248_v12 = vld [vmem:[#allocation213_spill] sm:$0xff]  ;;  %v9023_v29 = vsel %vm9002_vm3, %v7726_v27, -inf  ;;  %v8750_v8 = vpop.f32.mrb[195].mxu1 }
 0x330   : > { %17246 = vst [vmem:[#allocation81_spill] sm:$0xff] %v15543_v20  ;;  %v9041_v55 = vmax.f32 %v9039_v5, %v17247_v25  ;;  %v9054_v56 = vmax.f32 %v17248_v12, %v9053_v46  ;;  %v15551_v24 = vsel %vm9002_vm3, %v15279_v59, -inf  ;;  %v15555_v6 = vsel %vm9002_vm3, %v15295_v34, -inf  ;;  %v17251_v52 = vld [vmem:[#allocation3_spill] sm:$0xff]  ;;  %v17252_v20 = vld [vmem:[#allocation85_spill] sm:$0xff]  ;;  %v17255_v27 = vld [vmem:[#allocation4_spill] sm:$0xff] }
 0x331   : > { %17249 = vst [vmem:[#allocation150_spill] sm:$0xff] %v15551_v24  ;;  %17250 = vst [vmem:[#allocation213_spill] sm:$0xff] %v15555_v6  ;;  %v9011_v32 = vmax.f32 %v9009_v13, %v17251_v52  ;;  %v9024_v5 = vmax.f32 %v17252_v20, %v9023_v29  ;;  %v15561_v12 = vsel %vm9002_vm3, %v15311_v17, -inf  ;;  %v15565_v46 = vsel %vm9002_vm3, %v15391_v47, -inf  ;;  %v17256_v59 = vld [vmem:[#allocation79_spill] sm:$0xff]  ;;  %v17258_v34 = vld [vmem:[#allocation5_spill] sm:$0xff] }
 0x332   : > { %17253 = vst [vmem:[#allocation3_spill] sm:$0xff] %v15561_v12  ;;  %17254 = vst [vmem:[#allocation85_spill] sm:$0xff] %v15565_v46  ;;  %v9056_v25 = vmax.f32 %v9054_v56, %v17255_v27  ;;  %v9043_v24 = vmax.f32 %v9041_v55, %v17256_v59  ;;  %v15570_v22 = vsel %vm9002_vm3, %v8731_v41, -inf  ;;  %v9046_v13 = vsel %vm9002_vm3, %v11858_v37, -inf  ;;  %v17259_v20 = vld [vmem:[#allocation82_spill] sm:$0xff]  ;;  %v17260_v56 = vld [vmem:[#allocation172_spill] sm:$0xff] }
 0x333   : > { %17257 = vst [vmem:[#allocation4_spill] sm:$0xff] %v15570_v22  ;;  %v9026_v6 = vmax.f32 %v9024_v5, %v17258_v34  ;;  %v9013_v29 = vmax.f32 %v9011_v32, %v17259_v20  ;;  %v9016_v47 = vsel %vm9002_vm3, %v8747_v7, -inf  ;;  %v9061_v55 = vsel %vm9002_vm3, %v11859_v16, -inf  ;;  %v11606_v41 = vpop.f32.mrb[196].mxu0  ;;  %v15587_v5 = vld [vmem:[%s16426_s2] ss:$0 sm:$0xff] }
 0x334   : > { %v9045_v17 = vmax.f32 %v9043_v24, %v15248_v40  ;;  %v9058_v52 = vmax.f32 %v9056_v25, %v17260_v56  ;;  %v9098_v32 = vsel %vm9002_vm3, %v11606_v41, -inf  ;;  %v17261_v27 = vld [vmem:[#allocation84_spill] sm:$0xff]  ;;  %v9031_v40 = vsel %vm9002_vm3, %v8750_v8, -inf  ;;  %v7739_v7 = vpop.f32.mrb[197].mxu0  ;;  %v11862_v24 = vpop.f32.mrb[196].mxu1  ;;  %v17262_v34 = vld [vmem:[#allocation86_spill] sm:$0xff] }
 0x335   : > { %v9015_v37 = vmax.f32 %v9013_v29, %v15252_v26  ;;  %v9028_v59 = vmax.f32 %v9026_v6, %v17261_v27  ;;  %v9099_v20 = vmax.f32 %v17262_v34, %v9098_v32  ;;  %v9068_v56 = vsel %vm9002_vm3, %v7739_v7, -inf  ;;  %v11607_v22 = vpop.f32.mrb[198].mxu0  ;;  %v8763_v46 = vpop.f32.mrb[197].mxu1  ;;  %v17263_v29 = vld [vmem:[#allocation88_spill] sm:$0xff]  ;;  %v17265_v32 = vld [vmem:[#allocation89_spill] sm:$0xff] }
 0x336   : > { %v9047_v25 = vmax.f32 %v9045_v17, %v9046_v13  ;;  %v9060_v16 = vmax.f32 %v9058_v52, %v15256_v18  ;;  %v9069_v41 = vmax.f32 %v17263_v29, %v9068_v56  ;;  %v9113_v6 = vsel %vm9002_vm3, %v11607_v22, -inf  ;;  %v7742_v27 = vpop.f32.mrb[199].mxu0  ;;  %v11863_v8 = vpop.f32.mrb[198].mxu1  ;;  %v17264_v18 = vld [vmem:[#allocation6_spill] sm:$0xff]  ;;  %v17267_v29 = vld [vmem:[#allocation8_spill] sm:$0xff]  ;;  %v17268_v31 = vld [vmem:[#allocation93_spill] sm:$0xff] }
 0x337   : > { %v9017_v12 = vmax.f32 %v9015_v37, %v9016_v47  ;;  %v9030_v26 = vmax.f32 %v9028_v59, %v15260_v36  ;;  %v9101_v52 = vmax.f32 %v9099_v20, %v17264_v18  ;;  %v9114_v34 = vmax.f32 %v17265_v32, %v9113_v6  ;;  %v8766_v7 = vpop.f32.mrb[199].mxu1  ;;  %v17266_v37 = vld [vmem:[#allocation7_spill] sm:$0xff]  ;;  %v17270_v6 = vld [vmem:[#allocation9_spill] sm:$0xff] }
 0x338   : > { %v9972_v13 = vadd.f32 %v15587_v5, %v9047_v25  ;;  %v9062_v17 = vmax.f32 %v9060_v16, %v9061_v55  ;;  %v9071_v36 = vmax.f32 %v9069_v41, %v17266_v37  ;;  %v9083_v59 = vsel %vm9002_vm3, %v7742_v27, -inf }
 0x339   : > { %v9970_v15 = vadd.f32 %v15587_v5, %v9017_v12  ;;  %v9032_v47 = vmax.f32 %v9030_v26, %v9031_v40  ;;  %v9116_v54 = vmax.f32 %v9114_v34, %v17267_v29  ;;  %v9084_v25 = vmax.f32 %v17268_v31, %v9083_v59  ;;  %v17269_v40 = vld [vmem:[#allocation87_spill] sm:$0xff]  ;;  %v17272_v34 = vld [vmem:[#allocation205_spill] sm:$0xff] }
 0x33a   : > { %v10036_v56 = vmax.f32 %v9972_v13, 0.0  ;;  %v9973_v22 = vadd.f32 %v15587_v5, %v9062_v17  ;;  %v9103_v16 = vmax.f32 %v9101_v52, %v17269_v40  ;;  %v9106_v20 = vsel %vm9002_vm3, %v11862_v24, -inf  ;;  %v17271_v13 = vld [vmem:[#allocation174_spill] sm:$0xff]  ;;  %v11610_v17 = vpop.f32.mrb[200].mxu0  ;;  %v17273_v52 = vld [vmem:[#allocation207_spill] sm:$0xff] }
 0x33b   : > { %v10034_v55 = vmax.f32 %v9970_v15, 0.0  ;;  %v9971_v12 = vadd.f32 %v15587_v5, %v9032_v47  ;;  %v9086_v27 = vmax.f32 %v9084_v25, %v17270_v6  ;;  %v9073_v31 = vmax.f32 %v9071_v36, %v17271_v13  ;;  %v7755_v59 = vpop.f32.mrb[201].mxu0  ;;  %v11866_v47 = vpop.f32.mrb[200].mxu1 }
 0x33c   : > { %v11084_v26 = vpack.c.bf16 %v10036_v56, %v10036_v56  ;;  %v10037_v41 = vmax.f32 %v9973_v22, 0.0  ;;  %v9105_v37 = vmax.f32 %v9103_v16, %v17272_v34  ;;  %v9076_v15 = vsel %vm9002_vm3, %v8763_v46, -inf  ;;  %v17274_v22 = vld [vmem:[#allocation175_spill] sm:$0xff]  ;;  %v11611_v36 = vpop.f32.mrb[202].mxu0 }
 0x33d   : > { %v11082_v18 = vpack.c.bf16 %v10034_v55, %v10034_v55  ;;  %v10035_v32 = vmax.f32 %v9971_v12, 0.0  ;;  %v9075_v56 = vmax.f32 %v9073_v31, %v17273_v52  ;;  %v9118_v29 = vmax.f32 %v9116_v54, %v17274_v22  ;;  %v8779_v55 = vpop.f32.mrb[201].mxu1  ;;  %v17275_v16 = vld [vmem:[#allocation91_spill] sm:$0xff]  ;;  %v7758_v13 = vpop.f32.mrb[203].mxu0  ;;  %v17276_v31 = vld [vmem:[#allocation94_spill] sm:$0xff] }
 0x33e   : > { %10357 = vst.msk [vmem:[%s15612_s14 + $0x8] sm:$0xf] %vm10354_vm4, %v11084_v26  ;;  %v11085_v24 = vpack.c.bf16 %v10037_v41, %v10037_v41  ;;  %v9121_v25 = vsel %vm9002_vm3, %v11863_v8, -inf  ;;  %v9107_v40 = vmax.f32 %v9105_v37, %v9106_v20  ;;  %v9158_v46 = vsel %vm9002_vm3, %v11610_v17, -inf  ;;  %v11867_v26 = vpop.f32.mrb[202].mxu1 }
 0x33f   : > { %10355 = vst.msk [vmem:[%s15612_s14] sm:$0xf] %vm10354_vm4, %v11082_v18  ;;  %v11083_v12 = vpack.c.bf16 %v10035_v32, %v10035_v32  ;;  %v9088_v6 = vmax.f32 %v9086_v27, %v17275_v16  ;;  %v9077_v41 = vmax.f32 %v9075_v56, %v9076_v15  ;;  %v9120_v54 = vmax.f32 %v9118_v29, %v15283_v1  ;;  %v8782_v52 = vpop.f32.mrb[203].mxu1  ;;  %v17277_v18 = vld [vmem:[#allocation211_spill] sm:$0xff]  ;;  %v17279_v56 = vld [vmem:[#allocation96_spill] sm:$0xff] }
 0x340   : > { %10358 = vst.msk [vmem:[%s15612_s14 + $0xc] sm:$0xf] %vm10354_vm4, %v11085_v24  ;;  %v9159_v8 = vmax.f32 %v17276_v31, %v9158_v46  ;;  %v9091_v34 = vsel %vm9002_vm3, %v8766_v7, -inf  ;;  %v9976_v20 = vadd.f32 %v15587_v5, %v9107_v40  ;;  %v9128_v27 = vsel %vm9002_vm3, %v7755_v59, -inf  ;;  %v17278_v24 = vld [vmem:[#allocation10_spill] sm:$0xff]  ;;  %v17280_v46 = vld [vmem:[#allocation97_spill] sm:$0xff] }
 0x341   : > { %10356 = vst.msk [vmem:[%s15612_s14 + $0x4] sm:$0xf] %vm10354_vm4, %v11083_v12  ;;  %v9090_v17 = vmax.f32 %v9088_v6, %v17277_v18  ;;  %v9173_v32 = vsel %vm9002_vm3, %v11611_v36, -inf  ;;  %v9974_v37 = vadd.f32 %v15587_v5, %v9077_v41  ;;  %v9122_v15 = vmax.f32 %v9120_v54, %v9121_v25  ;;  %v17281_v31 = vld [vmem:[#allocation11_spill] sm:$0xff]  ;;  %v17282_v36 = vld [vmem:[#allocation101_spill] sm:$0xff]  ;;  %v11614_v41 = vpop.f32.mrb[204].mxu0 }
 0x342   : > { %v9161_v1 = vmax.f32 %v9159_v8, %v17278_v24  ;;  %v9129_v22 = vmax.f32 %v17279_v56, %v9128_v27  ;;  %v10040_v29 = vmax.f32 %v9976_v20, 0.0  ;;  %v9174_v16 = vmax.f32 %v17280_v46, %v9173_v32  ;;  %v17283_v8 = vld [vmem:[#allocation12_spill] sm:$0xff]  ;;  %v11870_v32 = vpop.f32.mrb[204].mxu1  ;;  %v17285_v24 = vld [vmem:[#allocation13_spill] sm:$0xff] }
 0x343   : > { %v9092_v7 = vmax.f32 %v9090_v17, %v9091_v34  ;;  %v9143_v12 = vsel %vm9002_vm3, %v7758_v13, -inf  ;;  %v10038_v40 = vmax.f32 %v9974_v37, 0.0  ;;  %v9977_v6 = vadd.f32 %v15587_v5, %v9122_v15  ;;  %v17284_v20 = vld [vmem:[#allocation92_spill] sm:$0xff]  ;;  %v7771_v17 = vpop.f32.mrb[205].mxu0  ;;  %v8795_v46 = vpop.f32.mrb[205].mxu1 }
 0x344   : > { %v9131_v59 = vmax.f32 %v9129_v22, %v17281_v31  ;;  %v9144_v18 = vmax.f32 %v17282_v36, %v9143_v12  ;;  %v11088_v25 = vpack.c.bf16 %v10040_v29, %v10040_v29  ;;  %v9176_v27 = vmax.f32 %v9174_v16, %v17283_v8  ;;  %v11615_v22 = vpop.f32.mrb[206].mxu0  ;;  %v17286_v16 = vld [vmem:[#allocation95_spill] sm:$0xff]  ;;  %v11871_v36 = vpop.f32.mrb[206].mxu1 }
 0x345   : > { %v9975_v54 = vadd.f32 %v15587_v5, %v9092_v7  ;;  %v9163_v34 = vmax.f32 %v9161_v1, %v17284_v20  ;;  %v11086_v13 = vpack.c.bf16 %v10038_v40, %v10038_v40  ;;  %v10041_v37 = vmax.f32 %v9977_v6, 0.0  ;;  %v7774_v31 = vpop.f32.mrb[207].mxu0  ;;  %v17287_v6 = vld [vmem:[#allocation98_spill] sm:$0xff] }
 0x346   : > { %v9146_v15 = vmax.f32 %v9144_v18, %v17285_v24  ;;  %v9166_v56 = vsel %vm9002_vm3, %v11866_v47, -inf  ;;  %10361 = vst.msk [vmem:[%s15612_s14 + $0x18] sm:$0xf] %vm10354_vm4, %v11088_v25  ;;  %v9133_v12 = vmax.f32 %v9131_v59, %v17286_v16  ;;  %v9136_v1 = vsel %vm9002_vm3, %v8779_v55, -inf  ;;  %v17288_v59 = vld [vmem:[#allocation102_spill] sm:$0xff]  ;;  %v17289_v24 = vld [vmem:[#allocation99_spill] sm:$0xff] }
 0x347   : > { %v10039_v29 = vmax.f32 %v9975_v54, 0.0  ;;  %v9165_v7 = vmax.f32 %v9163_v34, %v15299_v62  ;;  %10359 = vst.msk [vmem:[%s15612_s14 + $0x10] sm:$0xf] %vm10354_vm4, %v11086_v13  ;;  %v11089_v40 = vpack.c.bf16 %v10041_v37, %v10041_v37  ;;  %v9178_v47 = vmax.f32 %v9176_v27, %v17287_v6  ;;  %v8798_v54 = vpop.f32.mrb[207].mxu1  ;;  %v17292_v6 = vld [vmem:[#allocation15_spill] sm:$0xff] }
 0x348   : > { %v9181_v18 = vsel %vm9002_vm3, %v11867_v26, -inf  ;;  %v9218_v25 = vsel %vm9002_vm3, %v11614_v41, -inf  ;;  %v9135_v62 = vmax.f32 %v9133_v12, %v15303_v21  ;;  %v9148_v13 = vmax.f32 %v9146_v15, %v17289_v24  ;;  %v17291_v21 = vld [vmem:[#allocation104_spill] sm:$0xff] }
 0x349   : > { %v11087_v8 = vpack.c.bf16 %v10039_v29, %v10039_v29  ;;  %v9167_v20 = vmax.f32 %v9165_v7, %v9166_v56  ;;  %v9219_v34 = vmax.f32 %v17288_v59, %v9218_v25  ;;  %10362 = vst.msk [vmem:[%s15612_s14 + $0x1c] sm:$0xf] %vm10354_vm4, %v11089_v40  ;;  %v9180_v55 = vmax.f32 %v9178_v47, %v15315_v45  ;;  %v17290_v56 = vld [vmem:[#allocation14_spill] sm:$0xff]  ;;  %v11618_v40 = vpop.f32.mrb[208].mxu0  ;;  %v17293_v25 = vld [vmem:[#allocation105_spill] sm:$0xff] }
 0x34a   : > { %v9151_v37 = vsel %vm9002_vm3, %v8782_v52, -inf  ;;  %v9188_v27 = vsel %vm9002_vm3, %v7771_v17, -inf  ;;  %v9137_v41 = vmax.f32 %v9135_v62, %v9136_v1  ;;  %v9150_v12 = vmax.f32 %v9148_v13, %v15319_v10  ;;  %v7787_v1 = vpop.f32.mrb[209].mxu0  ;;  %v17294_v59 = vld [vmem:[#allocation109_spill] sm:$0xff] }
 0x34b   : > { %10360 = vst.msk [vmem:[%s15612_s14 + $0x14] sm:$0xf] %vm10354_vm4, %v11087_v8  ;;  %v9980_v26 = vadd.f32 %v15587_v5, %v9167_v20  ;;  %v9221_v29 = vmax.f32 %v9219_v34, %v17290_v56  ;;  %v9189_v7 = vmax.f32 %v17291_v21, %v9188_v27  ;;  %v9182_v16 = vmax.f32 %v9180_v55, %v9181_v18  ;;  %v15683_v20 = vpop.f32.mrb[208].mxu1  ;;  %v17296_v27 = vld [vmem:[#allocation152_spill] sm:$0xff] }
 0x34c   : > { %v9233_v45 = vsel %vm9002_vm3, %v11615_v22, -inf  ;;  %v9203_v15 = vsel %vm9002_vm3, %v7774_v31, -inf  ;;  %v9978_v17 = vadd.f32 %v15587_v5, %v9137_v41  ;;  %v9152_v18 = vmax.f32 %v9150_v12, %v9151_v37  ;;  %v17295_v22 = vld [vmem:[#allocation100_spill] sm:$0xff]  ;;  %v11619_v31 = vpop.f32.mrb[210].mxu0  ;;  %v15688_v55 = vpop.f32.mrb[209].mxu1 }
 0x34d   : > { %v10044_v52 = vmax.f32 %v9980_v26, 0.0  ;;  %v9191_v47 = vmax.f32 %v9189_v7, %v17292_v6  ;;  %v9234_v8 = vmax.f32 %v17293_v25, %v9233_v45  ;;  %v9981_v62 = vadd.f32 %v15587_v5, %v9182_v16  ;;  %v7790_v56 = vpop.f32.mrb[211].mxu0  ;;  %v15692_v21 = vpop.f32.mrb[210].mxu1  ;;  %v17297_v16 = vld [vmem:[#allocation153_spill] sm:$0xff]  ;;  %v17299_v6 = vld [vmem:[#allocation106_spill] sm:$0xff] }
 0x34e   : > { %v9204_v10 = vmax.f32 %v17294_v59, %v9203_v15  ;;  %v9223_v34 = vmax.f32 %v9221_v29, %v17295_v22  ;;  %v10042_v13 = vmax.f32 %v9978_v17, 0.0  ;;  %v9226_v41 = vsel %vm9002_vm3, %v11870_v32, -inf  ;;  %v15697_v45 = vpop.f32.mrb[211].mxu1 }
 0x34f   : > { %v11092_v24 = vpack.c.bf16 %v10044_v52, %v10044_v52  ;;  %v9236_v26 = vmax.f32 %v9234_v8, %v17296_v27  ;;  %v10045_v7 = vmax.f32 %v9981_v62, 0.0  ;;  %v9979_v37 = vadd.f32 %v15587_v5, %v9152_v18  ;;  %v17298_v52 = vld [vmem:[#allocation103_spill] sm:$0xff] }
 0x350   : > { %v9206_v12 = vmax.f32 %v9204_v10, %v17297_v16  ;;  %v9225_v29 = vmax.f32 %v9223_v34, %v15323_v14  ;;  %v11090_v15 = vpack.c.bf16 %v10042_v13, %v10042_v13  ;;  %v9193_v17 = vmax.f32 %v9191_v47, %v17298_v52  ;;  %v17300_v34 = vld [vmem:[#allocation107_spill] sm:$0xff]  ;;  %v17301_v13 = vld [vmem:[#allocation110_spill] sm:$0xff] }
 0x351   : > { %10365 = vst.msk [vmem:[%s15612_s14 + $0x28] sm:$0xf] %vm10354_vm4, %v11092_v24  ;;  %v9196_v32 = vsel %vm9002_vm3, %v8795_v46, -inf  ;;  %v9238_v25 = vmax.f32 %v9236_v26, %v17299_v6  ;;  %v11093_v8 = vpack.c.bf16 %v10045_v7, %v10045_v7  ;;  %v10043_v62 = vmax.f32 %v9979_v37, 0.0  ;;  %v11622_v26 = vpop.f32.mrb[212].mxu0 }
 0x352   : > { %v9227_v59 = vmax.f32 %v9225_v29, %v9226_v41  ;;  %v9241_v18 = vsel %vm9002_vm3, %v11871_v36, -inf  ;;  %10363 = vst.msk [vmem:[%s15612_s14 + $0x20] sm:$0xf] %vm10354_vm4, %v11090_v15  ;;  %v9195_v14 = vmax.f32 %v9193_v17, %v15332_v19  ;;  %v9278_v22 = vsel %vm9002_vm3, %v11618_v40, -inf  ;;  %v7803_v37 = vpop.f32.mrb[213].mxu0  ;;  %v15718_v40 = vpop.f32.mrb[212].mxu1 }
 0x353   : > { %v9240_v10 = vmax.f32 %v9238_v25, %v15336_v63  ;;  %v9208_v47 = vmax.f32 %v9206_v12, %v17300_v34  ;;  %10366 = vst.msk [vmem:[%s15612_s14 + $0x2c] sm:$0xf] %vm10354_vm4, %v11093_v8  ;;  %v11091_v46 = vpack.c.bf16 %v10043_v62, %v10043_v62  ;;  %v9279_v27 = vmax.f32 %v17301_v13, %v9278_v22  ;;  %v17302_v12 = vld [vmem:[#allocation18_spill] sm:$0xff]  ;;  %v17303_v15 = vld [vmem:[#allocation112_spill] sm:$0xff]  ;;  %v15725_v6 = vpop.f32.mrb[213].mxu1  ;;  %v17304_v25 = vld [vmem:[#allocation113_spill] sm:$0xff] }
 0x354   : > { %v9984_v24 = vadd.f32 %v15587_v5, %v9227_v59  ;;  %v9211_v36 = vsel %vm9002_vm3, %v8798_v54, -inf  ;;  %v9197_v41 = vmax.f32 %v9195_v14, %v9196_v32  ;;  %v9248_v63 = vsel %vm9002_vm3, %v7787_v1, -inf  ;;  %v11623_v54 = vpop.f32.mrb[214].mxu0  ;;  %v15730_v59 = vpop.f32.mrb[214].mxu1  ;;  %v17305_v14 = vld [vmem:[#allocation19_spill] sm:$0xff] }
 0x355   : > { %v9242_v7 = vmax.f32 %v9240_v10, %v9241_v18  ;;  %v9210_v19 = vmax.f32 %v9208_v47, %v15340_v57  ;;  %10364 = vst.msk [vmem:[%s15612_s14 + $0x24] sm:$0xf] %vm10354_vm4, %v11091_v46  ;;  %v9281_v29 = vmax.f32 %v9279_v27, %v17302_v12  ;;  %v9249_v52 = vmax.f32 %v17303_v15, %v9248_v63  ;;  %v7806_v62 = vpop.f32.mrb[215].mxu0  ;;  %v15735_v47 = vpop.f32.mrb[215].mxu1  ;;  %v17307_v27 = vld [vmem:[#allocation21_spill] sm:$0xff]  ;;  %v17309_v63 = vld [vmem:[#allocation111_spill] sm:$0xff] }
 0x356   : > { %v10048_v16 = vmax.f32 %v9984_v24, 0.0  ;;  %v9293_v17 = vsel %vm9002_vm3, %v11619_v31, -inf  ;;  %v9982_v57 = vadd.f32 %v15587_v5, %v9197_v41  ;;  %v9263_v22 = vsel %vm9002_vm3, %v7790_v56, -inf  ;;  %v17306_v31 = vld [vmem:[#allocation108_spill] sm:$0xff]  ;;  %v17308_v41 = vld [vmem:[#allocation117_spill] sm:$0xff] }
 0x357   : > { %v9985_v1 = vadd.f32 %v15587_v5, %v9242_v7  ;;  %v9212_v32 = vmax.f32 %v9210_v19, %v9211_v36  ;;  %v9294_v8 = vmax.f32 %v17304_v25, %v9293_v17  ;;  %v9251_v10 = vmax.f32 %v9249_v52, %v17305_v14  ;;  %v17310_v17 = vld [vmem:[#allocation22_spill] sm:$0xff] }
 0x358   : > { %v11096_v18 = vpack.c.bf16 %v10048_v16, %v10048_v16  ;;  %v9283_v34 = vmax.f32 %v9281_v29, %v17306_v31  ;;  %v10046_v46 = vmax.f32 %v9982_v57, 0.0  ;;  %v9264_v7 = vmax.f32 %v17308_v41, %v9263_v22  ;;  %v17311_v25 = vld [vmem:[#allocation114_spill] sm:$0xff]  ;;  %v15760_v22 = vpop.f32.mrb[216].mxu1 }
 0x359   : > { %v10049_v24 = vmax.f32 %v9985_v1, 0.0  ;;  %v9983_v13 = vadd.f32 %v15587_v5, %v9212_v32  ;;  %v9296_v36 = vmax.f32 %v9294_v8, %v17307_v27  ;;  %v9286_v56 = vsel %vm9002_vm3, %v15683_v20, -inf  ;;  %v15767_v27 = vpop.f32.mrb[217].mxu1 }
 0x35a   : > { %10369 = vst.msk [vmem:[%s15612_s14 + $0x38] sm:$0xf] %vm10354_vm4, %v11096_v18  ;;  %v9285_v19 = vmax.f32 %v9283_v34, %v15344_v58  ;;  %v9253_v16 = vmax.f32 %v9251_v10, %v17309_v63  ;;  %v11094_v12 = vpack.c.bf16 %v10046_v46, %v10046_v46  ;;  %v9256_v52 = vsel %vm9002_vm3, %v15688_v55, -inf  ;;  %v11626_v58 = vpop.f32.mrb[216].mxu0  ;;  %v17312_v46 = vld [vmem:[#allocation118_spill] sm:$0xff] }
 0x35b   : > { %v11097_v29 = vpack.c.bf16 %v10049_v24, %v10049_v24  ;;  %v10047_v15 = vmax.f32 %v9983_v13, 0.0  ;;  %v9266_v57 = vmax.f32 %v9264_v7, %v17310_v17  ;;  %v9298_v8 = vmax.f32 %v9296_v36, %v17311_v25  ;;  %v7819_v10 = vpop.f32.mrb[217].mxu0  ;;  %v17316_v17 = vld [vmem:[#allocation121_spill] sm:$0xff] }
 0x35c   : > { %v9287_v1 = vmax.f32 %v9285_v19, %v9286_v56  ;;  %v9255_v32 = vmax.f32 %v9253_v16, %v15348_v30  ;;  %10367 = vst.msk [vmem:[%s15612_s14 + $0x30] sm:$0xf] %vm10354_vm4, %v11094_v12  ;;  %v9301_v18 = vsel %vm9002_vm3, %v15692_v21, -inf  ;;  %v9338_v14 = vsel %vm9002_vm3, %v11622_v26, -inf  ;;  %v15765_v13 = vpop.f32.mrb[218].mxu0  ;;  %v17313_v21 = vld [vmem:[#allocation115_spill] sm:$0xff] }
 0x35d   : > { %10370 = vst.msk [vmem:[%s15612_s14 + $0x3c] sm:$0xf] %vm10354_vm4, %v11097_v29  ;;  %v11095_v20 = vpack.c.bf16 %v10047_v15, %v10047_v15  ;;  %v9271_v55 = vsel %vm9002_vm3, %v15697_v45, -inf  ;;  %v9300_v34 = vmax.f32 %v9298_v8, %v15352_v48  ;;  %v9339_v24 = vmax.f32 %v17312_v46, %v9338_v14  ;;  %v7822_v7 = vpop.f32.mrb[219].mxu0  ;;  %v15775_v19 = vpop.f32.mrb[218].mxu1  ;;  %v17314_v16 = vld [vmem:[#allocation23_spill] sm:$0xff] }
 0x35e   : > { %v9988_v30 = vadd.f32 %v15587_v5, %v9287_v1  ;;  %v9257_v31 = vmax.f32 %v9255_v32, %v9256_v52  ;;  %v9268_v26 = vmax.f32 %v9266_v57, %v17313_v21  ;;  %v9308_v45 = vsel %vm9002_vm3, %v7803_v37, -inf  ;;  %v15779_v29 = vpop.f32.mrb[219].mxu1  ;;  %v17315_v52 = vld [vmem:[#allocation120_spill] sm:$0xff]  ;;  %v17317_v57 = vld [vmem:[#allocation125_spill] sm:$0xff]  ;;  %v17318_v8 = vld [vmem:[#allocation119_spill] sm:$0xff] }
 0x35f   : > { %10368 = vst.msk [vmem:[%s15612_s14 + $0x34] sm:$0xf] %vm10354_vm4, %v11095_v20  ;;  %v9353_v36 = vsel %vm9002_vm3, %v11623_v54, -inf  ;;  %v9323_v41 = vsel %vm9002_vm3, %v7806_v62, -inf  ;;  %v9302_v63 = vmax.f32 %v9300_v34, %v9301_v18  ;;  %v9341_v12 = vmax.f32 %v9339_v24, %v17314_v16  ;;  %v17319_v18 = vld [vmem:[#allocation158_spill] sm:$0xff]  ;;  %v17321_v46 = vld [vmem:[#allocation25_spill] sm:$0xff] }
 0x360   : > { %v10052_v48 = vmax.f32 %v9988_v30, 0.0  ;;  %v9986_v56 = vadd.f32 %v15587_v5, %v9257_v31  ;;  %v9270_v15 = vmax.f32 %v9268_v26, %v15356_v61  ;;  %v9309_v37 = vmax.f32 %v17315_v52, %v9308_v45  ;;  %v17320_v31 = vld [vmem:[#allocation24_spill] sm:$0xff] }
 0x361   : > { %v9354_v54 = vmax.f32 %v17316_v17, %v9353_v36  ;;  %v9324_v62 = vmax.f32 %v17317_v57, %v9323_v41  ;;  %v9989_v25 = vadd.f32 %v15587_v5, %v9302_v63  ;;  %v9343_v20 = vmax.f32 %v9341_v12, %v17318_v8  ;;  %v15795_v36 = vpop.f32.mrb[220].mxu0  ;;  %v17322_v41 = vld [vmem:[#allocation122_spill] sm:$0xff] }
 0x362   : > { %v11100_v1 = vpack.c.bf16 %v10052_v48, %v10052_v48  ;;  %v10050_v32 = vmax.f32 %v9986_v56, 0.0  ;;  %v9272_v14 = vmax.f32 %v9270_v15, %v9271_v55  ;;  %v9311_v30 = vmax.f32 %v9309_v37, %v17319_v18  ;;  %v17323_v63 = vld [vmem:[#allocation178_spill] sm:$0xff]  ;;  %v15802_v12 = vpop.f32.mrb[221].mxu0  ;;  %v15804_v15 = vpop.f32.mrb[220].mxu1 }
 0x363   : > { %v9356_v34 = vmax.f32 %v9354_v54, %v17320_v31  ;;  %v9326_v61 = vmax.f32 %v9324_v62, %v17321_v46  ;;  %v10053_v21 = vmax.f32 %v9989_v25, 0.0  ;;  %v9345_v26 = vmax.f32 %v9343_v20, %v15360_v23  ;;  %v15811_v17 = vpop.f32.mrb[222].mxu0  ;;  %v15813_v54 = vpop.f32.mrb[221].mxu1 }
 0x364   : > { %10373 = vst.msk [vmem:[%s15612_s14 + $0x48] sm:$0xf] %vm10354_vm4, %v11100_v1  ;;  %v11098_v24 = vpack.c.bf16 %v10050_v32, %v10050_v32  ;;  %v9346_v45 = vsel %vm9002_vm3, %v15718_v40, -inf  ;;  %v9987_v55 = vadd.f32 %v15587_v5, %v9272_v14  ;;  %v9313_v48 = vmax.f32 %v9311_v30, %v17322_v41  ;;  %v17324_v1 = vld [vmem:[#allocation126_spill] sm:$0xff]  ;;  %v15818_v25 = vpop.f32.mrb[223].mxu0  ;;  %v15820_v8 = vpop.f32.mrb[222].mxu1 }
 0x365   : > { %v9316_v56 = vsel %vm9002_vm3, %v15725_v6, -inf  ;;  %v9358_v16 = vmax.f32 %v9356_v34, %v17323_v63  ;;  %v11101_v23 = vpack.c.bf16 %v10053_v21, %v10053_v21  ;;  %v9347_v40 = vmax.f32 %v9345_v26, %v9346_v45  ;;  %v15829_v18 = vpop.f32.mrb[223].mxu1  ;;  %v17326_v34 = vld [vmem:[#allocation26_spill] sm:$0xff]  ;;  %v17327_v26 = vld [vmem:[#allocation128_spill] sm:$0xff] }
 0x366   : > { %10371 = vst.msk [vmem:[%s15612_s14 + $0x40] sm:$0xf] %vm10354_vm4, %v11098_v24  ;;  %v9361_v52 = vsel %vm9002_vm3, %v15730_v59, -inf  ;;  %v9398_v37 = vsel %vm9002_vm3, %v11626_v58, -inf  ;;  %v10051_v6 = vmax.f32 %v9987_v55, 0.0  ;;  %v9315_v57 = vmax.f32 %v9313_v48, %v15364_v51  ;;  %v17325_v58 = vld [vmem:[#allocation124_spill] sm:$0xff] }
 0x367   : > { %v9360_v62 = vmax.f32 %v9358_v16, %v15368_v53  ;;  %v9399_v32 = vmax.f32 %v17324_v1, %v9398_v37  ;;  %10374 = vst.msk [vmem:[%s15612_s14 + $0x4c] sm:$0xf] %vm10354_vm4, %v11101_v23  ;;  %v9992_v59 = vadd.f32 %v15587_v5, %v9347_v40  ;;  %v9328_v20 = vmax.f32 %v9326_v61, %v17325_v58  ;;  %v17328_v55 = vld [vmem:[#allocation129_spill] sm:$0xff]  ;;  %v17329_v16 = vld [vmem:[#allocation27_spill] sm:$0xff] }
 0x368   : > { %v9331_v14 = vsel %vm9002_vm3, %v15735_v47, -inf  ;;  %v9368_v51 = vsel %vm9002_vm3, %v7819_v10, -inf  ;;  %v11099_v53 = vpack.c.bf16 %v10051_v6, %v10051_v6  ;;  %v9317_v30 = vmax.f32 %v9315_v57, %v9316_v56  ;;  %v17330_v23 = vld [vmem:[#allocation133_spill] sm:$0xff]  ;;  %v17331_v6 = vld [vmem:[#allocation28_spill] sm:$0xff] }
 0x369   : > { %v9362_v31 = vmax.f32 %v9360_v62, %v9361_v52  ;;  %v9401_v46 = vmax.f32 %v9399_v32, %v17326_v34  ;;  %v10056_v24 = vmax.f32 %v9992_v59, 0.0  ;;  %v9330_v21 = vmax.f32 %v9328_v20, %v15372_v4  ;;  %v15844_v52 = vpop.f32.mrb[224].mxu0  ;;  %v17332_v62 = vld [vmem:[#allocation181_spill] sm:$0xff]  ;;  %v15850_v59 = vpop.f32.mrb[224].mxu1 }
 0x36a   : > { %v9369_v45 = vmax.f32 %v17327_v26, %v9368_v51  ;;  %v9413_v61 = vsel %vm9002_vm3, %v15765_v13, -inf  ;;  %10372 = vst.msk [vmem:[%s15612_s14 + $0x44] sm:$0xf] %vm10354_vm4, %v11099_v53  ;;  %v9990_v47 = vadd.f32 %v15587_v5, %v9317_v30  ;;  %v9383_v48 = vsel %vm9002_vm3, %v7822_v7, -inf  ;;  %v15848_v32 = vpop.f32.mrb[225].mxu0  ;;  %v17333_v58 = vld [vmem:[#allocation29_spill] sm:$0xff] }
 0x36b   : > { %v9993_v10 = vadd.f32 %v15587_v5, %v9362_v31  ;;  %v9414_v41 = vmax.f32 %v17328_v55, %v9413_v61  ;;  %v11104_v56 = vpack.c.bf16 %v10056_v24, %v10056_v24  ;;  %v9332_v63 = vmax.f32 %v9330_v21, %v9331_v14  ;;  %v17334_v51 = vld [vmem:[#allocation130_spill] sm:$0xff]  ;;  %v15859_v30 = vpop.f32.mrb[226].mxu0  ;;  %v15861_v31 = vpop.f32.mrb[225].mxu1 }
 0x36c   : > { %v9371_v4 = vmax.f32 %v9369_v45, %v17329_v16  ;;  %v9384_v40 = vmax.f32 %v17330_v23, %v9383_v48  ;;  %v10054_v13 = vmax.f32 %v9990_v47, 0.0  ;;  %v9403_v1 = vmax.f32 %v9401_v46, %v17332_v62  ;;  %v15866_v26 = vpop.f32.mrb[227].mxu0  ;;  %v15868_v45 = vpop.f32.mrb[226].mxu1  ;;  %v17335_v47 = vld [vmem:[#allocation184_spill] sm:$0xff]  ;;  %v17339_v62 = vld [vmem:[#allocation30_spill] sm:$0xff] }
 0x36d   : > { %v10057_v37 = vmax.f32 %v9993_v10, 0.0  ;;  %v9416_v57 = vmax.f32 %v9414_v41, %v17331_v6  ;;  %10377 = vst.msk [vmem:[%s15612_s14 + $0x58] sm:$0xf] %vm10354_vm4, %v11104_v56  ;;  %v9991_v7 = vadd.f32 %v15587_v5, %v9332_v63  ;;  %v9406_v14 = vsel %vm9002_vm3, %v15760_v22, -inf  ;;  %v15874_v41 = vpop.f32.mrb[227].mxu1  ;;  %v17336_v48 = vld [vmem:[#allocation132_spill] sm:$0xff] }
 0x36e   : > { %v9386_v20 = vmax.f32 %v9384_v40, %v17333_v58  ;;  %v9373_v53 = vmax.f32 %v9371_v4, %v17334_v51  ;;  %v11102_v34 = vpack.c.bf16 %v10054_v13, %v10054_v13  ;;  %v9405_v24 = vmax.f32 %v9403_v1, %v15376_v9  ;;  %v17337_v4 = vld [vmem:[#allocation134_spill] sm:$0xff]  ;;  %v17338_v13 = vld [vmem:[#allocation65_spill] sm:$0xff]  ;;  %v15898_v58 = vpop.f32.mrb[228].mxu0 }
 0x36f   : > { %v11105_v46 = vpack.c.bf16 %v10057_v37, %v10057_v37  ;;  %v9376_v21 = vsel %vm9002_vm3, %v15767_v27, -inf  ;;  %v10055_v61 = vmax.f32 %v9991_v7, 0.0  ;;  %v9418_v10 = vmax.f32 %v9416_v57, %v17335_v47  ;;  %v17341_v51 = vld [vmem:[#allocation137_spill] sm:$0xff] }
 0x370   : > { %v9375_v22 = vmax.f32 %v9373_v53, %v15380_v28  ;;  %v9421_v55 = vsel %vm9002_vm3, %v15775_v19, -inf  ;;  %10375 = vst.msk [vmem:[%s15612_s14 + $0x50] sm:$0xf] %vm10354_vm4, %v11102_v34  ;;  %v9407_v9 = vmax.f32 %v9405_v24, %v9406_v14  ;;  %v9458_v27 = vsel %vm9002_vm3, %v15795_v36, -inf  ;;  %v15903_v34 = vpop.f32.mrb[229].mxu0 }
 0x371   : > { %10378 = vst.msk [vmem:[%s15612_s14 + $0x5c] sm:$0xf] %vm10354_vm4, %v11105_v46  ;;  %v9388_v56 = vmax.f32 %v9386_v20, %v17336_v48  ;;  %v9391_v28 = vsel %vm9002_vm3, %v15779_v29, -inf  ;;  %v11103_v63 = vpack.c.bf16 %v10055_v61, %v10055_v61  ;;  %v9420_v19 = vmax.f32 %v9418_v10, %v15384_v60  ;;  %v17340_v60 = vld [vmem:[#allocation136_spill] sm:$0xff]  ;;  %v15910_v10 = vpop.f32.mrb[230].mxu0 }
 0x372   : > { %v9377_v16 = vmax.f32 %v9375_v22, %v9376_v21  ;;  %v9459_v23 = vmax.f32 %v17337_v4, %v9458_v27  ;;  %v9996_v40 = vadd.f32 %v15587_v5, %v9407_v9  ;;  %v9428_v6 = vsel %vm9002_vm3, %v15802_v12, -inf  ;;  %v17342_v21 = vld [vmem:[#allocation31_spill] sm:$0xff]  ;;  %v17343_v22 = vld [vmem:[#allocation141_spill] sm:$0xff]  ;;  %v17344_v27 = vld [vmem:[#allocation32_spill] sm:$0xff] }
 0x373   : > { %v9390_v37 = vmax.f32 %v9388_v56, %v17338_v13  ;;  %v9473_v36 = vsel %vm9002_vm3, %v15811_v17, -inf  ;;  %10376 = vst.msk [vmem:[%s15612_s14 + $0x54] sm:$0xf] %vm10354_vm4, %v11103_v63  ;;  %v9422_v57 = vmax.f32 %v9420_v19, %v9421_v55  ;;  %v9429_v7 = vmax.f32 %v17340_v60, %v9428_v6  ;;  %v15905_v17 = vpop.f32.mrb[228].mxu1  ;;  %v17345_v56 = vld [vmem:[#allocation135_spill] sm:$0xff]  ;;  %v15917_v63 = vpop.f32.mrb[231].mxu0 }
 0x374   : > { %v9994_v29 = vadd.f32 %v15587_v5, %v9377_v16  ;;  %v9461_v1 = vmax.f32 %v9459_v23, %v17339_v62  ;;  %v10060_v20 = vmax.f32 %v9996_v40, 0.0  ;;  %v9474_v53 = vmax.f32 %v17341_v51, %v9473_v36  ;;  %v15912_v55 = vpop.f32.mrb[229].mxu1  ;;  %v17346_v23 = vld [vmem:[#allocation33_spill] sm:$0xff]  ;;  %v17347_v36 = vld [vmem:[#allocation198_spill] sm:$0xff] }
 0x375   : > { %v9392_v14 = vmax.f32 %v9390_v37, %v9391_v28  ;;  %v9443_v12 = vsel %vm9002_vm3, %v15818_v25, -inf  ;;  %v9997_v24 = vadd.f32 %v15587_v5, %v9422_v57  ;;  %v9431_v61 = vmax.f32 %v9429_v7, %v17342_v21  ;;  %v15919_v16 = vpop.f32.mrb[230].mxu1  ;;  %v17348_v57 = vld [vmem:[#allocation53_spill] sm:$0xff]  ;;  %v17349_v7 = vld [vmem:[#allocation186_spill] sm:$0xff] }
 0x376   : > { %v10058_v46 = vmax.f32 %v9994_v29, 0.0  ;;  %v9444_v47 = vmax.f32 %v17343_v22, %v9443_v12  ;;  %v11108_v9 = vpack.c.bf16 %v10060_v20, %v10060_v20  ;;  %v9476_v48 = vmax.f32 %v9474_v53, %v17344_v27  ;;  %v15924_v37 = vpop.f32.mrb[231].mxu1  ;;  %v17350_v12 = vld [vmem:[#allocation67_spill] sm:$0xff]  ;;  %v17353_v27 = vld [vmem:[#allocation34_spill] sm:$0xff] }
 0x377   : > { %v9995_v25 = vadd.f32 %v15587_v5, %v9392_v14  ;;  %v9463_v28 = vmax.f32 %v9461_v1, %v17345_v56  ;;  %v10061_v4 = vmax.f32 %v9997_v24, 0.0  ;;  %v9466_v13 = vsel %vm9002_vm3, %v15804_v15, -inf  ;;  %v17351_v24 = vld [vmem:[#allocation142_spill] sm:$0xff]  ;;  %v17354_v56 = vld [vmem:[#allocation144_spill] sm:$0xff] }
 0x378   : > { %v11106_v19 = vpack.c.bf16 %v10058_v46, %v10058_v46  ;;  %v9446_v40 = vmax.f32 %v9444_v47, %v17346_v23  ;;  %10381 = vst.msk [vmem:[%s15612_s14 + $0x68] sm:$0xf] %vm10354_vm4, %v11108_v9  ;;  %v9433_v62 = vmax.f32 %v9431_v61, %v17348_v57  ;;  %v9436_v1 = vsel %vm9002_vm3, %v15813_v54, -inf  ;;  %v17352_v61 = vld [vmem:[#allocation139_spill] sm:$0xff]  ;;  %v15949_v9 = vpop.f32.mrb[232].mxu0 }
 0x379   : > { %v10059_v6 = vmax.f32 %v9995_v25, 0.0  ;;  %v9465_v29 = vmax.f32 %v9463_v28, %v17347_v36  ;;  %v11109_v60 = vpack.c.bf16 %v10061_v4, %v10061_v4  ;;  %v9478_v20 = vmax.f32 %v9476_v48, %v17349_v7  ;;  %v17356_v57 = vld [vmem:[#allocation35_spill] sm:$0xff] }
 0x37a   : > { %10379 = vst.msk [vmem:[%s15612_s14 + $0x60] sm:$0xf] %vm10354_vm4, %v11106_v19  ;;  %v9481_v15 = vsel %vm9002_vm3, %v15820_v8, -inf  ;;  %v9518_v14 = vsel %vm9002_vm3, %v15844_v52, -inf  ;;  %v9435_v46 = vmax.f32 %v9433_v62, %v17350_v12  ;;  %v9448_v22 = vmax.f32 %v9446_v40, %v17352_v61  ;;  %v15958_v19 = vpop.f32.mrb[232].mxu1 }
 0x37b   : > { %v11107_v51 = vpack.c.bf16 %v10059_v6, %v10059_v6  ;;  %v9467_v53 = vmax.f32 %v9465_v29, %v9466_v13  ;;  %v9519_v21 = vmax.f32 %v17351_v24, %v9518_v14  ;;  %10382 = vst.msk [vmem:[%s15612_s14 + $0x6c] sm:$0xf] %vm10354_vm4, %v11109_v60  ;;  %v9480_v54 = vmax.f32 %v9478_v20, %v15409_v43  ;;  %v15956_v43 = vpop.f32.mrb[233].mxu0  ;;  %v15967_v6 = vpop.f32.mrb[233].mxu1 }
 0x37c   : > { %v9451_v47 = vsel %vm9002_vm3, %v15829_v18, -inf  ;;  %v9488_v8 = vsel %vm9002_vm3, %v15848_v32, -inf  ;;  %v9437_v25 = vmax.f32 %v9435_v46, %v9436_v1  ;;  %v17355_v18 = vld [vmem:[#allocation69_spill] sm:$0xff]  ;;  %v9533_v32 = vsel %vm9002_vm3, %v15859_v30, -inf  ;;  %v15965_v13 = vpop.f32.mrb[234].mxu0  ;;  %v15974_v20 = vpop.f32.mrb[234].mxu1 }
 0x37d   : > { %10380 = vst.msk [vmem:[%s15612_s14 + $0x64] sm:$0xf] %vm10354_vm4, %v11107_v51  ;;  %v10000_v52 = vadd.f32 %v15587_v5, %v9467_v53  ;;  %v9521_v48 = vmax.f32 %v9519_v21, %v17353_v27  ;;  %v9489_v28 = vmax.f32 %v17354_v56, %v9488_v8  ;;  %v9482_v4 = vmax.f32 %v9480_v54, %v9481_v15  ;;  %v17357_v1 = vld [vmem:[#allocation145_spill] sm:$0xff]  ;;  %v15972_v7 = vpop.f32.mrb[235].mxu0  ;;  %v17359_v51 = vld [vmem:[#allocation140_spill] sm:$0xff]  ;;  %v15979_v12 = vpop.f32.mrb[235].mxu1 }
 0x37e   : > { %v9450_v23 = vmax.f32 %v9448_v22, %v17355_v18  ;;  %v9503_v40 = vsel %vm9002_vm3, %v15866_v26, -inf  ;;  %v9998_v29 = vadd.f32 %v15587_v5, %v9437_v25  ;;  %v9534_v60 = vmax.f32 %v17357_v1, %v9533_v32  ;;  %v17358_v26 = vld [vmem:[#allocation149_spill] sm:$0xff]  ;;  %v17360_v21 = vld [vmem:[#allocation36_spill] sm:$0xff] }
 0x37f   : > { %v10064_v36 = vmax.f32 %v10000_v52, 0.0  ;;  %v9491_v62 = vmax.f32 %v9489_v28, %v17356_v57  ;;  %v10001_v30 = vadd.f32 %v15587_v5, %v9482_v4  ;;  %v9504_v14 = vmax.f32 %v17358_v26, %v9503_v40  ;;  %v17361_v52 = vld [vmem:[#allocation37_spill] sm:$0xff]  ;;  %v17363_v4 = vld [vmem:[#allocation146_spill] sm:$0xff] }
 0x380   : > { %v9452_v15 = vmax.f32 %v9450_v23, %v9451_v47  ;;  %v9523_v53 = vmax.f32 %v9521_v48, %v17359_v51  ;;  %v10062_v24 = vmax.f32 %v9998_v29, 0.0  ;;  %v9536_v54 = vmax.f32 %v9534_v60, %v17360_v21  ;;  %v17362_v48 = vld [vmem:[#allocation143_spill] sm:$0xff]  ;;  %v16006_v60 = vpop.f32.mrb[236].mxu1 }
 0x381   : > { %v11112_v46 = vpack.c.bf16 %v10064_v36, %v10064_v36  ;;  %v9526_v61 = vsel %vm9002_vm3, %v15850_v59, -inf  ;;  %v10065_v22 = vmax.f32 %v10001_v30, 0.0  ;;  %v9506_v25 = vmax.f32 %v9504_v14, %v17361_v52  ;;  %v15995_v36 = vpop.f32.mrb[236].mxu0 }
 0x382   : > { %v9999_v8 = vadd.f32 %v15587_v5, %v9452_v15  ;;  %v9525_v47 = vmax.f32 %v9523_v53, %v15425_v0  ;;  %v11110_v27 = vpack.c.bf16 %v10062_v24, %v10062_v24  ;;  %v9493_v56 = vmax.f32 %v9491_v62, %v17362_v48  ;;  %v16004_v1 = vpop.f32.mrb[237].mxu0  ;;  %v17365_v15 = vld [vmem:[#allocation16_spill] sm:$0xff] }
 0x383   : > { %10385 = vst.msk [vmem:[%s15612_s14 + $0x78] sm:$0xf] %vm10354_vm4, %v11112_v46  ;;  %v9496_v28 = vsel %vm9002_vm3, %v15861_v31, -inf  ;;  %v9538_v18 = vmax.f32 %v9536_v54, %v17363_v4  ;;  %v11113_v23 = vpack.c.bf16 %v10065_v22, %v10065_v22  ;;  %v9541_v40 = vsel %vm9002_vm3, %v15868_v45, -inf  ;;  %v17364_v31 = vld [vmem:[#allocation147_spill] sm:$0xff]  ;;  %v17367_v22 = vld [vmem:[#allocation17_spill] sm:$0xff] }
 0x384   : > { %v10063_v59 = vmax.f32 %v9999_v8, 0.0  ;;  %v9527_v32 = vmax.f32 %v9525_v47, %v9526_v61  ;;  %10383 = vst.msk [vmem:[%s15612_s14 + $0x70] sm:$0xf] %vm10354_vm4, %v11110_v27  ;;  %v9495_v0 = vmax.f32 %v9493_v56, %v15429_v44  ;;  %v9578_v57 = vsel %vm9002_vm3, %v15898_v58, -inf  ;;  %v16016_v58 = vpop.f32.mrb[237].mxu1  ;;  %v17366_v61 = vld [vmem:[#allocation38_spill] sm:$0xff] }
 0x385   : > { %v9540_v29 = vmax.f32 %v9538_v18, %v15441_v35  ;;  %v9508_v62 = vmax.f32 %v9506_v25, %v17364_v31  ;;  %10386 = vst.msk [vmem:[%s15612_s14 + $0x7c] sm:$0xf] %vm10354_vm4, %v11113_v23  ;;  %v9579_v26 = vmax.f32 %v17365_v15, %v9578_v57  ;;  %v9511_v44 = vsel %vm9002_vm3, %v15874_v41, -inf  ;;  %v16014_v35 = vpop.f32.mrb[238].mxu0  ;;  %v16023_v21 = vpop.f32.mrb[238].mxu1  ;;  %v17368_v27 = vld [vmem:[#allocation20_spill] sm:$0xff] }
 0x386   : > { %v11111_v45 = vpack.c.bf16 %v10063_v59, %v10063_v59  ;;  %v10004_v30 = vadd.f32 %v15587_v5, %v9527_v32  ;;  %v9497_v14 = vmax.f32 %v9495_v0, %v9496_v28  ;;  %v9548_v46 = vsel %vm9002_vm3, %v15903_v34, -inf  ;;  %v16021_v24 = vpop.f32.mrb[239].mxu0  ;;  %v16031_v25 = vpop.f32.mrb[239].mxu1  ;;  %v17369_v28 = vld [vmem:[#allocation39_spill] sm:$0xff]  ;;  %v17370_v23 = vld [vmem:[#allocation148_spill] sm:$0xff]  ;;  %v17372_v57 = vld [vmem:[#allocation157_spill] sm:$0xff] }
 0x387   : > { %v9542_v51 = vmax.f32 %v9540_v29, %v9541_v40  ;;  %v9510_v53 = vmax.f32 %v9508_v62, %v15445_v11  ;;  %v9581_v41 = vmax.f32 %v9579_v26, %v17366_v61  ;;  %v9549_v8 = vmax.f32 %v17367_v22, %v9548_v46  ;;  %v17371_v0 = vld [vmem:[#allocation160_spill] sm:$0xff]  ;;  %v16049_v15 = vpop.f32.mrb[240].mxu0  ;;  %v16055_v46 = vpop.f32.mrb[240].mxu1 }
 0x388   : > { %10384 = vst.msk [vmem:[%s15612_s14 + $0x74] sm:$0xf] %vm10354_vm4, %v11111_v45  ;;  %v10068_v54 = vmax.f32 %v10004_v30, 0.0  ;;  %v9593_v52 = vsel %vm9002_vm3, %v15910_v10, -inf  ;;  %v10002_v11 = vadd.f32 %v15587_v5, %v9497_v14  ;;  %v9563_v18 = vsel %vm9002_vm3, %v15917_v63, -inf  ;;  %v17373_v30 = vld [vmem:[#allocation151_spill] sm:$0xff] }
 0x389   : > { %v10005_v34 = vadd.f32 %v15587_v5, %v9542_v51  ;;  %v9512_v47 = vmax.f32 %v9510_v53, %v9511_v44  ;;  %v9594_v48 = vmax.f32 %v17368_v27, %v9593_v52  ;;  %v9551_v4 = vmax.f32 %v9549_v8, %v17369_v28  ;;  %v16053_v53 = vpop.f32.mrb[241].mxu0  ;;  %v16062_v52 = vpop.f32.mrb[241].mxu1 }
 0x38a   : > { %v11116_v56 = vpack.c.bf16 %v10068_v54, %v10068_v54  ;;  %v9583_v59 = vmax.f32 %v9581_v41, %v17370_v23  ;;  %v10066_v32 = vmax.f32 %v10002_v11, 0.0  ;;  %v9564_v31 = vmax.f32 %v17372_v57, %v9563_v18  ;;  %v17375_v41 = vld [vmem:[#allocation154_spill] sm:$0xff]  ;;  %v16060_v8 = vpop.f32.mrb[242].mxu0  ;;  %v16076_v27 = vpop.f32.mrb[242].mxu1 }
 0x38b   : > { %v10069_v40 = vmax.f32 %v10005_v34, 0.0  ;;  %v10003_v10 = vadd.f32 %v15587_v5, %v9512_v47  ;;  %v9596_v29 = vmax.f32 %v9594_v48, %v17371_v0  ;;  %v9586_v45 = vsel %vm9002_vm3, %v15905_v17, -inf  ;;  %v16074_v47 = vpop.f32.mrb[243].mxu0  ;;  %v16081_v23 = vpop.f32.mrb[243].mxu1  ;;  %v17378_v0 = vld [vmem:[#allocation42_spill] sm:$0xff] }
 0x38c   : > { %10389 = vst.msk [vmem:[%s15612_s14 + $0x88] sm:$0xf] %vm10354_vm4, %v11116_v56  ;;  %v9585_v62 = vmax.f32 %v9583_v59, %v15449_v39  ;;  %v9553_v63 = vmax.f32 %v9551_v4, %v17373_v30  ;;  %v11114_v26 = vpack.c.bf16 %v10066_v32, %v10066_v32  ;;  %v9556_v51 = vsel %vm9002_vm3, %v15912_v55, -inf  ;;  %v17374_v39 = vld [vmem:[#allocation161_spill] sm:$0xff]  ;;  %v17376_v4 = vld [vmem:[#allocation40_spill] sm:$0xff] }
 0x38d   : > { %v11117_v44 = vpack.c.bf16 %v10069_v40, %v10069_v40  ;;  %v10067_v14 = vmax.f32 %v10003_v10, 0.0  ;;  %v9566_v54 = vmax.f32 %v9564_v31, %v17374_v39  ;;  %v9598_v22 = vmax.f32 %v9596_v29, %v17375_v41  ;;  %v17379_v31 = vld [vmem:[#allocation41_spill] sm:$0xff]  ;;  %v17383_v39 = vld [vmem:[#allocation43_spill] sm:$0xff]  ;;  %v17385_v41 = vld [vmem:[#allocation46_spill] sm:$0xff] }
 0x38e   : > { %v9587_v61 = vmax.f32 %v9585_v62, %v9586_v45  ;;  %v9555_v17 = vmax.f32 %v9553_v63, %v15458_v33  ;;  %10387 = vst.msk [vmem:[%s15612_s14 + $0x80] sm:$0xf] %vm10354_vm4, %v11114_v26  ;;  %v9601_v11 = vsel %vm9002_vm3, %v15919_v16, -inf  ;;  %v9638_v34 = vsel %vm9002_vm3, %v15949_v9, -inf  ;;  %v17377_v16 = vld [vmem:[#allocation155_spill] sm:$0xff]  ;;  %v17380_v45 = vld [vmem:[#allocation44_spill] sm:$0xff] }
 0x38f   : > { %10390 = vst.msk [vmem:[%s15612_s14 + $0x8c] sm:$0xf] %vm10354_vm4, %v11117_v44  ;;  %v11115_v55 = vpack.c.bf16 %v10067_v14, %v10067_v14  ;;  %v9571_v33 = vsel %vm9002_vm3, %v15924_v37, -inf  ;;  %v9600_v28 = vmax.f32 %v9598_v22, %v15462_v2  ;;  %v9639_v18 = vmax.f32 %v17376_v4, %v9638_v34  ;;  %v17382_v44 = vld [vmem:[#allocation156_spill] sm:$0xff] }
 0x390   : > { %v10008_v48 = vadd.f32 %v15587_v5, %v9587_v61  ;;  %v9557_v56 = vmax.f32 %v9555_v17, %v9556_v51  ;;  %v9568_v9 = vmax.f32 %v9566_v54, %v17377_v16  ;;  %v9608_v37 = vsel %vm9002_vm3, %v15956_v43, -inf  ;;  %v17381_v43 = vld [vmem:[#allocation165_spill] sm:$0xff]  ;;  %v16105_v51 = vpop.f32.mrb[244].mxu0  ;;  %v17386_v16 = vld [vmem:[#allocation159_spill] sm:$0xff] }
 0x391   : > { %10388 = vst.msk [vmem:[%s15612_s14 + $0x84] sm:$0xf] %vm10354_vm4, %v11115_v55  ;;  %v9653_v59 = vsel %vm9002_vm3, %v15965_v13, -inf  ;;  %v9623_v32 = vsel %vm9002_vm3, %v15972_v7, -inf  ;;  %v9602_v10 = vmax.f32 %v9600_v28, %v9601_v11  ;;  %v9641_v29 = vmax.f32 %v9639_v18, %v17378_v0  ;;  %v16101_v7 = vld [vmem:[%s16426_s2] ss:$0 sm:$0xff] }
 0x392   : > { %v10072_v40 = vmax.f32 %v10008_v48, 0.0  ;;  %v10006_v2 = vadd.f32 %v15587_v5, %v9557_v56  ;;  %v9570_v57 = vmax.f32 %v9568_v9, %v15466_v50  ;;  %v9609_v62 = vmax.f32 %v17379_v31, %v9608_v37  ;;  %v17384_v61 = vld [vmem:[#allocation45_spill] sm:$0xff]  ;;  %v16110_v55 = vpop.f32.mrb[245].mxu0  ;;  %v16112_v11 = vpop.f32.mrb[244].mxu1 }
 0x393   : > { %v9654_v30 = vmax.f32 %v17380_v45, %v9653_v59  ;;  %v9624_v63 = vmax.f32 %v17381_v43, %v9623_v32  ;;  %v10009_v5 = vadd.f32 %v16101_v7, %v9602_v10  ;;  %v9643_v14 = vmax.f32 %v9641_v29, %v17382_v44  ;;  %v16119_v28 = vpop.f32.mrb[246].mxu0  ;;  %v16121_v4 = vpop.f32.mrb[245].mxu1  ;;  %v17387_v59 = vld [vmem:[#allocation162_spill] sm:$0xff]  ;;  %v17389_v43 = vld [vmem:[#allocation163_spill] sm:$0xff] }
 0x394   : > { %v11120_v26 = vpack.c.bf16 %v10072_v40, %v10072_v40  ;;  %v10070_v13 = vmax.f32 %v10006_v2, 0.0  ;;  %v9572_v50 = vmax.f32 %v9570_v57, %v9571_v33  ;;  %v9611_v54 = vmax.f32 %v9609_v62, %v17383_v39  ;;  %v16128_v40 = vpop.f32.mrb[247].mxu0  ;;  %v17388_v62 = vld [vmem:[#allocation76_spill] sm:$0xff] }
 0x395   : > { %v9656_v17 = vmax.f32 %v9654_v30, %v17384_v61  ;;  %v9626_v22 = vmax.f32 %v9624_v63, %v17385_v41  ;;  %v10073_v48 = vmax.f32 %v10009_v5, 0.0  ;;  %v9645_v56 = vmax.f32 %v9643_v14, %v15470_v38  ;;  %v16130_v38 = vpop.f32.mrb[246].mxu1  ;;  %v17390_v5 = vld [vmem:[#allocation47_spill] sm:$0xff]  ;;  %v16156_v61 = vpop.f32.mrb[248].mxu0 }
 0x396   : > { %10393 = vst.msk [vmem:[%s15612_s14 + $0x98] sm:$0xf] %vm10354_vm4, %v11120_v26  ;;  %v11118_v34 = vpack.c.bf16 %v10070_v13, %v10070_v13  ;;  %v9646_v33 = vsel %vm9002_vm3, %v15958_v19, -inf  ;;  %v10007_v18 = vadd.f32 %v16101_v7, %v9572_v50  ;;  %v9613_v9 = vmax.f32 %v9611_v54, %v17386_v16  ;;  %v16138_v29 = vpop.f32.mrb[247].mxu1  ;;  %v17391_v50 = vld [vmem:[#allocation78_spill] sm:$0xff] }
 0x397   : > { %v9616_v37 = vsel %vm9002_vm3, %v15967_v6, -inf  ;;  %v9658_v32 = vmax.f32 %v9656_v17, %v17387_v59  ;;  %v11121_v19 = vpack.c.bf16 %v10073_v48, %v10073_v48  ;;  %v9647_v2 = vmax.f32 %v9645_v56, %v9646_v33  ;;  %v17392_v17 = vld [vmem:[#allocation83_spill] sm:$0xff]  ;;  %v17393_v56 = vld [vmem:[#allocation166_spill] sm:$0xff] }
 0x398   : > { %10391 = vst.msk [vmem:[%s15612_s14 + $0x90] sm:$0xf] %vm10354_vm4, %v11118_v34  ;;  %v9661_v10 = vsel %vm9002_vm3, %v15974_v20, -inf  ;;  %v9698_v0 = vsel %vm9002_vm3, %v15995_v36, -inf  ;;  %v10071_v57 = vmax.f32 %v10007_v18, 0.0  ;;  %v9615_v6 = vmax.f32 %v9613_v9, %v15474_v3  ;;  %v16167_v34 = vpop.f32.mrb[248].mxu1 }
 0x399   : > { %v9660_v31 = vmax.f32 %v9658_v32, %v15478_v49  ;;  %v9699_v45 = vmax.f32 %v17388_v62, %v9698_v0  ;;  %10394 = vst.msk [vmem:[%s15612_s14 + $0x9c] sm:$0xf] %vm10354_vm4, %v11121_v19  ;;  %v10012_v30 = vadd.f32 %v16101_v7, %v9647_v2  ;;  %v9628_v63 = vmax.f32 %v9626_v22, %v17389_v43  ;;  %v17394_v18 = vld [vmem:[#allocation90_spill] sm:$0xff]  ;;  %v17395_v19 = vld [vmem:[#allocation48_spill] sm:$0xff] }
 0x39a   : > { %v9631_v20 = vsel %vm9002_vm3, %v15979_v12, -inf  ;;  %v9668_v36 = vsel %vm9002_vm3, %v16004_v1, -inf  ;;  %v11119_v26 = vpack.c.bf16 %v10071_v57, %v10071_v57  ;;  %v9617_v13 = vmax.f32 %v9615_v6, %v9616_v37  ;;  %v16173_v37 = vpop.f32.mrb[249].mxu1 }
 0x39b   : > { %v9662_v3 = vmax.f32 %v9660_v31, %v9661_v10  ;;  %v9701_v49 = vmax.f32 %v9699_v45, %v17390_v5  ;;  %v10076_v44 = vmax.f32 %v10012_v30, 0.0  ;;  %v9630_v14 = vmax.f32 %v9628_v63, %v15482_v42  ;;  %v16165_v42 = vpop.f32.mrb[249].mxu0  ;;  %v17396_v10 = vld [vmem:[#allocation167_spill] sm:$0xff]  ;;  %v16179_v57 = vpop.f32.mrb[250].mxu1  ;;  %v17397_v31 = vld [vmem:[#allocation49_spill] sm:$0xff]  ;;  %v17398_v30 = vld [vmem:[#allocation170_spill] sm:$0xff] }
 0x39c   : > { %v9669_v39 = vmax.f32 %v17391_v50, %v9668_v36  ;;  %v9713_v54 = vsel %vm9002_vm3, %v16014_v35, -inf  ;;  %10392 = vst.msk [vmem:[%s15612_s14 + $0x94] sm:$0xf] %vm10354_vm4, %v11119_v26  ;;  %v10010_v12 = vadd.f32 %v16101_v7, %v9617_v13  ;;  %v9683_v22 = vsel %vm9002_vm3, %v16021_v24, -inf  ;;  %v16171_v9 = vpop.f32.mrb[250].mxu0  ;;  %v16188_v63 = vpop.f32.mrb[251].mxu1 }
 0x39d   : > { %v10013_v1 = vadd.f32 %v16101_v7, %v9662_v3  ;;  %v9714_v41 = vmax.f32 %v17392_v17, %v9713_v54  ;;  %v11124_v48 = vpack.c.bf16 %v10076_v44, %v10076_v44  ;;  %v9632_v35 = vmax.f32 %v9630_v14, %v9631_v20  ;;  %v16177_v0 = vpop.f32.mrb[251].mxu0  ;;  %v17399_v26 = vld [vmem:[#allocation75_spill] sm:$0xff]  ;;  %v17401_v14 = vld [vmem:[#allocation188_spill] sm:$0xff] }
 0x39e   : > { %v9671_v33 = vmax.f32 %v9669_v39, %v17393_v56  ;;  %v9684_v16 = vmax.f32 %v17394_v18, %v9683_v22  ;;  %v10074_v59 = vmax.f32 %v10010_v12, 0.0  ;;  %v9703_v24 = vmax.f32 %v9701_v49, %v17396_v10  ;;  %v17400_v49 = vld [vmem:[#allocation208_spill] sm:$0xff]  ;;  %v17402_v12 = vld [vmem:[#allocation173_spill] sm:$0xff]  ;;  %v16208_v56 = vpop.f32.mrb[252].mxu0  ;;  %v17405_v18 = vld [vmem:[#allocation210_spill] sm:$0xff] }
 0x39f   : > { %v10077_v32 = vmax.f32 %v10013_v1, 0.0  ;;  %v9716_v2 = vmax.f32 %v9714_v41, %v17395_v19  ;;  %10397 = vst.msk [vmem:[%s15612_s14 + $0xa8] sm:$0xf] %vm10354_vm4, %v11124_v48  ;;  %v10011_v6 = vadd.f32 %v16101_v7, %v9632_v35  ;;  %v9706_v45 = vsel %vm9002_vm3, %v16006_v60, -inf  ;;  %v17403_v22 = vld [vmem:[#allocation77_spill] sm:$0xff]  ;;  %v17404_v35 = vld [vmem:[#allocation123_spill] sm:$0xff] }
 0x3a0   : > { %v9686_v62 = vmax.f32 %v9684_v16, %v17397_v31  ;;  %v9673_v43 = vmax.f32 %v9671_v33, %v17398_v30  ;;  %v11122_v20 = vpack.c.bf16 %v10074_v59, %v10074_v59  ;;  %v9705_v13 = vmax.f32 %v9703_v24, %v17399_v26  ;;  %v17406_v10 = vld [vmem:[#allocation50_spill] sm:$0xff] }
 0x3a1   : > { %v11125_v36 = vpack.c.bf16 %v10077_v32, %v10077_v32  ;;  %v9676_v3 = vsel %vm9002_vm3, %v16016_v58, -inf  ;;  %v10075_v5 = vmax.f32 %v10011_v6, 0.0  ;;  %v9718_v50 = vmax.f32 %v9716_v2, %v17401_v14  ;;  %v16216_v32 = vpop.f32.mrb[253].mxu0  ;;  %v17407_v6 = vld [vmem:[#allocation127_spill] sm:$0xff] }
 0x3a2   : > { %v9675_v44 = vmax.f32 %v9673_v43, %v17400_v49  ;;  %v9721_v39 = vsel %vm9002_vm3, %v16023_v21, -inf  ;;  %10395 = vst.msk [vmem:[%s15612_s14 + $0xa0] sm:$0xf] %vm10354_vm4, %v11122_v20  ;;  %v9707_v60 = vmax.f32 %v9705_v13, %v9706_v45  ;;  %v9758_v54 = vsel %vm9002_vm3, %v16049_v15, -inf }
 0x3a3   : > { %10398 = vst.msk [vmem:[%s15612_s14 + $0xac] sm:$0xf] %vm10354_vm4, %v11125_v36  ;;  %v9688_v1 = vmax.f32 %v9686_v62, %v17402_v12  ;;  %v9691_v58 = vsel %vm9002_vm3, %v16031_v25, -inf  ;;  %v11123_v17 = vpack.c.bf16 %v10075_v5, %v10075_v5  ;;  %v9720_v48 = vmax.f32 %v9718_v50, %v17403_v22  ;;  %v16218_v25 = vpop.f32.mrb[252].mxu1  ;;  %v16225_v62 = vpop.f32.mrb[254].mxu0  ;;  %v17409_v5 = vld [vmem:[#allocation51_spill] sm:$0xff] }
 0x3a4   : > { %v9677_v41 = vmax.f32 %v9675_v44, %v9676_v3  ;;  %v9759_v21 = vmax.f32 %v17404_v35, %v9758_v54  ;;  %v10016_v33 = vadd.f32 %v16101_v7, %v9707_v60  ;;  %v9728_v15 = vsel %vm9002_vm3, %v16053_v53, -inf  ;;  %v16227_v45 = vpop.f32.mrb[253].mxu1  ;;  %v16232_v36 = vpop.f32.mrb[255].mxu0  ;;  %v17410_v44 = vld [vmem:[#allocation138_spill] sm:$0xff]  ;;  %v17411_v54 = vld [vmem:[#allocation52_spill] sm:$0xff]  ;;  %v17412_v12 = vld [vmem:[#allocation57_spill] sm:$0xff] }
 0x3a5   : > { %v9690_v16 = vmax.f32 %v9688_v1, %v17405_v18  ;;  %v9773_v59 = vsel %vm9002_vm3, %v16060_v8, -inf  ;;  %10396 = vst.msk [vmem:[%s15612_s14 + $0xa4] sm:$0xf] %vm10354_vm4, %v11123_v17  ;;  %v9722_v2 = vmax.f32 %v9720_v48, %v9721_v39  ;;  %v9729_v31 = vmax.f32 %v17407_v6, %v9728_v15  ;;  %v17408_v8 = vld [vmem:[#allocation131_spill] sm:$0xff]  ;;  %v16234_v26 = vpop.f32.mrb[254].mxu1  ;;  %v17415_v18 = vld [vmem:[#allocation190_spill] sm:$0xff] }
 0x3a6   : > { %v10014_v19 = vadd.f32 %v16101_v7, %v9677_v41  ;;  %v9761_v24 = vmax.f32 %v9759_v21, %v17406_v10  ;;  %v10080_v53 = vmax.f32 %v10016_v33, 0.0  ;;  %v9774_v43 = vmax.f32 %v17408_v8, %v9773_v59  ;;  %v16239_v50 = vpop.f32.mrb[255].mxu1  ;;  %v17413_v41 = vld [vmem:[#allocation54_spill] sm:$0xff]  ;;  %v17414_v21 = vld [vmem:[#allocation116_spill] sm:$0xff] }
 0x3a7   : > { %v9692_v30 = vmax.f32 %v9690_v16, %v9691_v58  ;;  %v9743_v20 = vsel %vm9002_vm3, %v16074_v47, -inf  ;;  %v10017_v3 = vadd.f32 %v16101_v7, %v9722_v2  ;;  %v9731_v49 = vmax.f32 %v9729_v31, %v17409_v5  ;;  %v17417_v31 = vld [vmem:[#allocation177_spill] sm:$0xff] }
 0x3a8   : > { %v10078_v13 = vmax.f32 %v10014_v19, 0.0  ;;  %v9744_v14 = vmax.f32 %v17410_v44, %v9743_v20  ;;  %v11128_v39 = vpack.c.bf16 %v10080_v53, %v10080_v53  ;;  %v9776_v47 = vmax.f32 %v9774_v43, %v17411_v54  ;;  %v17416_v19 = vld [vmem:[#allocation182_spill] sm:$0xff]  ;;  %v17420_v20 = vld [vmem:[#allocation59_spill] sm:$0xff] }
 0x3a9   : > { %v10015_v60 = vadd.f32 %v16101_v7, %v9692_v30  ;;  %v9763_v1 = vmax.f32 %v9761_v24, %v17412_v12  ;;  %v10081_v17 = vmax.f32 %v10017_v3, 0.0  ;;  %v9766_v48 = vsel %vm9002_vm3, %v16055_v46, -inf  ;;  %v17418_v30 = vld [vmem:[#allocation171_spill] sm:$0xff] }
 0x3aa   : > { %v11126_v58 = vpack.c.bf16 %v10078_v13, %v10078_v13  ;;  %v9746_v22 = vmax.f32 %v9744_v14, %v17413_v41  ;;  %10401 = vst.msk [vmem:[%s15612_s14 + $0xb8] sm:$0xf] %vm10354_vm4, %v11128_v39  ;;  %v9733_v16 = vmax.f32 %v9731_v49, %v17415_v18  ;;  %v9736_v15 = vsel %vm9002_vm3, %v16062_v52, -inf  ;;  %v17419_v52 = vld [vmem:[#allocation180_spill] sm:$0xff]  ;;  %v17421_v49 = vld [vmem:[#allocation55_spill] sm:$0xff] }
 0x3ab   : > { %v10079_v35 = vmax.f32 %v10015_v60, 0.0  ;;  %v9765_v33 = vmax.f32 %v9763_v1, %v17414_v21  ;;  %v11129_v59 = vpack.c.bf16 %v10081_v17, %v10081_v17  ;;  %v9778_v2 = vmax.f32 %v9776_v47, %v17416_v19  ;;  %v17422_v14 = vld [vmem:[#allocation176_spill] sm:$0xff]  ;;  %v17423_v54 = vld [vmem:[#allocation183_spill] sm:$0xff]  ;;  %v17426_v21 = vld [vmem:[#allocation185_spill] sm:$0xff] }
 0x3ac   : > { %10399 = vst.msk [vmem:[%s15612_s14 + $0xb0] sm:$0xf] %vm10354_vm4, %v11126_v58  ;;  %v9781_v10 = vsel %vm9002_vm3, %v16076_v27, -inf  ;;  %v9818_v46 = vsel %vm9002_vm3, %v16105_v51, -inf  ;;  %v9735_v53 = vmax.f32 %v9733_v16, %v17417_v31  ;;  %v9748_v13 = vmax.f32 %v9746_v22, %v17420_v20  ;;  %v17424_v58 = vld [vmem:[#allocation58_spill] sm:$0xff]  ;;  %v17425_v41 = vld [vmem:[#allocation179_spill] sm:$0xff] }
 0x3ad   : > { %v11127_v24 = vpack.c.bf16 %v10079_v35, %v10079_v35  ;;  %v9767_v6 = vmax.f32 %v9765_v33, %v9766_v48  ;;  %v9819_v8 = vmax.f32 %v17418_v30, %v9818_v46  ;;  %10402 = vst.msk [vmem:[%s15612_s14 + $0xbc] sm:$0xf] %vm10354_vm4, %v11129_v59  ;;  %v9780_v43 = vmax.f32 %v9778_v2, %v17419_v52  ;;  %v17427_v18 = vld [vmem:[#allocation192_spill] sm:$0xff]  ;;  %v17429_v46 = vld [vmem:[#allocation62_spill] sm:$0xff]  ;;  %v17431_v30 = vld [vmem:[#allocation187_spill] sm:$0xff] }
 0x3ae   : > { %v9751_v3 = vsel %vm9002_vm3, %v16081_v23, -inf  ;;  %v9788_v27 = vsel %vm9002_vm3, %v16110_v55, -inf  ;;  %v9737_v5 = vmax.f32 %v9735_v53, %v9736_v15  ;;  %v9750_v47 = vmax.f32 %v9748_v13, %v17423_v54  ;;  %v17428_v59 = vld [vmem:[#allocation60_spill] sm:$0xff] }
 0x3af   : > { %10400 = vst.msk [vmem:[%s15612_s14 + $0xb4] sm:$0xf] %vm10354_vm4, %v11127_v24  ;;  %v10020_v51 = vadd.f32 %v16101_v7, %v9767_v6  ;;  %v9821_v44 = vmax.f32 %v9819_v8, %v17421_v49  ;;  %v9789_v39 = vmax.f32 %v17422_v14, %v9788_v27  ;;  %v9782_v60 = vmax.f32 %v9780_v43, %v9781_v10  ;;  %v17430_v6 = vld [vmem:[#allocation164_spill] sm:$0xff]  ;;  %v17432_v43 = vld [vmem:[#allocation189_spill] sm:$0xff] }
 0x3b0   : > { %v9833_v12 = vsel %vm9002_vm3, %v16119_v28, -inf  ;;  %v9803_v23 = vsel %vm9002_vm3, %v16128_v40, -inf  ;;  %v10018_v55 = vadd.f32 %v16101_v7, %v9737_v5  ;;  %v9752_v35 = vmax.f32 %v9750_v47, %v9751_v3  ;;  %v17434_v49 = vld [vmem:[#allocation80_spill] sm:$0xff]  ;;  %v17436_v47 = vld [vmem:[#allocation209_spill] sm:$0xff] }
 0x3b1   : > { %v10084_v1 = vmax.f32 %v10020_v51, 0.0  ;;  %v9791_v17 = vmax.f32 %v9789_v39, %v17424_v58  ;;  %v9834_v22 = vmax.f32 %v17425_v41, %v9833_v12  ;;  %v10021_v48 = vadd.f32 %v16101_v7, %v9782_v60  ;;  %v17433_v51 = vld [vmem:[#allocation56_spill] sm:$0xff]  ;;  %v17435_v39 = vld [vmem:[#allocation61_spill] sm:$0xff]  ;;  %v17438_v41 = vld [vmem:[#allocation63_spill] sm:$0xff] }
 0x3b2   : > { %v9804_v33 = vmax.f32 %v17426_v21, %v9803_v23  ;;  %v9823_v16 = vmax.f32 %v9821_v44, %v17427_v18  ;;  %v10082_v28 = vmax.f32 %v10018_v55, 0.0  ;;  %v9826_v19 = vsel %vm9002_vm3, %v16112_v11, -inf  ;;  %v17437_v55 = vld [vmem:[#allocation214_spill] sm:$0xff] }
 0x3b3   : > { %v11132_v15 = vpack.c.bf16 %v10084_v1, %v10084_v1  ;;  %v9836_v40 = vmax.f32 %v9834_v22, %v17428_v59  ;;  %v10085_v2 = vmax.f32 %v10021_v48, 0.0  ;;  %v10019_v10 = vadd.f32 %v16101_v7, %v9752_v35  ;;  %v17439_v48 = vld [vmem:[#allocation212_spill] sm:$0xff] }
 0x3b4   : > { %v9806_v24 = vmax.f32 %v9804_v33, %v17429_v46  ;;  %v9825_v31 = vmax.f32 %v9823_v16, %v17430_v6  ;;  %v11130_v53 = vpack.c.bf16 %v10082_v28, %v10082_v28  ;;  %v9793_v8 = vmax.f32 %v9791_v17, %v17431_v30  ;;  %v17440_v16 = vld [vmem:[#allocation64_spill] sm:$0xff]  ;;  %v17445_v30 = vld [vmem:[#allocation81_spill] sm:$0xff] }
 0x3b5   : > { %10405 = vst.msk [vmem:[%s15612_s14 + $0xc8] sm:$0xf] %vm10354_vm4, %v11132_v15  ;;  %v9796_v52 = vsel %vm9002_vm3, %v16121_v4, -inf  ;;  %v9838_v20 = vmax.f32 %v9836_v40, %v17432_v43  ;;  %v11133_v13 = vpack.c.bf16 %v10085_v2, %v10085_v2  ;;  %v10083_v11 = vmax.f32 %v10019_v10, 0.0 }
 0x3b6   : > { %v9827_v3 = vmax.f32 %v9825_v31, %v9826_v19  ;;  %v9841_v27 = vsel %vm9002_vm3, %v16130_v38, -inf  ;;  %10403 = vst.msk [vmem:[%s15612_s14 + $0xc0] sm:$0xf] %vm10354_vm4, %v11130_v53  ;;  %v9795_v5 = vmax.f32 %v9793_v8, %v17433_v51  ;;  %v9878_v14 = vsel %vm9002_vm3, %v16156_v61, -inf  ;;  %v17442_v19 = vld [vmem:[#allocation194_spill] sm:$0xff]  ;;  %v17444_v31 = vld [vmem:[#allocation196_spill] sm:$0xff] }
 0x3b7   : > { %v9840_v44 = vmax.f32 %v9838_v20, %v17434_v49  ;;  %v9808_v4 = vmax.f32 %v9806_v24, %v17435_v39  ;;  %10406 = vst.msk [vmem:[%s15612_s14 + $0xcc] sm:$0xf] %vm10354_vm4, %v11133_v13  ;;  %v11131_v60 = vpack.c.bf16 %v10083_v11, %v10083_v11  ;;  %v9879_v12 = vmax.f32 %v17436_v47, %v9878_v14  ;;  %v17443_v24 = vld [vmem:[#allocation68_spill] sm:$0xff]  ;;  %v17448_v49 = vld [vmem:[#allocation150_spill] sm:$0xff]  ;;  %v17449_v14 = vld [vmem:[#allocation193_spill] sm:$0xff] }
 0x3b8   : > { %v10024_v54 = vadd.f32 %v16101_v7, %v9827_v3  ;;  %v9811_v38 = vsel %vm9002_vm3, %v16138_v29, -inf  ;;  %v9797_v23 = vmax.f32 %v9795_v5, %v9796_v52  ;;  %v9848_v17 = vsel %vm9002_vm3, %v16165_v42, -inf  ;;  %v17441_v42 = vld [vmem:[#allocation66_spill] sm:$0xff] }
 0x3b9   : > { %v9842_v1 = vmax.f32 %v9840_v44, %v9841_v27  ;;  %v9810_v58 = vmax.f32 %v9808_v4, %v17437_v55  ;;  %10404 = vst.msk [vmem:[%s15612_s14 + $0xc4] sm:$0xf] %vm10354_vm4, %v11131_v60  ;;  %v9881_v22 = vmax.f32 %v9879_v12, %v17438_v41  ;;  %v9849_v35 = vmax.f32 %v17439_v48, %v9848_v17  ;;  %v17447_v27 = vld [vmem:[#allocation70_spill] sm:$0xff]  ;;  %v17450_v12 = vld [vmem:[#allocation213_spill] sm:$0xff]  ;;  %v17452_v55 = vld [vmem:[#allocation195_spill] sm:$0xff] }
 0x3ba   : > { %v10088_v61 = vmax.f32 %v10024_v54, 0.0  ;;  %v9893_v21 = vsel %vm9002_vm3, %v16171_v9, -inf  ;;  %v10022_v29 = vadd.f32 %v16101_v7, %v9797_v23  ;;  %v9863_v40 = vsel %vm9002_vm3, %v16177_v0, -inf  ;;  %v17446_v0 = vld [vmem:[#allocation191_spill] sm:$0xff]  ;;  %v17451_v23 = vld [vmem:[#allocation200_spill] sm:$0xff] }
 0x3bb   : > { %v10025_v33 = vadd.f32 %v16101_v7, %v9842_v1  ;;  %v9812_v18 = vmax.f32 %v9810_v58, %v9811_v38  ;;  %v9894_v15 = vmax.f32 %v17440_v16, %v9893_v21  ;;  %v9851_v59 = vmax.f32 %v9849_v35, %v17441_v42  ;;  %v17454_v35 = vld [vmem:[#allocation3_spill] sm:$0xff]  ;;  %v17458_v42 = vld [vmem:[#allocation197_spill] sm:$0xff] }
 0x3bc   : > { %v11136_v28 = vpack.c.bf16 %v10088_v61, %v10088_v61  ;;  %v9883_v2 = vmax.f32 %v9881_v22, %v17442_v19  ;;  %v10086_v10 = vmax.f32 %v10022_v29, 0.0  ;;  %v9864_v53 = vmax.f32 %v17444_v31, %v9863_v40  ;;  %v17453_v22 = vld [vmem:[#allocation71_spill] sm:$0xff]  ;;  %v17455_v29 = vld [vmem:[#allocation202_spill] sm:$0xff] }
 0x3bd   : > { %v10089_v46 = vmax.f32 %v10025_v33, 0.0  ;;  %v10023_v9 = vadd.f32 %v16101_v7, %v9812_v18  ;;  %v9896_v6 = vmax.f32 %v9894_v15, %v17443_v24  ;;  %v9886_v52 = vsel %vm9002_vm3, %v16167_v34, -inf  ;;  %v17456_v18 = vld [vmem:[#allocation204_spill] sm:$0xff]  ;;  %v17459_v19 = vld [vmem:[#allocation74_spill] sm:$0xff] }
 0x3be   : > { %10409 = vst.msk [vmem:[%s15612_s14 + $0xd8] sm:$0xf] %vm10354_vm4, %v11136_v28  ;;  %v9885_v8 = vmax.f32 %v9883_v2, %v17445_v30  ;;  %v9853_v43 = vmax.f32 %v9851_v59, %v17446_v0  ;;  %v11134_v20 = vpack.c.bf16 %v10086_v10, %v10086_v10  ;;  %v9856_v3 = vsel %vm9002_vm3, %v16173_v37, -inf  ;;  %v17460_v10 = vld [vmem:[#allocation168_spill] sm:$0xff] }
 0x3bf   : > { %v11137_v13 = vpack.c.bf16 %v10089_v46, %v10089_v46  ;;  %v10087_v11 = vmax.f32 %v10023_v9, 0.0  ;;  %v9866_v51 = vmax.f32 %v9864_v53, %v17447_v27  ;;  %v9898_v39 = vmax.f32 %v9896_v6, %v17449_v14  ;;  %v17461_v9 = vld [vmem:[#allocation169_spill] sm:$0xff] }
 0x3c0   : > { %v9887_v5 = vmax.f32 %v9885_v8, %v9886_v52  ;;  %v9855_v44 = vmax.f32 %v9853_v43, %v17448_v49  ;;  %10407 = vst.msk [vmem:[%s15612_s14 + $0xd0] sm:$0xf] %vm10354_vm4, %v11134_v20  ;;  %v9901_v4 = vsel %vm9002_vm3, %v16179_v57, -inf  ;;  %v9938_v60 = vsel %vm9002_vm3, %v16208_v56, -inf  ;;  %v17462_v53 = vld [vmem:[#allocation85_spill] sm:$0xff]  ;;  %v17463_v52 = vld [vmem:[#allocation72_spill] sm:$0xff] }
 0x3c1   : > { %10410 = vst.msk [vmem:[%s15612_s14 + $0xdc] sm:$0xf] %vm10354_vm4, %v11137_v13  ;;  %v11135_v34 = vpack.c.bf16 %v10087_v11, %v10087_v11  ;;  %v9871_v37 = vsel %vm9002_vm3, %v16188_v63, -inf  ;;  %v9900_v38 = vmax.f32 %v9898_v39, %v17450_v12  ;;  %v9939_v1 = vmax.f32 %v17451_v23, %v9938_v60  ;;  %v17464_v20 = vld [vmem:[#allocation199_spill] sm:$0xff]  ;;  %v17465_v11 = vld [vmem:[#allocation201_spill] sm:$0xff] }
 0x3c2   : > { %v10028_v54 = vadd.f32 %v16101_v7, %v9887_v5  ;;  %v9857_v47 = vmax.f32 %v9855_v44, %v9856_v3  ;;  %v9868_v58 = vmax.f32 %v9866_v51, %v17452_v55  ;;  %v9908_v57 = vsel %vm9002_vm3, %v16216_v32, -inf  ;;  %v17457_v32 = vld [vmem:[#allocation206_spill] sm:$0xff]  ;;  %v17466_v49 = vld [vmem:[#allocation203_spill] sm:$0xff] }
 0x3c3   : > { %10408 = vst.msk [vmem:[%s15612_s14 + $0xd4] sm:$0xf] %vm10354_vm4, %v11135_v34  ;;  %v9953_v56 = vsel %vm9002_vm3, %v16225_v62, -inf  ;;  %v9923_v63 = vsel %vm9002_vm3, %v16232_v36, -inf  ;;  %v9902_v41 = vmax.f32 %v9900_v38, %v9901_v4  ;;  %v9941_v48 = vmax.f32 %v9939_v1, %v17453_v22  ;;  %v17468_v34 = vld [vmem:[#allocation4_spill] sm:$0xff] }
 0x3c4   : > { %v10092_v17 = vmax.f32 %v10028_v54, 0.0  ;;  %v10026_v61 = vadd.f32 %v16101_v7, %v9857_v47  ;;  %v9870_v21 = vmax.f32 %v9868_v58, %v17454_v35  ;;  %v9909_v33 = vmax.f32 %v17455_v29, %v9908_v57 }
 0x3c5   : > { %v9954_v16 = vmax.f32 %v17456_v18, %v9953_v56  ;;  %v9924_v15 = vmax.f32 %v17457_v32, %v9923_v63  ;;  %v10029_v36 = vadd.f32 %v16101_v7, %v9902_v41  ;;  %v9943_v59 = vmax.f32 %v9941_v48, %v17458_v42 }
 0x3c6   : > { %v11140_v28 = vpack.c.bf16 %v10092_v17, %v10092_v17  ;;  %v10090_v62 = vmax.f32 %v10026_v61, 0.0  ;;  %v9872_v40 = vmax.f32 %v9870_v21, %v9871_v37  ;;  %v9911_v2 = vmax.f32 %v9909_v33, %v17459_v19 }
 0x3c7   : > { %v9956_v46 = vmax.f32 %v9954_v16, %v17460_v10  ;;  %v9926_v24 = vmax.f32 %v9924_v15, %v17461_v9  ;;  %v10093_v31 = vmax.f32 %v10029_v36, 0.0  ;;  %v9945_v30 = vmax.f32 %v9943_v59, %v17462_v53 }
 0x3c8   : > { %10413 = vst.msk [vmem:[%s15612_s14 + $0xe8] sm:$0xf] %vm10354_vm4, %v11140_v28  ;;  %v11138_v6 = vpack.c.bf16 %v10090_v62, %v10090_v62  ;;  %v9946_v8 = vsel %vm9002_vm3, %v16218_v25, -inf  ;;  %v9959_v0 = vsel %vm9002_vm3, %v17463_v52, -inf  ;;  %v10027_v43 = vadd.f32 %v16101_v7, %v9872_v40  ;;  %v17467_v25 = vld [vmem:[#allocation73_spill] sm:$0xff] }
 0x3c9   : > { %v9913_v13 = vmax.f32 %v9911_v2, %v17464_v20  ;;  %v9958_v3 = vmax.f32 %v9956_v46, %v17465_v11  ;;  %v11141_v27 = vpack.c.bf16 %v10093_v31, %v10093_v31  ;;  %v9947_v51 = vmax.f32 %v9945_v30, %v9946_v8 }
 0x3ca   : > { %10411 = vst.msk [vmem:[%s15612_s14 + $0xe0] sm:$0xf] %vm10354_vm4, %v11138_v6  ;;  %v9916_v5 = vsel %vm9002_vm3, %v16227_v45, -inf  ;;  %v9928_v44 = vmax.f32 %v9926_v24, %v17466_v49  ;;  %v9929_v14 = vsel %vm9002_vm3, %v17467_v25, -inf  ;;  %v10091_v39 = vmax.f32 %v10027_v43, 0.0 }
 0x3cb   : > { %v9915_v4 = vmax.f32 %v9913_v13, %v17468_v34  ;;  %v9960_v60 = vmax.f32 %v9958_v3, %v9959_v0  ;;  %10414 = vst.msk [vmem:[%s15612_s14 + $0xec] sm:$0xf] %vm10354_vm4, %v11141_v27  ;;  %v10032_v37 = vadd.f32 %v16101_v7, %v9947_v51  ;;  %v9961_v54 = vsel %vm9002_vm3, %v16234_v26, -inf }
 0x3cc   : > { %v9930_v47 = vmax.f32 %v9928_v44, %v9929_v14  ;;  %v11139_v45 = vpack.c.bf16 %v10091_v39, %v10091_v39  ;;  %v9931_v23 = vsel %vm9002_vm3, %v16239_v50, -inf }
 0x3cd   : > { %v9917_v12 = vmax.f32 %v9915_v4, %v9916_v5  ;;  %v9962_v38 = vmax.f32 %v9960_v60, %v9961_v54  ;;  %v10096_v1 = vmax.f32 %v10032_v37, 0.0 }
 0x3ce   : > { %v9932_v55 = vmax.f32 %v9930_v47, %v9931_v23  ;;  %10412 = vst.msk [vmem:[%s15612_s14 + $0xe4] sm:$0xf] %vm10354_vm4, %v11139_v45 }
 0x3cf   : > { %v10030_v58 = vadd.f32 %v16101_v7, %v9917_v12  ;;  %v10033_v57 = vadd.f32 %v16101_v7, %v9962_v38  ;;  %v11144_v56 = vpack.c.bf16 %v10096_v1, %v10096_v1 }
 0x3d0   : > { %v10031_v26 = vadd.f32 %v16101_v7, %v9932_v55 }
 0x3d1   : > { %v10094_v63 = vmax.f32 %v10030_v58, 0.0  ;;  %v10097_v17 = vmax.f32 %v10033_v57, 0.0  ;;  %10417 = vst.msk [vmem:[%s15612_s14 + $0xf8] sm:$0xf] %vm10354_vm4, %v11144_v56 }
 0x3d2   : > { %v10095_v61 = vmax.f32 %v10031_v26, 0.0 }
 0x3d3   : > { %v11142_v41 = vpack.c.bf16 %v10094_v63, %v10094_v63  ;;  %v11145_v50 = vpack.c.bf16 %v10097_v17, %v10097_v17 }
 0x3d4   : > { %v11143_v22 = vpack.c.bf16 %v10095_v61, %v10095_v61 }
 0x3d5   : > { %10415 = vst.msk [vmem:[%s15612_s14 + $0xf0] sm:$0xf] %vm10354_vm4, %v11142_v41  ;;  %10418 = vst.msk [vmem:[%s15612_s14 + $0xfc] sm:$0xf] %vm10354_vm4, %v11145_v50 }
 0x3d6   : > { %10416 = vst.msk [vmem:[%s15612_s14 + $0xf4] sm:$0xf] %vm10354_vm4, %v11143_v22 }
 0x3d7 PF: > { %p10_p9 = scmp.ge.s32.totalorder %s12270_s16, 4   ;;  %s17469_s12 = smov %s12226_s13 }
 0x3d8   : > { %s17470_s13 = smov %s12279_s19  ;;  %s17471_s14 = smov %s12270_s16 }
 0x3d9   :  { %12 = sbr.rel (!%p10_p9) target bundleno = 2 (0x2), region = 123 }

// kernel: forward.4
= control target key start
LH: loop header
LB: loop body
LE: loop exit
PB: predicated region body
PF: predicated region fallthrough
CT: control target
= control target key end

     0   :  { %s2896_s12 = smov 0   ;;  %s2898_s13 = smov 0   ;;  %s3702_s0 = inlined_call_operand.vmem [shape: bf16[8,128,432], index: 0, kind: input, shape index: {}]   ;;  %s3703_s1 = inlined_call_operand.vmem [shape: bf16[432,32], index: 1, kind: input, shape index: {}]   ;;  %s3704_s2 = inlined_call_operand.vmem [shape: f32[1,32], index: 2, kind: input, shape index: {}]   ;;  %s3705_s3 = inlined_call_operand.vmem [shape: bf16[128,32], index: 3, kind: output, shape index: {}]  }
   0x1   :  { %s2900_s14 = smov 0  }
   0x2 LB: > { %s2323_s15 = sadd.s32 4294967295, %s2873_s14   ;;  %s2913_s16 = sadd.s32 1, %s2873_s14   ;;  %s2873_s14 = sphi %s2900_s14, %s3708_s14   ;;  %s2869_s13 = sphi %s2898_s13, %s3707_s13   ;;  %s2865_s12 = sphi %s2896_s12, %s3706_s12  }
   0x3   : > { %s17_s17 = ssub.s32 %s2873_s14, %s2913_s16  ;;  %s20_s18 = sadd.s32 1, %s2869_s13 }
   0x4   : > { %p18_p0 = scmp.eq.s32.totalorder %s17_s17, 0  ;;  %p27_p1 = scmp.ne.s32.totalorder %s2869_s13, %s2865_s12 }
   0x5   : > { %p28_p2 = scmp.eq.s32.totalorder %s2873_s14, 0  ;;  %p2326_p4 = scmp.ge.s32.totalorder %s2873_s14, 2 }
   0x6   : > { %s2922_s19 = scalar_select %p18_p0, %s2869_s13, %s20_s18  }
   0x7   : > { %p29_p3 = por %p28_p2, %p27_p1  ;;  %127 = sbr.rel (%p2326_p4) target bundleno = 82 (0x52), region = 24 }
   0xe   : > { %130 = sbr.rel (!%p29_p3) target bundleno = 82 (0x52), region = 28  ;;  %s132_s20 = sand.u32 (%p29_p3), 1, %s2869_s13  }
   0xf   : > { %s2534_s21 = sshll.u32 (%p29_p3), %s2873_s14, 7  ;;  %s2327_s22 = sshll.u32 (%p29_p3), %s132_s20, 10 }
  0x10   : > { %s2930_s25 = scalar_lea.vmem (%p29_p3), %s3702_s0, %s2534_s21  ;;  %s2935_s26 = scalar_lea.vmem (%p29_p3), [#allocation2], %s2327_s22 }
  0x11   : > { %v151_v0 = vld [vmem:[%s2930_s25] sm:$0xff] (%p29_p3)  ;;  %v153_v1 = vld [vmem:[%s2930_s25 + $0x8] sm:$0xff] (%p29_p3)  ;;  %v155_v2 = vld [vmem:[%s2930_s25 + $0x10] sm:$0xff] (%p29_p3) }
  0x12   : > { %152 = vst [vmem:[%s2935_s26] sm:$0xff] (%p29_p3), %v151_v0  ;;  %154 = vst [vmem:[%s2935_s26 + $0x8] sm:$0xff] (%p29_p3), %v153_v1  ;;  %v157_v3 = vld [vmem:[%s2930_s25 + $0x18] sm:$0xff] (%p29_p3)  ;;  %v159_v4 = vld [vmem:[%s2930_s25 + $0x20] sm:$0xff] (%p29_p3) }
  0x13   : > { %156 = vst [vmem:[%s2935_s26 + $0x10] sm:$0xff] (%p29_p3), %v155_v2  ;;  %v161_v5 = vld [vmem:[%s2930_s25 + $0x28] sm:$0xff] (%p29_p3)  ;;  %158 = vst [vmem:[%s2935_s26 + $0x18] sm:$0xff] (%p29_p3), %v157_v3  ;;  %v163_v6 = vld [vmem:[%s2930_s25 + $0x30] sm:$0xff] (%p29_p3) }
  0x14   : > { %160 = vst [vmem:[%s2935_s26 + $0x20] sm:$0xff] (%p29_p3), %v159_v4  ;;  %162 = vst [vmem:[%s2935_s26 + $0x28] sm:$0xff] (%p29_p3), %v161_v5  ;;  %v165_v7 = vld [vmem:[%s2930_s25 + $0x38] sm:$0xff] (%p29_p3)  ;;  %v167_v8 = vld [vmem:[%s2930_s25 + $0x40] sm:$0xff] (%p29_p3) }
  0x15   : > { %164 = vst [vmem:[%s2935_s26 + $0x30] sm:$0xff] %v163_v6  ;;  %166 = vst [vmem:[%s2935_s26 + $0x38] sm:$0xff] %v165_v7  ;;  %v169_v9 = vld [vmem:[%s2930_s25 + $0x48] sm:$0xff]  ;;  %v171_v10 = vld [vmem:[%s2930_s25 + $0x50] sm:$0xff] }
  0x16   : > { %168 = vst [vmem:[%s2935_s26 + $0x40] sm:$0xff] %v167_v8  ;;  %v173_v11 = vld [vmem:[%s2930_s25 + $0x58] sm:$0xff]  ;;  %170 = vst [vmem:[%s2935_s26 + $0x48] sm:$0xff] %v169_v9  ;;  %v175_v12 = vld [vmem:[%s2930_s25 + $0x60] sm:$0xff] }
  0x17   : > { %172 = vst [vmem:[%s2935_s26 + $0x50] sm:$0xff] %v171_v10  ;;  %174 = vst [vmem:[%s2935_s26 + $0x58] sm:$0xff] %v173_v11  ;;  %v177_v13 = vld [vmem:[%s2930_s25 + $0x68] sm:$0xff]  ;;  %v179_v14 = vld [vmem:[%s2930_s25 + $0x70] sm:$0xff] }
  0x18   : > { %176 = vst [vmem:[%s2935_s26 + $0x60] sm:$0xff] %v175_v12  ;;  %178 = vst [vmem:[%s2935_s26 + $0x68] sm:$0xff] %v177_v13  ;;  %v181_v15 = vld [vmem:[%s2930_s25 + $0x78] sm:$0xff]  ;;  %v183_v16 = vld [vmem:[%s2930_s25 + $0x100] sm:$0xff] }
  0x19   : > { %180 = vst [vmem:[%s2935_s26 + $0x70] sm:$0xff] %v179_v14  ;;  %v185_v17 = vld [vmem:[%s2930_s25 + $0x108] sm:$0xff]  ;;  %182 = vst [vmem:[%s2935_s26 + $0x78] sm:$0xff] %v181_v15  ;;  %v187_v18 = vld [vmem:[%s2930_s25 + $0x110] sm:$0xff] }
  0x1a   : > { %184 = vst [vmem:[%s2935_s26 + $0x80] sm:$0xff] %v183_v16  ;;  %186 = vst [vmem:[%s2935_s26 + $0x88] sm:$0xff] %v185_v17  ;;  %v189_v19 = vld [vmem:[%s2930_s25 + $0x118] sm:$0xff]  ;;  %v191_v20 = vld [vmem:[%s2930_s25 + $0x120] sm:$0xff] }
  0x1b   : > { %188 = vst [vmem:[%s2935_s26 + $0x90] sm:$0xff] %v187_v18  ;;  %190 = vst [vmem:[%s2935_s26 + $0x98] sm:$0xff] %v189_v19  ;;  %v193_v21 = vld [vmem:[%s2930_s25 + $0x128] sm:$0xff]  ;;  %v195_v22 = vld [vmem:[%s2930_s25 + $0x130] sm:$0xff] }
  0x1c   : > { %192 = vst [vmem:[%s2935_s26 + $0xa0] sm:$0xff] %v191_v20  ;;  %v197_v23 = vld [vmem:[%s2930_s25 + $0x138] sm:$0xff]  ;;  %194 = vst [vmem:[%s2935_s26 + $0xa8] sm:$0xff] %v193_v21  ;;  %v199_v24 = vld [vmem:[%s2930_s25 + $0x140] sm:$0xff] }
  0x1d   : > { %196 = vst [vmem:[%s2935_s26 + $0xb0] sm:$0xff] %v195_v22  ;;  %198 = vst [vmem:[%s2935_s26 + $0xb8] sm:$0xff] %v197_v23  ;;  %v201_v25 = vld [vmem:[%s2930_s25 + $0x148] sm:$0xff]  ;;  %v203_v26 = vld [vmem:[%s2930_s25 + $0x150] sm:$0xff] }
  0x1e   : > { %200 = vst [vmem:[%s2935_s26 + $0xc0] sm:$0xff] %v199_v24  ;;  %202 = vst [vmem:[%s2935_s26 + $0xc8] sm:$0xff] %v201_v25  ;;  %v205_v27 = vld [vmem:[%s2930_s25 + $0x158] sm:$0xff]  ;;  %v207_v28 = vld [vmem:[%s2930_s25 + $0x160] sm:$0xff] }
  0x1f   : > { %204 = vst [vmem:[%s2935_s26 + $0xd0] sm:$0xff] %v203_v26  ;;  %v209_v29 = vld [vmem:[%s2930_s25 + $0x168] sm:$0xff]  ;;  %206 = vst [vmem:[%s2935_s26 + $0xd8] sm:$0xff] %v205_v27  ;;  %v211_v30 = vld [vmem:[%s2930_s25 + $0x170] sm:$0xff] }
  0x20   : > { %208 = vst [vmem:[%s2935_s26 + $0xe0] sm:$0xff] %v207_v28  ;;  %210 = vst [vmem:[%s2935_s26 + $0xe8] sm:$0xff] %v209_v29  ;;  %v213_v31 = vld [vmem:[%s2930_s25 + $0x178] sm:$0xff]  ;;  %v215_v32 = vld [vmem:[%s2930_s25 + $0x200] sm:$0xff] }
  0x21   : > { %212 = vst [vmem:[%s2935_s26 + $0xf0] sm:$0xff] %v211_v30  ;;  %214 = vst [vmem:[%s2935_s26 + $0xf8] sm:$0xff] %v213_v31  ;;  %v217_v33 = vld [vmem:[%s2930_s25 + $0x208] sm:$0xff]  ;;  %v219_v34 = vld [vmem:[%s2930_s25 + $0x210] sm:$0xff] }
  0x22   : > { %216 = vst [vmem:[%s2935_s26 + $0x100] sm:$0xff] %v215_v32  ;;  %v221_v35 = vld [vmem:[%s2930_s25 + $0x218] sm:$0xff]  ;;  %218 = vst [vmem:[%s2935_s26 + $0x108] sm:$0xff] %v217_v33  ;;  %v223_v36 = vld [vmem:[%s2930_s25 + $0x220] sm:$0xff] }
  0x23   : > { %220 = vst [vmem:[%s2935_s26 + $0x110] sm:$0xff] %v219_v34  ;;  %222 = vst [vmem:[%s2935_s26 + $0x118] sm:$0xff] %v221_v35  ;;  %v225_v37 = vld [vmem:[%s2930_s25 + $0x228] sm:$0xff]  ;;  %v227_v38 = vld [vmem:[%s2930_s25 + $0x230] sm:$0xff] }
  0x24   : > { %224 = vst [vmem:[%s2935_s26 + $0x120] sm:$0xff] %v223_v36  ;;  %226 = vst [vmem:[%s2935_s26 + $0x128] sm:$0xff] %v225_v37  ;;  %v229_v39 = vld [vmem:[%s2930_s25 + $0x238] sm:$0xff]  ;;  %v231_v40 = vld [vmem:[%s2930_s25 + $0x240] sm:$0xff] }
  0x25   : > { %228 = vst [vmem:[%s2935_s26 + $0x130] sm:$0xff] %v227_v38  ;;  %v233_v41 = vld [vmem:[%s2930_s25 + $0x248] sm:$0xff]  ;;  %230 = vst [vmem:[%s2935_s26 + $0x138] sm:$0xff] %v229_v39  ;;  %v235_v42 = vld [vmem:[%s2930_s25 + $0x250] sm:$0xff] }
  0x26   : > { %232 = vst [vmem:[%s2935_s26 + $0x140] sm:$0xff] %v231_v40  ;;  %234 = vst [vmem:[%s2935_s26 + $0x148] sm:$0xff] %v233_v41  ;;  %v237_v43 = vld [vmem:[%s2930_s25 + $0x258] sm:$0xff]  ;;  %v239_v44 = vld [vmem:[%s2930_s25 + $0x260] sm:$0xff] }
  0x27   : > { %236 = vst [vmem:[%s2935_s26 + $0x150] sm:$0xff] %v235_v42  ;;  %238 = vst [vmem:[%s2935_s26 + $0x158] sm:$0xff] %v237_v43  ;;  %v241_v45 = vld [vmem:[%s2930_s25 + $0x268] sm:$0xff]  ;;  %v243_v46 = vld [vmem:[%s2930_s25 + $0x270] sm:$0xff] }
  0x28   : > { %240 = vst [vmem:[%s2935_s26 + $0x160] sm:$0xff] %v239_v44  ;;  %v245_v47 = vld [vmem:[%s2930_s25 + $0x278] sm:$0xff]  ;;  %242 = vst [vmem:[%s2935_s26 + $0x168] sm:$0xff] %v241_v45  ;;  %v247_v48 = vld [vmem:[%s2930_s25 + $0x300] sm:$0xff] }
  0x29   : > { %244 = vst [vmem:[%s2935_s26 + $0x170] sm:$0xff] %v243_v46  ;;  %246 = vst [vmem:[%s2935_s26 + $0x178] sm:$0xff] %v245_v47  ;;  %v249_v49 = vld [vmem:[%s2930_s25 + $0x308] sm:$0xff]  ;;  %v251_v50 = vld [vmem:[%s2930_s25 + $0x310] sm:$0xff] }
  0x2a   : > { %248 = vst [vmem:[%s2935_s26 + $0x180] sm:$0xff] %v247_v48  ;;  %250 = vst [vmem:[%s2935_s26 + $0x188] sm:$0xff] %v249_v49  ;;  %v253_v51 = vld [vmem:[%s2930_s25 + $0x318] sm:$0xff]  ;;  %v255_v52 = vld [vmem:[%s2930_s25 + $0x320] sm:$0xff] }
  0x2b   : > { %252 = vst [vmem:[%s2935_s26 + $0x190] sm:$0xff] %v251_v50  ;;  %v257_v53 = vld [vmem:[%s2930_s25 + $0x328] sm:$0xff]  ;;  %254 = vst [vmem:[%s2935_s26 + $0x198] sm:$0xff] %v253_v51  ;;  %v259_v54 = vld [vmem:[%s2930_s25 + $0x330] sm:$0xff] }
  0x2c   : > { %256 = vst [vmem:[%s2935_s26 + $0x1a0] sm:$0xff] %v255_v52  ;;  %258 = vst [vmem:[%s2935_s26 + $0x1a8] sm:$0xff] %v257_v53  ;;  %v261_v55 = vld [vmem:[%s2930_s25 + $0x338] sm:$0xff]  ;;  %v263_v56 = vld [vmem:[%s2930_s25 + $0x340] sm:$0xff] }
  0x2d   : > { %260 = vst [vmem:[%s2935_s26 + $0x1b0] sm:$0xff] %v259_v54  ;;  %262 = vst [vmem:[%s2935_s26 + $0x1b8] sm:$0xff] %v261_v55  ;;  %v265_v57 = vld [vmem:[%s2930_s25 + $0x348] sm:$0xff]  ;;  %v267_v58 = vld [vmem:[%s2930_s25 + $0x350] sm:$0xff] }
  0x2e   : > { %264 = vst [vmem:[%s2935_s26 + $0x1c0] sm:$0xff] %v263_v56  ;;  %v269_v59 = vld [vmem:[%s2930_s25 + $0x358] sm:$0xff]  ;;  %266 = vst [vmem:[%s2935_s26 + $0x1c8] sm:$0xff] %v265_v57  ;;  %v271_v60 = vld [vmem:[%s2930_s25 + $0x360] sm:$0xff] }
  0x2f   : > { %268 = vst [vmem:[%s2935_s26 + $0x1d0] sm:$0xff] %v267_v58  ;;  %270 = vst [vmem:[%s2935_s26 + $0x1d8] sm:$0xff] %v269_v59  ;;  %v273_v61 = vld [vmem:[%s2930_s25 + $0x368] sm:$0xff]  ;;  %v275_v62 = vld [vmem:[%s2930_s25 + $0x370] sm:$0xff] }
  0x30   : > { %272 = vst [vmem:[%s2935_s26 + $0x1e0] sm:$0xff] %v271_v60  ;;  %274 = vst [vmem:[%s2935_s26 + $0x1e8] sm:$0xff] %v273_v61  ;;  %v277_v63 = vld [vmem:[%s2930_s25 + $0x378] sm:$0xff]  ;;  %v279_v0 = vld [vmem:[%s2930_s25 + $0x400] sm:$0xff] }
  0x31   : > { %276 = vst [vmem:[%s2935_s26 + $0x1f0] sm:$0xff] %v275_v62  ;;  %v281_v1 = vld [vmem:[%s2930_s25 + $0x408] sm:$0xff]  ;;  %278 = vst [vmem:[%s2935_s26 + $0x1f8] sm:$0xff] %v277_v63  ;;  %v283_v2 = vld [vmem:[%s2930_s25 + $0x410] sm:$0xff] }
  0x32   : > { %280 = vst [vmem:[%s2935_s26 + $0x200] sm:$0xff] %v279_v0  ;;  %282 = vst [vmem:[%s2935_s26 + $0x208] sm:$0xff] %v281_v1  ;;  %v285_v3 = vld [vmem:[%s2930_s25 + $0x418] sm:$0xff]  ;;  %v287_v4 = vld [vmem:[%s2930_s25 + $0x420] sm:$0xff] }
  0x33   : > { %284 = vst [vmem:[%s2935_s26 + $0x210] sm:$0xff] %v283_v2  ;;  %286 = vst [vmem:[%s2935_s26 + $0x218] sm:$0xff] %v285_v3  ;;  %v289_v5 = vld [vmem:[%s2930_s25 + $0x428] sm:$0xff]  ;;  %v291_v6 = vld [vmem:[%s2930_s25 + $0x430] sm:$0xff] }
  0x34   : > { %288 = vst [vmem:[%s2935_s26 + $0x220] sm:$0xff] %v287_v4  ;;  %v293_v7 = vld [vmem:[%s2930_s25 + $0x438] sm:$0xff]  ;;  %290 = vst [vmem:[%s2935_s26 + $0x228] sm:$0xff] %v289_v5  ;;  %v295_v8 = vld [vmem:[%s2930_s25 + $0x440] sm:$0xff] }
  0x35   : > { %292 = vst [vmem:[%s2935_s26 + $0x230] sm:$0xff] %v291_v6  ;;  %294 = vst [vmem:[%s2935_s26 + $0x238] sm:$0xff] %v293_v7  ;;  %v297_v9 = vld [vmem:[%s2930_s25 + $0x448] sm:$0xff]  ;;  %v299_v10 = vld [vmem:[%s2930_s25 + $0x450] sm:$0xff] }
  0x36   : > { %296 = vst [vmem:[%s2935_s26 + $0x240] sm:$0xff] %v295_v8  ;;  %298 = vst [vmem:[%s2935_s26 + $0x248] sm:$0xff] %v297_v9  ;;  %v301_v11 = vld [vmem:[%s2930_s25 + $0x458] sm:$0xff]  ;;  %v303_v12 = vld [vmem:[%s2930_s25 + $0x460] sm:$0xff] }
  0x37   : > { %300 = vst [vmem:[%s2935_s26 + $0x250] sm:$0xff] %v299_v10  ;;  %v305_v13 = vld [vmem:[%s2930_s25 + $0x468] sm:$0xff]  ;;  %302 = vst [vmem:[%s2935_s26 + $0x258] sm:$0xff] %v301_v11  ;;  %v307_v14 = vld [vmem:[%s2930_s25 + $0x470] sm:$0xff] }
  0x38   : > { %304 = vst [vmem:[%s2935_s26 + $0x260] sm:$0xff] %v303_v12  ;;  %306 = vst [vmem:[%s2935_s26 + $0x268] sm:$0xff] %v305_v13  ;;  %v309_v15 = vld [vmem:[%s2930_s25 + $0x478] sm:$0xff]  ;;  %v311_v16 = vld [vmem:[%s2930_s25 + $0x500] sm:$0xff] }
  0x39   : > { %308 = vst [vmem:[%s2935_s26 + $0x270] sm:$0xff] %v307_v14  ;;  %310 = vst [vmem:[%s2935_s26 + $0x278] sm:$0xff] %v309_v15  ;;  %v313_v17 = vld [vmem:[%s2930_s25 + $0x508] sm:$0xff]  ;;  %v315_v18 = vld [vmem:[%s2930_s25 + $0x510] sm:$0xff] }
  0x3a   : > { %312 = vst [vmem:[%s2935_s26 + $0x280] sm:$0xff] %v311_v16  ;;  %v317_v19 = vld [vmem:[%s2930_s25 + $0x518] sm:$0xff]  ;;  %314 = vst [vmem:[%s2935_s26 + $0x288] sm:$0xff] %v313_v17  ;;  %v319_v20 = vld [vmem:[%s2930_s25 + $0x520] sm:$0xff] }
  0x3b   : > { %316 = vst [vmem:[%s2935_s26 + $0x290] sm:$0xff] %v315_v18  ;;  %318 = vst [vmem:[%s2935_s26 + $0x298] sm:$0xff] %v317_v19  ;;  %v321_v21 = vld [vmem:[%s2930_s25 + $0x528] sm:$0xff]  ;;  %v323_v22 = vld [vmem:[%s2930_s25 + $0x530] sm:$0xff] }
  0x3c   : > { %320 = vst [vmem:[%s2935_s26 + $0x2a0] sm:$0xff] %v319_v20  ;;  %322 = vst [vmem:[%s2935_s26 + $0x2a8] sm:$0xff] %v321_v21  ;;  %v325_v23 = vld [vmem:[%s2930_s25 + $0x538] sm:$0xff]  ;;  %v327_v24 = vld [vmem:[%s2930_s25 + $0x540] sm:$0xff] }
  0x3d   : > { %324 = vst [vmem:[%s2935_s26 + $0x2b0] sm:$0xff] %v323_v22  ;;  %v329_v25 = vld [vmem:[%s2930_s25 + $0x548] sm:$0xff]  ;;  %326 = vst [vmem:[%s2935_s26 + $0x2b8] sm:$0xff] %v325_v23  ;;  %v331_v26 = vld [vmem:[%s2930_s25 + $0x550] sm:$0xff] }
  0x3e   : > { %328 = vst [vmem:[%s2935_s26 + $0x2c0] sm:$0xff] %v327_v24  ;;  %330 = vst [vmem:[%s2935_s26 + $0x2c8] sm:$0xff] %v329_v25  ;;  %v333_v27 = vld [vmem:[%s2930_s25 + $0x558] sm:$0xff]  ;;  %v335_v28 = vld [vmem:[%s2930_s25 + $0x560] sm:$0xff] }
  0x3f   : > { %332 = vst [vmem:[%s2935_s26 + $0x2d0] sm:$0xff] %v331_v26  ;;  %334 = vst [vmem:[%s2935_s26 + $0x2d8] sm:$0xff] %v333_v27  ;;  %v337_v29 = vld [vmem:[%s2930_s25 + $0x568] sm:$0xff]  ;;  %v339_v30 = vld [vmem:[%s2930_s25 + $0x570] sm:$0xff] }
  0x40   : > { %336 = vst [vmem:[%s2935_s26 + $0x2e0] sm:$0xff] %v335_v28  ;;  %v341_v31 = vld [vmem:[%s2930_s25 + $0x578] sm:$0xff]  ;;  %338 = vst [vmem:[%s2935_s26 + $0x2e8] sm:$0xff] %v337_v29  ;;  %v343_v32 = vld [vmem:[%s2930_s25 + $0x600] sm:$0xff] }
  0x41   : > { %340 = vst [vmem:[%s2935_s26 + $0x2f0] sm:$0xff] %v339_v30  ;;  %342 = vst [vmem:[%s2935_s26 + $0x2f8] sm:$0xff] %v341_v31  ;;  %v345_v33 = vld [vmem:[%s2930_s25 + $0x608] sm:$0xff]  ;;  %v347_v34 = vld [vmem:[%s2930_s25 + $0x610] sm:$0xff] }
  0x42   : > { %344 = vst [vmem:[%s2935_s26 + $0x300] sm:$0xff] %v343_v32  ;;  %346 = vst [vmem:[%s2935_s26 + $0x308] sm:$0xff] %v345_v33  ;;  %v349_v35 = vld [vmem:[%s2930_s25 + $0x618] sm:$0xff]  ;;  %v351_v36 = vld [vmem:[%s2930_s25 + $0x620] sm:$0xff] }
  0x43   : > { %348 = vst [vmem:[%s2935_s26 + $0x310] sm:$0xff] %v347_v34  ;;  %v353_v37 = vld [vmem:[%s2930_s25 + $0x628] sm:$0xff]  ;;  %350 = vst [vmem:[%s2935_s26 + $0x318] sm:$0xff] %v349_v35  ;;  %v355_v38 = vld [vmem:[%s2930_s25 + $0x630] sm:$0xff] }
  0x44   : > { %352 = vst [vmem:[%s2935_s26 + $0x320] sm:$0xff] %v351_v36  ;;  %354 = vst [vmem:[%s2935_s26 + $0x328] sm:$0xff] %v353_v37  ;;  %v357_v39 = vld [vmem:[%s2930_s25 + $0x638] sm:$0xff]  ;;  %v359_v40 = vld [vmem:[%s2930_s25 + $0x640] sm:$0xff] }
  0x45   : > { %356 = vst [vmem:[%s2935_s26 + $0x330] sm:$0xff] %v355_v38  ;;  %358 = vst [vmem:[%s2935_s26 + $0x338] sm:$0xff] %v357_v39  ;;  %v361_v41 = vld [vmem:[%s2930_s25 + $0x648] sm:$0xff]  ;;  %v363_v42 = vld [vmem:[%s2930_s25 + $0x650] sm:$0xff] }
  0x46   : > { %360 = vst [vmem:[%s2935_s26 + $0x340] sm:$0xff] %v359_v40  ;;  %v365_v43 = vld [vmem:[%s2930_s25 + $0x658] sm:$0xff]  ;;  %362 = vst [vmem:[%s2935_s26 + $0x348] sm:$0xff] %v361_v41  ;;  %v367_v44 = vld [vmem:[%s2930_s25 + $0x660] sm:$0xff] }
  0x47   : > { %364 = vst [vmem:[%s2935_s26 + $0x350] sm:$0xff] %v363_v42  ;;  %366 = vst [vmem:[%s2935_s26 + $0x358] sm:$0xff] %v365_v43  ;;  %v369_v45 = vld [vmem:[%s2930_s25 + $0x668] sm:$0xff]  ;;  %v371_v46 = vld [vmem:[%s2930_s25 + $0x670] sm:$0xff] }
  0x48   : > { %368 = vst [vmem:[%s2935_s26 + $0x360] sm:$0xff] %v367_v44  ;;  %370 = vst [vmem:[%s2935_s26 + $0x368] sm:$0xff] %v369_v45  ;;  %v373_v47 = vld [vmem:[%s2930_s25 + $0x678] sm:$0xff]  ;;  %v375_v48 = vld [vmem:[%s2930_s25 + $0x700] sm:$0xff] }
  0x49   : > { %372 = vst [vmem:[%s2935_s26 + $0x370] sm:$0xff] %v371_v46  ;;  %v377_v49 = vld [vmem:[%s2930_s25 + $0x708] sm:$0xff]  ;;  %374 = vst [vmem:[%s2935_s26 + $0x378] sm:$0xff] %v373_v47  ;;  %v379_v50 = vld [vmem:[%s2930_s25 + $0x710] sm:$0xff] }
  0x4a   : > { %376 = vst [vmem:[%s2935_s26 + $0x380] sm:$0xff] %v375_v48  ;;  %378 = vst [vmem:[%s2935_s26 + $0x388] sm:$0xff] %v377_v49  ;;  %v381_v51 = vld [vmem:[%s2930_s25 + $0x718] sm:$0xff]  ;;  %v383_v52 = vld [vmem:[%s2930_s25 + $0x720] sm:$0xff] }
  0x4b   : > { %380 = vst [vmem:[%s2935_s26 + $0x390] sm:$0xff] %v379_v50  ;;  %382 = vst [vmem:[%s2935_s26 + $0x398] sm:$0xff] %v381_v51  ;;  %v385_v53 = vld [vmem:[%s2930_s25 + $0x728] sm:$0xff]  ;;  %v387_v54 = vld [vmem:[%s2930_s25 + $0x730] sm:$0xff] }
  0x4c   : > { %384 = vst [vmem:[%s2935_s26 + $0x3a0] sm:$0xff] %v383_v52  ;;  %v389_v55 = vld [vmem:[%s2930_s25 + $0x738] sm:$0xff]  ;;  %386 = vst [vmem:[%s2935_s26 + $0x3a8] sm:$0xff] %v385_v53  ;;  %v391_v56 = vld [vmem:[%s2930_s25 + $0x740] sm:$0xff] }
  0x4d   : > { %388 = vst [vmem:[%s2935_s26 + $0x3b0] sm:$0xff] %v387_v54  ;;  %390 = vst [vmem:[%s2935_s26 + $0x3b8] sm:$0xff] %v389_v55  ;;  %v393_v57 = vld [vmem:[%s2930_s25 + $0x748] sm:$0xff]  ;;  %v395_v58 = vld [vmem:[%s2930_s25 + $0x750] sm:$0xff] }
  0x4e   : > { %392 = vst [vmem:[%s2935_s26 + $0x3c0] sm:$0xff] %v391_v56  ;;  %394 = vst [vmem:[%s2935_s26 + $0x3c8] sm:$0xff] %v393_v57  ;;  %v397_v59 = vld [vmem:[%s2930_s25 + $0x758] sm:$0xff]  ;;  %v399_v60 = vld [vmem:[%s2930_s25 + $0x760] sm:$0xff] }
  0x4f   : > { %396 = vst [vmem:[%s2935_s26 + $0x3d0] sm:$0xff] %v395_v58  ;;  %v401_v61 = vld [vmem:[%s2930_s25 + $0x768] sm:$0xff]  ;;  %398 = vst [vmem:[%s2935_s26 + $0x3d8] sm:$0xff] %v397_v59  ;;  %v403_v62 = vld [vmem:[%s2930_s25 + $0x770] sm:$0xff] }
  0x50   : > { %400 = vst [vmem:[%s2935_s26 + $0x3e0] sm:$0xff] %v399_v60  ;;  %402 = vst [vmem:[%s2935_s26 + $0x3e8] sm:$0xff] %v401_v61  ;;  %v405_v63 = vld [vmem:[%s2930_s25 + $0x778] sm:$0xff] }
  0x51   : > { %404 = vst [vmem:[%s2935_s26 + $0x3f0] sm:$0xff] %v403_v62  ;;  %406 = vst [vmem:[%s2935_s26 + $0x3f8] sm:$0xff] %v405_v63 }
  0x52 PF: > { %p2331_p5 = scmp.ge.s32.totalorder %s2873_s14, 1  ;;  %p411_p6 = scmp.lt.s32.totalorder %s2873_s14, 3 }
  0x54   : > { %p412_p7 = pnand %p2331_p5, %p411_p6 }
  0x55   : > { %v2632_v0 = vld [vmem:[%s3703_s1] sm:$0xff] (!%p412_p7)   ;;  %v2875_v1 = vmov (!%p412_p7), 0   ;;  %v2633_v2 = vld [vmem:[%s3703_s1 + $0x8] sm:$0xff] (!%p412_p7)   ;;  %v2634_v4 = vld [vmem:[%s3703_s1 + $0x10] sm:$0xff] (!%p412_p7)   ;;  %s418_s26 = sand.u32 (!%p412_p7), 1, %s2865_s12   ;;  %vm1401_vm0 = vcmask (!%p412_p7), 392192  }
  0x56   : > { %415 = sbr.rel (%p412_p7) target bundleno = 624 (0x270), region = 51  ;;  %1498 = vmatprep.subr.bf16.mxu1 (!%p412_p7), %v2875_v1  ;;  %1787 = vmatprep.subr.bf16.mxu0 (!%p412_p7), %v2875_v1  ;;  %v2637_v3 = vld [vmem:[%s3703_s1 + $0x80] sm:$0xff] (!%p412_p7)   ;;  %v2639_v5 = vld [vmem:[%s3703_s1 + $0x88] sm:$0xff] (!%p412_p7)   ;;  %v2635_v6 = vld [vmem:[%s3703_s1 + $0x18] sm:$0xff] (!%p412_p7)   ;;  %s2332_s29 = sshll.u32 (!%p412_p7), %s418_s26, 10  ;;  %vm2076_vm1 = vcmask (!%p412_p7), 261120  }
  0x57   : > { %1499 = vmatpush1.bf16.msra.mxu1 (!%p412_p7), %v2632_v0  ;;  %1788 = vmatpush1.bf16.msra.mxu0 (!%p412_p7), %v2637_v3  ;;  %v2641_v7 = vld [vmem:[%s3703_s1 + $0x90] sm:$0xff] (!%p412_p7)   ;;  %v2636_v8 = vld [vmem:[%s3703_s1 + $0x20] sm:$0xff] (!%p412_p7)   ;;  %v2643_v9 = vld [vmem:[%s3703_s1 + $0x98] sm:$0xff] (!%p412_p7)   ;;  %s3251_s10 = scalar_lea.vmem (!%p412_p7), [#allocation2], %s2332_s29  ;;  %vm2252_vm2 = vcmask (!%p412_p7), 257024  }
  0x58   : > { %1500 = vmatprep.subr.bf16.mxu1 (!%p412_p7), %v2875_v1  ;;  %1789 = vmatprep.subr.bf16.mxu0 (!%p412_p7), %v2875_v1  ;;  %v2638_v10 = vld [vmem:[%s3703_s1 + $0x28] sm:$0xff] (!%p412_p7)   ;;  %v2645_v11 = vld [vmem:[%s3703_s1 + $0xa0] sm:$0xff] (!%p412_p7)   ;;  %v2640_v12 = vld [vmem:[%s3703_s1 + $0x30] sm:$0xff] (!%p412_p7)  }
  0x59   : > { %v2647_v13 = vld [vmem:[%s3703_s1 + $0xa8] sm:$0xff] (!%p412_p7)   ;;  %v2642_v14 = vld [vmem:[%s3703_s1 + $0x38] sm:$0xff] (!%p412_p7)   ;;  %v2649_v15 = vld [vmem:[%s3703_s1 + $0xb0] sm:$0xff] (!%p412_p7)  }
  0x5a   : > { %v2660_v16 = vld [vmem:[%s3251_s10 + $0xc] ss:$16 sps:$4 sm:$0xff] (!%p412_p7)   ;;  %v2664_v17 = vld [vmem:[%s3251_s10 + $0x4] ss:$16 sps:$4 sm:$0xff] (!%p412_p7)   ;;  %v2658_v27 = vld [vmem:[%s3251_s10 + $0x8] ss:$16 sps:$4 sm:$0xff] (!%p412_p7)  }
  0x5b   : > { %1501 = vmatpush1.bf16.msra.mxu1 (!%p412_p7), %v2633_v2  ;;  %1790 = vmatpush1.bf16.msra.mxu0 (!%p412_p7), %v2639_v5  ;;  %v2644_v18 = vld [vmem:[%s3703_s1 + $0x40] sm:$0xff] (!%p412_p7)   ;;  %v2651_v19 = vld [vmem:[%s3703_s1 + $0xb8] sm:$0xff] (!%p412_p7)   ;;  %v2646_v20 = vld [vmem:[%s3703_s1 + $0x48] sm:$0xff] (!%p412_p7)  }
  0x5c   : > { %1502 = vmatprep.subr.bf16.mxu1 (!%p412_p7), %v2875_v1  ;;  %1791 = vmatprep.subr.bf16.mxu0 (!%p412_p7), %v2875_v1  ;;  %v2653_v21 = vld [vmem:[%s3703_s1 + $0xc0] sm:$0xff] (!%p412_p7)   ;;  %v2648_v22 = vld [vmem:[%s3703_s1 + $0x50] sm:$0xff] (!%p412_p7)   ;;  %v2655_v23 = vld [vmem:[%s3703_s1 + $0xc8] sm:$0xff] (!%p412_p7)  }
  0x5d   : > { %2490 = vmatprep.mubr.msk.bf16.mxu0 %vm1401_vm0, %v2660_v16  ;;  %1530 = vmatprep.mubr.bf16.mxu1 %v2664_v17  ;;  %v2650_v24 = vld [vmem:[%s3703_s1 + $0x58] sm:$0xff]   ;;  %v2657_v25 = vld [vmem:[%s3703_s1 + $0xd0] sm:$0xff]   ;;  %v2652_v26 = vld [vmem:[%s3703_s1 + $0x60] sm:$0xff]  }
  0x5e   : > { %v2665_v28 = vld [vmem:[%s3251_s10 + $0x2c] ss:$16 sps:$4 sm:$0xff]   ;;  %v2656_v30 = vld [vmem:[%s3703_s1 + $0x70] sm:$0xff]   ;;  %v2667_v31 = vld [vmem:[%s3251_s10 + $0x28] ss:$16 sps:$4 sm:$0xff]  }
  0x5f   : > { %1503 = vmatpush1.bf16.msra.mxu1 %v2634_v4  ;;  %1792 = vmatpush1.bf16.msra.mxu0 %v2641_v7  ;;  %v2654_v29 = vld [vmem:[%s3703_s1 + $0x68] sm:$0xff]   ;;  %v2661_v33 = vld [vmem:[%s3703_s1 + $0x78] sm:$0xff]   ;;  %v2662_v34 = vld [vmem:[%s3251_s10] ss:$16 sps:$4 sm:$0xff]  }
  0x60   : > { %1504 = vmatprep.subr.bf16.mxu1 %v2875_v1  ;;  %1793 = vmatprep.subr.bf16.mxu0 %v2875_v1  ;;  %v2671_v32 = vld [vmem:[%s3251_s10 + $0x4c] ss:$16 sps:$4 sm:$0xff]   ;;  %v2668_v35 = vld [vmem:[%s3251_s10 + $0x24] ss:$16 sps:$4 sm:$0xff]   ;;  %v2673_v36 = vld [vmem:[%s3251_s10 + $0x48] ss:$16 sps:$4 sm:$0xff]  }
  0x61   : > { %v2677_v37 = vld [vmem:[%s3251_s10 + $0x6c] ss:$16 sps:$4 sm:$0xff]   ;;  %v2670_v38 = vld [vmem:[%s3251_s10 + $0x20] ss:$16 sps:$4 sm:$0xff]   ;;  %v2674_v39 = vld [vmem:[%s3251_s10 + $0x44] ss:$16 sps:$4 sm:$0xff]  }
  0x62   : > { %v2679_v40 = vld [vmem:[%s3251_s10 + $0x68] ss:$16 sps:$4 sm:$0xff]   ;;  %v2683_v41 = vld [vmem:[%s3251_s10 + $0x8c] ss:$16 sps:$4 sm:$0xff]   ;;  %v2676_v42 = vld [vmem:[%s3251_s10 + $0x40] ss:$16 sps:$4 sm:$0xff]  }
  0x63   : > { %1505 = vmatpush1.bf16.msra.mxu1 %v2635_v6  ;;  %1794 = vmatpush1.bf16.msra.mxu0 %v2643_v9  ;;  %v2680_v43 = vld [vmem:[%s3251_s10 + $0x64] ss:$16 sps:$4 sm:$0xff]   ;;  %v2685_v44 = vld [vmem:[%s3251_s10 + $0x88] ss:$16 sps:$4 sm:$0xff]   ;;  %v2689_v45 = vld [vmem:[%s3251_s10 + $0xac] ss:$16 sps:$4 sm:$0xff]  }
  0x64   : > { %1506 = vmatprep.subr.bf16.mxu1 %v2875_v1  ;;  %1795 = vmatprep.subr.bf16.mxu0 %v2875_v1  ;;  %v2682_v46 = vld [vmem:[%s3251_s10 + $0x60] ss:$16 sps:$4 sm:$0xff]   ;;  %v2686_v47 = vld [vmem:[%s3251_s10 + $0x84] ss:$16 sps:$4 sm:$0xff]   ;;  %v2691_v48 = vld [vmem:[%s3251_s10 + $0xa8] ss:$16 sps:$4 sm:$0xff]  }
  0x65   : > { %v2695_v49 = vld [vmem:[%s3251_s10 + $0xcc] ss:$16 sps:$4 sm:$0xff]   ;;  %v2688_v50 = vld [vmem:[%s3251_s10 + $0x80] ss:$16 sps:$4 sm:$0xff]   ;;  %v2692_v51 = vld [vmem:[%s3251_s10 + $0xa4] ss:$16 sps:$4 sm:$0xff]  }
  0x66   : > { %v2697_v52 = vld [vmem:[%s3251_s10 + $0xc8] ss:$16 sps:$4 sm:$0xff]   ;;  %v2701_v53 = vld [vmem:[%s3251_s10 + $0xec] ss:$16 sps:$4 sm:$0xff]   ;;  %v2694_v54 = vld [vmem:[%s3251_s10 + $0xa0] ss:$16 sps:$4 sm:$0xff]  }
  0x67   : > { %1507 = vmatpush1.bf16.msra.mxu1 %v2636_v8  ;;  %1796 = vmatpush1.bf16.msra.mxu0 %v2645_v11  ;;  %v2698_v55 = vld [vmem:[%s3251_s10 + $0xc4] ss:$16 sps:$4 sm:$0xff]   ;;  %v2703_v56 = vld [vmem:[%s3251_s10 + $0xe8] ss:$16 sps:$4 sm:$0xff]   ;;  %v2707_v57 = vld [vmem:[%s3251_s10 + $0x10c] ss:$16 sps:$4 sm:$0xff]  }
  0x68   : > { %1508 = vmatprep.subr.bf16.mxu1 %v2875_v1  ;;  %1797 = vmatprep.subr.bf16.mxu0 %v2875_v1  ;;  %v2700_v58 = vld [vmem:[%s3251_s10 + $0xc0] ss:$16 sps:$4 sm:$0xff]   ;;  %v2704_v59 = vld [vmem:[%s3251_s10 + $0xe4] ss:$16 sps:$4 sm:$0xff]   ;;  %v2709_v60 = vld [vmem:[%s3251_s10 + $0x108] ss:$16 sps:$4 sm:$0xff]  }
  0x69   : > { %v2713_v61 = vld [vmem:[%s3251_s10 + $0x12c] ss:$16 sps:$4 sm:$0xff]   ;;  %v2706_v62 = vld [vmem:[%s3251_s10 + $0xe0] ss:$16 sps:$4 sm:$0xff]   ;;  %v2710_v63 = vld [vmem:[%s3251_s10 + $0x104] ss:$16 sps:$4 sm:$0xff]  }
  0x6a   : > { %v2715_v0 = vld [vmem:[%s3251_s10 + $0x128] ss:$16 sps:$4 sm:$0xff]   ;;  %v2712_v2 = vld [vmem:[%s3251_s10 + $0x100] ss:$16 sps:$4 sm:$0xff]   ;;  %v2716_v3 = vld [vmem:[%s3251_s10 + $0x124] ss:$16 sps:$4 sm:$0xff]  }
  0x6b   : > { %1509 = vmatpush1.bf16.msra.mxu1 %v2638_v10  ;;  %1798 = vmatpush1.bf16.msra.mxu0 %v2647_v13  ;;  %v2721_v4 = vld [vmem:[%s3251_s10 + $0x148] ss:$16 sps:$4 sm:$0xff]   ;;  %v2725_v5 = vld [vmem:[%s3251_s10 + $0x16c] ss:$16 sps:$4 sm:$0xff]   ;;  %v2718_v6 = vld [vmem:[%s3251_s10 + $0x120] ss:$16 sps:$4 sm:$0xff]  }
  0x6c   : > { %1510 = vmatprep.subr.bf16.mxu1 %v2875_v1  ;;  %1799 = vmatprep.subr.bf16.mxu0 %v2875_v1  ;;  %v2722_v7 = vld [vmem:[%s3251_s10 + $0x144] ss:$16 sps:$4 sm:$0xff]   ;;  %v2727_v8 = vld [vmem:[%s3251_s10 + $0x168] ss:$16 sps:$4 sm:$0xff]   ;;  %v2731_v9 = vld [vmem:[%s3251_s10 + $0x18c] ss:$16 sps:$4 sm:$0xff]  }
  0x6d   : > { %v2724_v10 = vld [vmem:[%s3251_s10 + $0x140] ss:$16 sps:$4 sm:$0xff]   ;;  %v2728_v11 = vld [vmem:[%s3251_s10 + $0x164] ss:$16 sps:$4 sm:$0xff]   ;;  %v2737_v13 = vld [vmem:[%s3251_s10 + $0x1ac] ss:$16 sps:$4 sm:$0xff]  }
  0x6e   : > { %v2739_v16 = vld [vmem:[%s3251_s10 + $0x1a8] ss:$16 sps:$4 sm:$0xff]   ;;  %v2743_v17 = vld [vmem:[%s3251_s10 + $0x1cc] ss:$16 sps:$4 sm:$0xff]  }
  0x6f   : > { %1511 = vmatpush1.bf16.msra.mxu1 %v2640_v12  ;;  %1800 = vmatpush1.bf16.msra.mxu0 %v2649_v15  ;;  %v2733_v12 = vld [vmem:[%s3251_s10 + $0x188] ss:$16 sps:$4 sm:$0xff]   ;;  %v2734_v15 = vld [vmem:[%s3251_s10 + $0x184] ss:$16 sps:$4 sm:$0xff]  }
  0x70   : > { %1512 = vmatprep.subr.bf16.mxu1 %v2875_v1  ;;  %1801 = vmatprep.subr.bf16.mxu0 %v2875_v1 }
  0x73   : > { %1513 = vmatpush1.bf16.msra.mxu1 %v2642_v14  ;;  %1802 = vmatpush1.bf16.msra.mxu0 %v2651_v19  ;;  %v2730_v14 = vld [vmem:[%s3251_s10 + $0x160] ss:$16 sps:$4 sm:$0xff]   ;;  %v2740_v19 = vld [vmem:[%s3251_s10 + $0x1a4] ss:$16 sps:$4 sm:$0xff]  }
  0x74   : > { %1514 = vmatprep.subr.bf16.mxu1 %v2875_v1  ;;  %1803 = vmatprep.subr.bf16.mxu0 %v2875_v1 }
  0x77   : > { %1515 = vmatpush1.bf16.msra.mxu1 %v2644_v18  ;;  %1804 = vmatpush1.bf16.msra.mxu0 %v2653_v21  ;;  %v2736_v18 = vld [vmem:[%s3251_s10 + $0x180] ss:$16 sps:$4 sm:$0xff]   ;;  %v2749_v21 = vld [vmem:[%s3251_s10 + $0x1ec] ss:$16 sps:$4 sm:$0xff]  }
  0x78   : > { %1516 = vmatprep.subr.bf16.mxu1 %v2875_v1  ;;  %1805 = vmatprep.subr.bf16.mxu0 %v2875_v1 }
  0x7b   : > { %1517 = vmatpush1.bf16.msra.mxu1 %v2646_v20  ;;  %1806 = vmatpush1.bf16.msra.mxu0 %v2655_v23  ;;  %v2745_v20 = vld [vmem:[%s3251_s10 + $0x1c8] ss:$16 sps:$4 sm:$0xff]   ;;  %v2746_v23 = vld [vmem:[%s3251_s10 + $0x1c4] ss:$16 sps:$4 sm:$0xff]  }
  0x7c   : > { %1518 = vmatprep.subr.bf16.mxu1 %v2875_v1  ;;  %1807 = vmatprep.subr.bf16.mxu0 %v2875_v1 }
  0x7f   : > { %1519 = vmatpush1.bf16.msra.mxu1 %v2648_v22  ;;  %1808 = vmatpush1.bf16.msra.mxu0 %v2657_v25  ;;  %v2742_v22 = vld [vmem:[%s3251_s10 + $0x1a0] ss:$16 sps:$4 sm:$0xff]   ;;  %v2755_v25 = vld [vmem:[%s3251_s10 + $0x20c] ss:$16 sps:$4 sm:$0xff]  }
  0x80   : > { %1520 = vmatprep.subr.bf16.mxu1 %v2875_v1 }
  0x82   : > { %1820 = vmatmul.mubr.bf16.vlgmr.msra.gmra.mrb[0].mxu0 %v2658_v27  ;;  %v2752_v27 = vld [vmem:[%s3251_s10 + $0x1e4] ss:$16 sps:$4 sm:$0xff]  }
  0x83   : > { %1521 = vmatpush1.bf16.msra.mxu1 %v2650_v24  ;;  %2491 = vmatprep.mubr.msk.bf16.mxu0 %vm1401_vm0, %v2665_v28  ;;  %v2751_v24 = vld [vmem:[%s3251_s10 + $0x1e8] ss:$16 sps:$4 sm:$0xff]  }
  0x84   : > { %1522 = vmatprep.subr.bf16.mxu1 %v2875_v1  ;;  %v2757_v28 = vld [vmem:[%s3251_s10 + $0x208] ss:$16 sps:$4 sm:$0xff]  }
  0x87   : > { %1523 = vmatpush1.bf16.msra.mxu1 %v2652_v26  ;;  %v2748_v26 = vld [vmem:[%s3251_s10 + $0x1c0] ss:$16 sps:$4 sm:$0xff]  }
  0x88   : > { %1524 = vmatprep.subr.bf16.mxu1 %v2875_v1 }
  0x8a   : > { %1828 = vmatmul.mubr.bf16.gmra.mrb[4].mxu0 %v2667_v31  ;;  %v2758_v31 = vld [vmem:[%s3251_s10 + $0x204] ss:$16 sps:$4 sm:$0xff]  }
  0x8b   : > { %1525 = vmatpush1.bf16.msra.mxu1 %v2654_v29  ;;  %2492 = vmatprep.mubr.msk.bf16.mxu0 %vm1401_vm0, %v2671_v32  ;;  %v2761_v29 = vld [vmem:[%s3251_s10 + $0x22c] ss:$16 sps:$4 sm:$0xff]   ;;  %v2763_v32 = vld [vmem:[%s3251_s10 + $0x228] ss:$16 sps:$4 sm:$0xff]  }
  0x8c   : > { %1526 = vmatprep.subr.bf16.mxu1 %v2875_v1 }
  0x8f   : > { %1527 = vmatpush1.bf16.msra.mxu1 %v2656_v30  ;;  %v2754_v30 = vld [vmem:[%s3251_s10 + $0x1e0] ss:$16 sps:$4 sm:$0xff]  }
  0x90   : > { %1528 = vmatprep.subr.bf16.mxu1 %v2875_v1  ;;  %v2719_v1 = vld [vmem:[%s3251_s10 + $0x14c] ss:$16 sps:$4 sm:$0xff]  }
  0x92   : > { %1836 = vmatmul.mubr.bf16.gmra.mrb[8].mxu0 %v2673_v36  ;;  %v2769_v36 = vld [vmem:[%s3251_s10 + $0x248] ss:$16 sps:$4 sm:$0xff]  }
  0x93   : > { %1529 = vmatpush1.bf16.msra.mxu1 %v2661_v33  ;;  %2493 = vmatprep.mubr.msk.bf16.mxu0 %vm1401_vm0, %v2677_v37  ;;  %v2767_v33 = vld [vmem:[%s3251_s10 + $0x24c] ss:$16 sps:$4 sm:$0xff]  }
  0x94   : > { %v2773_v37 = vld [vmem:[%s3251_s10 + $0x26c] ss:$16 sps:$4 sm:$0xff]  }
  0x96   : > { %1531 = vmatmul.mubr.bf16.vlgmr.msra.gmra.mrb[0].mxu1 %v2662_v34  ;;  %v2760_v34 = vld [vmem:[%s3251_s10 + $0x200] ss:$16 sps:$4 sm:$0xff]  }
  0x97   : > { %1538 = vmatprep.mubr.bf16.mxu1 %v2668_v35  ;;  %v2764_v35 = vld [vmem:[%s3251_s10 + $0x224] ss:$16 sps:$4 sm:$0xff]  }
  0x9a   : > { %1844 = vmatmul.mubr.bf16.gmra.mrb[12].mxu0 %v2679_v40  ;;  %v2775_v40 = vld [vmem:[%s3251_s10 + $0x268] ss:$16 sps:$4 sm:$0xff]  }
  0x9b   : > { %2494 = vmatprep.mubr.msk.bf16.mxu0 %vm1401_vm0, %v2683_v41  ;;  %v2779_v41 = vld [vmem:[%s3251_s10 + $0x28c] ss:$16 sps:$4 sm:$0xff]  }
  0x9e   : > { %1539 = vmatmul.mubr.bf16.gmra.mrb[4].mxu1 %v2670_v38  ;;  %v2766_v38 = vld [vmem:[%s3251_s10 + $0x220] ss:$16 sps:$4 sm:$0xff]  }
  0x9f   : > { %1546 = vmatprep.mubr.bf16.mxu1 %v2674_v39  ;;  %v2770_v39 = vld [vmem:[%s3251_s10 + $0x244] ss:$16 sps:$4 sm:$0xff]  }
  0xa2   : > { %1852 = vmatmul.mubr.bf16.gmra.mrb[16].mxu0 %v2685_v44  ;;  %v2781_v44 = vld [vmem:[%s3251_s10 + $0x288] ss:$16 sps:$4 sm:$0xff]  }
  0xa3   : > { %2495 = vmatprep.mubr.msk.bf16.mxu0 %vm1401_vm0, %v2689_v45  ;;  %v2785_v45 = vld [vmem:[%s3251_s10 + $0x2ac] ss:$16 sps:$4 sm:$0xff]  }
  0xa6   : > { %1547 = vmatmul.mubr.bf16.gmra.mrb[8].mxu1 %v2676_v42  ;;  %v2772_v42 = vld [vmem:[%s3251_s10 + $0x240] ss:$16 sps:$4 sm:$0xff]  }
  0xa7   : > { %1554 = vmatprep.mubr.bf16.mxu1 %v2680_v43  ;;  %v2776_v43 = vld [vmem:[%s3251_s10 + $0x264] ss:$16 sps:$4 sm:$0xff]  }
  0xaa   : > { %1860 = vmatmul.mubr.bf16.gmra.mrb[20].mxu0 %v2691_v48  ;;  %v2787_v48 = vld [vmem:[%s3251_s10 + $0x2a8] ss:$16 sps:$4 sm:$0xff]  }
  0xab   : > { %2496 = vmatprep.mubr.msk.bf16.mxu0 %vm1401_vm0, %v2695_v49  ;;  %v2791_v49 = vld [vmem:[%s3251_s10 + $0x2cc] ss:$16 sps:$4 sm:$0xff]  }
  0xae   : > { %1555 = vmatmul.mubr.bf16.gmra.mrb[12].mxu1 %v2682_v46  ;;  %v2778_v46 = vld [vmem:[%s3251_s10 + $0x260] ss:$16 sps:$4 sm:$0xff]  }
  0xaf   : > { %1562 = vmatprep.mubr.bf16.mxu1 %v2686_v47  ;;  %v2782_v47 = vld [vmem:[%s3251_s10 + $0x284] ss:$16 sps:$4 sm:$0xff]  }
  0xb2   : > { %1868 = vmatmul.mubr.bf16.gmra.mrb[24].mxu0 %v2697_v52  ;;  %v2793_v52 = vld [vmem:[%s3251_s10 + $0x2c8] ss:$16 sps:$4 sm:$0xff]  }
  0xb3   : > { %2497 = vmatprep.mubr.msk.bf16.mxu0 %vm1401_vm0, %v2701_v53  ;;  %v2797_v53 = vld [vmem:[%s3251_s10 + $0x2ec] ss:$16 sps:$4 sm:$0xff]  }
  0xb6   : > { %1563 = vmatmul.mubr.bf16.gmra.mrb[16].mxu1 %v2688_v50  ;;  %v2784_v50 = vld [vmem:[%s3251_s10 + $0x280] ss:$16 sps:$4 sm:$0xff]  }
  0xb7   : > { %1570 = vmatprep.mubr.bf16.mxu1 %v2692_v51  ;;  %v2788_v51 = vld [vmem:[%s3251_s10 + $0x2a4] ss:$16 sps:$4 sm:$0xff]  }
  0xba   : > { %1876 = vmatmul.mubr.bf16.gmra.mrb[28].mxu0 %v2703_v56  ;;  %v2799_v56 = vld [vmem:[%s3251_s10 + $0x2e8] ss:$16 sps:$4 sm:$0xff]  }
  0xbb   : > { %2498 = vmatprep.mubr.msk.bf16.mxu0 %vm1401_vm0, %v2707_v57  ;;  %v2803_v57 = vld [vmem:[%s3251_s10 + $0x30c] ss:$16 sps:$4 sm:$0xff]  }
  0xbe   : > { %1571 = vmatmul.mubr.bf16.gmra.mrb[20].mxu1 %v2694_v54  ;;  %v2790_v54 = vld [vmem:[%s3251_s10 + $0x2a0] ss:$16 sps:$4 sm:$0xff]  }
  0xbf   : > { %1578 = vmatprep.mubr.bf16.mxu1 %v2698_v55  ;;  %v2794_v55 = vld [vmem:[%s3251_s10 + $0x2c4] ss:$16 sps:$4 sm:$0xff]  }
  0xc2   : > { %1884 = vmatmul.mubr.bf16.gmra.mrb[32].mxu0 %v2709_v60  ;;  %v2805_v60 = vld [vmem:[%s3251_s10 + $0x308] ss:$16 sps:$4 sm:$0xff]  }
  0xc3   : > { %2499 = vmatprep.mubr.msk.bf16.mxu0 %vm1401_vm0, %v2713_v61  ;;  %v2809_v61 = vld [vmem:[%s3251_s10 + $0x32c] ss:$16 sps:$4 sm:$0xff]  }
  0xc6   : > { %1579 = vmatmul.mubr.bf16.gmra.mrb[24].mxu1 %v2700_v58  ;;  %v2796_v58 = vld [vmem:[%s3251_s10 + $0x2c0] ss:$16 sps:$4 sm:$0xff]  }
  0xc7   : > { %1586 = vmatprep.mubr.bf16.mxu1 %v2704_v59  ;;  %v2800_v59 = vld [vmem:[%s3251_s10 + $0x2e4] ss:$16 sps:$4 sm:$0xff]  }
  0xca   : > { %1892 = vmatmul.mubr.bf16.gmra.mrb[36].mxu0 %v2715_v0  ;;  %v2811_v0 = vld [vmem:[%s3251_s10 + $0x328] ss:$16 sps:$4 sm:$0xff]  }
  0xcb   : > { %2500 = vmatprep.mubr.msk.bf16.mxu0 %vm1401_vm0, %v2719_v1  ;;  %v2815_v1 = vld [vmem:[%s3251_s10 + $0x34c] ss:$16 sps:$4 sm:$0xff]  }
  0xce   : > { %1587 = vmatmul.mubr.bf16.gmra.mrb[28].mxu1 %v2706_v62  ;;  %v2802_v62 = vld [vmem:[%s3251_s10 + $0x2e0] ss:$16 sps:$4 sm:$0xff]  }
  0xcf   : > { %1594 = vmatprep.mubr.bf16.mxu1 %v2710_v63  ;;  %v2806_v63 = vld [vmem:[%s3251_s10 + $0x304] ss:$16 sps:$4 sm:$0xff]  }
  0xd2   : > { %1900 = vmatmul.mubr.bf16.gmra.mrb[40].mxu0 %v2721_v4  ;;  %v2817_v4 = vld [vmem:[%s3251_s10 + $0x348] ss:$16 sps:$4 sm:$0xff]  }
  0xd3   : > { %2501 = vmatprep.mubr.msk.bf16.mxu0 %vm1401_vm0, %v2725_v5  ;;  %v2821_v5 = vld [vmem:[%s3251_s10 + $0x36c] ss:$16 sps:$4 sm:$0xff]  }
  0xd6   : > { %1595 = vmatmul.mubr.bf16.gmra.mrb[32].mxu1 %v2712_v2  ;;  %v2808_v2 = vld [vmem:[%s3251_s10 + $0x300] ss:$16 sps:$4 sm:$0xff]  }
  0xd7   : > { %1602 = vmatprep.mubr.bf16.mxu1 %v2716_v3  ;;  %v2812_v3 = vld [vmem:[%s3251_s10 + $0x324] ss:$16 sps:$4 sm:$0xff]  }
  0xda   : > { %1908 = vmatmul.mubr.bf16.gmra.mrb[44].mxu0 %v2727_v8  ;;  %v2818_v8 = vld [vmem:[%s3251_s10 + $0x344] ss:$16 sps:$4 sm:$0xff]  }
  0xdb   : > { %2502 = vmatprep.mubr.msk.bf16.mxu0 %vm1401_vm0, %v2731_v9 }
  0xde   : > { %1603 = vmatmul.mubr.bf16.gmra.mrb[36].mxu1 %v2718_v6  ;;  %v2814_v6 = vld [vmem:[%s3251_s10 + $0x320] ss:$16 sps:$4 sm:$0xff]  }
  0xdf   : > { %1610 = vmatprep.mubr.bf16.mxu1 %v2722_v7 }
  0xe2   : > { %1916 = vmatmul.mubr.bf16.gmra.mrb[48].mxu0 %v2733_v12  ;;  %v2827_v12 = vld [vmem:[%s3251_s10 + $0x38c] ss:$16 sps:$4 sm:$0xff]  }
  0xe3   : > { %2503 = vmatprep.mubr.msk.bf16.mxu0 %vm1401_vm0, %v2737_v13 }
  0xe6   : > { %1611 = vmatmul.mubr.bf16.gmra.mrb[40].mxu1 %v2724_v10  ;;  %v2823_v10 = vld [vmem:[%s3251_s10 + $0x368] ss:$16 sps:$4 sm:$0xff]  }
  0xe7   : > { %1618 = vmatprep.mubr.bf16.mxu1 %v2728_v11 }
  0xea   : > { %1924 = vmatmul.mubr.bf16.gmra.mrb[52].mxu0 %v2739_v16  ;;  %v2824_v16 = vld [vmem:[%s3251_s10 + $0x364] ss:$16 sps:$4 sm:$0xff]  }
  0xeb   : > { %2504 = vmatprep.mubr.msk.bf16.mxu0 %vm1401_vm0, %v2743_v17 }
  0xee   : > { %1619 = vmatmul.mubr.bf16.gmra.mrb[44].mxu1 %v2730_v14  ;;  %v2820_v14 = vld [vmem:[%s3251_s10 + $0x340] ss:$16 sps:$4 sm:$0xff]  }
  0xef   : > { %1626 = vmatprep.mubr.bf16.mxu1 %v2734_v15 }
  0xf2   : > { %1932 = vmatmul.mubr.bf16.gmra.mrb[56].mxu0 %v2745_v20  ;;  %v2833_v20 = vld [vmem:[%s3251_s10 + $0x3ac] ss:$16 sps:$4 sm:$0xff]  }
  0xf3   : > { %2505 = vmatprep.mubr.msk.bf16.mxu0 %vm1401_vm0, %v2749_v21 }
  0xf6   : > { %1627 = vmatmul.mubr.bf16.gmra.mrb[48].mxu1 %v2736_v18  ;;  %v2829_v18 = vld [vmem:[%s3251_s10 + $0x388] ss:$16 sps:$4 sm:$0xff]  }
  0xf7   : > { %1634 = vmatprep.mubr.bf16.mxu1 %v2740_v19 }
  0xfa   : > { %1940 = vmatmul.mubr.bf16.gmra.mrb[60].mxu0 %v2751_v24 }
  0xfb   : > { %2506 = vmatprep.mubr.msk.bf16.mxu0 %vm1401_vm0, %v2755_v25  ;;  %v2826_v25 = vld [vmem:[%s3251_s10 + $0x360] ss:$16 sps:$4 sm:$0xff]  }
  0xfe   : > { %1635 = vmatmul.mubr.bf16.gmra.mrb[52].mxu1 %v2742_v22 }
  0xff   : > { %1642 = vmatprep.mubr.bf16.mxu1 %v2746_v23 }
 0x102   : > { %1948 = vmatmul.mubr.bf16.gmra.mrb[64].mxu0 %v2757_v28  ;;  %v2830_v28 = vld [vmem:[%s3251_s10 + $0x384] ss:$16 sps:$4 sm:$0xff]  }
 0x103   : > { %2507 = vmatprep.mubr.msk.bf16.mxu0 %vm1401_vm0, %v2761_v29 }
 0x106   : > { %1643 = vmatmul.mubr.bf16.gmra.mrb[56].mxu1 %v2748_v26 }
 0x107   : > { %1650 = vmatprep.mubr.bf16.mxu1 %v2752_v27 }
 0x10a   : > { %1956 = vmatmul.mubr.bf16.gmra.mrb[68].mxu0 %v2763_v32 }
 0x10b   : > { %2508 = vmatprep.mubr.msk.bf16.mxu0 %vm1401_vm0, %v2767_v33 }
 0x10e   : > { %1651 = vmatmul.mubr.bf16.gmra.mrb[60].mxu1 %v2754_v30  ;;  %v2835_v30 = vld [vmem:[%s3251_s10 + $0x3a8] ss:$16 sps:$4 sm:$0xff]  }
 0x10f   : > { %1658 = vmatprep.mubr.bf16.mxu1 %v2758_v31 }
 0x112   : > { %1964 = vmatmul.mubr.bf16.gmra.mrb[72].mxu0 %v2769_v36 }
 0x113   : > { %2509 = vmatprep.mubr.msk.bf16.mxu0 %vm1401_vm0, %v2773_v37 }
 0x116   : > { %1659 = vmatmul.mubr.bf16.gmra.mrb[64].mxu1 %v2760_v34  ;;  %v2839_v34 = vld [vmem:[%s3251_s10 + $0x3cc] ss:$16 sps:$4 sm:$0xff]  }
 0x117   : > { %1666 = vmatprep.mubr.bf16.mxu1 %v2764_v35 }
 0x11a   : > { %1972 = vmatmul.mubr.bf16.gmra.mrb[76].mxu0 %v2775_v40 }
 0x11b   : > { %2510 = vmatprep.mubr.msk.bf16.mxu0 %vm1401_vm0, %v2779_v41 }
 0x11e   : > { %1667 = vmatmul.mubr.bf16.gmra.mrb[68].mxu1 %v2766_v38 }
 0x11f   : > { %1674 = vmatprep.mubr.bf16.mxu1 %v2770_v39  ;;  %v2832_v39 = vld [vmem:[%s3251_s10 + $0x380] ss:$16 sps:$4 sm:$0xff]  }
 0x122   : > { %1980 = vmatmul.mubr.bf16.gmra.mrb[80].mxu0 %v2781_v44  ;;  %v2841_v44 = vld [vmem:[%s3251_s10 + $0x3c8] ss:$16 sps:$4 sm:$0xff]  }
 0x123   : > { %2511 = vmatprep.mubr.msk.bf16.mxu0 %vm1401_vm0, %v2785_v45 }
 0x126   : > { %1675 = vmatmul.mubr.bf16.gmra.mrb[72].mxu1 %v2772_v42  ;;  %v2836_v42 = vld [vmem:[%s3251_s10 + $0x3a4] ss:$16 sps:$4 sm:$0xff]  }
 0x127   : > { %1682 = vmatprep.mubr.bf16.mxu1 %v2776_v43 }
 0x12a   : > { %1988 = vmatmul.mubr.bf16.gmra.mrb[84].mxu0 %v2787_v48  ;;  %v2845_v48 = vld [vmem:[%s3251_s10 + $0x3ec] ss:$16 sps:$4 sm:$0xff]  }
 0x12b   : > { %2512 = vmatprep.mubr.msk.bf16.mxu0 %vm1401_vm0, %v2791_v49 }
 0x12e   : > { %1683 = vmatmul.mubr.bf16.gmra.mrb[76].mxu1 %v2778_v46 }
 0x12f   : > { %1690 = vmatprep.mubr.bf16.mxu1 %v2782_v47 }
 0x132   : > { %1996 = vmatmul.mubr.bf16.gmra.mrb[88].mxu0 %v2793_v52 }
 0x133   : > { %2513 = vmatprep.mubr.msk.bf16.mxu0 %vm1401_vm0, %v2797_v53  ;;  %v2838_v53 = vld [vmem:[%s3251_s10 + $0x3a0] ss:$16 sps:$4 sm:$0xff]  }
 0x136   : > { %1691 = vmatmul.mubr.bf16.gmra.mrb[80].mxu1 %v2784_v50 }
 0x137   : > { %1698 = vmatprep.mubr.bf16.mxu1 %v2788_v51 }
 0x13a   : > { %2004 = vmatmul.mubr.bf16.gmra.mrb[92].mxu0 %v2799_v56  ;;  %v2842_v56 = vld [vmem:[%s3251_s10 + $0x3c4] ss:$16 sps:$4 sm:$0xff]  }
 0x13b   : > { %2514 = vmatprep.mubr.msk.bf16.mxu0 %vm1401_vm0, %v2803_v57 }
 0x13e   : > { %1699 = vmatmul.mubr.bf16.gmra.mrb[84].mxu1 %v2790_v54 }
 0x13f   : > { %1706 = vmatprep.mubr.bf16.mxu1 %v2794_v55 }
 0x142   : > { %2012 = vmatmul.mubr.bf16.gmra.mrb[96].mxu0 %v2805_v60 }
 0x143   : > { %2515 = vmatprep.mubr.msk.bf16.mxu0 %vm1401_vm0, %v2809_v61 }
 0x146   : > { %1707 = vmatmul.mubr.bf16.gmra.mrb[88].mxu1 %v2796_v58  ;;  %v2847_v58 = vld [vmem:[%s3251_s10 + $0x3e8] ss:$16 sps:$4 sm:$0xff]  }
 0x147   : > { %1714 = vmatprep.mubr.bf16.mxu1 %v2800_v59 }
 0x14a   : > { %2020 = vmatmul.mubr.bf16.gmra.mrb[100].mxu0 %v2811_v0 }
 0x14b   : > { %2516 = vmatprep.mubr.msk.bf16.mxu0 %vm1401_vm0, %v2815_v1 }
 0x14e   : > { %1715 = vmatmul.mubr.bf16.gmra.mrb[92].mxu1 %v2802_v62 }
 0x14f   : > { %1722 = vmatprep.mubr.bf16.mxu1 %v2806_v63 }
 0x152   : > { %2028 = vmatmul.mubr.bf16.gmra.mrb[104].mxu0 %v2817_v4 }
 0x153   : > { %2517 = vmatprep.mubr.msk.bf16.mxu0 %vm1401_vm0, %v2821_v5  ;;  %v2848_v5 = vld [vmem:[%s3251_s10 + $0x3e4] ss:$16 sps:$4 sm:$0xff]  }
 0x155   : > { %v1821_v7 = vpop.f32.mrb[0].mxu0 }
 0x156   : > { %1723 = vmatmul.mubr.bf16.gmra.mrb[96].mxu1 %v2808_v2  ;;  %v1823_v9 = vpop.f32.mrb[1].mxu0  ;;  %v2844_v2 = vld [vmem:[%s3251_s10 + $0x3c0] ss:$16 sps:$4 sm:$0xff]  }
 0x157   : > { %1730 = vmatprep.mubr.bf16.mxu1 %v2812_v3  ;;  %v1824_v11 = vpop.f32.mrb[2].mxu0 }
 0x158   : > { %v1826_v13 = vpop.f32.mrb[3].mxu0 }
 0x15a   : > { %2036 = vmatmul.mubr.bf16.gmra.mrb[108].mxu0 %v2823_v10 }
 0x15b   : > { %2518 = vmatprep.mubr.msk.bf16.mxu0 %vm1401_vm0, %v2827_v12 }
 0x15d   : > { %v1829_v15 = vpop.f32.mrb[4].mxu0 }
 0x15e   : > { %1731 = vmatmul.mubr.bf16.gmra.mrb[100].mxu1 %v2814_v6  ;;  %v1831_v17 = vpop.f32.mrb[5].mxu0 }
 0x15f   : > { %1738 = vmatprep.mubr.bf16.mxu1 %v2818_v8  ;;  %v1832_v19 = vpop.f32.mrb[6].mxu0 }
 0x160   : > { %v1834_v21 = vpop.f32.mrb[7].mxu0 }
 0x162   : > { %2044 = vmatmul.mubr.bf16.gmra.mrb[112].mxu0 %v2829_v18 }
 0x163   : > { %2519 = vmatprep.mubr.msk.bf16.mxu0 %vm1401_vm0, %v2833_v20 }
 0x165   : > { %v1837_v26 = vpop.f32.mrb[8].mxu0 }
 0x166   : > { %1739 = vmatmul.mubr.bf16.gmra.mrb[104].mxu1 %v2820_v14  ;;  %v1839_v29 = vpop.f32.mrb[9].mxu0  ;;  %v2850_v14 = vld [vmem:[%s3251_s10 + $0x3e0] ss:$16 sps:$4 sm:$0xff]   ;;  %s2333_s10 = sshll.u32 %s2323_s15, 3 }
 0x167   : > { %1746 = vmatprep.mubr.bf16.mxu1 %v2824_v16  ;;  %v1840_v33 = vpop.f32.mrb[10].mxu0  ;;  %p443_p8 = scmp.lt.s32.totalorder %s2333_s10, 15 }
 0x168   : > { %v1842_v35 = vpop.f32.mrb[11].mxu0 }
 0x169   : > { %v1532_v22 = vpop.f32.mrb[0].mxu1  ;;  %s3710_s10 = smov (!%p443_p8, %s2333_s10), 15 }
 0x16a   : > { %v3447_v23 = vadd.f32 %v1821_v7, %v1532_v22  ;;  %v1534_v24 = vpop.f32.mrb[1].mxu1  ;;  %2052 = vmatmul.mubr.bf16.gmra.mrb[116].mxu0 %v2835_v30  ;;  %s2334_s20 = sshll.u32 %s3710_s10, 2 }
 0x16b   : > { %v1535_v27 = vpop.f32.mrb[2].mxu1  ;;  %2520 = vmatprep.mubr.msk.bf16.mxu0 %vm1401_vm0, %v2839_v34  ;;  %s3656_s23 = scalar_lea.vmem %s3705_s3, %s2334_s20 }
 0x16c   : > { %v3452_v31 = vadd.f32 %v1824_v11, %v1535_v27  ;;  %v1537_v32 = vpop.f32.mrb[3].mxu1  ;;  %v3481_v18 = vsel %vm2076_vm1, %v3447_v23, -inf }
 0x16d   : > { %v1845_v40 = vpop.f32.mrb[12].mxu0 }
 0x16e   : > { %1747 = vmatmul.mubr.bf16.gmra.mrb[108].mxu1 %v2826_v25  ;;  %v1847_v43 = vpop.f32.mrb[13].mxu0 }
 0x16f   : > { %1754 = vmatprep.mubr.bf16.mxu1 %v2830_v28  ;;  %v1848_v47 = vpop.f32.mrb[14].mxu0 }
 0x170   : > { %v1850_v49 = vpop.f32.mrb[15].mxu0 }
 0x171   : > { %v1540_v36 = vpop.f32.mrb[4].mxu1 }
 0x172   : > { %v3456_v37 = vadd.f32 %v1829_v15, %v1540_v36  ;;  %v1542_v38 = vpop.f32.mrb[5].mxu1  ;;  %2060 = vmatmul.mubr.bf16.gmra.mrb[120].mxu0 %v2841_v44 }
 0x173   : > { %v1543_v41 = vpop.f32.mrb[6].mxu1  ;;  %2521 = vmatprep.mubr.msk.bf16.mxu0 %vm1401_vm0, %v2845_v48 }
 0x174   : > { %v3461_v45 = vadd.f32 %v1832_v19, %v1543_v41  ;;  %v1545_v46 = vpop.f32.mrb[7].mxu1  ;;  %v3499_v35 = vsel %vm2076_vm1, %v3456_v37, -inf }
 0x175   : > { %v1853_v54 = vpop.f32.mrb[16].mxu0 }
 0x176   : > { %1755 = vmatmul.mubr.bf16.gmra.mrb[112].mxu1 %v2832_v39  ;;  %v1855_v57 = vpop.f32.mrb[17].mxu0 }
 0x177   : > { %1762 = vmatprep.mubr.bf16.mxu1 %v2836_v42  ;;  %v1856_v61 = vpop.f32.mrb[18].mxu0  ;;  %v3508_v42 = vsel %vm2076_vm1, %v3461_v45, -inf }
 0x178   : > { %v1858_v62 = vpop.f32.mrb[19].mxu0 }
 0x179   : > { %v1548_v50 = vpop.f32.mrb[8].mxu1 }
 0x17a   : > { %v3465_v51 = vadd.f32 %v1837_v26, %v1548_v50  ;;  %v1550_v52 = vpop.f32.mrb[9].mxu1  ;;  %2068 = vmatmul.mubr.bf16.gmra.mrb[124].mxu0 %v2847_v58  ;;  %v3490_v26 = vsel %vm2076_vm1, %v3452_v31, -inf }
 0x17b   : > { %v1551_v55 = vpop.f32.mrb[10].mxu1 }
 0x17c   : > { %v3470_v59 = vadd.f32 %v1840_v33, %v1551_v55  ;;  %v1553_v60 = vpop.f32.mrb[11].mxu1  ;;  %v3514_v52 = vsel %vm2076_vm1, %v3465_v51, -inf }
 0x17d   : > { %v1861_v3 = vpop.f32.mrb[20].mxu0 }
 0x17e   : > { %1763 = vmatmul.mubr.bf16.gmra.mrb[116].mxu1 %v2838_v53  ;;  %v1863_v6 = vpop.f32.mrb[21].mxu0  ;;  %v2152_v58 = vsel %vm2076_vm1, %v3470_v59, -inf }
 0x17f   : > { %1770 = vmatprep.mubr.bf16.mxu1 %v2842_v56  ;;  %v1864_v9 = vpop.f32.mrb[22].mxu0 }
 0x180   : > { %v1866_v10 = vpop.f32.mrb[23].mxu0 }
 0x181   : > { %v1556_v63 = vpop.f32.mrb[12].mxu1 }
 0x182   : > { %v3472_v0 = vadd.f32 %v1845_v40, %v1556_v63  ;;  %v1558_v1 = vpop.f32.mrb[13].mxu1 }
 0x183   : > { %v1559_v4 = vpop.f32.mrb[14].mxu1 }
 0x184   : > { %v3476_v7 = vadd.f32 %v1848_v47, %v1559_v4  ;;  %v1561_v8 = vpop.f32.mrb[15].mxu1  ;;  %v3526_v4 = vsel %vm2076_vm1, %v3472_v0, -inf }
 0x185   : > { %v1869_v15 = vpop.f32.mrb[24].mxu0 }
 0x186   : > { %1771 = vmatmul.mubr.bf16.gmra.mrb[120].mxu1 %v2844_v2  ;;  %v1871_v17 = vpop.f32.mrb[25].mxu0 }
 0x187   : > { %1778 = vmatprep.mubr.bf16.mxu1 %v2848_v5  ;;  %v1872_v22 = vpop.f32.mrb[26].mxu0 }
 0x188   : > { %v1874_v25 = vpop.f32.mrb[27].mxu0 }
 0x189   : > { %v1564_v11 = vpop.f32.mrb[16].mxu1 }
 0x18a   : > { %v1854_v12 = vadd.f32 %v1853_v54, %v1564_v11  ;;  %v1566_v13 = vpop.f32.mrb[17].mxu1  ;;  %v2182_v11 = vsel %vm2076_vm1, %v3476_v7, -inf }
 0x18b   : > { %v1567_v16 = vpop.f32.mrb[18].mxu1 }
 0x18c   : > { %v3484_v19 = vsel %vm2076_vm1, %v1854_v12, -inf  ;;  %v1857_v20 = vadd.f32 %v1856_v61, %v1567_v16  ;;  %v1569_v21 = vpop.f32.mrb[19].mxu1 }
 0x18d   : > { %v2079_v24 = vmax.f32 %v3481_v18, %v3484_v19  ;;  %v1877_v32 = vpop.f32.mrb[28].mxu0 }
 0x18e   : > { %v3493_v27 = vsel %vm2076_vm1, %v1857_v20, -inf  ;;  %1779 = vmatmul.mubr.bf16.gmra.mrb[124].mxu1 %v2850_v14  ;;  %v1879_v34 = vpop.f32.mrb[29].mxu0 }
 0x18f   : > { %v2094_v23 = vmax.f32 %v3490_v26, %v3493_v27  ;;  %v1880_v39 = vpop.f32.mrb[30].mxu0 }
 0x190   : > { %v1882_v41 = vpop.f32.mrb[31].mxu0 }
 0x191   : > { %v1572_v28 = vpop.f32.mrb[20].mxu1 }
 0x192   : > { %v1862_v29 = vadd.f32 %v1861_v3, %v1572_v28  ;;  %v1574_v30 = vpop.f32.mrb[21].mxu1 }
 0x193   : > { %v1575_v33 = vpop.f32.mrb[22].mxu1 }
 0x194   : > { %v3502_v31 = vsel %vm2076_vm1, %v1862_v29, -inf  ;;  %v1865_v36 = vadd.f32 %v1864_v9, %v1575_v33  ;;  %v1577_v38 = vpop.f32.mrb[23].mxu1 }
 0x195   : > { %v2109_v40 = vmax.f32 %v3499_v35, %v3502_v31  ;;  %v1885_v48 = vpop.f32.mrb[32].mxu0 }
 0x196   : > { %v2123_v43 = vsel %vm2076_vm1, %v1865_v36, -inf  ;;  %v1887_v50 = vpop.f32.mrb[33].mxu0 }
 0x197   : > { %v2124_v44 = vmax.f32 %v3508_v42, %v2123_v43  ;;  %v1888_v55 = vpop.f32.mrb[34].mxu0 }
 0x198   : > { %v1890_v57 = vpop.f32.mrb[35].mxu0 }
 0x199   : > { %v1580_v37 = vpop.f32.mrb[24].mxu1 }
 0x19a   : > { %v1870_v46 = vadd.f32 %v1869_v15, %v1580_v37  ;;  %v1582_v47 = vpop.f32.mrb[25].mxu1 }
 0x19b   : > { %v1583_v49 = vpop.f32.mrb[26].mxu1 }
 0x19c   : > { %v3517_v53 = vsel %vm2076_vm1, %v1870_v46, -inf  ;;  %v1873_v54 = vadd.f32 %v1872_v22, %v1583_v49  ;;  %v1585_v45 = vpop.f32.mrb[27].mxu1 }
 0x19d   : > { %v2139_v56 = vmax.f32 %v3514_v52, %v3517_v53  ;;  %v1893_v1 = vpop.f32.mrb[36].mxu0 }
 0x19e   : > { %v2153_v60 = vsel %vm2076_vm1, %v1873_v54, -inf  ;;  %v1895_v3 = vpop.f32.mrb[37].mxu0 }
 0x19f   : > { %v2154_v61 = vmax.f32 %v2152_v58, %v2153_v60  ;;  %v1896_v9 = vpop.f32.mrb[38].mxu0 }
 0x1a0   : > { %v1898_v10 = vpop.f32.mrb[39].mxu0 }
 0x1a1   : > { %v1588_v62 = vpop.f32.mrb[28].mxu1 }
 0x1a2   : > { %v1878_v63 = vadd.f32 %v1877_v32, %v1588_v62  ;;  %v1590_v51 = vpop.f32.mrb[29].mxu1 }
 0x1a3   : > { %v1591_v2 = vpop.f32.mrb[30].mxu1 }
 0x1a4   : > { %v2168_v5 = vsel %vm2076_vm1, %v1878_v63, -inf  ;;  %v1881_v6 = vadd.f32 %v1880_v39, %v1591_v2  ;;  %v1593_v8 = vpop.f32.mrb[31].mxu1 }
 0x1a5   : > { %v2169_v59 = vmax.f32 %v3526_v4, %v2168_v5  ;;  %v1901_v17 = vpop.f32.mrb[40].mxu0 }
 0x1a6   : > { %v2183_v12 = vsel %vm2076_vm1, %v1881_v6, -inf  ;;  %v1903_v20 = vpop.f32.mrb[41].mxu0 }
 0x1a7   : > { %v2184_v13 = vmax.f32 %v2182_v11, %v2183_v12  ;;  %v1904_v26 = vpop.f32.mrb[42].mxu0 }
 0x1a8   : > { %v1906_v7 = vpop.f32.mrb[43].mxu0 }
 0x1a9   : > { %v1596_v14 = vpop.f32.mrb[32].mxu1 }
 0x1aa   : > { %v1886_v15 = vadd.f32 %v1885_v48, %v1596_v14  ;;  %v1598_v16 = vpop.f32.mrb[33].mxu1 }
 0x1ab   : > { %v1599_v0 = vpop.f32.mrb[34].mxu1 }
 0x1ac   : > { %v2080_v21 = vsel %vm2076_vm1, %v1886_v15, -inf  ;;  %v1889_v22 = vadd.f32 %v1888_v55, %v1599_v0  ;;  %v1601_v25 = vpop.f32.mrb[35].mxu1 }
 0x1ad   : > { %v3537_v27 = vmax.f32 %v2079_v24, %v2080_v21  ;;  %v1909_v34 = vpop.f32.mrb[44].mxu0 }
 0x1ae   : > { %v2095_v28 = vsel %vm2076_vm1, %v1889_v22, -inf  ;;  %v1911_v31 = vpop.f32.mrb[45].mxu0 }
 0x1af   : > { %v3540_v29 = vmax.f32 %v2094_v23, %v2095_v28  ;;  %v1912_v41 = vpop.f32.mrb[46].mxu0 }
 0x1b0   : > { %v1914_v18 = vpop.f32.mrb[47].mxu0 }
 0x1b1   : > { %v1604_v30 = vpop.f32.mrb[36].mxu1 }
 0x1b2   : > { %v1894_v32 = vadd.f32 %v1893_v1, %v1604_v30  ;;  %v1606_v33 = vpop.f32.mrb[37].mxu1 }
 0x1b3   : > { %v1607_v35 = vpop.f32.mrb[38].mxu1 }
 0x1b4   : > { %v2110_v36 = vsel %vm2076_vm1, %v1894_v32, -inf  ;;  %v1897_v38 = vadd.f32 %v1896_v9, %v1607_v35  ;;  %v1609_v39 = vpop.f32.mrb[39].mxu1 }
 0x1b5   : > { %v3543_v42 = vmax.f32 %v2109_v40, %v2110_v36  ;;  %v1917_v46 = vpop.f32.mrb[48].mxu0 }
 0x1b6   : > { %v2125_v19 = vsel %vm2076_vm1, %v1897_v38, -inf  ;;  %v1919_v48 = vpop.f32.mrb[49].mxu0 }
 0x1b7   : > { %v3546_v24 = vmax.f32 %v2124_v44, %v2125_v19  ;;  %v1920_v53 = vpop.f32.mrb[50].mxu0 }
 0x1b8   : > { %v1922_v40 = vpop.f32.mrb[51].mxu0 }
 0x1b9   : > { %v1612_v23 = vpop.f32.mrb[40].mxu1 }
 0x1ba   : > { %v1902_v43 = vadd.f32 %v1901_v17, %v1612_v23  ;;  %v1614_v37 = vpop.f32.mrb[41].mxu1 }
 0x1bb   : > { %v1615_v47 = vpop.f32.mrb[42].mxu1 }
 0x1bc   : > { %v2140_v49 = vsel %vm2076_vm1, %v1902_v43, -inf  ;;  %v1905_v50 = vadd.f32 %v1904_v26, %v1615_v47  ;;  %v1617_v52 = vpop.f32.mrb[43].mxu1 }
 0x1bd   : > { %v3549_v54 = vmax.f32 %v2139_v56, %v2140_v49  ;;  %v1925_v60 = vpop.f32.mrb[52].mxu0 }
 0x1be   : > { %v2155_v45 = vsel %vm2076_vm1, %v1905_v50, -inf  ;;  %v1927_v63 = vpop.f32.mrb[53].mxu0 }
 0x1bf   : > { %v3552_v55 = vmax.f32 %v2154_v61, %v2155_v45  ;;  %v1928_v3 = vpop.f32.mrb[54].mxu0 }
 0x1c0   : > { %v1930_v56 = vpop.f32.mrb[55].mxu0 }
 0x1c1   : > { %v1620_v44 = vpop.f32.mrb[44].mxu1 }
 0x1c2   : > { %v1910_v57 = vadd.f32 %v1909_v34, %v1620_v44  ;;  %v1622_v58 = vpop.f32.mrb[45].mxu1 }
 0x1c3   : > { %v1623_v62 = vpop.f32.mrb[46].mxu1 }
 0x1c4   : > { %v2170_v51 = vsel %vm2076_vm1, %v1910_v57, -inf  ;;  %v1913_v1 = vadd.f32 %v1912_v41, %v1623_v62  ;;  %v1625_v2 = vpop.f32.mrb[47].mxu1 }
 0x1c5   : > { %v3555_v4 = vmax.f32 %v2169_v59, %v2170_v51  ;;  %v1933_v10 = vpop.f32.mrb[56].mxu0 }
 0x1c6   : > { %v2185_v5 = vsel %vm2076_vm1, %v1913_v1, -inf  ;;  %v1935_v12 = vpop.f32.mrb[57].mxu0 }
 0x1c7   : > { %v3558_v6 = vmax.f32 %v2184_v13, %v2185_v5  ;;  %v1936_v17 = vpop.f32.mrb[58].mxu0 }
 0x1c8   : > { %v1938_v59 = vpop.f32.mrb[59].mxu0 }
 0x1c9   : > { %v1628_v61 = vpop.f32.mrb[48].mxu1 }
 0x1ca   : > { %v1918_v8 = vadd.f32 %v1917_v46, %v1628_v61  ;;  %v1630_v9 = vpop.f32.mrb[49].mxu1 }
 0x1cb   : > { %v1631_v11 = vpop.f32.mrb[50].mxu1 }
 0x1cc   : > { %v2082_v14 = vsel %vm2076_vm1, %v1918_v8, -inf  ;;  %v1921_v15 = vadd.f32 %v1920_v53, %v1631_v11  ;;  %v1633_v16 = vpop.f32.mrb[51].mxu1 }
 0x1cd   : > { %v2083_v0 = vmax.f32 %v3537_v27, %v2082_v14  ;;  %v1941_v26 = vpop.f32.mrb[60].mxu0 }
 0x1ce   : > { %v2097_v20 = vsel %vm2076_vm1, %v1921_v15, -inf  ;;  %v1943_v28 = vpop.f32.mrb[61].mxu0 }
 0x1cf   : > { %v2098_v21 = vmax.f32 %v3540_v29, %v2097_v20  ;;  %v1944_v34 = vpop.f32.mrb[62].mxu0 }
 0x1d0   : > { %v1946_v31 = vpop.f32.mrb[63].mxu0 }
 0x1d1   : > { %v1636_v13 = vpop.f32.mrb[52].mxu1 }
 0x1d2   : > { %v1926_v22 = vadd.f32 %v1925_v60, %v1636_v13  ;;  %v1638_v25 = vpop.f32.mrb[53].mxu1 }
 0x1d3   : > { %v1639_v7 = vpop.f32.mrb[54].mxu1 }
 0x1d4   : > { %v2112_v30 = vsel %vm2076_vm1, %v1926_v22, -inf  ;;  %v1929_v32 = vadd.f32 %v1928_v3, %v1639_v7  ;;  %v1641_v33 = vpop.f32.mrb[55].mxu1 }
 0x1d5   : > { %v2113_v35 = vmax.f32 %v3543_v42, %v2112_v30  ;;  %v1949_v41 = vpop.f32.mrb[64].mxu0 }
 0x1d6   : > { %v2127_v27 = vsel %vm2076_vm1, %v1929_v32, -inf  ;;  %v1951_v19 = vpop.f32.mrb[65].mxu0 }
 0x1d7   : > { %v2128_v36 = vmax.f32 %v3546_v24, %v2127_v27  ;;  %v1952_v46 = vpop.f32.mrb[66].mxu0 }
 0x1d8   : > { %v1954_v48 = vpop.f32.mrb[67].mxu0 }
 0x1d9   : > { %v1644_v38 = vpop.f32.mrb[56].mxu1 }
 0x1da   : > { %v1934_v29 = vadd.f32 %v1933_v10, %v1644_v38  ;;  %v1646_v39 = vpop.f32.mrb[57].mxu1 }
 0x1db   : > { %v1647_v18 = vpop.f32.mrb[58].mxu1 }
 0x1dc   : > { %v2142_v23 = vsel %vm2076_vm1, %v1934_v29, -inf  ;;  %v1937_v43 = vadd.f32 %v1936_v17, %v1647_v18  ;;  %v1649_v37 = vpop.f32.mrb[59].mxu1 }
 0x1dd   : > { %v2143_v47 = vmax.f32 %v3549_v54, %v2142_v23  ;;  %v1957_v53 = vpop.f32.mrb[68].mxu0 }
 0x1de   : > { %v2157_v42 = vsel %vm2076_vm1, %v1937_v43, -inf  ;;  %v1959_v45 = vpop.f32.mrb[69].mxu0 }
 0x1df   : > { %v2158_v49 = vmax.f32 %v3552_v55, %v2157_v42  ;;  %v1960_v60 = vpop.f32.mrb[70].mxu0 }
 0x1e0   : > { %v1962_v63 = vpop.f32.mrb[71].mxu0 }
 0x1e1   : > { %v1652_v50 = vpop.f32.mrb[60].mxu1 }
 0x1e2   : > { %v1942_v24 = vadd.f32 %v1941_v26, %v1652_v50  ;;  %v1654_v52 = vpop.f32.mrb[61].mxu1 }
 0x1e3   : > { %v1655_v40 = vpop.f32.mrb[62].mxu1 }
 0x1e4   : > { %v2172_v44 = vsel %vm2076_vm1, %v1942_v24, -inf  ;;  %v1945_v57 = vadd.f32 %v1944_v34, %v1655_v40  ;;  %v1657_v58 = vpop.f32.mrb[63].mxu1 }
 0x1e5   : > { %v2173_v62 = vmax.f32 %v3555_v4, %v2172_v44  ;;  %v1965_v3 = vpop.f32.mrb[72].mxu0 }
 0x1e6   : > { %v2187_v54 = vsel %vm2076_vm1, %v1945_v57, -inf  ;;  %v1967_v5 = vpop.f32.mrb[73].mxu0 }
 0x1e7   : > { %v2188_v51 = vmax.f32 %v3558_v6, %v2187_v54  ;;  %v1968_v10 = vpop.f32.mrb[74].mxu0 }
 0x1e8   : > { %v1970_v12 = vpop.f32.mrb[75].mxu0 }
 0x1e9   : > { %v1660_v1 = vpop.f32.mrb[64].mxu1 }
 0x1ea   : > { %v1950_v55 = vadd.f32 %v1949_v41, %v1660_v1  ;;  %v1662_v2 = vpop.f32.mrb[65].mxu1 }
 0x1eb   : > { %v1663_v56 = vpop.f32.mrb[66].mxu1 }
 0x1ec   : > { %v2084_v61 = vsel %vm2076_vm1, %v1950_v55, -inf  ;;  %v1953_v8 = vadd.f32 %v1952_v46, %v1663_v56  ;;  %v1665_v9 = vpop.f32.mrb[67].mxu1 }
 0x1ed   : > { %v3577_v11 = vmax.f32 %v2083_v0, %v2084_v61  ;;  %v1973_v17 = vpop.f32.mrb[76].mxu0 }
 0x1ee   : > { %v2099_v4 = vsel %vm2076_vm1, %v1953_v8, -inf  ;;  %v1975_v20 = vpop.f32.mrb[77].mxu0 }
 0x1ef   : > { %v3580_v14 = vmax.f32 %v2098_v21, %v2099_v4  ;;  %v1976_v26 = vpop.f32.mrb[78].mxu0 }
 0x1f0   : > { %v1978_v0 = vpop.f32.mrb[79].mxu0 }
 0x1f1   : > { %v1668_v15 = vpop.f32.mrb[68].mxu1 }
 0x1f2   : > { %v1958_v6 = vadd.f32 %v1957_v53, %v1668_v15  ;;  %v1670_v16 = vpop.f32.mrb[69].mxu1 }
 0x1f3   : > { %v1671_v59 = vpop.f32.mrb[70].mxu1 }
 0x1f4   : > { %v2114_v13 = vsel %vm2076_vm1, %v1958_v6, -inf  ;;  %v1961_v22 = vadd.f32 %v1960_v60, %v1671_v59  ;;  %v1673_v25 = vpop.f32.mrb[71].mxu1 }
 0x1f5   : > { %v3583_v7 = vmax.f32 %v2113_v35, %v2114_v13  ;;  %v1981_v34 = vpop.f32.mrb[80].mxu0 }
 0x1f6   : > { %v2129_v28 = vsel %vm2076_vm1, %v1961_v22, -inf  ;;  %v1983_v27 = vpop.f32.mrb[81].mxu0 }
 0x1f7   : > { %v3586_v30 = vmax.f32 %v2128_v36, %v2129_v28  ;;  %v1984_v41 = vpop.f32.mrb[82].mxu0 }
 0x1f8   : > { %v1986_v35 = vpop.f32.mrb[83].mxu0 }
 0x1f9   : > { %v1676_v21 = vpop.f32.mrb[72].mxu1 }
 0x1fa   : > { %v1966_v32 = vadd.f32 %v1965_v3, %v1676_v21  ;;  %v1678_v33 = vpop.f32.mrb[73].mxu1 }
 0x1fb   : > { %v1679_v31 = vpop.f32.mrb[74].mxu1 }
 0x1fc   : > { %v2144_v38 = vsel %vm2076_vm1, %v1966_v32, -inf  ;;  %v1969_v29 = vadd.f32 %v1968_v10, %v1679_v31  ;;  %v1681_v39 = vpop.f32.mrb[75].mxu1 }
 0x1fd   : > { %v3589_v18 = vmax.f32 %v2143_v47, %v2144_v38  ;;  %v1989_v46 = vpop.f32.mrb[84].mxu0 }
 0x1fe   : > { %v2159_v19 = vsel %vm2076_vm1, %v1969_v29, -inf  ;;  %v1991_v42 = vpop.f32.mrb[85].mxu0 }
 0x1ff   : > { %v3592_v23 = vmax.f32 %v2158_v49, %v2159_v19  ;;  %v1992_v53 = vpop.f32.mrb[86].mxu0 }
 0x200   : > { %v1994_v47 = vpop.f32.mrb[87].mxu0 }
 0x201   : > { %v1684_v36 = vpop.f32.mrb[76].mxu1 }
 0x202   : > { %v1974_v43 = vadd.f32 %v1973_v17, %v1684_v36  ;;  %v1686_v37 = vpop.f32.mrb[77].mxu1 }
 0x203   : > { %v1687_v48 = vpop.f32.mrb[78].mxu1 }
 0x204   : > { %v2174_v50 = vsel %vm2076_vm1, %v1974_v43, -inf  ;;  %v1977_v24 = vadd.f32 %v1976_v26, %v1687_v48  ;;  %v1689_v52 = vpop.f32.mrb[79].mxu1 }
 0x205   : > { %v3595_v40 = vmax.f32 %v2173_v62, %v2174_v50  ;;  %v1997_v60 = vpop.f32.mrb[88].mxu0 }
 0x206   : > { %v2189_v45 = vsel %vm2076_vm1, %v1977_v24, -inf  ;;  %v1999_v54 = vpop.f32.mrb[89].mxu0 }
 0x207   : > { %v3598_v44 = vmax.f32 %v2188_v51, %v2189_v45  ;;  %v2000_v3 = vpop.f32.mrb[90].mxu0 }
 0x208   : > { %v2002_v62 = vpop.f32.mrb[91].mxu0 }
 0x209   : > { %v1692_v49 = vpop.f32.mrb[80].mxu1 }
 0x20a   : > { %v1982_v57 = vadd.f32 %v1981_v34, %v1692_v49  ;;  %v1694_v58 = vpop.f32.mrb[81].mxu1 }
 0x20b   : > { %v1695_v63 = vpop.f32.mrb[82].mxu1 }
 0x20c   : > { %v2086_v1 = vsel %vm2076_vm1, %v1982_v57, -inf  ;;  %v1985_v55 = vadd.f32 %v1984_v41, %v1695_v63  ;;  %v1697_v2 = vpop.f32.mrb[83].mxu1 }
 0x20d   : > { %v2087_v56 = vmax.f32 %v3577_v11, %v2086_v1  ;;  %v2005_v10 = vpop.f32.mrb[92].mxu0 }
 0x20e   : > { %v2101_v5 = vsel %vm2076_vm1, %v1985_v55, -inf  ;;  %v2007_v4 = vpop.f32.mrb[93].mxu0 }
 0x20f   : > { %v2102_v61 = vmax.f32 %v3580_v14, %v2101_v5  ;;  %v2008_v17 = vpop.f32.mrb[94].mxu0 }
 0x210   : > { %v2010_v20 = vpop.f32.mrb[95].mxu0 }
 0x211   : > { %v1700_v51 = vpop.f32.mrb[84].mxu1 }
 0x212   : > { %v1990_v8 = vadd.f32 %v1989_v46, %v1700_v51  ;;  %v1702_v9 = vpop.f32.mrb[85].mxu1 }
 0x213   : > { %v1703_v12 = vpop.f32.mrb[86].mxu1 }
 0x214   : > { %v2116_v15 = vsel %vm2076_vm1, %v1990_v8, -inf  ;;  %v1993_v6 = vadd.f32 %v1992_v53, %v1703_v12  ;;  %v1705_v16 = vpop.f32.mrb[87].mxu1 }
 0x215   : > { %v2117_v59 = vmax.f32 %v3583_v7, %v2116_v15  ;;  %v2013_v26 = vpop.f32.mrb[96].mxu0 }
 0x216   : > { %v2131_v11 = vsel %vm2076_vm1, %v1993_v6, -inf  ;;  %v2015_v28 = vpop.f32.mrb[97].mxu0 }
 0x217   : > { %v2132_v13 = vmax.f32 %v3586_v30, %v2131_v11  ;;  %v2016_v34 = vpop.f32.mrb[98].mxu0 }
 0x218   : > { %v2018_v27 = vpop.f32.mrb[99].mxu0 }
 0x219   : > { %v1708_v22 = vpop.f32.mrb[88].mxu1 }
 0x21a   : > { %v1998_v14 = vadd.f32 %v1997_v60, %v1708_v22  ;;  %v1710_v25 = vpop.f32.mrb[89].mxu1 }
 0x21b   : > { %v1711_v0 = vpop.f32.mrb[90].mxu1 }
 0x21c   : > { %v2146_v21 = vsel %vm2076_vm1, %v1998_v14, -inf  ;;  %v2001_v32 = vadd.f32 %v2000_v3, %v1711_v0  ;;  %v1713_v33 = vpop.f32.mrb[91].mxu1 }
 0x21d   : > { %v2147_v31 = vmax.f32 %v3589_v18, %v2146_v21  ;;  %v2021_v41 = vpop.f32.mrb[100].mxu0 }
 0x21e   : > { %v2161_v7 = vsel %vm2076_vm1, %v2001_v32, -inf  ;;  %v2023_v19 = vpop.f32.mrb[101].mxu0 }
 0x21f   : > { %v2162_v38 = vmax.f32 %v3592_v23, %v2161_v7  ;;  %v2024_v46 = vpop.f32.mrb[102].mxu0 }
 0x220   : > { %v2026_v42 = vpop.f32.mrb[103].mxu0 }
 0x221   : > { %v1716_v29 = vpop.f32.mrb[92].mxu1 }
 0x222   : > { %v2006_v30 = vadd.f32 %v2005_v10, %v1716_v29  ;;  %v1718_v39 = vpop.f32.mrb[93].mxu1 }
 0x223   : > { %v1719_v35 = vpop.f32.mrb[94].mxu1 }
 0x224   : > { %v2176_v36 = vsel %vm2076_vm1, %v2006_v30, -inf  ;;  %v2009_v43 = vadd.f32 %v2008_v17, %v1719_v35  ;;  %v1721_v37 = vpop.f32.mrb[95].mxu1 }
 0x225   : > { %v2177_v48 = vmax.f32 %v3595_v40, %v2176_v36  ;;  %v2029_v53 = vpop.f32.mrb[104].mxu0 }
 0x226   : > { %v2191_v18 = vsel %vm2076_vm1, %v2009_v43, -inf  ;;  %v2031_v45 = vpop.f32.mrb[105].mxu0 }
 0x227   : > { %v2192_v50 = vmax.f32 %v3598_v44, %v2191_v18  ;;  %v2032_v60 = vpop.f32.mrb[106].mxu0 }
 0x228   : > { %v2034_v54 = vpop.f32.mrb[107].mxu0 }
 0x229   : > { %v1724_v24 = vpop.f32.mrb[96].mxu1 }
 0x22a   : > { %v2014_v23 = vadd.f32 %v2013_v26, %v1724_v24  ;;  %v1726_v52 = vpop.f32.mrb[97].mxu1 }
 0x22b   : > { %v1727_v47 = vpop.f32.mrb[98].mxu1 }
 0x22c   : > { %v2088_v49 = vsel %vm2076_vm1, %v2014_v23, -inf  ;;  %v2017_v57 = vadd.f32 %v2016_v34, %v1727_v47  ;;  %v1729_v58 = vpop.f32.mrb[99].mxu1 }
 0x22d   : > { %v3617_v63 = vmax.f32 %v2087_v56, %v2088_v49  ;;  %v2037_v3 = vpop.f32.mrb[108].mxu0 }
 0x22e   : > { %v2103_v40 = vsel %vm2076_vm1, %v2017_v57, -inf  ;;  %v2039_v5 = vpop.f32.mrb[109].mxu0 }
 0x22f   : > { %v3620_v1 = vmax.f32 %v2102_v61, %v2103_v40  ;;  %v2040_v10 = vpop.f32.mrb[110].mxu0 }
 0x230   : > { %v2042_v56 = vpop.f32.mrb[111].mxu0 }
 0x231   : > { %v1732_v55 = vpop.f32.mrb[100].mxu1 }
 0x232   : > { %v2022_v44 = vadd.f32 %v2021_v41, %v1732_v55  ;;  %v1734_v2 = vpop.f32.mrb[101].mxu1 }
 0x233   : > { %v1735_v62 = vpop.f32.mrb[102].mxu1 }
 0x234   : > { %v2118_v51 = vsel %vm2076_vm1, %v2022_v44, -inf  ;;  %v2025_v8 = vadd.f32 %v2024_v46, %v1735_v62  ;;  %v1737_v9 = vpop.f32.mrb[103].mxu1 }
 0x235   : > { %v3623_v12 = vmax.f32 %v2117_v59, %v2118_v51  ;;  %v2045_v17 = vpop.f32.mrb[112].mxu0 }
 0x236   : > { %v2133_v4 = vsel %vm2076_vm1, %v2025_v8, -inf  ;;  %v2047_v11 = vpop.f32.mrb[113].mxu0 }
 0x237   : > { %v3626_v15 = vmax.f32 %v2132_v13, %v2133_v4  ;;  %v2048_v26 = vpop.f32.mrb[114].mxu0 }
 0x238   : > { %v2050_v59 = vpop.f32.mrb[115].mxu0 }
 0x239   : > { %v1740_v61 = vpop.f32.mrb[104].mxu1 }
 0x23a   : > { %v2030_v6 = vadd.f32 %v2029_v53, %v1740_v61  ;;  %v1742_v16 = vpop.f32.mrb[105].mxu1 }
 0x23b   : > { %v1743_v20 = vpop.f32.mrb[106].mxu1 }
 0x23c   : > { %v2148_v22 = vsel %vm2076_vm1, %v2030_v6, -inf  ;;  %v2033_v14 = vadd.f32 %v2032_v60, %v1743_v20  ;;  %v1745_v25 = vpop.f32.mrb[107].mxu1 }
 0x23d   : > { %v3629_v0 = vmax.f32 %v2147_v31, %v2148_v22  ;;  %v2053_v34 = vpop.f32.mrb[116].mxu0 }
 0x23e   : > { %v2163_v28 = vsel %vm2076_vm1, %v2033_v14, -inf  ;;  %v2055_v7 = vpop.f32.mrb[117].mxu0 }
 0x23f   : > { %v3632_v21 = vmax.f32 %v2162_v38, %v2163_v28  ;;  %v2056_v41 = vpop.f32.mrb[118].mxu0 }
 0x240   : > { %v2058_v35 = vpop.f32.mrb[119].mxu0 }
 0x241   : > { %v1748_v13 = vpop.f32.mrb[108].mxu1 }
 0x242   : > { %v2038_v32 = vadd.f32 %v2037_v3, %v1748_v13  ;;  %v1750_v33 = vpop.f32.mrb[109].mxu1 }
 0x243   : > { %v1751_v27 = vpop.f32.mrb[110].mxu1 }
 0x244   : > { %v2178_v29 = vsel %vm2076_vm1, %v2038_v32, -inf  ;;  %v2041_v30 = vadd.f32 %v2040_v10, %v1751_v27  ;;  %v1753_v39 = vpop.f32.mrb[111].mxu1 }
 0x245   : > { %v3637_v31 = vmax.f32 %v2177_v48, %v2178_v29  ;;  %v2061_v46 = vpop.f32.mrb[120].mxu0  ;;  %v3646_v48 = vld [vmem:[%s3704_s2] ss:$0 sm:$0xff] }
 0x246   : > { %v2193_v19 = vsel %vm2076_vm1, %v2041_v30, -inf  ;;  %v2063_v18 = vpop.f32.mrb[121].mxu0 }
 0x247   : > { %v3640_v38 = vmax.f32 %v2192_v50, %v2193_v19  ;;  %v2064_v53 = vpop.f32.mrb[122].mxu0 }
 0x248   : > { %v2066_v47 = vpop.f32.mrb[123].mxu0 }
 0x249   : > { %v1756_v36 = vpop.f32.mrb[112].mxu1 }
 0x24a   : > { %v2046_v43 = vadd.f32 %v2045_v17, %v1756_v36  ;;  %v1758_v37 = vpop.f32.mrb[113].mxu1 }
 0x24b   : > { %v1759_v42 = vpop.f32.mrb[114].mxu1 }
 0x24c   : > { %v2090_v24 = vsel %vm2076_vm1, %v2046_v43, -inf  ;;  %v2049_v23 = vadd.f32 %v2048_v26, %v1759_v42  ;;  %v1761_v52 = vpop.f32.mrb[115].mxu1 }
 0x24d   : > { %v2091_v50 = vmax.f32 %v3617_v63, %v2090_v24  ;;  %v2069_v55 = vpop.f32.mrb[124].mxu0 }
 0x24e   : > { %v2105_v45 = vsel %vm2076_vm1, %v2049_v23, -inf  ;;  %v2071_v62 = vpop.f32.mrb[125].mxu0 }
 0x24f   : > { %v2204_v49 = vadd.f32 %v3646_v48, %v2091_v50  ;;  %v2106_v57 = vmax.f32 %v3620_v1, %v2105_v45  ;;  %v2072_v8 = vpop.f32.mrb[126].mxu0 }
 0x250   : > { %v2074_v56 = vpop.f32.mrb[127].mxu0 }
 0x251   : > { %v2212_v58 = vmax.f32 %v2204_v49, 0.0  ;;  %v2205_v60 = vadd.f32 %v3646_v48, %v2106_v57  ;;  %v1764_v54 = vpop.f32.mrb[116].mxu1 }
 0x252   : > { %v2054_v63 = vadd.f32 %v2053_v34, %v1764_v54  ;;  %v1766_v40 = vpop.f32.mrb[117].mxu1 }
 0x253   : > { %v2535_v44 = vpack.c.bf16 %v2212_v58, %v2212_v58  ;;  %v2213_v2 = vmax.f32 %v2205_v60, 0.0  ;;  %v1767_v3 = vpop.f32.mrb[118].mxu1 }
 0x254   : > { %v2120_v1 = vsel %vm2076_vm1, %v2054_v63, -inf  ;;  %v2057_v5 = vadd.f32 %v2056_v41, %v1767_v3  ;;  %v1769_v51 = vpop.f32.mrb[119].mxu1 }
 0x255   : > { %2253 = vst.msk [vmem:[%s3656_s23] sm:$0xf] %vm2252_vm2, %v2535_v44  ;;  %v2536_v9 = vpack.c.bf16 %v2213_v2, %v2213_v2  ;;  %v2121_v10 = vmax.f32 %v3623_v12, %v2120_v1 }
 0x256   : > { %v2135_v4 = vsel %vm2076_vm1, %v2057_v5, -inf }
 0x257   : > { %2254 = vst.msk [vmem:[%s3656_s23 + $0x4] sm:$0xf] %vm2252_vm2, %v2536_v9  ;;  %v2206_v61 = vadd.f32 %v3646_v48, %v2121_v10  ;;  %v2136_v6 = vmax.f32 %v3626_v15, %v2135_v4 }
 0x259   : > { %v2214_v16 = vmax.f32 %v2206_v61, 0.0  ;;  %v2207_v17 = vadd.f32 %v3646_v48, %v2136_v6  ;;  %v1772_v20 = vpop.f32.mrb[120].mxu1 }
 0x25a   : > { %v2062_v11 = vadd.f32 %v2061_v46, %v1772_v20  ;;  %v1774_v22 = vpop.f32.mrb[121].mxu1 }
 0x25b   : > { %v2537_v14 = vpack.c.bf16 %v2214_v16, %v2214_v16  ;;  %v2215_v25 = vmax.f32 %v2207_v17, 0.0  ;;  %v1775_v12 = vpop.f32.mrb[122].mxu1 }
 0x25c   : > { %v2150_v26 = vsel %vm2076_vm1, %v2062_v11, -inf  ;;  %v2065_v59 = vadd.f32 %v2064_v53, %v1775_v12  ;;  %v1777_v28 = vpop.f32.mrb[123].mxu1 }
 0x25d   : > { %2255 = vst.msk [vmem:[%s3656_s23 + $0x8] sm:$0xf] %vm2252_vm2, %v2537_v14  ;;  %v2538_v13 = vpack.c.bf16 %v2215_v25, %v2215_v25  ;;  %v2151_v32 = vmax.f32 %v3629_v0, %v2150_v26 }
 0x25e   : > { %v2165_v15 = vsel %vm2076_vm1, %v2065_v59, -inf }
 0x25f   : > { %2256 = vst.msk [vmem:[%s3656_s23 + $0xc] sm:$0xf] %vm2252_vm2, %v2538_v13  ;;  %v2208_v33 = vadd.f32 %v3646_v48, %v2151_v32  ;;  %v2166_v34 = vmax.f32 %v3632_v21, %v2165_v15 }
 0x261   : > { %v2216_v27 = vmax.f32 %v2208_v33, 0.0  ;;  %v2209_v7 = vadd.f32 %v3646_v48, %v2166_v34  ;;  %v1780_v29 = vpop.f32.mrb[124].mxu1 }
 0x262   : > { %v2070_v30 = vadd.f32 %v2069_v55, %v1780_v29  ;;  %v1782_v39 = vpop.f32.mrb[125].mxu1 }
 0x263   : > { %v2539_v41 = vpack.c.bf16 %v2216_v27, %v2216_v27  ;;  %v2217_v35 = vmax.f32 %v2209_v7, 0.0  ;;  %v1783_v0 = vpop.f32.mrb[126].mxu1 }
 0x264   : > { %v2180_v19 = vsel %vm2076_vm1, %v2070_v30, -inf  ;;  %v2073_v36 = vadd.f32 %v2072_v8, %v1783_v0  ;;  %v1785_v43 = vpop.f32.mrb[127].mxu1 }
 0x265   : > { %2257 = vst.msk [vmem:[%s3656_s23 + $0x10] sm:$0xf] %vm2252_vm2, %v2539_v41  ;;  %v2540_v37 = vpack.c.bf16 %v2217_v35, %v2217_v35  ;;  %v2181_v21 = vmax.f32 %v3637_v31, %v2180_v19 }
 0x266   : > { %v2195_v46 = vsel %vm2076_vm1, %v2073_v36, -inf }
 0x267   : > { %2258 = vst.msk [vmem:[%s3656_s23 + $0x14] sm:$0xf] %vm2252_vm2, %v2540_v37  ;;  %v2210_v42 = vadd.f32 %v3646_v48, %v2181_v21  ;;  %v2196_v18 = vmax.f32 %v3640_v38, %v2195_v46 }
 0x269   : > { %v2218_v24 = vmax.f32 %v2210_v42, 0.0  ;;  %v2211_v23 = vadd.f32 %v3646_v48, %v2196_v18 }
 0x26b   : > { %v2541_v52 = vpack.c.bf16 %v2218_v24, %v2218_v24  ;;  %v2219_v53 = vmax.f32 %v2211_v23, 0.0 }
 0x26d   : > { %2259 = vst.msk [vmem:[%s3656_s23 + $0x18] sm:$0xf] %vm2252_vm2, %v2541_v52  ;;  %v2542_v50 = vpack.c.bf16 %v2219_v53, %v2219_v53 }
 0x26f   : > { %2260 = vst.msk [vmem:[%s3656_s23 + $0x1c] sm:$0xf] %vm2252_vm2, %v2542_v50 }
 0x270 PF: > { %p10_p9 = scmp.ge.s32.totalorder %s2913_s16, 4   ;;  %s3706_s12 = smov %s2869_s13 }
 0x271   : > { %s3707_s13 = smov %s2922_s19  ;;  %s3708_s14 = smov %s2913_s16 }
 0x272   :  { %12 = sbr.rel (!%p10_p9) target bundleno = 2 (0x2), region = 90 }

// kernel: forward.5
= control target key start
LH: loop header
LB: loop body
LE: loop exit
PB: predicated region body
PF: predicated region fallthrough
CT: control target
= control target key end

     0   :  { %v293_v28 = vlaneseq  ;;  %v2124_v36 = vmov 1966171168   ;;  %s2614_s0 = inlined_call_operand.vmem [shape: bf16[2,2048], index: 0, kind: input, shape index: {}]   ;;  %s2615_s1 = inlined_call_operand.vmem [shape: bf16[2048,128], index: 1, kind: input, shape index: {}]   ;;  %s2616_s2 = inlined_call_operand.vmem [shape: f32[1,128], index: 2, kind: input, shape index: {}]   ;;  %s2617_s3 = inlined_call_operand.vmem [shape: bf16[128,128], index: 3, kind: input, shape index: {}]   ;;  %s2618_s4 = inlined_call_operand.vmem [shape: f32[1,128], index: 4, kind: input, shape index: {}]   ;;  %s2619_s5 = inlined_call_operand.hbm [shape: f32[2,128], index: 5, kind: output, shape index: {}]  }
   0x1   :  { %v1962_v0 = vld [vmem:[%s2615_s1 + $0x40] sm:$0xff]   ;;  %v1966_v4 = vld [vmem:[%s2615_s1 + $0x48] sm:$0xff]   ;;  %v1970_v8 = vld [vmem:[%s2615_s1 + $0x50] sm:$0xff]   ;;  %v291_v37 = vunpack.c.l.s4 %v2124_v36 }
   0x2   :  { %v1963_v1 = vld [vmem:[%s2615_s1 + $0xc0] sm:$0xff]   ;;  %1754 = vmatprep.subr.bf16.mxu0 %v1962_v0  ;;  %v1967_v5 = vld [vmem:[%s2615_s1 + $0xc8] sm:$0xff]   ;;  %v1971_v9 = vld [vmem:[%s2615_s1 + $0xd0] sm:$0xff]   ;;  %v294_v33 = vshrl.u32 %v293_v28, 7 }
   0x3   :  { %v1964_v2 = vld [vmem:[%s2615_s1] sm:$0xff]   ;;  %1776 = vmatprep.subr.bf16.mxu1 %v1963_v1  ;;  %v1968_v6 = vld [vmem:[%s2615_s1 + $0x8] sm:$0xff]   ;;  %v1972_v10 = vld [vmem:[%s2615_s1 + $0x10] sm:$0xff]   ;;  %v292_v40 = vunpack.c.0.s8 %v291_v37 }
   0x4   :  { %v1965_v3 = vld [vmem:[%s2615_s1 + $0x80] sm:$0xff]   ;;  %1755 = vmatpush3.bf16.msra.mxu0 %v1964_v2  ;;  %v1969_v7 = vld [vmem:[%s2615_s1 + $0x88] sm:$0xff]   ;;  %v1973_v11 = vld [vmem:[%s2615_s1 + $0x90] sm:$0xff]  }
   0x5   :  { %1777 = vmatpush3.bf16.msra.mxu1 %v1965_v3  ;;  %1756 = vmatprep.subr.bf16.mxu0 %v1966_v4  ;;  %v1974_v12 = vld [vmem:[%s2615_s1 + $0x58] sm:$0xff]   ;;  %v1978_v16 = vld [vmem:[%s2615_s1 + $0x60] sm:$0xff]   ;;  %v1982_v20 = vld [vmem:[%s2615_s1 + $0x68] sm:$0xff]   ;;  %v2263_v41 = vsub.s32 %v292_v40, %v294_v33 }
   0x6   :  { %1778 = vmatprep.subr.bf16.mxu1 %v1967_v5  ;;  %v1975_v13 = vld [vmem:[%s2615_s1 + $0xd8] sm:$0xff]   ;;  %v1979_v17 = vld [vmem:[%s2615_s1 + $0xe0] sm:$0xff]   ;;  %v1983_v21 = vld [vmem:[%s2615_s1 + $0xe8] sm:$0xff]  }
   0x7   :  { %v1976_v14 = vld [vmem:[%s2615_s1 + $0x18] sm:$0xff]   ;;  %v1980_v18 = vld [vmem:[%s2615_s1 + $0x20] sm:$0xff]   ;;  %v1984_v22 = vld [vmem:[%s2615_s1 + $0x28] sm:$0xff]  }
   0x8   :  { %1757 = vmatpush3.bf16.msra.mxu0 %v1968_v6  ;;  %v1977_v15 = vld [vmem:[%s2615_s1 + $0x98] sm:$0xff]   ;;  %v1981_v19 = vld [vmem:[%s2615_s1 + $0xa0] sm:$0xff]   ;;  %v1985_v23 = vld [vmem:[%s2615_s1 + $0xa8] sm:$0xff]  }
   0x9   :  { %1779 = vmatpush3.bf16.msra.mxu1 %v1969_v7  ;;  %1758 = vmatprep.subr.bf16.mxu0 %v1970_v8  ;;  %v1986_v24 = vld [vmem:[%s2615_s1 + $0x70] sm:$0xff]   ;;  %v1990_v29 = vld [vmem:[%s2615_s1 + $0x78] sm:$0xff]   ;;  %v22_v34 = vld [vmem:[%s2614_s0] sm:$0xff] }
   0xa   :  { %1780 = vmatprep.subr.bf16.mxu1 %v1971_v9  ;;  %v1987_v25 = vld [vmem:[%s2615_s1 + $0xf0] sm:$0xff]   ;;  %v1991_v30 = vld [vmem:[%s2615_s1 + $0xf8] sm:$0xff]   ;;  %v1995_v35 = vld [vmem:[%s2615_s1 + $0x140] sm:$0xff]   ;;  %v289_v39 = vcombine.high %v22_v34, %v22_v34  ;;  %v296_v42 = vrot.slane %v22_v34, %v2263_v41 }
   0xb   :  { %v1988_v26 = vld [vmem:[%s2615_s1 + $0x30] sm:$0xff]   ;;  %v1992_v31 = vld [vmem:[%s2615_s1 + $0x38] sm:$0xff]   ;;  %v1996_v38 = vld [vmem:[%s2615_s1 + $0x1c0] sm:$0xff]  }
   0xc   :  { %1759 = vmatpush3.bf16.msra.mxu0 %v1972_v10  ;;  %v1989_v27 = vld [vmem:[%s2615_s1 + $0xb0] sm:$0xff]   ;;  %v1993_v32 = vld [vmem:[%s2615_s1 + $0xb8] sm:$0xff]   ;;  %v2267_v43 = vrot.slane %v289_v39, %v2263_v41  ;;  %v304_v44 = vcombine.high %v296_v42, %v296_v42  ;;  %v312_v45 = vrot.slane %v296_v42, %v2263_v41  ;;  %v1997_v47 = vld [vmem:[%s2615_s1 + $0x100] sm:$0xff]  }
   0xd   :  { %1781 = vmatpush3.bf16.msra.mxu1 %v1973_v11  ;;  %1760 = vmatprep.subr.bf16.mxu0 %v1974_v12  ;;  %v1998_v49 = vld [vmem:[%s2615_s1 + $0x180] sm:$0xff]   ;;  %v1999_v52 = vld [vmem:[%s2615_s1 + $0x148] sm:$0xff]   ;;  %v2003_v58 = vld [vmem:[%s2615_s1 + $0x150] sm:$0xff]  }
   0xe   :  { %1782 = vmatprep.subr.bf16.mxu1 %v1975_v13  ;;  %v305_v46 = vcombine.high %v2267_v43, %v2267_v43  ;;  %v326_v48 = vrot.slane %v304_v44, %v2263_v41  ;;  %v334_v51 = vcombine.high %v312_v45, %v312_v45  ;;  %v2000_v54 = vld [vmem:[%s2615_s1 + $0x1c8] sm:$0xff]   ;;  %v2004_v59 = vld [vmem:[%s2615_s1 + $0x1d0] sm:$0xff]   ;;  %v2007_v62 = vld [vmem:[%s2615_s1 + $0x158] sm:$0xff]  }
   0xf   :  { %v2001_v55 = vld [vmem:[%s2615_s1 + $0x108] sm:$0xff]   ;;  %v2005_v60 = vld [vmem:[%s2615_s1 + $0x110] sm:$0xff]   ;;  %v2008_v63 = vld [vmem:[%s2615_s1 + $0x1d8] sm:$0xff]  }
  0x10   :  { %1761 = vmatpush3.bf16.msra.mxu0 %v1976_v14  ;;  %v333_v50 = vrot.slane %v305_v46, %v2263_v41  ;;  %1203 = vmatprep.mubr.bf16.mxu0 %v326_v48  ;;  %v336_v53 = vcombine.high %v326_v48, %v326_v48  ;;  %v2002_v57 = vld [vmem:[%s2615_s1 + $0x188] sm:$0xff]   ;;  %v2006_v61 = vld [vmem:[%s2615_s1 + $0x190] sm:$0xff]   ;;  %v2009_v0 = vld [vmem:[%s2615_s1 + $0x118] sm:$0xff]  }
  0x11   :  { %1783 = vmatpush3.bf16.msra.mxu1 %v1977_v15  ;;  %1762 = vmatprep.subr.bf16.mxu0 %v1978_v16  ;;  %v2010_v1 = vld [vmem:[%s2615_s1 + $0x198] sm:$0xff]   ;;  %v2011_v2 = vld [vmem:[%s2615_s1 + $0x160] sm:$0xff]   ;;  %v2015_v6 = vld [vmem:[%s2615_s1 + $0x168] sm:$0xff]  }
  0x12   :  { %1784 = vmatprep.subr.bf16.mxu1 %v1979_v17  ;;  %v337_v56 = vcombine.high %v333_v50, %v333_v50  ;;  %1243 = vmatprep.mubr.bf16.mxu1 %v336_v53  ;;  %v2012_v3 = vld [vmem:[%s2615_s1 + $0x1e0] sm:$0xff]   ;;  %v2016_v7 = vld [vmem:[%s2615_s1 + $0x1e8] sm:$0xff]   ;;  %v2019_v10 = vld [vmem:[%s2615_s1 + $0x170] sm:$0xff]  }
  0x13   :  { %v2013_v4 = vld [vmem:[%s2615_s1 + $0x120] sm:$0xff]   ;;  %v2017_v8 = vld [vmem:[%s2615_s1 + $0x128] sm:$0xff]   ;;  %v2020_v11 = vld [vmem:[%s2615_s1 + $0x1f0] sm:$0xff]  }
  0x14   :  { %1763 = vmatpush3.bf16.msra.mxu0 %v1980_v18  ;;  %v2014_v5 = vld [vmem:[%s2615_s1 + $0x1a0] sm:$0xff]   ;;  %v2018_v9 = vld [vmem:[%s2615_s1 + $0x1a8] sm:$0xff]   ;;  %v2021_v12 = vld [vmem:[%s2615_s1 + $0x130] sm:$0xff]   ;;  %v319_v18 = vrot.slane %v2267_v43, %v2263_v41 }
  0x15   :  { %1785 = vmatpush3.bf16.msra.mxu1 %v1981_v19  ;;  %1764 = vmatprep.subr.bf16.mxu0 %v1982_v20  ;;  %v2022_v13 = vld [vmem:[%s2615_s1 + $0x1b0] sm:$0xff]   ;;  %v2023_v14 = vld [vmem:[%s2615_s1 + $0x178] sm:$0xff]   ;;  %v2027_v19 = vld [vmem:[%s2615_s1 + $0x240] sm:$0xff]  }
  0x16   :  { %1786 = vmatprep.subr.bf16.mxu1 %v1983_v21  ;;  %v2024_v15 = vld [vmem:[%s2615_s1 + $0x1f8] sm:$0xff]   ;;  %v2028_v20 = vld [vmem:[%s2615_s1 + $0x2c0] sm:$0xff]   ;;  %v2035_v28 = vld [vmem:[%s2615_s1 + $0x250] sm:$0xff]  }
  0x17   :  { %v2025_v16 = vld [vmem:[%s2615_s1 + $0x138] sm:$0xff]   ;;  %v2029_v21 = vld [vmem:[%s2615_s1 + $0x200] sm:$0xff]   ;;  %v2047_v40 = vld [vmem:[%s2615_s1 + $0x268] sm:$0xff]  }
  0x18   :  { %1765 = vmatpush3.bf16.msra.mxu0 %v1984_v22  ;;  %v2026_v17 = vld [vmem:[%s2615_s1 + $0x1b8] sm:$0xff]   ;;  %v2030_v22 = vld [vmem:[%s2615_s1 + $0x280] sm:$0xff]   ;;  %v2048_v42 = vld [vmem:[%s2615_s1 + $0x2e8] sm:$0xff]  }
  0x19   :  { %1787 = vmatpush3.bf16.msra.mxu1 %v1985_v23  ;;  %1766 = vmatprep.subr.bf16.mxu0 %v1986_v24  ;;  %v335_v23 = vcombine.high %v319_v18, %v319_v18  ;;  %v2031_v24 = vld [vmem:[%s2615_s1 + $0x248] sm:$0xff]   ;;  %v2040_v33 = vld [vmem:[%s2615_s1 + $0x2d8] sm:$0xff]   ;;  %v2043_v36 = vld [vmem:[%s2615_s1 + $0x260] sm:$0xff]  }
  0x1a   :  { %1788 = vmatprep.subr.bf16.mxu1 %v1987_v25  ;;  %v2032_v25 = vld [vmem:[%s2615_s1 + $0x2c8] sm:$0xff]   ;;  %v2041_v34 = vld [vmem:[%s2615_s1 + $0x218] sm:$0xff]   ;;  %v2044_v37 = vld [vmem:[%s2615_s1 + $0x2e0] sm:$0xff]  }
  0x1b   :  { %v2046_v39 = vld [vmem:[%s2615_s1 + $0x2a0] sm:$0xff]   ;;  %v2049_v43 = vld [vmem:[%s2615_s1 + $0x228] sm:$0xff]  }
  0x1c   :  { %1767 = vmatpush3.bf16.msra.mxu0 %v1988_v26  ;;  %v2033_v26 = vld [vmem:[%s2615_s1 + $0x208] sm:$0xff]  }
  0x1d   :  { %1789 = vmatpush3.bf16.msra.mxu1 %v1989_v27  ;;  %1768 = vmatprep.subr.bf16.mxu0 %v1990_v29  ;;  %v2034_v27 = vld [vmem:[%s2615_s1 + $0x288] sm:$0xff]   ;;  %v2036_v29 = vld [vmem:[%s2615_s1 + $0x2d0] sm:$0xff]  }
  0x1e   :  { %1790 = vmatprep.subr.bf16.mxu1 %v1991_v30  ;;  %v2037_v30 = vld [vmem:[%s2615_s1 + $0x210] sm:$0xff]   ;;  %v2050_v44 = vld [vmem:[%s2615_s1 + $0x2a8] sm:$0xff]  }
  0x1f   :  { %v23_v46 = vld [vmem:[%s2614_s0 + $0x8] sm:$0xff] }
  0x20   :  { %1769 = vmatpush3.bf16.msra.mxu0 %v1992_v31  ;;  %v2038_v31 = vld [vmem:[%s2615_s1 + $0x290] sm:$0xff]   ;;  %v345_v48 = vrot.slane %v23_v46, %v2263_v41 }
  0x21   :  { %1791 = vmatpush3.bf16.msra.mxu1 %v1993_v32  ;;  %1798 = vmatprep.subr.bf16.mxu0 %v1995_v35  ;;  %v2039_v32 = vld [vmem:[%s2615_s1 + $0x258] sm:$0xff]  }
  0x22   :  { %1820 = vmatprep.subr.bf16.mxu1 %v1996_v38  ;;  %v2042_v35 = vld [vmem:[%s2615_s1 + $0x298] sm:$0xff]   ;;  %v2045_v38 = vld [vmem:[%s2615_s1 + $0x220] sm:$0xff]  }
  0x23   :  { %1204 = vmatmul.mubr.bf16.vlgmr.msra.gmra.mrb[0].mxu0 %v312_v45  ;;  %v2051_v45 = vld [vmem:[%s2615_s1 + $0x270] sm:$0xff]  }
  0x24   :  { %1799 = vmatpush3.bf16.msra.mxu0 %v1997_v47  ;;  %1244 = vmatmul.mubr.bf16.vlgmr.msra.gmra.mrb[0].mxu1 %v334_v51  ;;  %v2052_v47 = vld [vmem:[%s2615_s1 + $0x2f0] sm:$0xff]  }
  0x25   :  { %1800 = vmatprep.subr.bf16.mxu0 %v1999_v52  ;;  %1821 = vmatpush3.bf16.msra.mxu1 %v1998_v49  ;;  %v338_v49 = vcombine.high %v23_v46, %v23_v46  ;;  %v2054_v51 = vld [vmem:[%s2615_s1 + $0x2b0] sm:$0xff]   ;;  %v353_v52 = vcombine.high %v345_v48, %v345_v48 }
  0x26   :  { %1283 = vmatprep.mubr.bf16.mxu0 %v333_v50  ;;  %1822 = vmatprep.subr.bf16.mxu1 %v2000_v54  ;;  %v2053_v50 = vld [vmem:[%s2615_s1 + $0x230] sm:$0xff]   ;;  %v2055_v54 = vld [vmem:[%s2615_s1 + $0x278] sm:$0xff]  }
  0x27   :  { %1323 = vmatprep.mubr.bf16.mxu1 %v337_v56  ;;  %v2455_v53 = vrot.slane %v338_v49, %v2263_v41  ;;  %v375_v56 = vrot.slane %v353_v52, %v2263_v41 }
  0x28   :  { %1801 = vmatpush3.bf16.msra.mxu0 %v2001_v55  ;;  %v2056_v55 = vld [vmem:[%s2615_s1 + $0x2f8] sm:$0xff]  }
  0x29   :  { %1802 = vmatprep.subr.bf16.mxu0 %v2003_v58  ;;  %1823 = vmatpush3.bf16.msra.mxu1 %v2002_v57  ;;  %v354_v57 = vcombine.high %v2455_v53, %v2455_v53  ;;  %v2057_v58 = vld [vmem:[%s2615_s1 + $0x238] sm:$0xff]  }
  0x2a   :  { %1824 = vmatprep.subr.bf16.mxu1 %v2004_v59  ;;  %v2058_v59 = vld [vmem:[%s2615_s1 + $0x2b8] sm:$0xff]  }
  0x2c   :  { %1803 = vmatpush3.bf16.msra.mxu0 %v2005_v60  ;;  %v385_v60 = vcombine.high %v375_v56, %v375_v56 }
  0x2d   :  { %1804 = vmatprep.subr.bf16.mxu0 %v2007_v62  ;;  %1825 = vmatpush3.bf16.msra.mxu1 %v2006_v61  ;;  %v361_v61 = vrot.slane %v345_v48, %v2263_v41  ;;  %v2059_v62 = vld [vmem:[%s2615_s1 + $0x340] sm:$0xff]  }
  0x2e   :  { %1826 = vmatprep.subr.bf16.mxu1 %v2008_v63  ;;  %v2060_v63 = vld [vmem:[%s2615_s1 + $0x3c0] sm:$0xff]  }
  0x30   :  { %1805 = vmatpush3.bf16.msra.mxu0 %v2009_v0  ;;  %v382_v0 = vrot.slane %v354_v57, %v2263_v41 }
  0x31   :  { %1806 = vmatprep.subr.bf16.mxu0 %v2011_v2  ;;  %1827 = vmatpush3.bf16.msra.mxu1 %v2010_v1  ;;  %v2061_v1 = vld [vmem:[%s2615_s1 + $0x300] sm:$0xff]  }
  0x32   :  { %1828 = vmatprep.subr.bf16.mxu1 %v2012_v3  ;;  %v2062_v2 = vld [vmem:[%s2615_s1 + $0x380] sm:$0xff]   ;;  %v383_v3 = vcombine.high %v361_v61, %v361_v61 }
  0x34   :  { %1807 = vmatpush3.bf16.msra.mxu0 %v2013_v4  ;;  %v2063_v4 = vld [vmem:[%s2615_s1 + $0x348] sm:$0xff]  }
  0x35   :  { %1808 = vmatprep.subr.bf16.mxu0 %v2015_v6  ;;  %1829 = vmatpush3.bf16.msra.mxu1 %v2014_v5  ;;  %v2064_v5 = vld [vmem:[%s2615_s1 + $0x3c8] sm:$0xff]   ;;  %v386_v6 = vcombine.high %v382_v0, %v382_v0 }
  0x36   :  { %1830 = vmatprep.subr.bf16.mxu1 %v2016_v7  ;;  %v2065_v7 = vld [vmem:[%s2615_s1 + $0x308] sm:$0xff]  }
  0x38   :  { %1809 = vmatpush3.bf16.msra.mxu0 %v2017_v8  ;;  %v2066_v8 = vld [vmem:[%s2615_s1 + $0x388] sm:$0xff]  }
  0x39   :  { %1810 = vmatprep.subr.bf16.mxu0 %v2019_v10  ;;  %1831 = vmatpush3.bf16.msra.mxu1 %v2018_v9  ;;  %v2067_v9 = vld [vmem:[%s2615_s1 + $0x350] sm:$0xff]  }
  0x3a   :  { %1832 = vmatprep.subr.bf16.mxu1 %v2020_v11  ;;  %v2068_v10 = vld [vmem:[%s2615_s1 + $0x3d0] sm:$0xff]  }
  0x3b   :  { %v2069_v11 = vld [vmem:[%s2615_s1 + $0x310] sm:$0xff]  }
  0x3c   :  { %1811 = vmatpush3.bf16.msra.mxu0 %v2021_v12  ;;  %v2070_v12 = vld [vmem:[%s2615_s1 + $0x390] sm:$0xff]  }
  0x3d   :  { %1812 = vmatprep.subr.bf16.mxu0 %v2023_v14  ;;  %1833 = vmatpush3.bf16.msra.mxu1 %v2022_v13  ;;  %v2071_v13 = vld [vmem:[%s2615_s1 + $0x358] sm:$0xff]  }
  0x3e   :  { %1834 = vmatprep.subr.bf16.mxu1 %v2024_v15  ;;  %v2072_v14 = vld [vmem:[%s2615_s1 + $0x3d8] sm:$0xff]  }
  0x3f   :  { %v2073_v15 = vld [vmem:[%s2615_s1 + $0x318] sm:$0xff]  }
  0x40   :  { %1813 = vmatpush3.bf16.msra.mxu0 %v2025_v16  ;;  %v2074_v16 = vld [vmem:[%s2615_s1 + $0x398] sm:$0xff]  }
  0x41   :  { %1842 = vmatprep.subr.bf16.mxu0 %v2027_v19  ;;  %1835 = vmatpush3.bf16.msra.mxu1 %v2026_v17  ;;  %v2075_v17 = vld [vmem:[%s2615_s1 + $0x360] sm:$0xff]  }
  0x42   :  { %1864 = vmatprep.subr.bf16.mxu1 %v2028_v20  ;;  %v2077_v19 = vld [vmem:[%s2615_s1 + $0x320] sm:$0xff]  }
  0x43   :  { %1284 = vmatmul.mubr.bf16.vlgmr.msra.gmra.mrb[4].mxu0 %v319_v18  ;;  %v2076_v18 = vld [vmem:[%s2615_s1 + $0x3e0] sm:$0xff]  }
  0x44   :  { %1843 = vmatpush3.bf16.msra.mxu0 %v2029_v21  ;;  %1324 = vmatmul.mubr.bf16.vlgmr.msra.gmra.mrb[4].mxu1 %v335_v23  ;;  %v2078_v20 = vld [vmem:[%s2615_s1 + $0x3a0] sm:$0xff]   ;;  %v2079_v21 = vld [vmem:[%s2615_s1 + $0x368] sm:$0xff]  }
  0x45   :  { %1844 = vmatprep.subr.bf16.mxu0 %v2031_v24  ;;  %1865 = vmatpush3.bf16.msra.mxu1 %v2030_v22  ;;  %v2080_v22 = vld [vmem:[%s2615_s1 + $0x3e8] sm:$0xff]  }
  0x46   :  { %1866 = vmatprep.subr.bf16.mxu1 %v2032_v25  ;;  %1363 = vmatprep.mubr.bf16.mxu0 %v375_v56  ;;  %v2081_v23 = vld [vmem:[%s2615_s1 + $0x328] sm:$0xff]   ;;  %v2083_v25 = vld [vmem:[%s2615_s1 + $0x370] sm:$0xff]  }
  0x47   :  { %1403 = vmatprep.mubr.bf16.mxu1 %v385_v60  ;;  %v2082_v24 = vld [vmem:[%s2615_s1 + $0x3a8] sm:$0xff]  }
  0x48   :  { %1845 = vmatpush3.bf16.msra.mxu0 %v2033_v26  ;;  %v2084_v26 = vld [vmem:[%s2615_s1 + $0x3f0] sm:$0xff]  }
  0x49   :  { %1846 = vmatprep.subr.bf16.mxu0 %v2035_v28  ;;  %1867 = vmatpush3.bf16.msra.mxu1 %v2034_v27  ;;  %v2085_v27 = vld [vmem:[%s2615_s1 + $0x330] sm:$0xff]  }
  0x4a   :  { %1868 = vmatprep.subr.bf16.mxu1 %v2036_v29  ;;  %v2086_v28 = vld [vmem:[%s2615_s1 + $0x3b0] sm:$0xff]   ;;  %v2087_v29 = vld [vmem:[%s2615_s1 + $0x378] sm:$0xff]  }
  0x4c   :  { %1847 = vmatpush3.bf16.msra.mxu0 %v2037_v30  ;;  %v2088_v30 = vld [vmem:[%s2615_s1 + $0x3f8] sm:$0xff]  }
  0x4d   :  { %1848 = vmatprep.subr.bf16.mxu0 %v2039_v32  ;;  %1869 = vmatpush3.bf16.msra.mxu1 %v2038_v31 }
  0x4e   :  { %1870 = vmatprep.subr.bf16.mxu1 %v2040_v33 }
  0x50   :  { %1849 = vmatpush3.bf16.msra.mxu0 %v2041_v34 }
  0x51   :  { %1850 = vmatprep.subr.bf16.mxu0 %v2043_v36  ;;  %1871 = vmatpush3.bf16.msra.mxu1 %v2042_v35 }
  0x52   :  { %1872 = vmatprep.subr.bf16.mxu1 %v2044_v37 }
  0x54   :  { %1851 = vmatpush3.bf16.msra.mxu0 %v2045_v38 }
  0x55   :  { %1852 = vmatprep.subr.bf16.mxu0 %v2047_v40  ;;  %1873 = vmatpush3.bf16.msra.mxu1 %v2046_v39 }
  0x56   :  { %1874 = vmatprep.subr.bf16.mxu1 %v2048_v42 }
  0x58   :  { %1853 = vmatpush3.bf16.msra.mxu0 %v2049_v43 }
  0x59   :  { %1854 = vmatprep.subr.bf16.mxu0 %v2051_v45  ;;  %1875 = vmatpush3.bf16.msra.mxu1 %v2050_v44 }
  0x5a   :  { %1876 = vmatprep.subr.bf16.mxu1 %v2052_v47 }
  0x5c   :  { %1855 = vmatpush3.bf16.msra.mxu0 %v2053_v50 }
  0x5d   :  { %1856 = vmatprep.subr.bf16.mxu0 %v2055_v54  ;;  %1877 = vmatpush3.bf16.msra.mxu1 %v2054_v51 }
  0x5e   :  { %1878 = vmatprep.subr.bf16.mxu1 %v2056_v55 }
  0x60   :  { %1857 = vmatpush3.bf16.msra.mxu0 %v2057_v58 }
  0x61   :  { %1886 = vmatprep.subr.bf16.mxu0 %v2059_v62  ;;  %1879 = vmatpush3.bf16.msra.mxu1 %v2058_v59 }
  0x62   :  { %1908 = vmatprep.subr.bf16.mxu1 %v2060_v63 }
  0x63   :  { %1364 = vmatmul.mubr.bf16.vlgmr.msra.gmra.mrb[8].mxu0 %v361_v61 }
  0x64   :  { %1887 = vmatpush3.bf16.msra.mxu0 %v2061_v1  ;;  %1443 = vmatprep.mubr.bf16.mxu0 %v382_v0 }
  0x65   :  { %1404 = vmatmul.mubr.bf16.vlgmr.msra.gmra.mrb[8].mxu1 %v383_v3  ;;  %1888 = vmatprep.subr.bf16.mxu0 %v2063_v4 }
  0x66   :  { %1909 = vmatpush3.bf16.msra.mxu1 %v2062_v2  ;;  %1483 = vmatprep.mubr.bf16.mxu1 %v386_v6 }
  0x67   :  { %1910 = vmatprep.subr.bf16.mxu1 %v2064_v5 }
  0x68   :  { %1889 = vmatpush3.bf16.msra.mxu0 %v2065_v7 }
  0x69   :  { %1890 = vmatprep.subr.bf16.mxu0 %v2067_v9 }
  0x6a   :  { %1911 = vmatpush3.bf16.msra.mxu1 %v2066_v8 }
  0x6b   :  { %1912 = vmatprep.subr.bf16.mxu1 %v2068_v10 }
  0x6c   :  { %1891 = vmatpush3.bf16.msra.mxu0 %v2069_v11 }
  0x6d   :  { %1892 = vmatprep.subr.bf16.mxu0 %v2071_v13 }
  0x6e   :  { %1913 = vmatpush3.bf16.msra.mxu1 %v2070_v12 }
  0x6f   :  { %1914 = vmatprep.subr.bf16.mxu1 %v2072_v14 }
  0x70   :  { %1893 = vmatpush3.bf16.msra.mxu0 %v2073_v15 }
  0x71   :  { %1894 = vmatprep.subr.bf16.mxu0 %v2075_v17 }
  0x72   :  { %1915 = vmatpush3.bf16.msra.mxu1 %v2074_v16 }
  0x73   :  { %1916 = vmatprep.subr.bf16.mxu1 %v2076_v18 }
  0x74   :  { %1895 = vmatpush3.bf16.msra.mxu0 %v2077_v19 }
  0x75   :  { %1896 = vmatprep.subr.bf16.mxu0 %v2079_v21 }
  0x76   :  { %1917 = vmatpush3.bf16.msra.mxu1 %v2078_v20 }
  0x77   :  { %1918 = vmatprep.subr.bf16.mxu1 %v2080_v22 }
  0x78   :  { %1897 = vmatpush3.bf16.msra.mxu0 %v2081_v23 }
  0x79   :  { %1898 = vmatprep.subr.bf16.mxu0 %v2083_v25 }
  0x7a   :  { %1919 = vmatpush3.bf16.msra.mxu1 %v2082_v24 }
  0x7b   :  { %1920 = vmatprep.subr.bf16.mxu1 %v2084_v26 }
  0x7c   :  { %10 = vsyncpa [#allocation3], 0  ;;  %1899 = vmatpush3.bf16.msra.mxu0 %v2085_v27  ;;  %v2089_v31 = vld [vmem:[%s2615_s1 + $0x338] sm:$0xff]   ;;  %v368_v32 = vrot.slane %v2455_v53, %v2263_v41  ;;  %v2092_v35 = vld [vmem:[%s2617_s3] sm:$0xff]   ;;  %v2125_v36 = vmov 0.0   ;;  %vm2126_vm0 = vmmov 0  }
  0x7d   :  { %1900 = vmatprep.subr.bf16.mxu0 %v2087_v29  ;;  %v2090_v33 = vld [vmem:[%s2615_s1 + $0x3b8] sm:$0xff]   ;;  %v2093_v41 = vld [vmem:[%s2617_s3 + $0x8] sm:$0xff]   ;;  %v2094_v37 = vld [vmem:[%s2617_s3 + $0x10] sm:$0xff]   ;;  %s2127_s16 = smov [#allocation2]  }
  0x7e   :  { %1921 = vmatpush3.bf16.msra.mxu1 %v2086_v28  ;;  %v384_v34 = vcombine.high %v368_v32, %v368_v32  ;;  %v2095_v38 = vld [vmem:[%s2617_s3 + $0x18] sm:$0xff]   ;;  %v2096_v39 = vld [vmem:[%s2617_s3 + $0x20] sm:$0xff]   ;;  %v2097_v40 = vld [vmem:[%s2617_s3 + $0x28] sm:$0xff]   ;;  %s1608_s17 = sshll.u32 %s2127_s16, 4  ;;  %s1609_s17 = int_to_ptr.vmem [resolvable:$true] %s1608_s17 }
  0x7f   :  { %1922 = vmatprep.subr.bf16.mxu1 %v2088_v30  ;;  %v2098_v42 = vld [vmem:[%s2617_s3 + $0x30] sm:$0xff]   ;;  %v2099_v43 = vld [vmem:[%s2617_s3 + $0x38] sm:$0xff]   ;;  %v1616_v45 = vld [vmem:[%s2616_s2] ss:$0 sm:$0xff]  ;;  %s2100_s18 = scalar_lea.vmem %s1609_s17, 32  ;;  %p2105_p1 = scmp.lt.s32.totalorder %s1609_s17, %s1609_s17 }
  0x80   :  { %1901 = vmatpush3.bf16.msra.mxu0 %v2089_v31  ;;  %v1745_v30 = vld [vmem:[%s2618_s4] ss:$0 sm:$0xff]  ;;  %p2101_p0 = scmp.ne.s32.totalorder %s1609_s17, %s2100_s18  ;;  %p2106_p2 = scmp.lt.s32.totalorder %s2100_s18, %s2100_s18 }
  0x81   :  { %1939 = vmatprep.subr.bf16.mxu0 %v2125_v36 }
  0x82   :  { %1923 = vmatpush3.bf16.msra.mxu1 %v2090_v33  ;;  %p2107_p3 = por %p2106_p2, %p2105_p1 }
  0x83   :  { %1444 = vmatmul.mubr.bf16.vlgmr.msra.gmra.mrb[12].mxu0 %v368_v32 }
  0x84   :  { %1940 = vmatpush3.bf16.msra.mxu0 %v2092_v35  ;;  %1955 = vmatprep.mubr.msk.f32.mxu0 %vm2126_vm0, %v2125_v36  ;;  %p2108_p4 = pnand %p2107_p3, %p2101_p0 }
  0x85   :  { %1484 = vmatmul.mubr.bf16.vlgmr.msra.gmra.mrb[12].mxu1 %v384_v34  ;;  %1941 = vmatprep.subr.bf16.mxu0 %v2125_v36 }
  0x88   :  { %1942 = vmatpush3.bf16.msra.mxu0 %v2093_v41 }
  0x89   :  { %1943 = vmatprep.subr.bf16.mxu0 %v2125_v36 }
  0x8c   :  { %1944 = vmatpush3.bf16.msra.mxu0 %v2094_v37 }
  0x8d   :  { %1945 = vmatprep.subr.bf16.mxu0 %v2125_v36 }
  0x90   :  { %1946 = vmatpush3.bf16.msra.mxu0 %v2095_v38 }
  0x91   :  { %1947 = vmatprep.subr.bf16.mxu0 %v2125_v36 }
  0x94   :  { %1948 = vmatpush3.bf16.msra.mxu0 %v2096_v39 }
  0x95   :  { %1949 = vmatprep.subr.bf16.mxu0 %v2125_v36 }
  0x98   :  { %1950 = vmatpush3.bf16.msra.mxu0 %v2097_v40 }
  0x99   :  { %1951 = vmatprep.subr.bf16.mxu0 %v2125_v36 }
  0x9c   :  { %1952 = vmatpush3.bf16.msra.mxu0 %v2098_v42 }
  0x9d   :  { %1953 = vmatprep.subr.bf16.mxu0 %v2125_v36 }
  0xa0   :  { %1954 = vmatpush3.bf16.msra.mxu0 %v2099_v43 }
  0xf6   :  { %v1770_v44 = vpop.f32.mrb[0].mxu0 }
  0xf7   :  { %v1771_v46 = vpop.f32.mrb[1].mxu0  ;;  %v1792_v47 = vpop.f32.mrb[0].mxu1 }
  0xf8   :  { %v1772_v48 = vadd.f32 %v1771_v46, %v1770_v44  ;;  %v1773_v49 = vpop.f32.mrb[2].mxu0  ;;  %v1793_v50 = vpop.f32.mrb[1].mxu1 }
  0xf9   :  { %v1774_v51 = vpop.f32.mrb[3].mxu0  ;;  %v1794_v53 = vadd.f32 %v1793_v50, %v1792_v47  ;;  %v1795_v54 = vpop.f32.mrb[2].mxu1 }
  0xfa   :  { %v1206_v52 = vadd.f32 %v1772_v48, %v1616_v45  ;;  %v1796_v55 = vpop.f32.mrb[3].mxu1 }
  0xfc   :  { %v1246_v56 = vadd.f32 %v1794_v53, %v1206_v52 }
 0x116   :  { %v1814_v57 = vpop.f32.mrb[4].mxu0 }
 0x117   :  { %v1815_v58 = vpop.f32.mrb[5].mxu0  ;;  %v1836_v59 = vpop.f32.mrb[4].mxu1 }
 0x118   :  { %v1816_v60 = vadd.f32 %v1815_v58, %v1814_v57  ;;  %v1817_v61 = vpop.f32.mrb[6].mxu0  ;;  %v1837_v62 = vpop.f32.mrb[5].mxu1 }
 0x119   :  { %v1818_v63 = vpop.f32.mrb[7].mxu0  ;;  %v1838_v1 = vadd.f32 %v1837_v62, %v1836_v59  ;;  %v1839_v2 = vpop.f32.mrb[6].mxu1 }
 0x11a   :  { %v1286_v0 = vadd.f32 %v1816_v60, %v1246_v56  ;;  %v1840_v3 = vpop.f32.mrb[7].mxu1 }
 0x11c   :  { %v1326_v4 = vadd.f32 %v1838_v1, %v1286_v0 }
 0x136   :  { %v1858_v5 = vpop.f32.mrb[8].mxu0 }
 0x137   :  { %v1859_v6 = vpop.f32.mrb[9].mxu0 }
 0x138   :  { %v1880_v7 = vpop.f32.mrb[8].mxu1  ;;  %v1860_v8 = vadd.f32 %v1859_v6, %v1858_v5  ;;  %v1861_v9 = vpop.f32.mrb[10].mxu0 }
 0x139   :  { %v1881_v10 = vpop.f32.mrb[9].mxu1  ;;  %v1862_v11 = vpop.f32.mrb[11].mxu0 }
 0x13a   :  { %v1366_v12 = vadd.f32 %v1860_v8, %v1326_v4  ;;  %v1882_v13 = vadd.f32 %v1881_v10, %v1880_v7  ;;  %v1883_v14 = vpop.f32.mrb[10].mxu1 }
 0x13b   :  { %v1884_v15 = vpop.f32.mrb[11].mxu1 }
 0x13c   :  { %v1406_v16 = vadd.f32 %v1882_v13, %v1366_v12 }
 0x156   :  { %v1902_v17 = vpop.f32.mrb[12].mxu0 }
 0x157   :  { %v1903_v18 = vpop.f32.mrb[13].mxu0 }
 0x158   :  { %v1924_v19 = vpop.f32.mrb[12].mxu1  ;;  %v1904_v20 = vadd.f32 %v1903_v18, %v1902_v17  ;;  %v1905_v21 = vpop.f32.mrb[14].mxu0 }
 0x159   :  { %v1925_v22 = vpop.f32.mrb[13].mxu1  ;;  %v1906_v23 = vpop.f32.mrb[15].mxu0 }
 0x15a   :  { %v1446_v24 = vadd.f32 %v1904_v20, %v1406_v16  ;;  %v1926_v25 = vadd.f32 %v1925_v22, %v1924_v19  ;;  %v1927_v26 = vpop.f32.mrb[14].mxu1 }
 0x15b   :  { %v1928_v27 = vpop.f32.mrb[15].mxu1 }
 0x15c   :  { %v1486_v28 = vadd.f32 %v1926_v25, %v1446_v24 }
 0x15e   :  { %v1491_v29 = vmax.f32 %v1486_v28, 0.0 }
 0x160   :  { %1956 = vmatmul.mubr.f32.vlgmr.msra.gmra.mrb[16].mxu0 %v1491_v29 }
 0x233   :  { %v1597_v31 = vpop.f32.mrb[16].mxu0 }
 0x234   :  { %v1598_v32 = vadd.f32 %v1745_v30, %v1597_v31  ;;  %v1957_v33 = vpop.f32.mrb[17].mxu0 }
 0x236   :  { %1601 = vst [vmem:[#allocation2] sm:$0x3] %v1598_v32 }
 0x237   :  { %2111 = shalt.err (!%p2108_p4)
}
 0x238   :  { %s2112_s21 = scalar_lea.hbm %s2619_s5, 32 }
 0x239   :  { %p2113_p5 = scmp.ne.s32.totalorder %s2619_s5, %s2112_s21  ;;  %p2116_p6 = scmp.lt.u32.totalorder %s2112_s21, %s2619_s5 }
 0x23b   :  { %p2118_p7 = pnand %p2116_p6, %p2113_p5 }
 0x23d   :  { %2121 = shalt.err (!%p2118_p7)
}
 0x23e   :  { %1611 = dma.vmem_to_hbm [thread:$0]  %s1609_s17, 32, %s2619_s5, [#allocation3]  }
 0x23f   :  { %2122 = dma.done.wait [#allocation3], 32  }
 0x240   :  { %2123 = vsyncadd [#allocation3], 4294967264 }
 0x241   :  { %1615 = vsyncpa [#allocation3], 1 }

</bundles_post_ra>
